<compile_context>
chip_gen: v5e
topology: v5e:2x2
jax: 0.10.0
libtpu: 0.0.40
codegen_flags: <defaults>
</compile_context>

<pallas_src>
import math

import numpy as np
import jax
import jax.numpy as jnp
from jax.experimental import pallas as pl
from jax.experimental.pallas import tpu as pltpu

# ---------------- hyper-parameters (stand-ins for `args`) ----------------
MAP_DEPTH = 4            # args.map_depth          -> in_channels
HEADING_STATES = 4       # args.heading_states     -> out_channels
OBS_EMBEDDING = 32       # obs_embedding_size
HC1, HB1, HC2 = 48, 24, 128
MIN_OBS_LIKELIHOOD = 0.005
BELIEF_DOWNSAMPLE = 1    # args.belief_downsample_factor (1 => no max-pool)
K, STRIDE, PAD = 3, 2, 1
LRELU_SLOPE = 0.01       # nn.LeakyReLU() default
IN_EPS = 1e-5            # nn.InstanceNorm2d default eps (affine=False)
NORM_EPS = 1e-12         # F.normalize eps

COMPUTE_DTYPE = jnp.bfloat16   # MXU operand dtype; accumulation & epilogues stay fp32


# ======================= trace-time routing constants (numpy) =======================

def _conv_route_cat(n, h_in, w_in, k, stride, pad):
    """R[o, t*M_in + i] = 1 iff input position i is tap t of conv output o (0 if padded)."""
    h_out = (h_in + 2 * pad - k) // stride + 1
    w_out = (w_in + 2 * pad - k) // stride + 1
    p_in, p_out = h_in * w_in, h_out * w_out
    m_in, m_out = n * p_in, n * p_out
    r = np.zeros((m_out, k * k * m_in), np.float32)
    for kh in range(k):
        for kw in range(k):
            t = kh * k + kw
            for b in range(n):
                for oh in range(h_out):
                    ih = stride * oh + kh - pad
                    if not (0 <= ih < h_in):
                        continue
                    for ow in range(w_out):
                        iw = stride * ow + kw - pad
                        if not (0 <= iw < w_in):
                            continue
                        r[b * p_out + oh * w_out + ow,
                          t * m_in + b * p_in + ih * w_in + iw] = 1.0
    return r, h_out, w_out


def _deconv_route_cat(n, h_in, w_in, k, stride, pad, out_pad):
    """R[o, t*M_in + i] = 1 iff ConvTranspose2d input i scatters onto output o under tap t."""
    h_out = (h_in - 1) * stride - 2 * pad + k + out_pad
    w_out = (w_in - 1) * stride - 2 * pad + k + out_pad
    p_in, p_out = h_in * w_in, h_out * w_out
    m_in, m_out = n * p_in, n * p_out
    r = np.zeros((m_out, k * k * m_in), np.float32)
    for kh in range(k):
        for kw in range(k):
            t = kh * k + kw
            for b in range(n):
                for ih in range(h_in):
                    oh = stride * ih + kh - pad
                    if not (0 <= oh < h_out):
                        continue
                    for iw in range(w_in):
                        ow = stride * iw + kw - pad
                        if not (0 <= ow < w_out):
                            continue
                        r[b * p_out + oh * w_out + ow,
                          t * m_in + b * p_in + ih * w_in + iw] = 1.0
    return r, h_out, w_out


# ======================= the fused kernel =======================

def _obs_model_kernel(
    patches_ref, obs_ref,
    w1_ref, r2_ref, w2_ref, r3_ref, w3_ref,
    lw_ref,
    t1_ref, w4a_ref, w4b_ref,
    t2_ref, w5a_ref, w5b_ref,
    w6at_ref, w6bt_ref,
    bias_ref,
    t3t_hbm,                 # memory_space=pl.ANY (raw HBM ref, DMA'd manually)
    out_ref,
    t3_vmem, dma_sem,        # scratch
):
    cd = COMPUTE_DTYPE
    f32 = jnp.float32
    n = obs_ref.shape[0]
    nt = K * K

    # Prefetch the big decoder scatter matrix (HBM -> VMEM) behind the encoder compute.
    t3_copy = pltpu.make_async_copy(t3t_hbm, t3_vmem, dma_sem.at[0])
    t3_copy.start()

    def leaky(v):
        return jnp.where(v >= 0, v, LRELU_SLOPE * v)

    def inorm(v):
        # InstanceNorm2d(affine=False) over each sample's spatial rows; stats on VPU/XLU.
        m, c = v.shape
        p = m // n
        parts = []
        for i in range(n):
            vi = v[i * p:(i + 1) * p, :]
            mu = jnp.mean(vi, axis=0, keepdims=True)
            vc = vi - mu
            var = jnp.mean(vc * vc, axis=0, keepdims=True)
            parts.append(vc * jax.lax.rsqrt(var + IN_EPS))
        return jnp.concatenate(parts, axis=0)

    def tap_stack(y, c_out):
        # [M_in, 9*c_out] f32 -> [9*M_in, c_out] bf16; row order (tap-major) matches the
        # stacked routing matrices.  (0/1 routing GEMM sums taps with f32 accumulation.)
        return jnp.concatenate(
            [y[:, t * c_out:(t + 1) * c_out] for t in range(nt)], axis=0).astype(cd)

    # ---------------- encoder: conv -> LeakyReLU -> InstanceNorm ----------------
    # conv1: gather (im2col) was done host-side -> a single GEMM here.
    x1 = inorm(leaky(jnp.dot(patches_ref[...], w1_ref[...],
                             preferred_element_type=f32) + bias_ref[0:1, :HC1]))
    x1c = x1.astype(cd)

    # conv2: one stacked weight GEMM + one stacked routing GEMM.
    y2 = jnp.dot(x1c, w2_ref[...], preferred_element_type=f32)
    x2 = inorm(leaky(jnp.dot(r2_ref[...], tap_stack(y2, HC1),
                             preferred_element_type=f32) + bias_ref[1:2, :HC1]))
    x2c = x2.astype(cd)

    # conv3 (bottleneck conv, no norm).
    y3 = jnp.dot(x2c, w3_ref[...], preferred_element_type=f32)
    x3 = leaky(jnp.dot(r3_ref[...], tap_stack(y3, HC2),
                       preferred_element_type=f32) + bias_ref[2:3, :HC2])
    x3c = x3.astype(cd)

    # ---------------- language bottleneck: F.normalize -> Linear -> tile ----------------
    obs = obs_ref[...]
    nrm = jnp.sqrt(jnp.sum(obs * obs, axis=-1, keepdims=True))
    e = obs / jnp.maximum(nrm, NORM_EPS)
    emb = jnp.dot(e, lw_ref[...], preferred_element_type=f32) + bias_ref[3:4, :HB1]
    p3 = x3c.shape[0] // n
    emb_rep = jnp.concatenate(                      # tile per-sample rows (no MXU)
        [emb[i:i + 1, :] for i in range(n) for _ in range(p3)], axis=0).astype(cd)

    # ---------------- decoder: "concat + deconv" as split-K stacked GEMMs ----------------
    yd1 = (jnp.dot(x3c, w4a_ref[...], preferred_element_type=f32)
           + jnp.dot(emb_rep, w4b_ref[...], preferred_element_type=f32))
    x4 = inorm(leaky(jnp.dot(t1_ref[...], tap_stack(yd1, HC1),
                             preferred_element_type=f32) + bias_ref[4:5, :HC1]))
    x4c = x4.astype(cd)

    yd2 = (jnp.dot(x2c, w5a_ref[...], preferred_element_type=f32)
           + jnp.dot(x4c, w5b_ref[...], preferred_element_type=f32))
    x5 = inorm(leaky(jnp.dot(t2_ref[...], tap_stack(yd2, HB1),
                             preferred_element_type=f32) + bias_ref[5:6, :HB1]))

    # ---- final deconv computed TRANSPOSED so the output store is lane-dense ----
    x1t = jnp.transpose(x1).astype(cd)              # [HC1, M1]
    x5t = jnp.transpose(x5).astype(cd)              # [HB1, M1]
    mt = (jnp.dot(w6at_ref[...], x1t, preferred_element_type=f32)
          + jnp.dot(w6bt_ref[...], x5t, preferred_element_type=f32))   # [9*Cout, M1]
    mt_cat = jnp.concatenate(                       # [Cout, 9*M1]
        [mt[t * HEADING_STATES:(t + 1) * HEADING_STATES, :] for t in range(nt)],
        axis=1).astype(cd)

    t3_copy.wait()
    y_t = jnp.dot(mt_cat, t3_vmem[...], preferred_element_type=f32)     # [Cout, N*H*W]
    y_t = y_t + bias_ref[3:3 + HEADING_STATES, 127:128]                 # per-channel bias

    # LogSigmoid (LingUnet activation) + torch.clamp(min=log(min_obs_likelihood)).
    ls = jnp.minimum(y_t, 0.0) - jnp.log1p(jnp.exp(-jnp.abs(y_t)))
    out_ref[...] = jnp.maximum(ls, math.log(MIN_OBS_LIKELIHOOD))


# ======================= parameters =======================

def _conv_init(key, cout, cin, k):
    wk, bk = jax.random.split(key)
    fan_in = cin * k * k
    w = jax.random.normal(wk, (cout, cin, k, k), jnp.float32) / jnp.sqrt(fan_in)
    b = 0.01 * jax.random.normal(bk, (cout,), jnp.float32)
    return w, b


def _deconv_init(key, cin, cout, k):
    wk, bk = jax.random.split(key)
    fan_in = cin * k * k
    w = jax.random.normal(wk, (cin, cout, k, k), jnp.float32) / jnp.sqrt(fan_in)
    b = 0.01 * jax.random.normal(bk, (cout,), jnp.float32)
    return w, b


def _linear_init(key, out_f, in_f):
    wk, bk = jax.random.split(key)
    w = jax.random.normal(wk, (out_f, in_f), jnp.float32) / jnp.sqrt(in_f)
    b = 0.01 * jax.random.normal(bk, (out_f,), jnp.float32)
    return w, b


def init_params(key):
    ks = jax.random.split(key, 7)
    p = {}
    p["conv1_w"], p["conv1_b"] = _conv_init(ks[0], HC1, MAP_DEPTH, K)
    p["conv2_w"], p["conv2_b"] = _conv_init(ks[1], HC1, HC1, K)
    p["conv3_w"], p["conv3_b"] = _conv_init(ks[2], HC2, HC1, K)
    p["lang_w"], p["lang_b"] = _linear_init(ks[3], HB1, OBS_EMBEDDING)
    p["deconv1_w"], p["deconv1_b"] = _deconv_init(ks[4], HC2 + HB1, HC1, K)
    p["deconv2_w"], p["deconv2_b"] = _deconv_init(ks[5], HC1 + HC1, HB1, K)
    p["deconv3_w"], p["deconv3_b"] = _deconv_init(ks[6], HC1 + HB1, HEADING_STATES, K)
    return p


# ======================= ObservationModel forward =======================

def observation_model_forward(params, obs, semantic_map):
    """obs: [N, OBS_EMBEDDING] f32, semantic_map: [N, MAP_DEPTH, H, W] (NCHW) f32."""
    p = params
    n, cin, h, w = semantic_map.shape
    assert h % 8 == 0 and w % 8 == 0, "spatial dims must survive 3 stride-2 stages"
    cd = COMPUTE_DTYPE
    f32 = jnp.float32
    nt = K * K

    h1, w1_ = h // 2, w // 2
    h2, w2_ = h1 // 2, w1_ // 2
    h3, w3_ = h2 // 2, w2_ // 2
    m0, m1, m2, m3 = n * h * w, n * h1 * w1_, n * h2 * w2_, n * h3 * w3_

    # ---- conv1's gather as a host-side im2col on the raw input (cheap XLA ops) ----
    x_nhwc = jnp.transpose(semantic_map, (0, 2, 3, 1)).astype(cd)
    xp = jnp.pad(x_nhwc, ((0, 0), (PAD, PAD), (PAD, PAD), (0, 0)))
    cols = []
    for kh in range(K):
        for kw in range(K):
            sl = xp[:, kh:kh + STRIDE * h1:STRIDE, kw:kw + STRIDE * w1_:STRIDE, :]
            cols.append(sl.reshape(m1, cin))
    patches0 = jnp.concatenate(cols, axis=1)                       # [M1, 9*Cin] bf16

    # ---- static 0/1 routing constants (numpy, trace time) ----
    r2_np, _, _ = _conv_route_cat(n, h1, w1_, K, STRIDE, PAD)          # [M2, 9*M1]
    r3_np, _, _ = _conv_route_cat(n, h2, w2_, K, STRIDE, PAD)          # [M3, 9*M2]
    t1_np, dh1, dw1 = _deconv_route_cat(n, h3, w3_, K, STRIDE, PAD, 1) # [M2, 9*M3]
    t2_np, dh2, dw2 = _deconv_route_cat(n, h2, w2_, K, STRIDE, PAD, 1) # [M1, 9*M2]
    t3_np, dh3, dw3 = _deconv_route_cat(n, h1, w1_, K, STRIDE, PAD, 1) # [M0, 9*M1]
    assert (dh1, dw1) == (h2, w2_) and (dh2, dw2) == (h1, w1_) and (dh3, dw3) == (h, w)
    t3t_np = np.ascontiguousarray(t3_np.T)                             # [9*M1, M0]

    # ---- weight re-layouts (tap-stacked, tiny XLA ops) ----
    w1flat = jnp.transpose(p["conv1_w"], (2, 3, 1, 0)).reshape(nt * cin, HC1).astype(cd)
    w2cat = jnp.transpose(p["conv2_w"], (1, 2, 3, 0)).reshape(HC1, nt * HC1).astype(cd)
    w3cat = jnp.transpose(p["conv3_w"], (1, 2, 3, 0)).reshape(HC1, nt * HC2).astype(cd)
    w4a = jnp.transpose(p["deconv1_w"][:HC2], (0, 2, 3, 1)).reshape(HC2, nt * HC1).astype(cd)
    w4b = jnp.transpose(p["deconv1_w"][HC2:], (0, 2, 3, 1)).reshape(HB1, nt * HC1).astype(cd)
    w5a = jnp.transpose(p["deconv2_w"][:HC1], (0, 2, 3, 1)).reshape(HC1, nt * HB1).astype(cd)
    w5b = jnp.transpose(p["deconv2_w"][HC1:], (0, 2, 3, 1)).reshape(HC1, nt * HB1).astype(cd)
    w6at = jnp.transpose(p["deconv3_w"][:HC1], (2, 3, 1, 0)).reshape(
        nt * HEADING_STATES, HC1).astype(cd)
    w6bt = jnp.transpose(p["deconv3_w"][HC1:], (2, 3, 1, 0)).reshape(
        nt * HEADING_STATES, HB1).astype(cd)

    # ---- all biases packed into a single [8, 128] f32 array (1 DMA instead of 7) ----
    bias_pack = jnp.zeros((8, 128), f32)
    bias_pack = bias_pack.at[0, :HC1].set(p["conv1_b"])
    bias_pack = bias_pack.at[1, :HC1].set(p["conv2_b"])
    bias_pack = bias_pack.at[2, :HC2].set(p["conv3_b"])
    bias_pack = bias_pack.at[3, :HB1].set(p["lang_b"])
    bias_pack = bias_pack.at[4, :HC1].set(p["deconv1_b"])
    bias_pack = bias_pack.at[5, :HB1].set(p["deconv2_b"])
    bias_pack = bias_pack.at[3:3 + HEADING_STATES, 127].set(p["deconv3_b"])  # column slot

    args = (
        patches0, obs.astype(f32),
        w1flat, jnp.asarray(r2_np, cd), w2cat, jnp.asarray(r3_np, cd), w3cat,
        p["lang_w"].T.astype(f32),
        jnp.asarray(t1_np, cd), w4a, w4b,
        jnp.asarray(t2_np, cd), w5a, w5b,
        w6at, w6bt,
        bias_pack,
        jnp.asarray(t3t_np, cd),          # big scatter matrix -> stays in HBM (pl.ANY)
    )

    vmem = pl.BlockSpec(memory_space=pltpu.MemorySpace.VMEM)
    in_specs = [vmem] * (len(args) - 1) + [pl.BlockSpec(memory_space=pl.ANY)]

    y_t = pl.pallas_call(
        _obs_model_kernel,
        out_shape=jax.ShapeDtypeStruct((HEADING_STATES, m0), f32),
        in_specs=in_specs,
        out_specs=vmem,
        scratch_shapes=[pltpu.VMEM((nt * m1, m0), cd),
                        pltpu.SemaphoreType.DMA((1,))],
        compiler_params=pltpu.CompilerParams(vmem_limit_bytes=32 * 1024 * 1024),
    )(*args)

    # [Cout, N*H*W] (lane-dense store) -> NCHW on the host.
    return jnp.transpose(y_t.reshape(HEADING_STATES, n, h, w), (1, 0, 2, 3))


# ======================= main =======================

if __name__ == "__main__":
    key = jax.random.PRNGKey(0)
    kp, kobs, kmap = jax.random.split(key, 3)

    params = init_params(kp)
    obs = jax.random.normal(kobs, (2, OBS_EMBEDDING), jnp.float32)
    semantic_map = jax.random.normal(kmap, (2, MAP_DEPTH, 16, 16), jnp.float32)

    out = jax.jit(observation_model_forward)(params, obs, semantic_map)
    out = jax.block_until_ready(out)

    assert out.shape == (2, HEADING_STATES, 16, 16), out.shape
    assert bool(jnp.all(jnp.isfinite(out)))
    assert bool(jnp.all(out >= math.log(MIN_OBS_LIKELIHOOD) - 1e-5))
    assert bool(jnp.all(out <= 0.0))
    print("KERNEL_OK")
</pallas_src>

<mosaic_0001>
module attributes {stable_mosaic.version = 11 : i64} {
  func.func @_obs_model_kernel(%arg0: memref<128x36xbf16, #tpu.memory_space<vmem>>, %arg1: memref<2x32xf32, #tpu.memory_space<vmem>>, %arg2: memref<36x48xbf16, #tpu.memory_space<vmem>>, %arg3: memref<32x1152xbf16, #tpu.memory_space<vmem>>, %arg4: memref<48x432xbf16, #tpu.memory_space<vmem>>, %arg5: memref<8x288xbf16, #tpu.memory_space<vmem>>, %arg6: memref<48x1152xbf16, #tpu.memory_space<vmem>>, %arg7: memref<32x24xf32, #tpu.memory_space<vmem>>, %arg8: memref<32x72xbf16, #tpu.memory_space<vmem>>, %arg9: memref<128x432xbf16, #tpu.memory_space<vmem>>, %arg10: memref<24x432xbf16, #tpu.memory_space<vmem>>, %arg11: memref<128x288xbf16, #tpu.memory_space<vmem>>, %arg12: memref<48x216xbf16, #tpu.memory_space<vmem>>, %arg13: memref<48x216xbf16, #tpu.memory_space<vmem>>, %arg14: memref<36x48xbf16, #tpu.memory_space<vmem>>, %arg15: memref<36x24xbf16, #tpu.memory_space<vmem>>, %arg16: memref<8x128xf32, #tpu.memory_space<vmem>>, %arg17: memref<1152x512xbf16, #tpu.memory_space<any>>, %arg18: memref<4x512xf32, #tpu.memory_space<vmem>>, %arg19: memref<1152x512xbf16, #tpu.memory_space<vmem>>, %arg20: memref<1x!tpu.dma_semaphore, #tpu.memory_space<semaphore_mem>>) attributes {dimension_semantics = [], scalar_prefetch = 0 : i64, scratch_operands = 2 : i64, tpu.core_type = #tpu.core_type<tc>} {
    %c0_i32 = arith.constant 0 : i32
    %0 = tpu.memref_slice %arg20[%c0_i32] : memref<1x!tpu.dma_semaphore, #tpu.memory_space<semaphore_mem>> -> memref<1x!tpu.dma_semaphore, #tpu.memory_space<semaphore_mem>>
    %1 = tpu.memref_squeeze %0 : memref<1x!tpu.dma_semaphore, #tpu.memory_space<semaphore_mem>> -> memref<!tpu.dma_semaphore, #tpu.memory_space<semaphore_mem>>
    tpu.enqueue_dma source(%arg17 : memref<1152x512xbf16, #tpu.memory_space<any>>) target(%arg19 : memref<1152x512xbf16, #tpu.memory_space<vmem>>) target_semaphore(%1 : memref<!tpu.dma_semaphore, #tpu.memory_space<semaphore_mem>>)
    %c0 = arith.constant 0 : index
    %c0_0 = arith.constant 0 : index
    %2 = vector.load %arg0[%c0, %c0_0] : memref<128x36xbf16, #tpu.memory_space<vmem>>, vector<128x36xbf16>
    %c0_1 = arith.constant 0 : index
    %c0_2 = arith.constant 0 : index
    %3 = vector.load %arg2[%c0_1, %c0_2] : memref<36x48xbf16, #tpu.memory_space<vmem>>, vector<36x48xbf16>
    %cst = arith.constant dense<0.000000e+00> : vector<128x48xf32>
    %4 = tpu.matmul %2, %3, %cst {dimension_numbers = #tpu.dot_dimension_numbers<[1], [0], [0], [1], [0, 0, 1, 1], [], []>} : vector<128x36xbf16>, vector<36x48xbf16>, vector<128x48xf32> -> vector<128x48xf32>
    %c0_3 = arith.constant 0 : index
    %c0_4 = arith.constant 0 : index
    %5 = vector.load %arg16[%c0_3, %c0_4] : memref<8x128xf32, #tpu.memory_space<vmem>>, vector<1x48xf32>
    %6 = vector.broadcast %5 : vector<1x48xf32> to vector<128x48xf32>
    %7 = arith.addf %4, %6 : vector<128x48xf32>
    %cst_5 = arith.constant 0.000000e+00 : f32
    %8 = vector.broadcast %cst_5 : f32 to vector<128x48xf32>
    %9 = arith.cmpf oge, %7, %8 : vector<128x48xf32>
    %cst_6 = arith.constant 0.00999999977 : f32
    %10 = vector.broadcast %cst_6 : f32 to vector<128x48xf32>
    %11 = arith.mulf %10, %7 : vector<128x48xf32>
    %12 = arith.select %9, %7, %11 : vector<128x48xi1>, vector<128x48xf32>
    %13 = vector.extract_strided_slice %12 {offsets = [0, 0], sizes = [64, 48], strides = [1, 1]} : vector<128x48xf32> to vector<64x48xf32>
    %cst_7 = arith.constant dense<0.000000e+00> : vector<48xf32>
    %14 = vector.multi_reduction <add>, %13, %cst_7 [0] : vector<64x48xf32> to vector<48xf32>
    %15 = vector.shape_cast %14 : vector<48xf32> to vector<1x48xf32>
    %cst_8 = arith.constant 6.400000e+01 : f32
    %16 = vector.broadcast %cst_8 : f32 to vector<1x48xf32>
    %17 = arith.divf %15, %16 : vector<1x48xf32>
    %18 = vector.broadcast %17 : vector<1x48xf32> to vector<64x48xf32>
    %19 = arith.subf %13, %18 : vector<64x48xf32>
    %20 = arith.mulf %19, %19 : vector<64x48xf32>
    %cst_9 = arith.constant dense<0.000000e+00> : vector<48xf32>
    %21 = vector.multi_reduction <add>, %20, %cst_9 [0] : vector<64x48xf32> to vector<48xf32>
    %22 = vector.shape_cast %21 : vector<48xf32> to vector<1x48xf32>
    %cst_10 = arith.constant 6.400000e+01 : f32
    %23 = vector.broadcast %cst_10 : f32 to vector<1x48xf32>
    %24 = arith.divf %22, %23 : vector<1x48xf32>
    %cst_11 = arith.constant 9.99999974E-6 : f32
    %25 = vector.broadcast %cst_11 : f32 to vector<1x48xf32>
    %26 = arith.addf %24, %25 : vector<1x48xf32>
    %27 = math.rsqrt %26 : vector<1x48xf32>
    %28 = vector.broadcast %27 : vector<1x48xf32> to vector<64x48xf32>
    %29 = arith.mulf %19, %28 : vector<64x48xf32>
    %30 = vector.extract_strided_slice %12 {offsets = [64, 0], sizes = [64, 48], strides = [1, 1]} : vector<128x48xf32> to vector<64x48xf32>
    %cst_12 = arith.constant dense<0.000000e+00> : vector<48xf32>
    %31 = vector.multi_reduction <add>, %30, %cst_12 [0] : vector<64x48xf32> to vector<48xf32>
    %32 = vector.shape_cast %31 : vector<48xf32> to vector<1x48xf32>
    %cst_13 = arith.constant 6.400000e+01 : f32
    %33 = vector.broadcast %cst_13 : f32 to vector<1x48xf32>
    %34 = arith.divf %32, %33 : vector<1x48xf32>
    %35 = vector.broadcast %34 : vector<1x48xf32> to vector<64x48xf32>
    %36 = arith.subf %30, %35 : vector<64x48xf32>
    %37 = arith.mulf %36, %36 : vector<64x48xf32>
    %cst_14 = arith.constant dense<0.000000e+00> : vector<48xf32>
    %38 = vector.multi_reduction <add>, %37, %cst_14 [0] : vector<64x48xf32> to vector<48xf32>
    %39 = vector.shape_cast %38 : vector<48xf32> to vector<1x48xf32>
    %cst_15 = arith.constant 6.400000e+01 : f32
    %40 = vector.broadcast %cst_15 : f32 to vector<1x48xf32>
    %41 = arith.divf %39, %40 : vector<1x48xf32>
    %cst_16 = arith.constant 9.99999974E-6 : f32
    %42 = vector.broadcast %cst_16 : f32 to vector<1x48xf32>
    %43 = arith.addf %41, %42 : vector<1x48xf32>
    %44 = math.rsqrt %43 : vector<1x48xf32>
    %45 = vector.broadcast %44 : vector<1x48xf32> to vector<64x48xf32>
    %46 = arith.mulf %36, %45 : vector<64x48xf32>
    %47 = tpu.concatenate %29, %46 in 0 : vector<64x48xf32>, vector<64x48xf32> -> vector<128x48xf32>
    %48 = arith.truncf %47 : vector<128x48xf32> to vector<128x48xbf16>
    %c0_17 = arith.constant 0 : index
    %c0_18 = arith.constant 0 : index
    %49 = vector.load %arg4[%c0_17, %c0_18] : memref<48x432xbf16, #tpu.memory_space<vmem>>, vector<48x432xbf16>
    %cst_19 = arith.constant dense<0.000000e+00> : vector<128x432xf32>
    %50 = tpu.matmul %48, %49, %cst_19 {dimension_numbers = #tpu.dot_dimension_numbers<[1], [0], [0], [1], [0, 0, 1, 1], [], []>} : vector<128x48xbf16>, vector<48x432xbf16>, vector<128x432xf32> -> vector<128x432xf32>
    %c0_20 = arith.constant 0 : index
    %c0_21 = arith.constant 0 : index
    %51 = vector.load %arg3[%c0_20, %c0_21] : memref<32x1152xbf16, #tpu.memory_space<vmem>>, vector<32x1152xbf16>
    %52 = vector.extract_strided_slice %50 {offsets = [0, 0], sizes = [128, 48], strides = [1, 1]} : vector<128x432xf32> to vector<128x48xf32>
    %53 = vector.extract_strided_slice %50 {offsets = [0, 48], sizes = [128, 48], strides = [1, 1]} : vector<128x432xf32> to vector<128x48xf32>
    %54 = vector.extract_strided_slice %50 {offsets = [0, 96], sizes = [128, 48], strides = [1, 1]} : vector<128x432xf32> to vector<128x48xf32>
    %55 = vector.extract_strided_slice %50 {offsets = [0, 144], sizes = [128, 48], strides = [1, 1]} : vector<128x432xf32> to vector<128x48xf32>
    %56 = vector.extract_strided_slice %50 {offsets = [0, 192], sizes = [128, 48], strides = [1, 1]} : vector<128x432xf32> to vector<128x48xf32>
    %57 = vector.extract_strided_slice %50 {offsets = [0, 240], sizes = [128, 48], strides = [1, 1]} : vector<128x432xf32> to vector<128x48xf32>
    %58 = vector.extract_strided_slice %50 {offsets = [0, 288], sizes = [128, 48], strides = [1, 1]} : vector<128x432xf32> to vector<128x48xf32>
    %59 = vector.extract_strided_slice %50 {offsets = [0, 336], sizes = [128, 48], strides = [1, 1]} : vector<128x432xf32> to vector<128x48xf32>
    %60 = vector.extract_strided_slice %50 {offsets = [0, 384], sizes = [128, 48], strides = [1, 1]} : vector<128x432xf32> to vector<128x48xf32>
    %61 = tpu.concatenate %52, %53, %54, %55, %56, %57, %58, %59, %60 in 0 : vector<128x48xf32>, vector<128x48xf32>, vector<128x48xf32>, vector<128x48xf32>, vector<128x48xf32>, vector<128x48xf32>, vector<128x48xf32>, vector<128x48xf32>, vector<128x48xf32> -> vector<1152x48xf32>
    %62 = arith.truncf %61 : vector<1152x48xf32> to vector<1152x48xbf16>
    %cst_22 = arith.constant dense<0.000000e+00> : vector<32x48xf32>
    %63 = tpu.matmul %51, %62, %cst_22 {dimension_numbers = #tpu.dot_dimension_numbers<[1], [0], [0], [1], [0, 0, 1, 1], [], []>} : vector<32x1152xbf16>, vector<1152x48xbf16>, vector<32x48xf32> -> vector<32x48xf32>
    %c1 = arith.constant 1 : index
    %c0_23 = arith.constant 0 : index
    %64 = vector.load %arg16[%c1, %c0_23] : memref<8x128xf32, #tpu.memory_space<vmem>>, vector<1x48xf32>
    %65 = vector.broadcast %64 : vector<1x48xf32> to vector<32x48xf32>
    %66 = arith.addf %63, %65 : vector<32x48xf32>
    %cst_24 = arith.constant 0.000000e+00 : f32
    %67 = vector.broadcast %cst_24 : f32 to vector<32x48xf32>
    %68 = arith.cmpf oge, %66, %67 : vector<32x48xf32>
    %cst_25 = arith.constant 0.00999999977 : f32
    %69 = vector.broadcast %cst_25 : f32 to vector<32x48xf32>
    %70 = arith.mulf %69, %66 : vector<32x48xf32>
    %71 = arith.select %68, %66, %70 : vector<32x48xi1>, vector<32x48xf32>
    %72 = vector.extract_strided_slice %71 {offsets = [0, 0], sizes = [16, 48], strides = [1, 1]} : vector<32x48xf32> to vector<16x48xf32>
    %cst_26 = arith.constant dense<0.000000e+00> : vector<48xf32>
    %73 = vector.multi_reduction <add>, %72, %cst_26 [0] : vector<16x48xf32> to vector<48xf32>
    %74 = vector.shape_cast %73 : vector<48xf32> to vector<1x48xf32>
    %cst_27 = arith.constant 1.600000e+01 : f32
    %75 = vector.broadcast %cst_27 : f32 to vector<1x48xf32>
    %76 = arith.divf %74, %75 : vector<1x48xf32>
    %77 = vector.broadcast %76 : vector<1x48xf32> to vector<16x48xf32>
    %78 = arith.subf %72, %77 : vector<16x48xf32>
    %79 = arith.mulf %78, %78 : vector<16x48xf32>
    %cst_28 = arith.constant dense<0.000000e+00> : vector<48xf32>
    %80 = vector.multi_reduction <add>, %79, %cst_28 [0] : vector<16x48xf32> to vector<48xf32>
    %81 = vector.shape_cast %80 : vector<48xf32> to vector<1x48xf32>
    %cst_29 = arith.constant 1.600000e+01 : f32
    %82 = vector.broadcast %cst_29 : f32 to vector<1x48xf32>
    %83 = arith.divf %81, %82 : vector<1x48xf32>
    %cst_30 = arith.constant 9.99999974E-6 : f32
    %84 = vector.broadcast %cst_30 : f32 to vector<1x48xf32>
    %85 = arith.addf %83, %84 : vector<1x48xf32>
    %86 = math.rsqrt %85 : vector<1x48xf32>
    %87 = vector.broadcast %86 : vector<1x48xf32> to vector<16x48xf32>
    %88 = arith.mulf %78, %87 : vector<16x48xf32>
    %89 = vector.extract_strided_slice %71 {offsets = [16, 0], sizes = [16, 48], strides = [1, 1]} : vector<32x48xf32> to vector<16x48xf32>
    %cst_31 = arith.constant dense<0.000000e+00> : vector<48xf32>
    %90 = vector.multi_reduction <add>, %89, %cst_31 [0] : vector<16x48xf32> to vector<48xf32>
    %91 = vector.shape_cast %90 : vector<48xf32> to vector<1x48xf32>
    %cst_32 = arith.constant 1.600000e+01 : f32
    %92 = vector.broadcast %cst_32 : f32 to vector<1x48xf32>
    %93 = arith.divf %91, %92 : vector<1x48xf32>
    %94 = vector.broadcast %93 : vector<1x48xf32> to vector<16x48xf32>
    %95 = arith.subf %89, %94 : vector<16x48xf32>
    %96 = arith.mulf %95, %95 : vector<16x48xf32>
    %cst_33 = arith.constant dense<0.000000e+00> : vector<48xf32>
    %97 = vector.multi_reduction <add>, %96, %cst_33 [0] : vector<16x48xf32> to vector<48xf32>
    %98 = vector.shape_cast %97 : vector<48xf32> to vector<1x48xf32>
    %cst_34 = arith.constant 1.600000e+01 : f32
    %99 = vector.broadcast %cst_34 : f32 to vector<1x48xf32>
    %100 = arith.divf %98, %99 : vector<1x48xf32>
    %cst_35 = arith.constant 9.99999974E-6 : f32
    %101 = vector.broadcast %cst_35 : f32 to vector<1x48xf32>
    %102 = arith.addf %100, %101 : vector<1x48xf32>
    %103 = math.rsqrt %102 : vector<1x48xf32>
    %104 = vector.broadcast %103 : vector<1x48xf32> to vector<16x48xf32>
    %105 = arith.mulf %95, %104 : vector<16x48xf32>
    %106 = tpu.concatenate %88, %105 in 0 : vector<16x48xf32>, vector<16x48xf32> -> vector<32x48xf32>
    %107 = arith.truncf %106 : vector<32x48xf32> to vector<32x48xbf16>
    %c0_36 = arith.constant 0 : index
    %c0_37 = arith.constant 0 : index
    %108 = vector.load %arg6[%c0_36, %c0_37] : memref<48x1152xbf16, #tpu.memory_space<vmem>>, vector<48x1152xbf16>
    %cst_38 = arith.constant dense<0.000000e+00> : vector<32x1152xf32>
    %109 = tpu.matmul %107, %108, %cst_38 {dimension_numbers = #tpu.dot_dimension_numbers<[1], [0], [0], [1], [0, 0, 1, 1], [], []>} : vector<32x48xbf16>, vector<48x1152xbf16>, vector<32x1152xf32> -> vector<32x1152xf32>
    %c0_39 = arith.constant 0 : index
    %c0_40 = arith.constant 0 : index
    %110 = vector.load %arg5[%c0_39, %c0_40] : memref<8x288xbf16, #tpu.memory_space<vmem>>, vector<8x288xbf16>
    %111 = vector.extract_strided_slice %109 {offsets = [0, 0], sizes = [32, 128], strides = [1, 1]} : vector<32x1152xf32> to vector<32x128xf32>
    %112 = vector.extract_strided_slice %109 {offsets = [0, 128], sizes = [32, 128], strides = [1, 1]} : vector<32x1152xf32> to vector<32x128xf32>
    %113 = vector.extract_strided_slice %109 {offsets = [0, 256], sizes = [32, 128], strides = [1, 1]} : vector<32x1152xf32> to vector<32x128xf32>
    %114 = vector.extract_strided_slice %109 {offsets = [0, 384], sizes = [32, 128], strides = [1, 1]} : vector<32x1152xf32> to vector<32x128xf32>
    %115 = vector.extract_strided_slice %109 {offsets = [0, 512], sizes = [32, 128], strides = [1, 1]} : vector<32x1152xf32> to vector<32x128xf32>
    %116 = vector.extract_strided_slice %109 {offsets = [0, 640], sizes = [32, 128], strides = [1, 1]} : vector<32x1152xf32> to vector<32x128xf32>
    %117 = vector.extract_strided_slice %109 {offsets = [0, 768], sizes = [32, 128], strides = [1, 1]} : vector<32x1152xf32> to vector<32x128xf32>
    %118 = vector.extract_strided_slice %109 {offsets = [0, 896], sizes = [32, 128], strides = [1, 1]} : vector<32x1152xf32> to vector<32x128xf32>
    %119 = vector.extract_strided_slice %109 {offsets = [0, 1024], sizes = [32, 128], strides = [1, 1]} : vector<32x1152xf32> to vector<32x128xf32>
    %120 = tpu.concatenate %111, %112, %113, %114, %115, %116, %117, %118, %119 in 0 : vector<32x128xf32>, vector<32x128xf32>, vector<32x128xf32>, vector<32x128xf32>, vector<32x128xf32>, vector<32x128xf32>, vector<32x128xf32>, vector<32x128xf32>, vector<32x128xf32> -> vector<288x128xf32>
    %121 = arith.truncf %120 : vector<288x128xf32> to vector<288x128xbf16>
    %cst_41 = arith.constant dense<0.000000e+00> : vector<8x128xf32>
    %122 = tpu.matmul %110, %121, %cst_41 {dimension_numbers = #tpu.dot_dimension_numbers<[1], [0], [0], [1], [0, 0, 1, 1], [], []>} : vector<8x288xbf16>, vector<288x128xbf16>, vector<8x128xf32> -> vector<8x128xf32>
    %c2 = arith.constant 2 : index
    %c0_42 = arith.constant 0 : index
    %123 = vector.load %arg16[%c2, %c0_42] : memref<8x128xf32, #tpu.memory_space<vmem>>, vector<1x128xf32>
    %124 = vector.broadcast %123 : vector<1x128xf32> to vector<8x128xf32>
    %125 = arith.addf %122, %124 : vector<8x128xf32>
    %cst_43 = arith.constant 0.000000e+00 : f32
    %126 = vector.broadcast %cst_43 : f32 to vector<8x128xf32>
    %127 = arith.cmpf oge, %125, %126 : vector<8x128xf32>
    %cst_44 = arith.constant 0.00999999977 : f32
    %128 = vector.broadcast %cst_44 : f32 to vector<8x128xf32>
    %129 = arith.mulf %128, %125 : vector<8x128xf32>
    %130 = arith.select %127, %125, %129 : vector<8x128xi1>, vector<8x128xf32>
    %131 = arith.truncf %130 : vector<8x128xf32> to vector<8x128xbf16>
    %c0_45 = arith.constant 0 : index
    %c0_46 = arith.constant 0 : index
    %132 = vector.load %arg1[%c0_45, %c0_46] : memref<2x32xf32, #tpu.memory_space<vmem>>, vector<2x32xf32>
    %133 = arith.mulf %132, %132 : vector<2x32xf32>
    %cst_47 = arith.constant dense<0.000000e+00> : vector<2xf32>
    %134 = vector.multi_reduction <add>, %133, %cst_47 [1] : vector<2x32xf32> to vector<2xf32>
    %135 = vector.shape_cast %134 : vector<2xf32> to vector<2x1xf32>
    %136 = math.sqrt %135 : vector<2x1xf32>
    %cst_48 = arith.constant 9.99999996E-13 : f32
    %137 = vector.broadcast %cst_48 : f32 to vector<2x1xf32>
    %138 = arith.maximumf %136, %137 : vector<2x1xf32>
    %139 = vector.broadcast %138 : vector<2x1xf32> to vector<2x32xf32>
    %140 = arith.divf %132, %139 : vector<2x32xf32>
    %c0_49 = arith.constant 0 : index
    %c0_50 = arith.constant 0 : index
    %141 = vector.load %arg7[%c0_49, %c0_50] : memref<32x24xf32, #tpu.memory_space<vmem>>, vector<32x24xf32>
    %cst_51 = arith.constant dense<0.000000e+00> : vector<2x24xf32>
    %142 = tpu.matmul %140, %141, %cst_51 {dimension_numbers = #tpu.dot_dimension_numbers<[1], [0], [0], [1], [0, 0, 1, 1], [], []>} : vector<2x32xf32>, vector<32x24xf32>, vector<2x24xf32> -> vector<2x24xf32>
    %c3 = arith.constant 3 : index
    %c0_52 = arith.constant 0 : index
    %143 = vector.load %arg16[%c3, %c0_52] : memref<8x128xf32, #tpu.memory_space<vmem>>, vector<1x24xf32>
    %144 = vector.broadcast %143 : vector<1x24xf32> to vector<2x24xf32>
    %145 = arith.addf %142, %144 : vector<2x24xf32>
    %146 = vector.extract_strided_slice %145 {offsets = [0, 0], sizes = [1, 24], strides = [1, 1]} : vector<2x24xf32> to vector<1x24xf32>
    %147 = vector.extract_strided_slice %145 {offsets = [0, 0], sizes = [1, 24], strides = [1, 1]} : vector<2x24xf32> to vector<1x24xf32>
    %148 = vector.extract_strided_slice %145 {offsets = [0, 0], sizes = [1, 24], strides = [1, 1]} : vector<2x24xf32> to vector<1x24xf32>
    %149 = vector.extract_strided_slice %145 {offsets = [0, 0], sizes = [1, 24], strides = [1, 1]} : vector<2x24xf32> to vector<1x24xf32>
    %150 = vector.extract_strided_slice %145 {offsets = [1, 0], sizes = [1, 24], strides = [1, 1]} : vector<2x24xf32> to vector<1x24xf32>
    %151 = vector.extract_strided_slice %145 {offsets = [1, 0], sizes = [1, 24], strides = [1, 1]} : vector<2x24xf32> to vector<1x24xf32>
    %152 = vector.extract_strided_slice %145 {offsets = [1, 0], sizes = [1, 24], strides = [1, 1]} : vector<2x24xf32> to vector<1x24xf32>
    %153 = vector.extract_strided_slice %145 {offsets = [1, 0], sizes = [1, 24], strides = [1, 1]} : vector<2x24xf32> to vector<1x24xf32>
    %154 = tpu.concatenate %146, %147, %148, %149, %150, %151, %152, %153 in 0 : vector<1x24xf32>, vector<1x24xf32>, vector<1x24xf32>, vector<1x24xf32>, vector<1x24xf32>, vector<1x24xf32>, vector<1x24xf32>, vector<1x24xf32> -> vector<8x24xf32>
    %155 = arith.truncf %154 : vector<8x24xf32> to vector<8x24xbf16>
    %c0_53 = arith.constant 0 : index
    %c0_54 = arith.constant 0 : index
    %156 = vector.load %arg9[%c0_53, %c0_54] : memref<128x432xbf16, #tpu.memory_space<vmem>>, vector<128x432xbf16>
    %cst_55 = arith.constant dense<0.000000e+00> : vector<8x432xf32>
    %157 = tpu.matmul %131, %156, %cst_55 {dimension_numbers = #tpu.dot_dimension_numbers<[1], [0], [0], [1], [0, 0, 1, 1], [], []>} : vector<8x128xbf16>, vector<128x432xbf16>, vector<8x432xf32> -> vector<8x432xf32>
    %c0_56 = arith.constant 0 : index
    %c0_57 = arith.constant 0 : index
    %158 = vector.load %arg10[%c0_56, %c0_57] : memref<24x432xbf16, #tpu.memory_space<vmem>>, vector<24x432xbf16>
    %cst_58 = arith.constant dense<0.000000e+00> : vector<8x432xf32>
    %159 = tpu.matmul %155, %158, %cst_58 {dimension_numbers = #tpu.dot_dimension_numbers<[1], [0], [0], [1], [0, 0, 1, 1], [], []>} : vector<8x24xbf16>, vector<24x432xbf16>, vector<8x432xf32> -> vector<8x432xf32>
    %160 = arith.addf %157, %159 : vector<8x432xf32>
    %c0_59 = arith.constant 0 : index
    %c0_60 = arith.constant 0 : index
    %161 = vector.load %arg8[%c0_59, %c0_60] : memref<32x72xbf16, #tpu.memory_space<vmem>>, vector<32x72xbf16>
    %162 = vector.extract_strided_slice %160 {offsets = [0, 0], sizes = [8, 48], strides = [1, 1]} : vector<8x432xf32> to vector<8x48xf32>
    %163 = vector.extract_strided_slice %160 {offsets = [0, 48], sizes = [8, 48], strides = [1, 1]} : vector<8x432xf32> to vector<8x48xf32>
    %164 = vector.extract_strided_slice %160 {offsets = [0, 96], sizes = [8, 48], strides = [1, 1]} : vector<8x432xf32> to vector<8x48xf32>
    %165 = vector.extract_strided_slice %160 {offsets = [0, 144], sizes = [8, 48], strides = [1, 1]} : vector<8x432xf32> to vector<8x48xf32>
    %166 = vector.extract_strided_slice %160 {offsets = [0, 192], sizes = [8, 48], strides = [1, 1]} : vector<8x432xf32> to vector<8x48xf32>
    %167 = vector.extract_strided_slice %160 {offsets = [0, 240], sizes = [8, 48], strides = [1, 1]} : vector<8x432xf32> to vector<8x48xf32>
    %168 = vector.extract_strided_slice %160 {offsets = [0, 288], sizes = [8, 48], strides = [1, 1]} : vector<8x432xf32> to vector<8x48xf32>
    %169 = vector.extract_strided_slice %160 {offsets = [0, 336], sizes = [8, 48], strides = [1, 1]} : vector<8x432xf32> to vector<8x48xf32>
    %170 = vector.extract_strided_slice %160 {offsets = [0, 384], sizes = [8, 48], strides = [1, 1]} : vector<8x432xf32> to vector<8x48xf32>
    %171 = tpu.concatenate %162, %163, %164, %165, %166, %167, %168, %169, %170 in 0 : vector<8x48xf32>, vector<8x48xf32>, vector<8x48xf32>, vector<8x48xf32>, vector<8x48xf32>, vector<8x48xf32>, vector<8x48xf32>, vector<8x48xf32>, vector<8x48xf32> -> vector<72x48xf32>
    %172 = arith.truncf %171 : vector<72x48xf32> to vector<72x48xbf16>
    %cst_61 = arith.constant dense<0.000000e+00> : vector<32x48xf32>
    %173 = tpu.matmul %161, %172, %cst_61 {dimension_numbers = #tpu.dot_dimension_numbers<[1], [0], [0], [1], [0, 0, 1, 1], [], []>} : vector<32x72xbf16>, vector<72x48xbf16>, vector<32x48xf32> -> vector<32x48xf32>
    %c4 = arith.constant 4 : index
    %c0_62 = arith.constant 0 : index
    %174 = vector.load %arg16[%c4, %c0_62] : memref<8x128xf32, #tpu.memory_space<vmem>>, vector<1x48xf32>
    %175 = vector.broadcast %174 : vector<1x48xf32> to vector<32x48xf32>
    %176 = arith.addf %173, %175 : vector<32x48xf32>
    %cst_63 = arith.constant 0.000000e+00 : f32
    %177 = vector.broadcast %cst_63 : f32 to vector<32x48xf32>
    %178 = arith.cmpf oge, %176, %177 : vector<32x48xf32>
    %cst_64 = arith.constant 0.00999999977 : f32
    %179 = vector.broadcast %cst_64 : f32 to vector<32x48xf32>
    %180 = arith.mulf %179, %176 : vector<32x48xf32>
    %181 = arith.select %178, %176, %180 : vector<32x48xi1>, vector<32x48xf32>
    %182 = vector.extract_strided_slice %181 {offsets = [0, 0], sizes = [16, 48], strides = [1, 1]} : vector<32x48xf32> to vector<16x48xf32>
    %cst_65 = arith.constant dense<0.000000e+00> : vector<48xf32>
    %183 = vector.multi_reduction <add>, %182, %cst_65 [0] : vector<16x48xf32> to vector<48xf32>
    %184 = vector.shape_cast %183 : vector<48xf32> to vector<1x48xf32>
    %cst_66 = arith.constant 1.600000e+01 : f32
    %185 = vector.broadcast %cst_66 : f32 to vector<1x48xf32>
    %186 = arith.divf %184, %185 : vector<1x48xf32>
    %187 = vector.broadcast %186 : vector<1x48xf32> to vector<16x48xf32>
    %188 = arith.subf %182, %187 : vector<16x48xf32>
    %189 = arith.mulf %188, %188 : vector<16x48xf32>
    %cst_67 = arith.constant dense<0.000000e+00> : vector<48xf32>
    %190 = vector.multi_reduction <add>, %189, %cst_67 [0] : vector<16x48xf32> to vector<48xf32>
    %191 = vector.shape_cast %190 : vector<48xf32> to vector<1x48xf32>
    %cst_68 = arith.constant 1.600000e+01 : f32
    %192 = vector.broadcast %cst_68 : f32 to vector<1x48xf32>
    %193 = arith.divf %191, %192 : vector<1x48xf32>
    %cst_69 = arith.constant 9.99999974E-6 : f32
    %194 = vector.broadcast %cst_69 : f32 to vector<1x48xf32>
    %195 = arith.addf %193, %194 : vector<1x48xf32>
    %196 = math.rsqrt %195 : vector<1x48xf32>
    %197 = vector.broadcast %196 : vector<1x48xf32> to vector<16x48xf32>
    %198 = arith.mulf %188, %197 : vector<16x48xf32>
    %199 = vector.extract_strided_slice %181 {offsets = [16, 0], sizes = [16, 48], strides = [1, 1]} : vector<32x48xf32> to vector<16x48xf32>
    %cst_70 = arith.constant dense<0.000000e+00> : vector<48xf32>
    %200 = vector.multi_reduction <add>, %199, %cst_70 [0] : vector<16x48xf32> to vector<48xf32>
    %201 = vector.shape_cast %200 : vector<48xf32> to vector<1x48xf32>
    %cst_71 = arith.constant 1.600000e+01 : f32
    %202 = vector.broadcast %cst_71 : f32 to vector<1x48xf32>
    %203 = arith.divf %201, %202 : vector<1x48xf32>
    %204 = vector.broadcast %203 : vector<1x48xf32> to vector<16x48xf32>
    %205 = arith.subf %199, %204 : vector<16x48xf32>
    %206 = arith.mulf %205, %205 : vector<16x48xf32>
    %cst_72 = arith.constant dense<0.000000e+00> : vector<48xf32>
    %207 = vector.multi_reduction <add>, %206, %cst_72 [0] : vector<16x48xf32> to vector<48xf32>
    %208 = vector.shape_cast %207 : vector<48xf32> to vector<1x48xf32>
    %cst_73 = arith.constant 1.600000e+01 : f32
    %209 = vector.broadcast %cst_73 : f32 to vector<1x48xf32>
    %210 = arith.divf %208, %209 : vector<1x48xf32>
    %cst_74 = arith.constant 9.99999974E-6 : f32
    %211 = vector.broadcast %cst_74 : f32 to vector<1x48xf32>
    %212 = arith.addf %210, %211 : vector<1x48xf32>
    %213 = math.rsqrt %212 : vector<1x48xf32>
    %214 = vector.broadcast %213 : vector<1x48xf32> to vector<16x48xf32>
    %215 = arith.mulf %205, %214 : vector<16x48xf32>
    %216 = tpu.concatenate %198, %215 in 0 : vector<16x48xf32>, vector<16x48xf32> -> vector<32x48xf32>
    %217 = arith.truncf %216 : vector<32x48xf32> to vector<32x48xbf16>
    %c0_75 = arith.constant 0 : index
    %c0_76 = arith.constant 0 : index
    %218 = vector.load %arg12[%c0_75, %c0_76] : memref<48x216xbf16, #tpu.memory_space<vmem>>, vector<48x216xbf16>
    %cst_77 = arith.constant dense<0.000000e+00> : vector<32x216xf32>
    %219 = tpu.matmul %107, %218, %cst_77 {dimension_numbers = #tpu.dot_dimension_numbers<[1], [0], [0], [1], [0, 0, 1, 1], [], []>} : vector<32x48xbf16>, vector<48x216xbf16>, vector<32x216xf32> -> vector<32x216xf32>
    %c0_78 = arith.constant 0 : index
    %c0_79 = arith.constant 0 : index
    %220 = vector.load %arg13[%c0_78, %c0_79] : memref<48x216xbf16, #tpu.memory_space<vmem>>, vector<48x216xbf16>
    %cst_80 = arith.constant dense<0.000000e+00> : vector<32x216xf32>
    %221 = tpu.matmul %217, %220, %cst_80 {dimension_numbers = #tpu.dot_dimension_numbers<[1], [0], [0], [1], [0, 0, 1, 1], [], []>} : vector<32x48xbf16>, vector<48x216xbf16>, vector<32x216xf32> -> vector<32x216xf32>
    %222 = arith.addf %219, %221 : vector<32x216xf32>
    %c0_81 = arith.constant 0 : index
    %c0_82 = arith.constant 0 : index
    %223 = vector.load %arg11[%c0_81, %c0_82] : memref<128x288xbf16, #tpu.memory_space<vmem>>, vector<128x288xbf16>
    %224 = vector.extract_strided_slice %222 {offsets = [0, 0], sizes = [32, 24], strides = [1, 1]} : vector<32x216xf32> to vector<32x24xf32>
    %225 = vector.extract_strided_slice %222 {offsets = [0, 24], sizes = [32, 24], strides = [1, 1]} : vector<32x216xf32> to vector<32x24xf32>
    %226 = vector.extract_strided_slice %222 {offsets = [0, 48], sizes = [32, 24], strides = [1, 1]} : vector<32x216xf32> to vector<32x24xf32>
    %227 = vector.extract_strided_slice %222 {offsets = [0, 72], sizes = [32, 24], strides = [1, 1]} : vector<32x216xf32> to vector<32x24xf32>
    %228 = vector.extract_strided_slice %222 {offsets = [0, 96], sizes = [32, 24], strides = [1, 1]} : vector<32x216xf32> to vector<32x24xf32>
    %229 = vector.extract_strided_slice %222 {offsets = [0, 120], sizes = [32, 24], strides = [1, 1]} : vector<32x216xf32> to vector<32x24xf32>
    %230 = vector.extract_strided_slice %222 {offsets = [0, 144], sizes = [32, 24], strides = [1, 1]} : vector<32x216xf32> to vector<32x24xf32>
    %231 = vector.extract_strided_slice %222 {offsets = [0, 168], sizes = [32, 24], strides = [1, 1]} : vector<32x216xf32> to vector<32x24xf32>
    %232 = vector.extract_strided_slice %222 {offsets = [0, 192], sizes = [32, 24], strides = [1, 1]} : vector<32x216xf32> to vector<32x24xf32>
    %233 = tpu.concatenate %224, %225, %226, %227, %228, %229, %230, %231, %232 in 0 : vector<32x24xf32>, vector<32x24xf32>, vector<32x24xf32>, vector<32x24xf32>, vector<32x24xf32>, vector<32x24xf32>, vector<32x24xf32>, vector<32x24xf32>, vector<32x24xf32> -> vector<288x24xf32>
    %234 = arith.truncf %233 : vector<288x24xf32> to vector<288x24xbf16>
    %cst_83 = arith.constant dense<0.000000e+00> : vector<128x24xf32>
    %235 = tpu.matmul %223, %234, %cst_83 {dimension_numbers = #tpu.dot_dimension_numbers<[1], [0], [0], [1], [0, 0, 1, 1], [], []>} : vector<128x288xbf16>, vector<288x24xbf16>, vector<128x24xf32> -> vector<128x24xf32>
    %c5 = arith.constant 5 : index
    %c0_84 = arith.constant 0 : index
    %236 = vector.load %arg16[%c5, %c0_84] : memref<8x128xf32, #tpu.memory_space<vmem>>, vector<1x24xf32>
    %237 = vector.broadcast %236 : vector<1x24xf32> to vector<128x24xf32>
    %238 = arith.addf %235, %237 : vector<128x24xf32>
    %cst_85 = arith.constant 0.000000e+00 : f32
    %239 = vector.broadcast %cst_85 : f32 to vector<128x24xf32>
    %240 = arith.cmpf oge, %238, %239 : vector<128x24xf32>
    %cst_86 = arith.constant 0.00999999977 : f32
    %241 = vector.broadcast %cst_86 : f32 to vector<128x24xf32>
    %242 = arith.mulf %241, %238 : vector<128x24xf32>
    %243 = arith.select %240, %238, %242 : vector<128x24xi1>, vector<128x24xf32>
    %244 = vector.extract_strided_slice %243 {offsets = [0, 0], sizes = [64, 24], strides = [1, 1]} : vector<128x24xf32> to vector<64x24xf32>
    %cst_87 = arith.constant dense<0.000000e+00> : vector<24xf32>
    %245 = vector.multi_reduction <add>, %244, %cst_87 [0] : vector<64x24xf32> to vector<24xf32>
    %246 = vector.shape_cast %245 : vector<24xf32> to vector<1x24xf32>
    %cst_88 = arith.constant 6.400000e+01 : f32
    %247 = vector.broadcast %cst_88 : f32 to vector<1x24xf32>
    %248 = arith.divf %246, %247 : vector<1x24xf32>
    %249 = vector.broadcast %248 : vector<1x24xf32> to vector<64x24xf32>
    %250 = arith.subf %244, %249 : vector<64x24xf32>
    %251 = arith.mulf %250, %250 : vector<64x24xf32>
    %cst_89 = arith.constant dense<0.000000e+00> : vector<24xf32>
    %252 = vector.multi_reduction <add>, %251, %cst_89 [0] : vector<64x24xf32> to vector<24xf32>
    %253 = vector.shape_cast %252 : vector<24xf32> to vector<1x24xf32>
    %cst_90 = arith.constant 6.400000e+01 : f32
    %254 = vector.broadcast %cst_90 : f32 to vector<1x24xf32>
    %255 = arith.divf %253, %254 : vector<1x24xf32>
    %cst_91 = arith.constant 9.99999974E-6 : f32
    %256 = vector.broadcast %cst_91 : f32 to vector<1x24xf32>
    %257 = arith.addf %255, %256 : vector<1x24xf32>
    %258 = math.rsqrt %257 : vector<1x24xf32>
    %259 = vector.broadcast %258 : vector<1x24xf32> to vector<64x24xf32>
    %260 = arith.mulf %250, %259 : vector<64x24xf32>
    %261 = vector.extract_strided_slice %243 {offsets = [64, 0], sizes = [64, 24], strides = [1, 1]} : vector<128x24xf32> to vector<64x24xf32>
    %cst_92 = arith.constant dense<0.000000e+00> : vector<24xf32>
    %262 = vector.multi_reduction <add>, %261, %cst_92 [0] : vector<64x24xf32> to vector<24xf32>
    %263 = vector.shape_cast %262 : vector<24xf32> to vector<1x24xf32>
    %cst_93 = arith.constant 6.400000e+01 : f32
    %264 = vector.broadcast %cst_93 : f32 to vector<1x24xf32>
    %265 = arith.divf %263, %264 : vector<1x24xf32>
    %266 = vector.broadcast %265 : vector<1x24xf32> to vector<64x24xf32>
    %267 = arith.subf %261, %266 : vector<64x24xf32>
    %268 = arith.mulf %267, %267 : vector<64x24xf32>
    %cst_94 = arith.constant dense<0.000000e+00> : vector<24xf32>
    %269 = vector.multi_reduction <add>, %268, %cst_94 [0] : vector<64x24xf32> to vector<24xf32>
    %270 = vector.shape_cast %269 : vector<24xf32> to vector<1x24xf32>
    %cst_95 = arith.constant 6.400000e+01 : f32
    %271 = vector.broadcast %cst_95 : f32 to vector<1x24xf32>
    %272 = arith.divf %270, %271 : vector<1x24xf32>
    %cst_96 = arith.constant 9.99999974E-6 : f32
    %273 = vector.broadcast %cst_96 : f32 to vector<1x24xf32>
    %274 = arith.addf %272, %273 : vector<1x24xf32>
    %275 = math.rsqrt %274 : vector<1x24xf32>
    %276 = vector.broadcast %275 : vector<1x24xf32> to vector<64x24xf32>
    %277 = arith.mulf %267, %276 : vector<64x24xf32>
    %278 = tpu.concatenate %260, %277 in 0 : vector<64x24xf32>, vector<64x24xf32> -> vector<128x24xf32>
    %279 = tpu.transpose %47, [1, 0] : vector<128x48xf32> -> vector<48x128xf32>
    %280 = arith.truncf %279 : vector<48x128xf32> to vector<48x128xbf16>
    %281 = tpu.transpose %278, [1, 0] : vector<128x24xf32> -> vector<24x128xf32>
    %282 = arith.truncf %281 : vector<24x128xf32> to vector<24x128xbf16>
    %c0_97 = arith.constant 0 : index
    %c0_98 = arith.constant 0 : index
    %283 = vector.load %arg14[%c0_97, %c0_98] : memref<36x48xbf16, #tpu.memory_space<vmem>>, vector<36x48xbf16>
    %cst_99 = arith.constant dense<0.000000e+00> : vector<36x128xf32>
    %284 = tpu.matmul %283, %280, %cst_99 {dimension_numbers = #tpu.dot_dimension_numbers<[1], [0], [0], [1], [0, 0, 1, 1], [], []>} : vector<36x48xbf16>, vector<48x128xbf16>, vector<36x128xf32> -> vector<36x128xf32>
    %c0_100 = arith.constant 0 : index
    %c0_101 = arith.constant 0 : index
    %285 = vector.load %arg15[%c0_100, %c0_101] : memref<36x24xbf16, #tpu.memory_space<vmem>>, vector<36x24xbf16>
    %cst_102 = arith.constant dense<0.000000e+00> : vector<36x128xf32>
    %286 = tpu.matmul %285, %282, %cst_102 {dimension_numbers = #tpu.dot_dimension_numbers<[1], [0], [0], [1], [0, 0, 1, 1], [], []>} : vector<36x24xbf16>, vector<24x128xbf16>, vector<36x128xf32> -> vector<36x128xf32>
    %287 = arith.addf %284, %286 : vector<36x128xf32>
    %288 = vector.extract_strided_slice %287 {offsets = [0, 0], sizes = [4, 128], strides = [1, 1]} : vector<36x128xf32> to vector<4x128xf32>
    %289 = vector.extract_strided_slice %287 {offsets = [4, 0], sizes = [4, 128], strides = [1, 1]} : vector<36x128xf32> to vector<4x128xf32>
    %290 = vector.extract_strided_slice %287 {offsets = [8, 0], sizes = [4, 128], strides = [1, 1]} : vector<36x128xf32> to vector<4x128xf32>
    %291 = vector.extract_strided_slice %287 {offsets = [12, 0], sizes = [4, 128], strides = [1, 1]} : vector<36x128xf32> to vector<4x128xf32>
    %292 = vector.extract_strided_slice %287 {offsets = [16, 0], sizes = [4, 128], strides = [1, 1]} : vector<36x128xf32> to vector<4x128xf32>
    %293 = vector.extract_strided_slice %287 {offsets = [20, 0], sizes = [4, 128], strides = [1, 1]} : vector<36x128xf32> to vector<4x128xf32>
    %294 = vector.extract_strided_slice %287 {offsets = [24, 0], sizes = [4, 128], strides = [1, 1]} : vector<36x128xf32> to vector<4x128xf32>
    %295 = vector.extract_strided_slice %287 {offsets = [28, 0], sizes = [4, 128], strides = [1, 1]} : vector<36x128xf32> to vector<4x128xf32>
    %296 = vector.extract_strided_slice %287 {offsets = [32, 0], sizes = [4, 128], strides = [1, 1]} : vector<36x128xf32> to vector<4x128xf32>
    %297 = tpu.concatenate %288, %289, %290, %291, %292, %293, %294, %295, %296 in 1 : vector<4x128xf32>, vector<4x128xf32>, vector<4x128xf32>, vector<4x128xf32>, vector<4x128xf32>, vector<4x128xf32>, vector<4x128xf32>, vector<4x128xf32>, vector<4x128xf32> -> vector<4x1152xf32>
    %298 = arith.truncf %297 : vector<4x1152xf32> to vector<4x1152xbf16>
    %c0_i32_103 = arith.constant 0 : i32
    %299 = tpu.memref_slice %arg20[%c0_i32_103] : memref<1x!tpu.dma_semaphore, #tpu.memory_space<semaphore_mem>> -> memref<1x!tpu.dma_semaphore, #tpu.memory_space<semaphore_mem>>
    %300 = tpu.memref_squeeze %299 : memref<1x!tpu.dma_semaphore, #tpu.memory_space<semaphore_mem>> -> memref<!tpu.dma_semaphore, #tpu.memory_space<semaphore_mem>>
    tpu.wait_dma2 semaphore(%300 : memref<!tpu.dma_semaphore, #tpu.memory_space<semaphore_mem>>) src(%arg17 : memref<1152x512xbf16, #tpu.memory_space<any>>) dst(%arg19 : memref<1152x512xbf16, #tpu.memory_space<vmem>>)
    %c0_104 = arith.constant 0 : index
    %c0_105 = arith.constant 0 : index
    %301 = vector.load %arg19[%c0_104, %c0_105] : memref<1152x512xbf16, #tpu.memory_space<vmem>>, vector<1152x512xbf16>
    %cst_106 = arith.constant dense<0.000000e+00> : vector<4x512xf32>
    %302 = tpu.matmul %298, %301, %cst_106 {dimension_numbers = #tpu.dot_dimension_numbers<[1], [0], [0], [1], [0, 0, 1, 1], [], []>} : vector<4x1152xbf16>, vector<1152x512xbf16>, vector<4x512xf32> -> vector<4x512xf32>
    %c3_107 = arith.constant 3 : index
    %c127 = arith.constant 127 : index
    %303 = vector.load %arg16[%c3_107, %c127] : memref<8x128xf32, #tpu.memory_space<vmem>>, vector<4x1xf32>
    %304 = vector.broadcast %303 : vector<4x1xf32> to vector<4x512xf32>
    %305 = arith.addf %302, %304 : vector<4x512xf32>
    %cst_108 = arith.constant 0.000000e+00 : f32
    %306 = vector.broadcast %cst_108 : f32 to vector<4x512xf32>
    %307 = arith.minimumf %305, %306 : vector<4x512xf32>
    %308 = math.absf %305 : vector<4x512xf32>
    %cst_109 = arith.constant 0.000000e+00 : f32
    %309 = vector.broadcast %cst_109 : f32 to vector<4x512xf32>
    %310 = arith.subf %309, %308 : vector<4x512xf32>
    %311 = math.exp %310 : vector<4x512xf32>
    %312 = math.log1p %311 : vector<4x512xf32>
    %313 = arith.subf %307, %312 : vector<4x512xf32>
    %cst_110 = arith.constant -5.29831743 : f32
    %314 = vector.broadcast %cst_110 : f32 to vector<4x512xf32>
    %315 = arith.maximumf %313, %314 : vector<4x512xf32>
    %c0_111 = arith.constant 0 : index
    %c0_112 = arith.constant 0 : index
    %316 = vector.load %arg18[%c0_111, %c0_112] : memref<4x512xf32, #tpu.memory_space<vmem>>, vector<4x512xf32>
    tpu.vector_store %arg18[%c0_111, %c0_112], %315 {strides = array<i32>} : memref<4x512xf32, #tpu.memory_space<vmem>>, vector<4x512xf32>,
    return
  }
}

</mosaic_0001>

<bundles_post_ra>
// kernel: observation_model_forward.1
= control target key start
LH: loop header
LB: loop body
LE: loop exit
PB: predicated region body
PF: predicated region fallthrough
CT: control target
= control target key end

     0   :  { %s12458_s0 = inlined_call_operand.vmem [shape: bf16[128,36], index: 0, kind: input, shape index: {}]   ;;  %s12459_s1 = inlined_call_operand.vmem [shape: f32[2,32], index: 1, kind: input, shape index: {}]   ;;  %s12460_s2 = inlined_call_operand.vmem [shape: bf16[36,48], index: 2, kind: input, shape index: {}]   ;;  %s12461_s3 = inlined_call_operand.vmem [shape: bf16[32,1152], index: 3, kind: input, shape index: {}]   ;;  %s12462_s4 = inlined_call_operand.vmem [shape: bf16[48,432], index: 4, kind: input, shape index: {}]   ;;  %s12463_s5 = inlined_call_operand.vmem [shape: bf16[8,288], index: 5, kind: input, shape index: {}]   ;;  %s12464_s6 = inlined_call_operand.vmem [shape: bf16[48,1152], index: 6, kind: input, shape index: {}]   ;;  %s12465_s7 = inlined_call_operand.vmem [shape: f32[32,24], index: 7, kind: input, shape index: {}]   ;;  %s12466_s8 = inlined_call_operand.vmem [shape: bf16[32,72], index: 8, kind: input, shape index: {}]   ;;  %s12467_s9 = inlined_call_operand.vmem [shape: bf16[128,432], index: 9, kind: input, shape index: {}]   ;;  %s12468_s10 = inlined_call_operand.vmem [shape: bf16[24,432], index: 10, kind: input, shape index: {}]   ;;  %s12469_s11 = inlined_call_operand.vmem [shape: bf16[128,288], index: 11, kind: input, shape index: {}]   ;;  %s12470_s12 = inlined_call_operand.vmem [shape: bf16[48,216], index: 12, kind: input, shape index: {}]   ;;  %s12471_s13 = inlined_call_operand.vmem [shape: bf16[48,216], index: 13, kind: input, shape index: {}]   ;;  %s12472_s14 = inlined_call_operand.vmem [shape: bf16[36,48], index: 14, kind: input, shape index: {}]   ;;  %s12473_s15 = inlined_call_operand.vmem [shape: bf16[36,24], index: 15, kind: input, shape index: {}]   ;;  %s12474_s16 = inlined_call_operand.vmem [shape: f32[8,128], index: 16, kind: input, shape index: {}]   ;;  %s12475_s17 = inlined_call_operand.vmem [shape: bf16[1152,512], index: 17, kind: input, shape index: {}]   ;;  %s12476_s18 = inlined_call_operand.vmem [shape: f32[4,512], index: 18, kind: output, shape index: {}]  }
   0x1   :  { %12495 = sst [smem:[#allocation21_spill]] %s12458_s0  ;;  %v68_v0 = vld [vmem:[%s12475_s17] sm:$0xff]  ;;  %v70_v1 = vld [vmem:[%s12475_s17 + $0x8] sm:$0xff]  ;;  %v72_v2 = vld [vmem:[%s12475_s17 + $0x10] sm:$0xff] }
   0x2   :  { %12496 = sst [smem:[#allocation22_spill]] %s12459_s1  ;;  %69 = vst [vmem:[#allocation2] sm:$0xff] %v68_v0  ;;  %v74_v3 = vld [vmem:[%s12475_s17 + $0x18] sm:$0xff]  ;;  %v76_v4 = vld [vmem:[%s12475_s17 + $0x20] sm:$0xff]  ;;  %v78_v5 = vld [vmem:[%s12475_s17 + $0x28] sm:$0xff] }
   0x3   :  { %12497 = sst [smem:[#allocation23_spill]] %s12460_s2  ;;  %71 = vst [vmem:[#allocation2 + $0x8] sm:$0xff] %v70_v1  ;;  %v80_v6 = vld [vmem:[%s12475_s17 + $0x30] sm:$0xff]  ;;  %v82_v7 = vld [vmem:[%s12475_s17 + $0x38] sm:$0xff]  ;;  %v84_v8 = vld [vmem:[%s12475_s17 + $0x40] sm:$0xff] }
   0x4   :  { %73 = vst [vmem:[#allocation2 + $0x10] sm:$0xff] %v72_v2  ;;  %v86_v9 = vld [vmem:[%s12475_s17 + $0x48] sm:$0xff]  ;;  %v88_v10 = vld [vmem:[%s12475_s17 + $0x50] sm:$0xff]  ;;  %v90_v11 = vld [vmem:[%s12475_s17 + $0x58] sm:$0xff] }
   0x5   :  { %75 = vst [vmem:[#allocation2 + $0x18] sm:$0xff] %v74_v3  ;;  %v92_v12 = vld [vmem:[%s12475_s17 + $0x60] sm:$0xff]  ;;  %v94_v13 = vld [vmem:[%s12475_s17 + $0x68] sm:$0xff]  ;;  %v96_v14 = vld [vmem:[%s12475_s17 + $0x70] sm:$0xff] }
   0x6   :  { %77 = vst [vmem:[#allocation2 + $0x20] sm:$0xff] %v76_v4  ;;  %v98_v15 = vld [vmem:[%s12475_s17 + $0x78] sm:$0xff]  ;;  %v100_v16 = vld [vmem:[%s12475_s17 + $0x80] sm:$0xff]  ;;  %v102_v17 = vld [vmem:[%s12475_s17 + $0x88] sm:$0xff] }
   0x7   :  { %79 = vst [vmem:[#allocation2 + $0x28] sm:$0xff] %v78_v5  ;;  %v104_v18 = vld [vmem:[%s12475_s17 + $0x90] sm:$0xff]  ;;  %v106_v19 = vld [vmem:[%s12475_s17 + $0x98] sm:$0xff]  ;;  %v108_v20 = vld [vmem:[%s12475_s17 + $0xa0] sm:$0xff] }
   0x8   :  { %81 = vst [vmem:[#allocation2 + $0x30] sm:$0xff] %v80_v6  ;;  %v110_v21 = vld [vmem:[%s12475_s17 + $0xa8] sm:$0xff]  ;;  %v112_v22 = vld [vmem:[%s12475_s17 + $0xb0] sm:$0xff]  ;;  %v114_v23 = vld [vmem:[%s12475_s17 + $0xb8] sm:$0xff] }
   0x9   :  { %83 = vst [vmem:[#allocation2 + $0x38] sm:$0xff] %v82_v7  ;;  %v116_v24 = vld [vmem:[%s12475_s17 + $0xc0] sm:$0xff]  ;;  %v118_v25 = vld [vmem:[%s12475_s17 + $0xc8] sm:$0xff]  ;;  %v120_v26 = vld [vmem:[%s12475_s17 + $0xd0] sm:$0xff] }
   0xa   :  { %85 = vst [vmem:[#allocation2 + $0x40] sm:$0xff] %v84_v8  ;;  %v122_v27 = vld [vmem:[%s12475_s17 + $0xd8] sm:$0xff]  ;;  %v124_v28 = vld [vmem:[%s12475_s17 + $0xe0] sm:$0xff]  ;;  %v126_v29 = vld [vmem:[%s12475_s17 + $0xe8] sm:$0xff] }
   0xb   :  { %87 = vst [vmem:[#allocation2 + $0x48] sm:$0xff] %v86_v9  ;;  %v128_v30 = vld [vmem:[%s12475_s17 + $0xf0] sm:$0xff]  ;;  %v130_v31 = vld [vmem:[%s12475_s17 + $0xf8] sm:$0xff]  ;;  %v132_v32 = vld [vmem:[%s12475_s17 + $0x100] sm:$0xff] }
   0xc   :  { %89 = vst [vmem:[#allocation2 + $0x50] sm:$0xff] %v88_v10  ;;  %v134_v33 = vld [vmem:[%s12475_s17 + $0x108] sm:$0xff]  ;;  %v136_v34 = vld [vmem:[%s12475_s17 + $0x110] sm:$0xff]  ;;  %v138_v35 = vld [vmem:[%s12475_s17 + $0x118] sm:$0xff] }
   0xd   :  { %91 = vst [vmem:[#allocation2 + $0x58] sm:$0xff] %v90_v11  ;;  %v140_v36 = vld [vmem:[%s12475_s17 + $0x120] sm:$0xff]  ;;  %v142_v37 = vld [vmem:[%s12475_s17 + $0x128] sm:$0xff]  ;;  %v144_v38 = vld [vmem:[%s12475_s17 + $0x130] sm:$0xff] }
   0xe   :  { %93 = vst [vmem:[#allocation2 + $0x60] sm:$0xff] %v92_v12  ;;  %v146_v39 = vld [vmem:[%s12475_s17 + $0x138] sm:$0xff]  ;;  %v148_v40 = vld [vmem:[%s12475_s17 + $0x140] sm:$0xff]  ;;  %v150_v41 = vld [vmem:[%s12475_s17 + $0x148] sm:$0xff] }
   0xf   :  { %95 = vst [vmem:[#allocation2 + $0x68] sm:$0xff] %v94_v13  ;;  %v152_v42 = vld [vmem:[%s12475_s17 + $0x150] sm:$0xff]  ;;  %v154_v43 = vld [vmem:[%s12475_s17 + $0x158] sm:$0xff]  ;;  %v156_v44 = vld [vmem:[%s12475_s17 + $0x160] sm:$0xff] }
  0x10   :  { %97 = vst [vmem:[#allocation2 + $0x70] sm:$0xff] %v96_v14  ;;  %v158_v45 = vld [vmem:[%s12475_s17 + $0x168] sm:$0xff]  ;;  %v160_v46 = vld [vmem:[%s12475_s17 + $0x170] sm:$0xff]  ;;  %v162_v47 = vld [vmem:[%s12475_s17 + $0x178] sm:$0xff] }
  0x11   :  { %99 = vst [vmem:[#allocation2 + $0x78] sm:$0xff] %v98_v15  ;;  %v164_v48 = vld [vmem:[%s12475_s17 + $0x180] sm:$0xff]  ;;  %v166_v49 = vld [vmem:[%s12475_s17 + $0x188] sm:$0xff]  ;;  %v168_v50 = vld [vmem:[%s12475_s17 + $0x190] sm:$0xff] }
  0x12   :  { %101 = vst [vmem:[#allocation2 + $0x80] sm:$0xff] %v100_v16  ;;  %v170_v51 = vld [vmem:[%s12475_s17 + $0x198] sm:$0xff]  ;;  %v172_v52 = vld [vmem:[%s12475_s17 + $0x1a0] sm:$0xff]  ;;  %v174_v53 = vld [vmem:[%s12475_s17 + $0x1a8] sm:$0xff] }
  0x13   :  { %103 = vst [vmem:[#allocation2 + $0x88] sm:$0xff] %v102_v17  ;;  %v176_v54 = vld [vmem:[%s12475_s17 + $0x1b0] sm:$0xff]  ;;  %v178_v55 = vld [vmem:[%s12475_s17 + $0x1b8] sm:$0xff]  ;;  %v180_v56 = vld [vmem:[%s12475_s17 + $0x1c0] sm:$0xff] }
  0x14   :  { %105 = vst [vmem:[#allocation2 + $0x90] sm:$0xff] %v104_v18  ;;  %v182_v57 = vld [vmem:[%s12475_s17 + $0x1c8] sm:$0xff]  ;;  %v184_v58 = vld [vmem:[%s12475_s17 + $0x1d0] sm:$0xff]  ;;  %v186_v59 = vld [vmem:[%s12475_s17 + $0x1d8] sm:$0xff] }
  0x15   :  { %107 = vst [vmem:[#allocation2 + $0x98] sm:$0xff] %v106_v19  ;;  %v188_v60 = vld [vmem:[%s12475_s17 + $0x1e0] sm:$0xff]  ;;  %v190_v61 = vld [vmem:[%s12475_s17 + $0x1e8] sm:$0xff]  ;;  %v192_v62 = vld [vmem:[%s12475_s17 + $0x1f0] sm:$0xff] }
  0x16   :  { %109 = vst [vmem:[#allocation2 + $0xa0] sm:$0xff] %v108_v20  ;;  %v194_v63 = vld [vmem:[%s12475_s17 + $0x1f8] sm:$0xff]  ;;  %v196_v0 = vld [vmem:[%s12475_s17 + $0x200] sm:$0xff]  ;;  %v198_v1 = vld [vmem:[%s12475_s17 + $0x208] sm:$0xff] }
  0x17   :  { %111 = vst [vmem:[#allocation2 + $0xa8] sm:$0xff] %v110_v21  ;;  %v200_v2 = vld [vmem:[%s12475_s17 + $0x210] sm:$0xff]  ;;  %v202_v3 = vld [vmem:[%s12475_s17 + $0x218] sm:$0xff]  ;;  %v204_v4 = vld [vmem:[%s12475_s17 + $0x220] sm:$0xff] }
  0x18   :  { %113 = vst [vmem:[#allocation2 + $0xb0] sm:$0xff] %v112_v22  ;;  %v206_v5 = vld [vmem:[%s12475_s17 + $0x228] sm:$0xff]  ;;  %v208_v6 = vld [vmem:[%s12475_s17 + $0x230] sm:$0xff]  ;;  %v210_v7 = vld [vmem:[%s12475_s17 + $0x238] sm:$0xff] }
  0x19   :  { %115 = vst [vmem:[#allocation2 + $0xb8] sm:$0xff] %v114_v23  ;;  %v212_v8 = vld [vmem:[%s12475_s17 + $0x240] sm:$0xff]  ;;  %v214_v9 = vld [vmem:[%s12475_s17 + $0x248] sm:$0xff]  ;;  %v216_v10 = vld [vmem:[%s12475_s17 + $0x250] sm:$0xff] }
  0x1a   :  { %117 = vst [vmem:[#allocation2 + $0xc0] sm:$0xff] %v116_v24  ;;  %v218_v11 = vld [vmem:[%s12475_s17 + $0x258] sm:$0xff]  ;;  %v220_v12 = vld [vmem:[%s12475_s17 + $0x260] sm:$0xff]  ;;  %v222_v13 = vld [vmem:[%s12475_s17 + $0x268] sm:$0xff] }
  0x1b   :  { %119 = vst [vmem:[#allocation2 + $0xc8] sm:$0xff] %v118_v25  ;;  %v224_v14 = vld [vmem:[%s12475_s17 + $0x270] sm:$0xff]  ;;  %v226_v15 = vld [vmem:[%s12475_s17 + $0x278] sm:$0xff]  ;;  %v228_v16 = vld [vmem:[%s12475_s17 + $0x280] sm:$0xff] }
  0x1c   :  { %121 = vst [vmem:[#allocation2 + $0xd0] sm:$0xff] %v120_v26  ;;  %v230_v17 = vld [vmem:[%s12475_s17 + $0x288] sm:$0xff]  ;;  %v232_v18 = vld [vmem:[%s12475_s17 + $0x290] sm:$0xff]  ;;  %v234_v19 = vld [vmem:[%s12475_s17 + $0x298] sm:$0xff] }
  0x1d   :  { %123 = vst [vmem:[#allocation2 + $0xd8] sm:$0xff] %v122_v27  ;;  %v236_v20 = vld [vmem:[%s12475_s17 + $0x2a0] sm:$0xff]  ;;  %v238_v21 = vld [vmem:[%s12475_s17 + $0x2a8] sm:$0xff]  ;;  %v240_v22 = vld [vmem:[%s12475_s17 + $0x2b0] sm:$0xff] }
  0x1e   :  { %125 = vst [vmem:[#allocation2 + $0xe0] sm:$0xff] %v124_v28  ;;  %v242_v23 = vld [vmem:[%s12475_s17 + $0x2b8] sm:$0xff]  ;;  %v244_v24 = vld [vmem:[%s12475_s17 + $0x2c0] sm:$0xff]  ;;  %v246_v25 = vld [vmem:[%s12475_s17 + $0x2c8] sm:$0xff] }
  0x1f   :  { %127 = vst [vmem:[#allocation2 + $0xe8] sm:$0xff] %v126_v29  ;;  %v248_v26 = vld [vmem:[%s12475_s17 + $0x2d0] sm:$0xff]  ;;  %v250_v27 = vld [vmem:[%s12475_s17 + $0x2d8] sm:$0xff]  ;;  %v252_v28 = vld [vmem:[%s12475_s17 + $0x2e0] sm:$0xff] }
  0x20   :  { %129 = vst [vmem:[#allocation2 + $0xf0] sm:$0xff] %v128_v30  ;;  %v254_v29 = vld [vmem:[%s12475_s17 + $0x2e8] sm:$0xff]  ;;  %v256_v30 = vld [vmem:[%s12475_s17 + $0x2f0] sm:$0xff] }
  0x21   :  { %131 = vst [vmem:[#allocation2 + $0xf8] sm:$0xff] %v130_v31  ;;  %v258_v31 = vld [vmem:[%s12475_s17 + $0x2f8] sm:$0xff] }
  0x22   :  { %133 = vst [vmem:[#allocation2 + $0x100] sm:$0xff] %v132_v32  ;;  %v260_v32 = vld [vmem:[%s12475_s17 + $0x300] sm:$0xff] }
  0x23   :  { %135 = vst [vmem:[#allocation2 + $0x108] sm:$0xff] %v134_v33  ;;  %v262_v33 = vld [vmem:[%s12475_s17 + $0x308] sm:$0xff] }
  0x24   :  { %137 = vst [vmem:[#allocation2 + $0x110] sm:$0xff] %v136_v34  ;;  %v264_v34 = vld [vmem:[%s12475_s17 + $0x310] sm:$0xff] }
  0x25   :  { %139 = vst [vmem:[#allocation2 + $0x118] sm:$0xff] %v138_v35  ;;  %v266_v35 = vld [vmem:[%s12475_s17 + $0x318] sm:$0xff] }
  0x26   :  { %141 = vst [vmem:[#allocation2 + $0x120] sm:$0xff] %v140_v36  ;;  %v268_v36 = vld [vmem:[%s12475_s17 + $0x320] sm:$0xff] }
  0x27   :  { %143 = vst [vmem:[#allocation2 + $0x128] sm:$0xff] %v142_v37  ;;  %v270_v37 = vld [vmem:[%s12475_s17 + $0x328] sm:$0xff] }
  0x28   :  { %145 = vst [vmem:[#allocation2 + $0x130] sm:$0xff] %v144_v38  ;;  %v272_v38 = vld [vmem:[%s12475_s17 + $0x330] sm:$0xff] }
  0x29   :  { %147 = vst [vmem:[#allocation2 + $0x138] sm:$0xff] %v146_v39  ;;  %v274_v39 = vld [vmem:[%s12475_s17 + $0x338] sm:$0xff] }
  0x2a   :  { %149 = vst [vmem:[#allocation2 + $0x140] sm:$0xff] %v148_v40  ;;  %v276_v40 = vld [vmem:[%s12475_s17 + $0x340] sm:$0xff] }
  0x2b   :  { %151 = vst [vmem:[#allocation2 + $0x148] sm:$0xff] %v150_v41  ;;  %v278_v41 = vld [vmem:[%s12475_s17 + $0x348] sm:$0xff] }
  0x2c   :  { %153 = vst [vmem:[#allocation2 + $0x150] sm:$0xff] %v152_v42  ;;  %v280_v42 = vld [vmem:[%s12475_s17 + $0x350] sm:$0xff] }
  0x2d   :  { %155 = vst [vmem:[#allocation2 + $0x158] sm:$0xff] %v154_v43  ;;  %v282_v43 = vld [vmem:[%s12475_s17 + $0x358] sm:$0xff] }
  0x2e   :  { %157 = vst [vmem:[#allocation2 + $0x160] sm:$0xff] %v156_v44  ;;  %v284_v44 = vld [vmem:[%s12475_s17 + $0x360] sm:$0xff] }
  0x2f   :  { %159 = vst [vmem:[#allocation2 + $0x168] sm:$0xff] %v158_v45  ;;  %v286_v45 = vld [vmem:[%s12475_s17 + $0x368] sm:$0xff] }
  0x30   :  { %161 = vst [vmem:[#allocation2 + $0x170] sm:$0xff] %v160_v46  ;;  %v288_v46 = vld [vmem:[%s12475_s17 + $0x370] sm:$0xff] }
  0x31   :  { %163 = vst [vmem:[#allocation2 + $0x178] sm:$0xff] %v162_v47  ;;  %v290_v47 = vld [vmem:[%s12475_s17 + $0x378] sm:$0xff] }
  0x32   :  { %165 = vst [vmem:[#allocation2 + $0x180] sm:$0xff] %v164_v48  ;;  %v292_v48 = vld [vmem:[%s12475_s17 + $0x380] sm:$0xff] }
  0x33   :  { %167 = vst [vmem:[#allocation2 + $0x188] sm:$0xff] %v166_v49  ;;  %v294_v49 = vld [vmem:[%s12475_s17 + $0x388] sm:$0xff] }
  0x34   :  { %169 = vst [vmem:[#allocation2 + $0x190] sm:$0xff] %v168_v50  ;;  %v296_v50 = vld [vmem:[%s12475_s17 + $0x390] sm:$0xff] }
  0x35   :  { %171 = vst [vmem:[#allocation2 + $0x198] sm:$0xff] %v170_v51  ;;  %v298_v51 = vld [vmem:[%s12475_s17 + $0x398] sm:$0xff] }
  0x36   :  { %173 = vst [vmem:[#allocation2 + $0x1a0] sm:$0xff] %v172_v52  ;;  %v300_v52 = vld [vmem:[%s12475_s17 + $0x3a0] sm:$0xff] }
  0x37   :  { %175 = vst [vmem:[#allocation2 + $0x1a8] sm:$0xff] %v174_v53  ;;  %v302_v53 = vld [vmem:[%s12475_s17 + $0x3a8] sm:$0xff] }
  0x38   :  { %177 = vst [vmem:[#allocation2 + $0x1b0] sm:$0xff] %v176_v54  ;;  %v304_v54 = vld [vmem:[%s12475_s17 + $0x3b0] sm:$0xff] }
  0x39   :  { %179 = vst [vmem:[#allocation2 + $0x1b8] sm:$0xff] %v178_v55  ;;  %v306_v55 = vld [vmem:[%s12475_s17 + $0x3b8] sm:$0xff] }
  0x3a   :  { %181 = vst [vmem:[#allocation2 + $0x1c0] sm:$0xff] %v180_v56  ;;  %v308_v56 = vld [vmem:[%s12475_s17 + $0x3c0] sm:$0xff] }
  0x3b   :  { %183 = vst [vmem:[#allocation2 + $0x1c8] sm:$0xff] %v182_v57  ;;  %v310_v57 = vld [vmem:[%s12475_s17 + $0x3c8] sm:$0xff] }
  0x3c   :  { %185 = vst [vmem:[#allocation2 + $0x1d0] sm:$0xff] %v184_v58  ;;  %v312_v58 = vld [vmem:[%s12475_s17 + $0x3d0] sm:$0xff] }
  0x3d   :  { %187 = vst [vmem:[#allocation2 + $0x1d8] sm:$0xff] %v186_v59  ;;  %v314_v59 = vld [vmem:[%s12475_s17 + $0x3d8] sm:$0xff] }
  0x3e   :  { %189 = vst [vmem:[#allocation2 + $0x1e0] sm:$0xff] %v188_v60  ;;  %v316_v60 = vld [vmem:[%s12475_s17 + $0x3e0] sm:$0xff] }
  0x3f   :  { %191 = vst [vmem:[#allocation2 + $0x1e8] sm:$0xff] %v190_v61  ;;  %v318_v61 = vld [vmem:[%s12475_s17 + $0x3e8] sm:$0xff] }
  0x40   :  { %193 = vst [vmem:[#allocation2 + $0x1f0] sm:$0xff] %v192_v62  ;;  %v320_v62 = vld [vmem:[%s12475_s17 + $0x3f0] sm:$0xff] }
  0x41   :  { %195 = vst [vmem:[#allocation2 + $0x1f8] sm:$0xff] %v194_v63  ;;  %v322_v63 = vld [vmem:[%s12475_s17 + $0x3f8] sm:$0xff] }
  0x42   :  { %197 = vst [vmem:[#allocation2 + $0x200] sm:$0xff] %v196_v0  ;;  %v324_v0 = vld [vmem:[%s12475_s17 + $0x400] sm:$0xff] }
  0x43   :  { %199 = vst [vmem:[#allocation2 + $0x208] sm:$0xff] %v198_v1  ;;  %v326_v1 = vld [vmem:[%s12475_s17 + $0x408] sm:$0xff] }
  0x44   :  { %201 = vst [vmem:[#allocation2 + $0x210] sm:$0xff] %v200_v2  ;;  %v328_v2 = vld [vmem:[%s12475_s17 + $0x410] sm:$0xff] }
  0x45   :  { %203 = vst [vmem:[#allocation2 + $0x218] sm:$0xff] %v202_v3  ;;  %v330_v3 = vld [vmem:[%s12475_s17 + $0x418] sm:$0xff] }
  0x46   :  { %205 = vst [vmem:[#allocation2 + $0x220] sm:$0xff] %v204_v4  ;;  %v332_v4 = vld [vmem:[%s12475_s17 + $0x420] sm:$0xff] }
  0x47   :  { %207 = vst [vmem:[#allocation2 + $0x228] sm:$0xff] %v206_v5  ;;  %v334_v5 = vld [vmem:[%s12475_s17 + $0x428] sm:$0xff] }
  0x48   :  { %209 = vst [vmem:[#allocation2 + $0x230] sm:$0xff] %v208_v6  ;;  %v336_v6 = vld [vmem:[%s12475_s17 + $0x430] sm:$0xff] }
  0x49   :  { %211 = vst [vmem:[#allocation2 + $0x238] sm:$0xff] %v210_v7  ;;  %v338_v7 = vld [vmem:[%s12475_s17 + $0x438] sm:$0xff] }
  0x4a   :  { %213 = vst [vmem:[#allocation2 + $0x240] sm:$0xff] %v212_v8  ;;  %v340_v8 = vld [vmem:[%s12475_s17 + $0x440] sm:$0xff] }
  0x4b   :  { %215 = vst [vmem:[#allocation2 + $0x248] sm:$0xff] %v214_v9  ;;  %v342_v9 = vld [vmem:[%s12475_s17 + $0x448] sm:$0xff] }
  0x4c   :  { %217 = vst [vmem:[#allocation2 + $0x250] sm:$0xff] %v216_v10  ;;  %v344_v10 = vld [vmem:[%s12475_s17 + $0x450] sm:$0xff] }
  0x4d   :  { %219 = vst [vmem:[#allocation2 + $0x258] sm:$0xff] %v218_v11  ;;  %v346_v11 = vld [vmem:[%s12475_s17 + $0x458] sm:$0xff] }
  0x4e   :  { %221 = vst [vmem:[#allocation2 + $0x260] sm:$0xff] %v220_v12  ;;  %v348_v12 = vld [vmem:[%s12475_s17 + $0x460] sm:$0xff] }
  0x4f   :  { %223 = vst [vmem:[#allocation2 + $0x268] sm:$0xff] %v222_v13  ;;  %v350_v13 = vld [vmem:[%s12475_s17 + $0x468] sm:$0xff] }
  0x50   :  { %225 = vst [vmem:[#allocation2 + $0x270] sm:$0xff] %v224_v14  ;;  %v352_v14 = vld [vmem:[%s12475_s17 + $0x470] sm:$0xff] }
  0x51   :  { %227 = vst [vmem:[#allocation2 + $0x278] sm:$0xff] %v226_v15  ;;  %v354_v15 = vld [vmem:[%s12475_s17 + $0x478] sm:$0xff] }
  0x52   :  { %229 = vst [vmem:[#allocation2 + $0x280] sm:$0xff] %v228_v16  ;;  %v356_v16 = vld [vmem:[%s12475_s17 + $0x480] sm:$0xff] }
  0x53   :  { %231 = vst [vmem:[#allocation2 + $0x288] sm:$0xff] %v230_v17  ;;  %v358_v17 = vld [vmem:[%s12475_s17 + $0x488] sm:$0xff] }
  0x54   :  { %233 = vst [vmem:[#allocation2 + $0x290] sm:$0xff] %v232_v18  ;;  %v360_v18 = vld [vmem:[%s12475_s17 + $0x490] sm:$0xff] }
  0x55   :  { %235 = vst [vmem:[#allocation2 + $0x298] sm:$0xff] %v234_v19  ;;  %v362_v19 = vld [vmem:[%s12475_s17 + $0x498] sm:$0xff] }
  0x56   :  { %237 = vst [vmem:[#allocation2 + $0x2a0] sm:$0xff] %v236_v20  ;;  %v364_v20 = vld [vmem:[%s12475_s17 + $0x4a0] sm:$0xff] }
  0x57   :  { %239 = vst [vmem:[#allocation2 + $0x2a8] sm:$0xff] %v238_v21  ;;  %v366_v21 = vld [vmem:[%s12475_s17 + $0x4a8] sm:$0xff] }
  0x58   :  { %241 = vst [vmem:[#allocation2 + $0x2b0] sm:$0xff] %v240_v22  ;;  %v368_v22 = vld [vmem:[%s12475_s17 + $0x4b0] sm:$0xff] }
  0x59   :  { %243 = vst [vmem:[#allocation2 + $0x2b8] sm:$0xff] %v242_v23  ;;  %v370_v23 = vld [vmem:[%s12475_s17 + $0x4b8] sm:$0xff] }
  0x5a   :  { %245 = vst [vmem:[#allocation2 + $0x2c0] sm:$0xff] %v244_v24  ;;  %v372_v24 = vld [vmem:[%s12475_s17 + $0x4c0] sm:$0xff] }
  0x5b   :  { %247 = vst [vmem:[#allocation2 + $0x2c8] sm:$0xff] %v246_v25  ;;  %v374_v25 = vld [vmem:[%s12475_s17 + $0x4c8] sm:$0xff] }
  0x5c   :  { %249 = vst [vmem:[#allocation2 + $0x2d0] sm:$0xff] %v248_v26  ;;  %v376_v26 = vld [vmem:[%s12475_s17 + $0x4d0] sm:$0xff] }
  0x5d   :  { %251 = vst [vmem:[#allocation2 + $0x2d8] sm:$0xff] %v250_v27  ;;  %v378_v27 = vld [vmem:[%s12475_s17 + $0x4d8] sm:$0xff] }
  0x5e   :  { %253 = vst [vmem:[#allocation2 + $0x2e0] sm:$0xff] %v252_v28  ;;  %v380_v28 = vld [vmem:[%s12475_s17 + $0x4e0] sm:$0xff] }
  0x5f   :  { %255 = vst [vmem:[#allocation2 + $0x2e8] sm:$0xff] %v254_v29  ;;  %v382_v29 = vld [vmem:[%s12475_s17 + $0x4e8] sm:$0xff] }
  0x60   :  { %257 = vst [vmem:[#allocation2 + $0x2f0] sm:$0xff] %v256_v30  ;;  %v384_v30 = vld [vmem:[%s12475_s17 + $0x4f0] sm:$0xff] }
  0x61   :  { %259 = vst [vmem:[#allocation2 + $0x2f8] sm:$0xff] %v258_v31  ;;  %v386_v31 = vld [vmem:[%s12475_s17 + $0x4f8] sm:$0xff] }
  0x62   :  { %261 = vst [vmem:[#allocation2 + $0x300] sm:$0xff] %v260_v32  ;;  %v388_v32 = vld [vmem:[%s12475_s17 + $0x500] sm:$0xff] }
  0x63   :  { %263 = vst [vmem:[#allocation2 + $0x308] sm:$0xff] %v262_v33  ;;  %v390_v33 = vld [vmem:[%s12475_s17 + $0x508] sm:$0xff] }
  0x64   :  { %265 = vst [vmem:[#allocation2 + $0x310] sm:$0xff] %v264_v34  ;;  %v392_v34 = vld [vmem:[%s12475_s17 + $0x510] sm:$0xff] }
  0x65   :  { %267 = vst [vmem:[#allocation2 + $0x318] sm:$0xff] %v266_v35  ;;  %v394_v35 = vld [vmem:[%s12475_s17 + $0x518] sm:$0xff] }
  0x66   :  { %269 = vst [vmem:[#allocation2 + $0x320] sm:$0xff] %v268_v36  ;;  %v396_v36 = vld [vmem:[%s12475_s17 + $0x520] sm:$0xff] }
  0x67   :  { %271 = vst [vmem:[#allocation2 + $0x328] sm:$0xff] %v270_v37  ;;  %v398_v37 = vld [vmem:[%s12475_s17 + $0x528] sm:$0xff] }
  0x68   :  { %273 = vst [vmem:[#allocation2 + $0x330] sm:$0xff] %v272_v38  ;;  %v400_v38 = vld [vmem:[%s12475_s17 + $0x530] sm:$0xff] }
  0x69   :  { %275 = vst [vmem:[#allocation2 + $0x338] sm:$0xff] %v274_v39  ;;  %v402_v39 = vld [vmem:[%s12475_s17 + $0x538] sm:$0xff] }
  0x6a   :  { %277 = vst [vmem:[#allocation2 + $0x340] sm:$0xff] %v276_v40  ;;  %v404_v40 = vld [vmem:[%s12475_s17 + $0x540] sm:$0xff] }
  0x6b   :  { %279 = vst [vmem:[#allocation2 + $0x348] sm:$0xff] %v278_v41  ;;  %v406_v41 = vld [vmem:[%s12475_s17 + $0x548] sm:$0xff] }
  0x6c   :  { %281 = vst [vmem:[#allocation2 + $0x350] sm:$0xff] %v280_v42  ;;  %v408_v42 = vld [vmem:[%s12475_s17 + $0x550] sm:$0xff] }
  0x6d   :  { %283 = vst [vmem:[#allocation2 + $0x358] sm:$0xff] %v282_v43  ;;  %v410_v43 = vld [vmem:[%s12475_s17 + $0x558] sm:$0xff] }
  0x6e   :  { %285 = vst [vmem:[#allocation2 + $0x360] sm:$0xff] %v284_v44  ;;  %v412_v44 = vld [vmem:[%s12475_s17 + $0x560] sm:$0xff] }
  0x6f   :  { %287 = vst [vmem:[#allocation2 + $0x368] sm:$0xff] %v286_v45  ;;  %v414_v45 = vld [vmem:[%s12475_s17 + $0x568] sm:$0xff] }
  0x70   :  { %289 = vst [vmem:[#allocation2 + $0x370] sm:$0xff] %v288_v46  ;;  %v416_v46 = vld [vmem:[%s12475_s17 + $0x570] sm:$0xff] }
  0x71   :  { %291 = vst [vmem:[#allocation2 + $0x378] sm:$0xff] %v290_v47  ;;  %v418_v47 = vld [vmem:[%s12475_s17 + $0x578] sm:$0xff] }
  0x72   :  { %293 = vst [vmem:[#allocation2 + $0x380] sm:$0xff] %v292_v48  ;;  %v420_v48 = vld [vmem:[%s12475_s17 + $0x580] sm:$0xff] }
  0x73   :  { %295 = vst [vmem:[#allocation2 + $0x388] sm:$0xff] %v294_v49  ;;  %v422_v49 = vld [vmem:[%s12475_s17 + $0x588] sm:$0xff] }
  0x74   :  { %297 = vst [vmem:[#allocation2 + $0x390] sm:$0xff] %v296_v50  ;;  %v424_v50 = vld [vmem:[%s12475_s17 + $0x590] sm:$0xff] }
  0x75   :  { %299 = vst [vmem:[#allocation2 + $0x398] sm:$0xff] %v298_v51  ;;  %v426_v51 = vld [vmem:[%s12475_s17 + $0x598] sm:$0xff] }
  0x76   :  { %301 = vst [vmem:[#allocation2 + $0x3a0] sm:$0xff] %v300_v52  ;;  %v428_v52 = vld [vmem:[%s12475_s17 + $0x5a0] sm:$0xff] }
  0x77   :  { %303 = vst [vmem:[#allocation2 + $0x3a8] sm:$0xff] %v302_v53  ;;  %v430_v53 = vld [vmem:[%s12475_s17 + $0x5a8] sm:$0xff] }
  0x78   :  { %305 = vst [vmem:[#allocation2 + $0x3b0] sm:$0xff] %v304_v54  ;;  %v432_v54 = vld [vmem:[%s12475_s17 + $0x5b0] sm:$0xff] }
  0x79   :  { %307 = vst [vmem:[#allocation2 + $0x3b8] sm:$0xff] %v306_v55  ;;  %v434_v55 = vld [vmem:[%s12475_s17 + $0x5b8] sm:$0xff] }
  0x7a   :  { %309 = vst [vmem:[#allocation2 + $0x3c0] sm:$0xff] %v308_v56  ;;  %v436_v56 = vld [vmem:[%s12475_s17 + $0x5c0] sm:$0xff] }
  0x7b   :  { %311 = vst [vmem:[#allocation2 + $0x3c8] sm:$0xff] %v310_v57  ;;  %v438_v57 = vld [vmem:[%s12475_s17 + $0x5c8] sm:$0xff] }
  0x7c   :  { %313 = vst [vmem:[#allocation2 + $0x3d0] sm:$0xff] %v312_v58  ;;  %v440_v58 = vld [vmem:[%s12475_s17 + $0x5d0] sm:$0xff] }
  0x7d   :  { %315 = vst [vmem:[#allocation2 + $0x3d8] sm:$0xff] %v314_v59  ;;  %v442_v59 = vld [vmem:[%s12475_s17 + $0x5d8] sm:$0xff] }
  0x7e   :  { %317 = vst [vmem:[#allocation2 + $0x3e0] sm:$0xff] %v316_v60  ;;  %v444_v60 = vld [vmem:[%s12475_s17 + $0x5e0] sm:$0xff] }
  0x7f   :  { %319 = vst [vmem:[#allocation2 + $0x3e8] sm:$0xff] %v318_v61  ;;  %v446_v61 = vld [vmem:[%s12475_s17 + $0x5e8] sm:$0xff] }
  0x80   :  { %321 = vst [vmem:[#allocation2 + $0x3f0] sm:$0xff] %v320_v62  ;;  %v448_v62 = vld [vmem:[%s12475_s17 + $0x5f0] sm:$0xff] }
  0x81   :  { %323 = vst [vmem:[#allocation2 + $0x3f8] sm:$0xff] %v322_v63  ;;  %v450_v63 = vld [vmem:[%s12475_s17 + $0x5f8] sm:$0xff] }
  0x82   :  { %325 = vst [vmem:[#allocation2 + $0x400] sm:$0xff] %v324_v0  ;;  %v452_v0 = vld [vmem:[%s12475_s17 + $0x600] sm:$0xff] }
  0x83   :  { %327 = vst [vmem:[#allocation2 + $0x408] sm:$0xff] %v326_v1  ;;  %v454_v1 = vld [vmem:[%s12475_s17 + $0x608] sm:$0xff] }
  0x84   :  { %329 = vst [vmem:[#allocation2 + $0x410] sm:$0xff] %v328_v2  ;;  %v456_v2 = vld [vmem:[%s12475_s17 + $0x610] sm:$0xff] }
  0x85   :  { %331 = vst [vmem:[#allocation2 + $0x418] sm:$0xff] %v330_v3  ;;  %v458_v3 = vld [vmem:[%s12475_s17 + $0x618] sm:$0xff] }
  0x86   :  { %333 = vst [vmem:[#allocation2 + $0x420] sm:$0xff] %v332_v4  ;;  %v460_v4 = vld [vmem:[%s12475_s17 + $0x620] sm:$0xff] }
  0x87   :  { %335 = vst [vmem:[#allocation2 + $0x428] sm:$0xff] %v334_v5  ;;  %v462_v5 = vld [vmem:[%s12475_s17 + $0x628] sm:$0xff] }
  0x88   :  { %337 = vst [vmem:[#allocation2 + $0x430] sm:$0xff] %v336_v6  ;;  %v464_v6 = vld [vmem:[%s12475_s17 + $0x630] sm:$0xff] }
  0x89   :  { %339 = vst [vmem:[#allocation2 + $0x438] sm:$0xff] %v338_v7  ;;  %v466_v7 = vld [vmem:[%s12475_s17 + $0x638] sm:$0xff] }
  0x8a   :  { %341 = vst [vmem:[#allocation2 + $0x440] sm:$0xff] %v340_v8  ;;  %v468_v8 = vld [vmem:[%s12475_s17 + $0x640] sm:$0xff] }
  0x8b   :  { %343 = vst [vmem:[#allocation2 + $0x448] sm:$0xff] %v342_v9  ;;  %v470_v9 = vld [vmem:[%s12475_s17 + $0x648] sm:$0xff] }
  0x8c   :  { %345 = vst [vmem:[#allocation2 + $0x450] sm:$0xff] %v344_v10  ;;  %v472_v10 = vld [vmem:[%s12475_s17 + $0x650] sm:$0xff] }
  0x8d   :  { %347 = vst [vmem:[#allocation2 + $0x458] sm:$0xff] %v346_v11  ;;  %v474_v11 = vld [vmem:[%s12475_s17 + $0x658] sm:$0xff] }
  0x8e   :  { %349 = vst [vmem:[#allocation2 + $0x460] sm:$0xff] %v348_v12  ;;  %v476_v12 = vld [vmem:[%s12475_s17 + $0x660] sm:$0xff] }
  0x8f   :  { %351 = vst [vmem:[#allocation2 + $0x468] sm:$0xff] %v350_v13  ;;  %v478_v13 = vld [vmem:[%s12475_s17 + $0x668] sm:$0xff] }
  0x90   :  { %353 = vst [vmem:[#allocation2 + $0x470] sm:$0xff] %v352_v14  ;;  %v480_v14 = vld [vmem:[%s12475_s17 + $0x670] sm:$0xff] }
  0x91   :  { %355 = vst [vmem:[#allocation2 + $0x478] sm:$0xff] %v354_v15  ;;  %v482_v15 = vld [vmem:[%s12475_s17 + $0x678] sm:$0xff] }
  0x92   :  { %357 = vst [vmem:[#allocation2 + $0x480] sm:$0xff] %v356_v16  ;;  %v484_v16 = vld [vmem:[%s12475_s17 + $0x680] sm:$0xff] }
  0x93   :  { %359 = vst [vmem:[#allocation2 + $0x488] sm:$0xff] %v358_v17  ;;  %v486_v17 = vld [vmem:[%s12475_s17 + $0x688] sm:$0xff] }
  0x94   :  { %361 = vst [vmem:[#allocation2 + $0x490] sm:$0xff] %v360_v18  ;;  %v488_v18 = vld [vmem:[%s12475_s17 + $0x690] sm:$0xff] }
  0x95   :  { %363 = vst [vmem:[#allocation2 + $0x498] sm:$0xff] %v362_v19  ;;  %v490_v19 = vld [vmem:[%s12475_s17 + $0x698] sm:$0xff] }
  0x96   :  { %365 = vst [vmem:[#allocation2 + $0x4a0] sm:$0xff] %v364_v20  ;;  %v492_v20 = vld [vmem:[%s12475_s17 + $0x6a0] sm:$0xff] }
  0x97   :  { %367 = vst [vmem:[#allocation2 + $0x4a8] sm:$0xff] %v366_v21  ;;  %v494_v21 = vld [vmem:[%s12475_s17 + $0x6a8] sm:$0xff] }
  0x98   :  { %369 = vst [vmem:[#allocation2 + $0x4b0] sm:$0xff] %v368_v22  ;;  %v496_v22 = vld [vmem:[%s12475_s17 + $0x6b0] sm:$0xff] }
  0x99   :  { %371 = vst [vmem:[#allocation2 + $0x4b8] sm:$0xff] %v370_v23  ;;  %v498_v23 = vld [vmem:[%s12475_s17 + $0x6b8] sm:$0xff] }
  0x9a   :  { %373 = vst [vmem:[#allocation2 + $0x4c0] sm:$0xff] %v372_v24  ;;  %v500_v24 = vld [vmem:[%s12475_s17 + $0x6c0] sm:$0xff] }
  0x9b   :  { %375 = vst [vmem:[#allocation2 + $0x4c8] sm:$0xff] %v374_v25  ;;  %v502_v25 = vld [vmem:[%s12475_s17 + $0x6c8] sm:$0xff] }
  0x9c   :  { %377 = vst [vmem:[#allocation2 + $0x4d0] sm:$0xff] %v376_v26  ;;  %v504_v26 = vld [vmem:[%s12475_s17 + $0x6d0] sm:$0xff] }
  0x9d   :  { %379 = vst [vmem:[#allocation2 + $0x4d8] sm:$0xff] %v378_v27  ;;  %v506_v27 = vld [vmem:[%s12475_s17 + $0x6d8] sm:$0xff] }
  0x9e   :  { %381 = vst [vmem:[#allocation2 + $0x4e0] sm:$0xff] %v380_v28  ;;  %v508_v28 = vld [vmem:[%s12475_s17 + $0x6e0] sm:$0xff] }
  0x9f   :  { %383 = vst [vmem:[#allocation2 + $0x4e8] sm:$0xff] %v382_v29  ;;  %v510_v29 = vld [vmem:[%s12475_s17 + $0x6e8] sm:$0xff] }
  0xa0   :  { %385 = vst [vmem:[#allocation2 + $0x4f0] sm:$0xff] %v384_v30  ;;  %v512_v30 = vld [vmem:[%s12475_s17 + $0x6f0] sm:$0xff] }
  0xa1   :  { %387 = vst [vmem:[#allocation2 + $0x4f8] sm:$0xff] %v386_v31  ;;  %v514_v31 = vld [vmem:[%s12475_s17 + $0x6f8] sm:$0xff] }
  0xa2   :  { %389 = vst [vmem:[#allocation2 + $0x500] sm:$0xff] %v388_v32  ;;  %v516_v32 = vld [vmem:[%s12475_s17 + $0x700] sm:$0xff] }
  0xa3   :  { %391 = vst [vmem:[#allocation2 + $0x508] sm:$0xff] %v390_v33  ;;  %v518_v33 = vld [vmem:[%s12475_s17 + $0x708] sm:$0xff] }
  0xa4   :  { %393 = vst [vmem:[#allocation2 + $0x510] sm:$0xff] %v392_v34  ;;  %v520_v34 = vld [vmem:[%s12475_s17 + $0x710] sm:$0xff] }
  0xa5   :  { %395 = vst [vmem:[#allocation2 + $0x518] sm:$0xff] %v394_v35  ;;  %v522_v35 = vld [vmem:[%s12475_s17 + $0x718] sm:$0xff] }
  0xa6   :  { %397 = vst [vmem:[#allocation2 + $0x520] sm:$0xff] %v396_v36  ;;  %v524_v36 = vld [vmem:[%s12475_s17 + $0x720] sm:$0xff] }
  0xa7   :  { %399 = vst [vmem:[#allocation2 + $0x528] sm:$0xff] %v398_v37  ;;  %v526_v37 = vld [vmem:[%s12475_s17 + $0x728] sm:$0xff] }
  0xa8   :  { %401 = vst [vmem:[#allocation2 + $0x530] sm:$0xff] %v400_v38  ;;  %v528_v38 = vld [vmem:[%s12475_s17 + $0x730] sm:$0xff] }
  0xa9   :  { %403 = vst [vmem:[#allocation2 + $0x538] sm:$0xff] %v402_v39  ;;  %v530_v39 = vld [vmem:[%s12475_s17 + $0x738] sm:$0xff] }
  0xaa   :  { %405 = vst [vmem:[#allocation2 + $0x540] sm:$0xff] %v404_v40  ;;  %v532_v40 = vld [vmem:[%s12475_s17 + $0x740] sm:$0xff] }
  0xab   :  { %407 = vst [vmem:[#allocation2 + $0x548] sm:$0xff] %v406_v41  ;;  %v534_v41 = vld [vmem:[%s12475_s17 + $0x748] sm:$0xff] }
  0xac   :  { %409 = vst [vmem:[#allocation2 + $0x550] sm:$0xff] %v408_v42  ;;  %v536_v42 = vld [vmem:[%s12475_s17 + $0x750] sm:$0xff] }
  0xad   :  { %411 = vst [vmem:[#allocation2 + $0x558] sm:$0xff] %v410_v43  ;;  %v538_v43 = vld [vmem:[%s12475_s17 + $0x758] sm:$0xff] }
  0xae   :  { %413 = vst [vmem:[#allocation2 + $0x560] sm:$0xff] %v412_v44  ;;  %v540_v44 = vld [vmem:[%s12475_s17 + $0x760] sm:$0xff] }
  0xaf   :  { %415 = vst [vmem:[#allocation2 + $0x568] sm:$0xff] %v414_v45  ;;  %v542_v45 = vld [vmem:[%s12475_s17 + $0x768] sm:$0xff] }
  0xb0   :  { %417 = vst [vmem:[#allocation2 + $0x570] sm:$0xff] %v416_v46  ;;  %v544_v46 = vld [vmem:[%s12475_s17 + $0x770] sm:$0xff] }
  0xb1   :  { %419 = vst [vmem:[#allocation2 + $0x578] sm:$0xff] %v418_v47  ;;  %v546_v47 = vld [vmem:[%s12475_s17 + $0x778] sm:$0xff] }
  0xb2   :  { %421 = vst [vmem:[#allocation2 + $0x580] sm:$0xff] %v420_v48  ;;  %v548_v48 = vld [vmem:[%s12475_s17 + $0x780] sm:$0xff] }
  0xb3   :  { %423 = vst [vmem:[#allocation2 + $0x588] sm:$0xff] %v422_v49  ;;  %v550_v49 = vld [vmem:[%s12475_s17 + $0x788] sm:$0xff] }
  0xb4   :  { %425 = vst [vmem:[#allocation2 + $0x590] sm:$0xff] %v424_v50  ;;  %v552_v50 = vld [vmem:[%s12475_s17 + $0x790] sm:$0xff] }
  0xb5   :  { %427 = vst [vmem:[#allocation2 + $0x598] sm:$0xff] %v426_v51  ;;  %v554_v51 = vld [vmem:[%s12475_s17 + $0x798] sm:$0xff] }
  0xb6   :  { %429 = vst [vmem:[#allocation2 + $0x5a0] sm:$0xff] %v428_v52  ;;  %v556_v52 = vld [vmem:[%s12475_s17 + $0x7a0] sm:$0xff] }
  0xb7   :  { %431 = vst [vmem:[#allocation2 + $0x5a8] sm:$0xff] %v430_v53  ;;  %v558_v53 = vld [vmem:[%s12475_s17 + $0x7a8] sm:$0xff] }
  0xb8   :  { %433 = vst [vmem:[#allocation2 + $0x5b0] sm:$0xff] %v432_v54  ;;  %v560_v54 = vld [vmem:[%s12475_s17 + $0x7b0] sm:$0xff] }
  0xb9   :  { %435 = vst [vmem:[#allocation2 + $0x5b8] sm:$0xff] %v434_v55  ;;  %v562_v55 = vld [vmem:[%s12475_s17 + $0x7b8] sm:$0xff] }
  0xba   :  { %437 = vst [vmem:[#allocation2 + $0x5c0] sm:$0xff] %v436_v56  ;;  %v564_v56 = vld [vmem:[%s12475_s17 + $0x7c0] sm:$0xff] }
  0xbb   :  { %439 = vst [vmem:[#allocation2 + $0x5c8] sm:$0xff] %v438_v57  ;;  %v566_v57 = vld [vmem:[%s12475_s17 + $0x7c8] sm:$0xff] }
  0xbc   :  { %441 = vst [vmem:[#allocation2 + $0x5d0] sm:$0xff] %v440_v58  ;;  %v568_v58 = vld [vmem:[%s12475_s17 + $0x7d0] sm:$0xff] }
  0xbd   :  { %443 = vst [vmem:[#allocation2 + $0x5d8] sm:$0xff] %v442_v59  ;;  %v570_v59 = vld [vmem:[%s12475_s17 + $0x7d8] sm:$0xff] }
  0xbe   :  { %445 = vst [vmem:[#allocation2 + $0x5e0] sm:$0xff] %v444_v60  ;;  %v572_v60 = vld [vmem:[%s12475_s17 + $0x7e0] sm:$0xff] }
  0xbf   :  { %447 = vst [vmem:[#allocation2 + $0x5e8] sm:$0xff] %v446_v61  ;;  %v574_v61 = vld [vmem:[%s12475_s17 + $0x7e8] sm:$0xff] }
  0xc0   :  { %449 = vst [vmem:[#allocation2 + $0x5f0] sm:$0xff] %v448_v62  ;;  %v576_v62 = vld [vmem:[%s12475_s17 + $0x7f0] sm:$0xff] }
  0xc1   :  { %451 = vst [vmem:[#allocation2 + $0x5f8] sm:$0xff] %v450_v63  ;;  %v578_v63 = vld [vmem:[%s12475_s17 + $0x7f8] sm:$0xff] }
  0xc2   :  { %453 = vst [vmem:[#allocation2 + $0x600] sm:$0xff] %v452_v0  ;;  %v580_v0 = vld [vmem:[%s12475_s17 + $0x800] sm:$0xff] }
  0xc3   :  { %455 = vst [vmem:[#allocation2 + $0x608] sm:$0xff] %v454_v1  ;;  %v582_v1 = vld [vmem:[%s12475_s17 + $0x808] sm:$0xff] }
  0xc4   :  { %457 = vst [vmem:[#allocation2 + $0x610] sm:$0xff] %v456_v2  ;;  %v584_v2 = vld [vmem:[%s12475_s17 + $0x810] sm:$0xff] }
  0xc5   :  { %459 = vst [vmem:[#allocation2 + $0x618] sm:$0xff] %v458_v3  ;;  %v586_v3 = vld [vmem:[%s12475_s17 + $0x818] sm:$0xff] }
  0xc6   :  { %461 = vst [vmem:[#allocation2 + $0x620] sm:$0xff] %v460_v4  ;;  %v588_v4 = vld [vmem:[%s12475_s17 + $0x820] sm:$0xff] }
  0xc7   :  { %463 = vst [vmem:[#allocation2 + $0x628] sm:$0xff] %v462_v5  ;;  %v590_v5 = vld [vmem:[%s12475_s17 + $0x828] sm:$0xff] }
  0xc8   :  { %465 = vst [vmem:[#allocation2 + $0x630] sm:$0xff] %v464_v6  ;;  %v592_v6 = vld [vmem:[%s12475_s17 + $0x830] sm:$0xff] }
  0xc9   :  { %467 = vst [vmem:[#allocation2 + $0x638] sm:$0xff] %v466_v7  ;;  %v594_v7 = vld [vmem:[%s12475_s17 + $0x838] sm:$0xff] }
  0xca   :  { %469 = vst [vmem:[#allocation2 + $0x640] sm:$0xff] %v468_v8  ;;  %v596_v8 = vld [vmem:[%s12475_s17 + $0x840] sm:$0xff] }
  0xcb   :  { %471 = vst [vmem:[#allocation2 + $0x648] sm:$0xff] %v470_v9  ;;  %v598_v9 = vld [vmem:[%s12475_s17 + $0x848] sm:$0xff] }
  0xcc   :  { %473 = vst [vmem:[#allocation2 + $0x650] sm:$0xff] %v472_v10  ;;  %v600_v10 = vld [vmem:[%s12475_s17 + $0x850] sm:$0xff] }
  0xcd   :  { %475 = vst [vmem:[#allocation2 + $0x658] sm:$0xff] %v474_v11  ;;  %v602_v11 = vld [vmem:[%s12475_s17 + $0x858] sm:$0xff] }
  0xce   :  { %477 = vst [vmem:[#allocation2 + $0x660] sm:$0xff] %v476_v12  ;;  %v604_v12 = vld [vmem:[%s12475_s17 + $0x860] sm:$0xff] }
  0xcf   :  { %479 = vst [vmem:[#allocation2 + $0x668] sm:$0xff] %v478_v13  ;;  %v606_v13 = vld [vmem:[%s12475_s17 + $0x868] sm:$0xff] }
  0xd0   :  { %481 = vst [vmem:[#allocation2 + $0x670] sm:$0xff] %v480_v14  ;;  %v608_v14 = vld [vmem:[%s12475_s17 + $0x870] sm:$0xff] }
  0xd1   :  { %483 = vst [vmem:[#allocation2 + $0x678] sm:$0xff] %v482_v15  ;;  %v610_v15 = vld [vmem:[%s12475_s17 + $0x878] sm:$0xff] }
  0xd2   :  { %485 = vst [vmem:[#allocation2 + $0x680] sm:$0xff] %v484_v16  ;;  %v612_v16 = vld [vmem:[%s12475_s17 + $0x880] sm:$0xff] }
  0xd3   :  { %487 = vst [vmem:[#allocation2 + $0x688] sm:$0xff] %v486_v17  ;;  %v614_v17 = vld [vmem:[%s12475_s17 + $0x888] sm:$0xff] }
  0xd4   :  { %489 = vst [vmem:[#allocation2 + $0x690] sm:$0xff] %v488_v18  ;;  %v616_v18 = vld [vmem:[%s12475_s17 + $0x890] sm:$0xff] }
  0xd5   :  { %491 = vst [vmem:[#allocation2 + $0x698] sm:$0xff] %v490_v19  ;;  %v618_v19 = vld [vmem:[%s12475_s17 + $0x898] sm:$0xff] }
  0xd6   :  { %493 = vst [vmem:[#allocation2 + $0x6a0] sm:$0xff] %v492_v20  ;;  %v620_v20 = vld [vmem:[%s12475_s17 + $0x8a0] sm:$0xff] }
  0xd7   :  { %495 = vst [vmem:[#allocation2 + $0x6a8] sm:$0xff] %v494_v21  ;;  %v622_v21 = vld [vmem:[%s12475_s17 + $0x8a8] sm:$0xff] }
  0xd8   :  { %497 = vst [vmem:[#allocation2 + $0x6b0] sm:$0xff] %v496_v22  ;;  %v624_v22 = vld [vmem:[%s12475_s17 + $0x8b0] sm:$0xff] }
  0xd9   :  { %499 = vst [vmem:[#allocation2 + $0x6b8] sm:$0xff] %v498_v23  ;;  %v626_v23 = vld [vmem:[%s12475_s17 + $0x8b8] sm:$0xff] }
  0xda   :  { %501 = vst [vmem:[#allocation2 + $0x6c0] sm:$0xff] %v500_v24  ;;  %v628_v24 = vld [vmem:[%s12475_s17 + $0x8c0] sm:$0xff] }
  0xdb   :  { %503 = vst [vmem:[#allocation2 + $0x6c8] sm:$0xff] %v502_v25  ;;  %v630_v25 = vld [vmem:[%s12475_s17 + $0x8c8] sm:$0xff] }
  0xdc   :  { %505 = vst [vmem:[#allocation2 + $0x6d0] sm:$0xff] %v504_v26  ;;  %v632_v26 = vld [vmem:[%s12475_s17 + $0x8d0] sm:$0xff] }
  0xdd   :  { %507 = vst [vmem:[#allocation2 + $0x6d8] sm:$0xff] %v506_v27  ;;  %v634_v27 = vld [vmem:[%s12475_s17 + $0x8d8] sm:$0xff] }
  0xde   :  { %509 = vst [vmem:[#allocation2 + $0x6e0] sm:$0xff] %v508_v28  ;;  %v636_v28 = vld [vmem:[%s12475_s17 + $0x8e0] sm:$0xff] }
  0xdf   :  { %511 = vst [vmem:[#allocation2 + $0x6e8] sm:$0xff] %v510_v29  ;;  %v638_v29 = vld [vmem:[%s12475_s17 + $0x8e8] sm:$0xff] }
  0xe0   :  { %513 = vst [vmem:[#allocation2 + $0x6f0] sm:$0xff] %v512_v30  ;;  %v640_v30 = vld [vmem:[%s12475_s17 + $0x8f0] sm:$0xff] }
  0xe1   :  { %515 = vst [vmem:[#allocation2 + $0x6f8] sm:$0xff] %v514_v31  ;;  %v642_v31 = vld [vmem:[%s12475_s17 + $0x8f8] sm:$0xff] }
  0xe2   :  { %517 = vst [vmem:[#allocation2 + $0x700] sm:$0xff] %v516_v32 }
  0xe3   :  { %519 = vst [vmem:[#allocation2 + $0x708] sm:$0xff] %v518_v33 }
  0xe4   :  { %521 = vst [vmem:[#allocation2 + $0x710] sm:$0xff] %v520_v34 }
  0xe5   :  { %523 = vst [vmem:[#allocation2 + $0x718] sm:$0xff] %v522_v35 }
  0xe6   :  { %525 = vst [vmem:[#allocation2 + $0x720] sm:$0xff] %v524_v36 }
  0xe7   :  { %527 = vst [vmem:[#allocation2 + $0x728] sm:$0xff] %v526_v37 }
  0xe8   :  { %529 = vst [vmem:[#allocation2 + $0x730] sm:$0xff] %v528_v38 }
  0xe9   :  { %531 = vst [vmem:[#allocation2 + $0x738] sm:$0xff] %v530_v39 }
  0xea   :  { %533 = vst [vmem:[#allocation2 + $0x740] sm:$0xff] %v532_v40 }
  0xeb   :  { %535 = vst [vmem:[#allocation2 + $0x748] sm:$0xff] %v534_v41 }
  0xec   :  { %537 = vst [vmem:[#allocation2 + $0x750] sm:$0xff] %v536_v42 }
  0xed   :  { %539 = vst [vmem:[#allocation2 + $0x758] sm:$0xff] %v538_v43 }
  0xee   :  { %541 = vst [vmem:[#allocation2 + $0x760] sm:$0xff] %v540_v44 }
  0xef   :  { %543 = vst [vmem:[#allocation2 + $0x768] sm:$0xff] %v542_v45 }
  0xf0   :  { %545 = vst [vmem:[#allocation2 + $0x770] sm:$0xff] %v544_v46 }
  0xf1   :  { %547 = vst [vmem:[#allocation2 + $0x778] sm:$0xff] %v546_v47 }
  0xf2   :  { %549 = vst [vmem:[#allocation2 + $0x780] sm:$0xff] %v548_v48 }
  0xf3   :  { %551 = vst [vmem:[#allocation2 + $0x788] sm:$0xff] %v550_v49 }
  0xf4   :  { %553 = vst [vmem:[#allocation2 + $0x790] sm:$0xff] %v552_v50 }
  0xf5   :  { %555 = vst [vmem:[#allocation2 + $0x798] sm:$0xff] %v554_v51 }
  0xf6   :  { %557 = vst [vmem:[#allocation2 + $0x7a0] sm:$0xff] %v556_v52 }
  0xf7   :  { %559 = vst [vmem:[#allocation2 + $0x7a8] sm:$0xff] %v558_v53 }
  0xf8   :  { %561 = vst [vmem:[#allocation2 + $0x7b0] sm:$0xff] %v560_v54 }
  0xf9   :  { %563 = vst [vmem:[#allocation2 + $0x7b8] sm:$0xff] %v562_v55 }
  0xfa   :  { %565 = vst [vmem:[#allocation2 + $0x7c0] sm:$0xff] %v564_v56 }
  0xfb   :  { %567 = vst [vmem:[#allocation2 + $0x7c8] sm:$0xff] %v566_v57 }
  0xfc   :  { %569 = vst [vmem:[#allocation2 + $0x7d0] sm:$0xff] %v568_v58 }
  0xfd   :  { %571 = vst [vmem:[#allocation2 + $0x7d8] sm:$0xff] %v570_v59 }
  0xfe   :  { %573 = vst [vmem:[#allocation2 + $0x7e0] sm:$0xff] %v572_v60 }
  0xff   :  { %575 = vst [vmem:[#allocation2 + $0x7e8] sm:$0xff] %v574_v61 }
 0x100   :  { %577 = vst [vmem:[#allocation2 + $0x7f0] sm:$0xff] %v576_v62 }
 0x101   :  { %579 = vst [vmem:[#allocation2 + $0x7f8] sm:$0xff] %v578_v63 }
 0x102   :  { %581 = vst [vmem:[#allocation2 + $0x800] sm:$0xff] %v580_v0 }
 0x103   :  { %583 = vst [vmem:[#allocation2 + $0x808] sm:$0xff] %v582_v1 }
 0x104   :  { %585 = vst [vmem:[#allocation2 + $0x810] sm:$0xff] %v584_v2 }
 0x105   :  { %587 = vst [vmem:[#allocation2 + $0x818] sm:$0xff] %v586_v3 }
 0x106   :  { %589 = vst [vmem:[#allocation2 + $0x820] sm:$0xff] %v588_v4 }
 0x107   :  { %591 = vst [vmem:[#allocation2 + $0x828] sm:$0xff] %v590_v5 }
 0x108   :  { %593 = vst [vmem:[#allocation2 + $0x830] sm:$0xff] %v592_v6 }
 0x109   :  { %595 = vst [vmem:[#allocation2 + $0x838] sm:$0xff] %v594_v7 }
 0x10a   :  { %597 = vst [vmem:[#allocation2 + $0x840] sm:$0xff] %v596_v8 }
 0x10b   :  { %599 = vst [vmem:[#allocation2 + $0x848] sm:$0xff] %v598_v9 }
 0x10c   :  { %601 = vst [vmem:[#allocation2 + $0x850] sm:$0xff] %v600_v10 }
 0x10d   :  { %603 = vst [vmem:[#allocation2 + $0x858] sm:$0xff] %v602_v11 }
 0x10e   :  { %605 = vst [vmem:[#allocation2 + $0x860] sm:$0xff] %v604_v12 }
 0x10f   :  { %607 = vst [vmem:[#allocation2 + $0x868] sm:$0xff] %v606_v13 }
 0x110   :  { %609 = vst [vmem:[#allocation2 + $0x870] sm:$0xff] %v608_v14 }
 0x111   :  { %611 = vst [vmem:[#allocation2 + $0x878] sm:$0xff] %v610_v15 }
 0x112   :  { %613 = vst [vmem:[#allocation2 + $0x880] sm:$0xff] %v612_v16 }
 0x113   :  { %615 = vst [vmem:[#allocation2 + $0x888] sm:$0xff] %v614_v17 }
 0x114   :  { %617 = vst [vmem:[#allocation2 + $0x890] sm:$0xff] %v616_v18 }
 0x115   :  { %619 = vst [vmem:[#allocation2 + $0x898] sm:$0xff] %v618_v19 }
 0x116   :  { %621 = vst [vmem:[#allocation2 + $0x8a0] sm:$0xff] %v620_v20 }
 0x117   :  { %623 = vst [vmem:[#allocation2 + $0x8a8] sm:$0xff] %v622_v21 }
 0x118   :  { %625 = vst [vmem:[#allocation2 + $0x8b0] sm:$0xff] %v624_v22 }
 0x119   :  { %627 = vst [vmem:[#allocation2 + $0x8b8] sm:$0xff] %v626_v23 }
 0x11a   :  { %629 = vst [vmem:[#allocation2 + $0x8c0] sm:$0xff] %v628_v24 }
 0x11b   :  { %631 = vst [vmem:[#allocation2 + $0x8c8] sm:$0xff] %v630_v25 }
 0x11c   :  { %633 = vst [vmem:[#allocation2 + $0x8d0] sm:$0xff] %v632_v26 }
 0x11d   :  { %635 = vst [vmem:[#allocation2 + $0x8d8] sm:$0xff] %v634_v27 }
 0x11e   :  { %637 = vst [vmem:[#allocation2 + $0x8e0] sm:$0xff] %v636_v28 }
 0x11f   :  { %639 = vst [vmem:[#allocation2 + $0x8e8] sm:$0xff] %v638_v29 }
 0x120   :  { %641 = vst [vmem:[#allocation2 + $0x8f0] sm:$0xff] %v640_v30 }
 0x121   :  { %643 = vst [vmem:[#allocation2 + $0x8f8] sm:$0xff] %v642_v31 }
 0x122   :  { %649 = vsyncadd [#allocation3], 36864  ;;  %s12498_s21 = sld [smem:[#allocation23_spill]]  ;;  %vm753_vm0 = vcmask 1041408   ;;  %vm728_vm1 = vcmask 293888   ;;  %vm854_vm6 = vcmask 392192  }
 0x123   :  { %s12499_s26 = sld [smem:[#allocation21_spill]]  ;;  %v10379_v51 = vld [vmem:[%s12474_s16] ss:$0 sm:$0xff]  ;;  %v9369_v8 = vmov 64.0   ;;  %s9372_s28 = smov 64  }
 0x124   :  { %9326 = vrcp.f32 %v9369_v8  ;;  %s9373_s29 = smov 16   ;;  %s9374_s30 = smov 112  }
 0x125   :  { %s9375_s0 = smov 96   ;;  %s9376_s19 = smov 48  }
 0x128   :  { %v670_v32 = vld [vmem:[%s12498_s21 + $0x10] sm:$0x3]  ;;  %v8422_v36 = vld [vmem:[%s12498_s21 + $0x8] sm:$0xff]  ;;  %v8421_v37 = vld [vmem:[%s12498_s21] sm:$0xff]  ;;  %s12526_s21 = sld [smem:[#allocation22_spill]] }
 0x129   :  { %v722_v33 = vunpack.c.l.b16 %v670_v32  ;;  %v8413_v38 = vld [vmem:[%s12499_s26] sm:$0xff]  ;;  %v8414_v39 = vld [vmem:[%s12499_s26 + $0x8] sm:$0xff]  ;;  %v8415_v40 = vld [vmem:[%s12499_s26 + $0x10] sm:$0xff] }
 0x12a   :  { %v8416_v41 = vld [vmem:[%s12499_s26 + $0x18] sm:$0xff]  ;;  %v8417_v42 = vld [vmem:[%s12499_s26 + $0x20] sm:$0xff]  ;;  %v8418_v43 = vld [vmem:[%s12499_s26 + $0x28] sm:$0xff]  ;;  %v9327_v18 = vpop.eup %9326 }
 0x12b   :  { %v725_v34 = vpack.c.b16 %v722_v33, %v722_v33  ;;  %v8419_v44 = vld [vmem:[%s12499_s26 + $0x30] sm:$0xff]  ;;  %v8420_v45 = vld [vmem:[%s12499_s26 + $0x38] sm:$0xff]  ;;  %v877_v26 = vmul.f32 64.0, %v9327_v18  ;;  %vm881_vm11 = vweird.f32 %v9327_v18  ;;  %s9371_s26 = smov 80  }
 0x12d   :  { %v755_v35 = vsel %vm753_vm0, %v725_v34, 0  ;;  %v878_v32 = vsub.f32 1.0, %v877_v26 }
 0x12e   :  { %762 = vmatpush.bf16.msra.mxu0 %v755_v35 }
 0x132   :  { %763 = vmatpush.bf16.msra.mxu0 %v8422_v36  ;;  %v879_v36 = vmul.f32 %v9327_v18, %v878_v32  ;;  %v6658_v32 = vld [vmem:[%s12462_s4 + $0x20] sm:$0xf] }
 0x136   :  { %764 = vmatpush.bf16.msra.mxu0 %v8421_v37 }
 0x139   :  { %6632 = vmatmul.msk.bf16.vlgmr.msra.gmra.mxu0 %vm728_vm1, %v8413_v38 }
 0x149   :  { %6633 = vmatmul.msk.bf16.gmra.mxu0 %vm728_vm1, %v8414_v39  ;;  %v880_v39 = vadd.f32 %v9327_v18, %v879_v36 }
 0x159   :  { %6634 = vmatmul.msk.bf16.gmra.mxu0 %vm728_vm1, %v8415_v40 }
 0x169   :  { %6635 = vmatmul.msk.bf16.gmra.mxu0 %vm728_vm1, %v8416_v41 }
 0x179   :  { %6636 = vmatmul.msk.bf16.gmra.mxu0 %vm728_vm1, %v8417_v42 }
 0x189   :  { %6637 = vmatmul.msk.bf16.gmra.mxu0 %vm728_vm1, %v8418_v43  ;;  %v10399_v43 = vsel %vm881_vm11, %v9327_v18, %v880_v39  ;;  %v8433_v18 = vld [vmem:[%s12462_s4 + $0x4c] sm:$0xf0]  ;;  %v8430_v39 = vld [vmem:[%s12462_s4 + $0x34] sm:$0xf0] }
 0x18a   :  { %12500 = vst [vmem:[#allocation6_spill] sm:$0xff] %v10399_v43 }
 0x199   :  { %6638 = vmatmul.msk.bf16.gmra.mxu0 %vm728_vm1, %v8419_v44 }
 0x1a9   :  { %6639 = vmatmul.msk.bf16.gmra.mxu0 %vm728_vm1, %v8420_v45 }
 0x1b6   :  { %v766_v46 = vpop.f32.mrf.mxu0 }
 0x1b7   :  { %v767_v53 = vadd.f32 %v10379_v51, %v766_v46 }
 0x1b9   :  { %v822_v58 = vmul.f32 0.01, %v767_v53  ;;  %vm806_vm3 = vcmp.ge.f32.partialorder %v767_v53, 0.0 }
 0x1bb   :  { %v838_v0 = vsel %vm806_vm3, %v767_v53, %v822_v58 }
 0x1bc   :  { %v855_v9 = vsel %vm854_vm6, %v838_v0, 0.0 }
 0x1be   :  { %v768_v47 = vpop.f32.mrf.mxu0 }
 0x1bf   :  { %v769_v52 = vadd.f32 %v10379_v51, %v768_v47 }
 0x1c1   :  { %v823_v56 = vmul.f32 0.01, %v769_v52  ;;  %vm807_vm2 = vcmp.ge.f32.partialorder %v769_v52, 0.0 }
 0x1c3   :  { %v839_v61 = vsel %vm807_vm2, %v769_v52, %v823_v56 }
 0x1c4   :  { %v856_v3 = vsel %vm854_vm6, %v839_v61, 0.0 }
 0x1c5   :  { %v857_v11 = vadd.f32 %v856_v3, %v855_v9 }
 0x1c6   :  { %v771_v48 = vpop.f32.mrf.mxu0 }
 0x1c7   :  { %v772_v54 = vadd.f32 %v10379_v51, %v771_v48 }
 0x1c9   :  { %v824_v59 = vmul.f32 0.01, %v772_v54  ;;  %vm808_vm4 = vcmp.ge.f32.partialorder %v772_v54, 0.0 }
 0x1cb   :  { %v840_v1 = vsel %vm808_vm4, %v772_v54, %v824_v59 }
 0x1cc   :  { %v858_v10 = vsel %vm854_vm6, %v840_v1, 0.0 }
 0x1cd   :  { %v859_v15 = vadd.f32 %v858_v10, %v857_v11 }
 0x1ce   :  { %v773_v49 = vpop.f32.mrf.mxu0 }
 0x1cf   :  { %v774_v57 = vadd.f32 %v10379_v51, %v773_v49 }
 0x1d1   :  { %v825_v62 = vmul.f32 0.01, %v774_v57  ;;  %vm809_vm5 = vcmp.ge.f32.partialorder %v774_v57, 0.0 }
 0x1d3   :  { %v841_v5 = vsel %vm809_vm5, %v774_v57, %v825_v62 }
 0x1d4   :  { %v860_v14 = vsel %vm854_vm6, %v841_v5, 0.0 }
 0x1d5   :  { %v861_v19 = vadd.f32 %v860_v14, %v859_v15 }
 0x1d6   :  { %v776_v50 = vpop.f32.mrf.mxu0 }
 0x1d7   :  { %v777_v60 = vadd.f32 %v10379_v51, %v776_v50 }
 0x1d9   :  { %v826_v2 = vmul.f32 0.01, %v777_v60  ;;  %vm810_vm7 = vcmp.ge.f32.partialorder %v777_v60, 0.0 }
 0x1db   :  { %v842_v12 = vsel %vm810_vm7, %v777_v60, %v826_v2 }
 0x1dc   :  { %v862_v17 = vsel %vm854_vm6, %v842_v12, 0.0 }
 0x1dd   :  { %v863_v23 = vadd.f32 %v862_v17, %v861_v19  ;;  %v6674_v17 = vld [vmem:[%s12462_s4 + $0x40] sm:$0xf]  ;;  %v8431_v19 = vld [vmem:[%s12462_s4 + $0x44] sm:$0xf] }
 0x1de   :  { %v778_v55 = vpop.f32.mrf.mxu0 }
 0x1df   :  { %v779_v63 = vadd.f32 %v10379_v51, %v778_v55 }
 0x1e1   :  { %v827_v6 = vmul.f32 0.01, %v779_v63  ;;  %vm811_vm8 = vcmp.ge.f32.partialorder %v779_v63, 0.0 }
 0x1e3   :  { %v843_v16 = vsel %vm811_vm8, %v779_v63, %v827_v6 }
 0x1e4   :  { %v864_v21 = vsel %vm854_vm6, %v843_v16, 0.0 }
 0x1e5   :  { %v865_v27 = vadd.f32 %v864_v21, %v863_v23  ;;  %v6676_v21 = vld [vmem:[%s12462_s4 + $0x50] sm:$0xf0]  ;;  %v8434_v23 = vld [vmem:[%s12462_s4 + $0x54] sm:$0xf0] }
 0x1e6   :  { %v781_v4 = vpop.f32.mrf.mxu0 }
 0x1e7   :  { %v782_v7 = vadd.f32 %v10379_v51, %v781_v4 }
 0x1e9   :  { %v828_v13 = vmul.f32 0.01, %v782_v7  ;;  %vm812_vm9 = vcmp.ge.f32.partialorder %v782_v7, 0.0 }
 0x1eb   :  { %v844_v20 = vsel %vm812_vm9, %v782_v7, %v828_v13 }
 0x1ec   :  { %v866_v25 = vsel %vm854_vm6, %v844_v20, 0.0 }
 0x1ed   :  { %v867_v29 = vadd.f32 %v866_v25, %v865_v27  ;;  %v6679_v25 = vor.u32 %v8431_v19, %v6676_v21  ;;  %v8432_v27 = vld [vmem:[%s12462_s4 + $0x4c] sm:$0xf] }
 0x1ee   :  { %v783_v22 = vpop.f32.mrf.mxu0 }
 0x1ef   :  { %v784_v24 = vadd.f32 %v10379_v51, %v783_v22  ;;  %v6682_v22 = vld [vmem:[%s12462_s4 + $0x48] sm:$0xf]  ;;  %1178 = vmatpush.bf16.msra.mxu2 %v6679_v25 }
 0x1f0   :  { %v6683_v26 = vor.u32 %v8434_v23, %v6682_v22 }
 0x1f1   :  { %vm813_vm10 = vcmp.ge.f32.partialorder %v784_v24, 0.0  ;;  %v829_v28 = vmul.f32 0.01, %v784_v24 }
 0x1f2   :  { %1227 = vmatpush.bf16.msra.mxu3 %v6683_v26 }
 0x1f3   :  { %v845_v30 = vsel %vm813_vm10, %v784_v24, %v829_v28  ;;  %v6684_v28 = vld [vmem:[%s12462_s4 + $0x58] sm:$0xf0] }
 0x1f4   :  { %v868_v31 = vsel %vm854_vm6, %v845_v30, 0.0 }
 0x1f5   :  { %v869_v33 = vadd.f32 %v868_v31, %v867_v29 }
 0x1f6   :  { %v10397_v34 = vpop.f32.mrf.mxu0 }
 0x1f7   :  { %v870_v35 = vrot.slane %v869_v33, 4 }
 0x1f9   :  { %v871_v37 = vadd.f32 %v870_v35, %v869_v33  ;;  %v8429_v33 = vld [vmem:[%s12462_s4 + $0x2c] sm:$0xf0]  ;;  %v8427_v35 = vld [vmem:[%s12462_s4 + $0x24] sm:$0xf] }
 0x1fa   :  { %v6659_v36 = vor.u32 %v8429_v33, %v6658_v32 }
 0x1fb   :  { %v872_v38 = vrot.slane %v871_v37, 2 }
 0x1fd   :  { %v873_v40 = vadd.f32 %v872_v38, %v871_v37  ;;  %v6660_v37 = vld [vmem:[%s12462_s4 + $0x30] sm:$0xf0]  ;;  %v6666_v38 = vld [vmem:[%s12462_s4 + $0x28] sm:$0xf] }
 0x1fe   :  { %v788_v41 = vpop.f32.mrf.mxu0 }
 0x1ff   :  { %v874_v42 = vrot.slane %v873_v40, 1  ;;  %v789_v29 = vadd.f32 %v10379_v51, %v788_v41  ;;  %v6663_v41 = vor.u32 %v8427_v35, %v6660_v37 }
 0x201   :  { %v875_v44 = vadd.f32 %v874_v42, %v873_v40  ;;  %v6667_v42 = vor.u32 %v8430_v39, %v6666_v38  ;;  %1179 = vmatpush.bf16.msra.mxu2 %v6663_v41  ;;  %vm815_vm12 = vcmp.ge.f32.partialorder %v789_v29, 0.0 }
 0x203   :  { %v883_v45 = vmul.f32 %v10399_v43, %v875_v44  ;;  %v8428_v44 = vld [vmem:[%s12462_s4 + $0x2c] sm:$0xf]  ;;  %1228 = vmatpush.bf16.msra.mxu3 %v6667_v42 }
 0x205   :  { %v10402_v46 = vsub.f32 %v838_v0, %v883_v45  ;;  %v10404_v47 = vsub.f32 %v839_v61, %v883_v45  ;;  %v10406_v48 = vsub.f32 %v840_v1, %v883_v45  ;;  %v10408_v49 = vsub.f32 %v841_v5, %v883_v45 }
 0x206   :  { %v10410_v50 = vpop.f32.mrf.mxu0  ;;  %v10412_v52 = vsub.f32 %v842_v12, %v883_v45  ;;  %v10420_v56 = vsub.f32 %v843_v16, %v883_v45  ;;  %v10426_v61 = vsub.f32 %v844_v20, %v883_v45  ;;  %v10431_v1 = vsub.f32 %v845_v30, %v883_v45  ;;  %v6668_v45 = vld [vmem:[%s12462_s4 + $0x38] sm:$0xf0] }
 0x207   :  { %v892_v53 = vmul.f32 %v10402_v46, %v10402_v46  ;;  %v893_v54 = vmul.f32 %v10404_v47, %v10404_v47  ;;  %v894_v55 = vmul.f32 %v10406_v48, %v10406_v48  ;;  %v895_v57 = vmul.f32 %v10408_v49, %v10408_v49 }
 0x208   :  { %v896_v62 = vmul.f32 %v10412_v52, %v10412_v52  ;;  %v897_v2 = vmul.f32 %v10420_v56, %v10420_v56  ;;  %v898_v6 = vmul.f32 %v10426_v61, %v10426_v61  ;;  %v899_v9 = vmul.f32 %v10431_v1, %v10431_v1 }
 0x209   :  { %v900_v58 = vsel %vm854_vm6, %v892_v53, 0.0  ;;  %v901_v59 = vsel %vm854_vm6, %v893_v54, 0.0  ;;  %v903_v63 = vsel %vm854_vm6, %v894_v55, 0.0  ;;  %v905_v3 = vsel %vm854_vm6, %v895_v57, 0.0 }
 0x20a   :  { %v902_v60 = vadd.f32 %v901_v59, %v900_v58  ;;  %v907_v7 = vsel %vm854_vm6, %v896_v62, 0.0  ;;  %v909_v10 = vsel %vm854_vm6, %v897_v2, 0.0  ;;  %v911_v12 = vsel %vm854_vm6, %v898_v6, 0.0  ;;  %v8425_v62 = vld [vmem:[%s12462_s4 + $0xc] sm:$0xf0] }
 0x20b   :  { %v913_v14 = vsel %vm854_vm6, %v899_v9, 0.0  ;;  %v6675_v20 = vor.u32 %v8433_v18, %v6674_v17  ;;  %v6687_v30 = vor.u32 %v8432_v27, %v6684_v28  ;;  %v787_v53 = vadd.f32 %v10379_v51, %v10397_v34  ;;  %v8423_v34 = vld [vmem:[%s12462_s4 + $0x4] sm:$0xf]  ;;  %v6650_v2 = vld [vmem:[%s12462_s4 + $0x8] sm:$0xf] }
 0x20c   :  { %v904_v0 = vadd.f32 %v903_v63, %v902_v60  ;;  %v831_v54 = vmul.f32 0.01, %v789_v29  ;;  %v792_v55 = vadd.f32 %v10379_v51, %v10410_v50  ;;  %v6671_v57 = vor.u32 %v8428_v44, %v6668_v45  ;;  %v6642_v60 = vld [vmem:[%s12462_s4] sm:$0xf] }
 0x20d   :  { %1129 = vmatpush.bf16.msra.mxu1 %v6675_v20  ;;  %1276 = vmatpush.bf16.msrb.mxu0 %v6687_v30  ;;  %v6643_v63 = vor.u32 %v8425_v62, %v6642_v60  ;;  %v830_v9 = vmul.f32 0.01, %v787_v53  ;;  %vm814_vm13 = vcmp.ge.f32.partialorder %v787_v53, 0.0 }
 0x20e   :  { %v906_v4 = vadd.f32 %v905_v3, %v904_v0  ;;  %v793_v5 = vpop.f32.mrf.mxu0  ;;  %v6644_v0 = vld [vmem:[%s12462_s4 + $0x10] sm:$0xf0]  ;;  %v8426_v3 = vld [vmem:[%s12462_s4 + $0x14] sm:$0xf0]  ;;  %vm816_vm14 = vcmp.ge.f32.partialorder %v792_v55, 0.0 }
 0x20f   :  { %v794_v50 = vadd.f32 %v10379_v51, %v793_v5  ;;  %v6647_v6 = vor.u32 %v8423_v34, %v6644_v0  ;;  %v8424_v5 = vld [vmem:[%s12462_s4 + $0xc] sm:$0xf]  ;;  %v846_v19 = vsel %vm814_vm13, %v787_v53, %v830_v9  ;;  %vm1693_vm13 = vcmask 130048  }
 0x210   :  { %v908_v8 = vadd.f32 %v907_v7, %v906_v4  ;;  %v6651_v7 = vor.u32 %v8426_v3, %v6650_v2  ;;  %v941_v27 = vsel %vm854_vm6, %v846_v19, 0.0 }
 0x211   :  { %1130 = vmatpush.bf16.msra.mxu1 %v6659_v36  ;;  %1277 = vmatpush.bf16.msrb.mxu0 %v6671_v57  ;;  %vm817_vm15 = vcmp.ge.f32.partialorder %v794_v50, 0.0 }
 0x212   :  { %v910_v11 = vadd.f32 %v909_v10, %v908_v8  ;;  %v6652_v8 = vld [vmem:[%s12462_s4 + $0x18] sm:$0xf0]  ;;  %v832_v10 = vmul.f32 0.01, %v792_v55  ;;  %1180 = vmatpush.bf16.msra.mxu2 %v6647_v6  ;;  %1229 = vmatpush.bf16.msra.mxu3 %v6651_v7  ;;  %s9370_s4 = smov 32  }
 0x214   :  { %v912_v13 = vadd.f32 %v911_v12, %v910_v11  ;;  %v6655_v12 = vor.u32 %v8424_v5, %v6652_v8  ;;  %v848_v20 = vsel %vm816_vm14, %v792_v55, %v832_v10 }
 0x215   :  { %1131 = vmatpush.bf16.msra.mxu1 %v6643_v63  ;;  %v944_v28 = vsel %vm854_vm6, %v848_v20, 0.0 }
 0x216   :  { %v914_v15 = vadd.f32 %v913_v14, %v912_v13  ;;  %v796_v16 = vpop.f32.mrf.mxu0  ;;  %v10523_v14 = vsel %vm815_vm12, %v789_v29, %v831_v54  ;;  %1278 = vmatpush.bf16.msrb.mxu0 %v6655_v12  ;;  %vm1484_vm12 = vcmask 261120  }
 0x217   :  { %v797_v11 = vadd.f32 %v10379_v51, %v796_v16  ;;  %v942_v22 = vsel %vm854_vm6, %v10523_v14, 0.0 }
 0x218   :  { %v915_v24 = vrot.slane %v914_v15, 4  ;;  %v943_v29 = vadd.f32 %v942_v22, %v941_v27 }
 0x219   :  { %v834_v21 = vmul.f32 0.01, %v797_v11  ;;  %vm818_vm1 = vcmp.ge.f32.partialorder %v797_v11, 0.0 }
 0x21a   :  { %v916_v31 = vadd.f32 %v915_v24, %v914_v15  ;;  %v833_v15 = vmul.f32 0.01, %v794_v50  ;;  %v945_v33 = vadd.f32 %v944_v28, %v943_v29 }
 0x21b   :  { %v850_v30 = vsel %vm818_vm1, %v797_v11, %v834_v21 }
 0x21c   :  { %v917_v40 = vrot.slane %v916_v31, 2  ;;  %v849_v24 = vsel %vm817_vm15, %v794_v50, %v833_v15  ;;  %v948_v36 = vsel %vm854_vm6, %v850_v30, 0.0 }
 0x21d   :  { %v946_v32 = vsel %vm854_vm6, %v849_v24, 0.0 }
 0x21e   :  { %v918_v58 = vadd.f32 %v917_v40, %v916_v31  ;;  %v798_v59 = vpop.f32.mrf.mxu0  ;;  %v947_v37 = vadd.f32 %v946_v32, %v945_v33 }
 0x21f   :  { %v799_v17 = vadd.f32 %v10379_v51, %v798_v59 }
 0x220   :  { %v919_v4 = vrot.slane %v918_v58, 1  ;;  %v949_v44 = vadd.f32 %v948_v36, %v947_v37 }
 0x221   :  { %v835_v25 = vmul.f32 0.01, %v799_v17  ;;  %vm819_vm2 = vcmp.ge.f32.partialorder %v799_v17, 0.0 }
 0x222   :  { %v920_v13 = vadd.f32 %v919_v4, %v918_v58 }
 0x223   :  { %v851_v35 = vsel %vm819_vm2, %v799_v17, %v835_v25 }
 0x224   :  { %v921_v18 = vmul.f32 %v920_v13, %v10399_v43  ;;  %v950_v40 = vsel %vm854_vm6, %v851_v35, 0.0 }
 0x225   :  { %v951_v55 = vadd.f32 %v950_v40, %v949_v44 }
 0x226   :  { %v922_v16 = vadd.f32 1e-05, %v921_v18  ;;  %v801_v23 = vpop.f32.mrf.mxu0 }
 0x227   :  { %v802_v26 = vadd.f32 %v10379_v51, %v801_v23 }
 0x228   :  { %9328 = vrsqrt.f32 %v922_v16  ;;  %vm929_vm7 = vweird.f32 %v922_v16 }
 0x229   :  { %v836_v31 = vmul.f32 0.01, %v802_v26  ;;  %vm820_vm3 = vcmp.ge.f32.partialorder %v802_v26, 0.0 }
 0x22b   :  { %v852_v38 = vsel %vm820_vm3, %v802_v26, %v836_v31 }
 0x22c   :  { %v952_v53 = vsel %vm854_vm6, %v852_v38, 0.0 }
 0x22d   :  { %v953_v59 = vadd.f32 %v952_v53, %v951_v55 }
 0x22e   :  { %v9329_v39 = vpop.eup %9328  ;;  %v803_v41 = vpop.f32.mrf.mxu0 }
 0x22f   :  { %v924_v42 = vmul.f32 %v9329_v39, %v922_v16  ;;  %v804_v45 = vadd.f32 %v10379_v51, %v803_v41  ;;  %vm930_vm5 = vweird.f32 %v9329_v39 }
 0x230   :  { %vm931_vm8 = vmor %vm929_vm7, %vm930_vm5 }
 0x231   :  { %v925_v54 = vmul.f32 %v9329_v39, %v924_v42  ;;  %vm821_vm4 = vcmp.ge.f32.partialorder %v804_v45, 0.0  ;;  %v837_v57 = vmul.f32 0.01, %v804_v45 }
 0x233   :  { %v926_v58 = vmul.f32 0.5, %v925_v54  ;;  %v853_v60 = vsel %vm821_vm4, %v804_v45, %v837_v57 }
 0x234   :  { %v954_v62 = vsel %vm854_vm6, %v853_v60, 0.0 }
 0x235   :  { %v927_v34 = vsub.f32 1.5, %v926_v58  ;;  %v955_v50 = vadd.f32 %v954_v62, %v953_v59 }
 0x237   :  { %v928_v63 = vmul.f32 %v9329_v39, %v927_v34  ;;  %v956_v0 = vrot.slane %v955_v50, 4 }
 0x239   :  { %v10538_v2 = vsel %vm931_vm8, %v9329_v39, %v928_v63  ;;  %v957_v51 = vadd.f32 %v956_v0, %v955_v50 }
 0x23a   :  { %v10542_v3 = vmul.f32 %v10538_v2, %v10402_v46  ;;  %v10546_v4 = vmul.f32 %v10538_v2, %v10404_v47  ;;  %v10612_v44 = vmul.f32 %v10538_v2, %v10412_v52  ;;  %v10616_v45 = vmul.f32 %v10538_v2, %v10420_v56 }
 0x23b   :  { %v958_v6 = vrot.slane %v957_v51, 2  ;;  %v10631_v62 = vmul.f32 %v10538_v2, %v10426_v61 }
 0x23c   :  { %v1020_v7 = vpack.c.bf16 %v10546_v4, %v10542_v3  ;;  %12503 = vst [vmem:[#allocation9_spill] sm:$0xff] %v10612_v44  ;;  %v1022_v55 = vpack.c.bf16 %v10616_v45, %v10612_v44 }
 0x23d   :  { %v959_v5 = vadd.f32 %v958_v6, %v957_v51  ;;  %12504 = vst [vmem:[#allocation10_spill] sm:$0xff] %v10616_v45 }
 0x23e   :  { %6688 = vmatmul.msk.bf16.vlgmr.msra.gmra.mxu1 %vm854_vm6, %v1020_v7  ;;  %6696 = vmatmul.msk.bf16.vlgmr.msra.gmra.mxu2 %vm854_vm6, %v1020_v7  ;;  %12506 = vst [vmem:[#allocation12_spill] sm:$0xff] %v10631_v62 }
 0x23f   :  { %v960_v8 = vrot.slane %v959_v5, 1  ;;  %6704 = vmatmul.msk.bf16.vlgmr.msra.gmra.mxu3 %vm854_vm6, %v1020_v7  ;;  %6712 = vmatmul.msk.bf16.vlgmr.msrb.gmra.mxu0 %vm854_vm6, %v1020_v7 }
 0x241   :  { %v961_v46 = vadd.f32 %v960_v8, %v959_v5 }
 0x243   :  { %v962_v9 = vmul.f32 %v961_v46, %v10399_v43 }
 0x245   :  { %v10555_v10 = vsub.f32 %v846_v19, %v962_v9  ;;  %v10558_v47 = vsub.f32 %v10523_v14, %v962_v9  ;;  %v10560_v11 = vsub.f32 %v848_v20, %v962_v9  ;;  %v10562_v12 = vsub.f32 %v849_v24, %v962_v9 }
 0x246   :  { %v10564_v13 = vsub.f32 %v850_v30, %v962_v9  ;;  %v10574_v19 = vmul.f32 %v10538_v2, %v10406_v48  ;;  %v10578_v14 = vmul.f32 %v10538_v2, %v10408_v49  ;;  %v10580_v20 = vsub.f32 %v851_v35, %v962_v9 }
 0x247   :  { %v971_v15 = vmul.f32 %v10555_v10, %v10555_v10  ;;  %v972_v17 = vmul.f32 %v10558_v47, %v10558_v47  ;;  %v973_v18 = vmul.f32 %v10560_v11, %v10560_v11  ;;  %v974_v21 = vmul.f32 %v10562_v12, %v10562_v12 }
 0x248   :  { %12501 = vst [vmem:[#allocation7_spill] sm:$0xff] %v10574_v19  ;;  %v10586_v24 = vsub.f32 %v852_v38, %v962_v9  ;;  %v975_v48 = vmul.f32 %v10564_v13, %v10564_v13  ;;  %v1021_v49 = vpack.c.bf16 %v10578_v14, %v10574_v19  ;;  %v10593_v27 = vsub.f32 %v853_v60, %v962_v9 }
 0x249   :  { %12502 = vst [vmem:[#allocation8_spill] sm:$0xff] %v10578_v14  ;;  %v979_v16 = vsel %vm854_vm6, %v971_v15, 0.0  ;;  %v980_v22 = vsel %vm854_vm6, %v972_v17, 0.0  ;;  %v982_v25 = vsel %vm854_vm6, %v973_v18, 0.0  ;;  %v976_v28 = vmul.f32 %v10580_v20, %v10580_v20 }
 0x24a   :  { %v981_v23 = vadd.f32 %v980_v22, %v979_v16  ;;  %v984_v29 = vsel %vm854_vm6, %v974_v21, 0.0  ;;  %v977_v31 = vmul.f32 %v10586_v24, %v10586_v24  ;;  %v986_v32 = vsel %vm854_vm6, %v975_v48, 0.0 }
 0x24b   :  { %v978_v35 = vmul.f32 %v10593_v27, %v10593_v27  ;;  %v988_v36 = vsel %vm854_vm6, %v976_v28, 0.0  ;;  %v10627_v60 = vmul.f32 %v10538_v2, %v10431_v1 }
 0x24c   :  { %v983_v26 = vadd.f32 %v982_v25, %v981_v23  ;;  %v990_v38 = vsel %vm854_vm6, %v977_v31, 0.0 }
 0x24d   :  { %v992_v40 = vsel %vm854_vm6, %v978_v35, 0.0  ;;  %12505 = vst [vmem:[#allocation11_spill] sm:$0xff] %v10627_v60  ;;  %v1023_v34 = vpack.c.bf16 %v10627_v60, %v10631_v62 }
 0x24e   :  { %v985_v30 = vadd.f32 %v984_v29, %v983_v26  ;;  %6689 = vmatmul.msk.bf16.gmra.mxu1 %vm854_vm6, %v1021_v49  ;;  %6697 = vmatmul.msk.bf16.gmra.mxu2 %vm854_vm6, %v1021_v49 }
 0x24f   :  { %6705 = vmatmul.msk.bf16.gmra.mxu3 %vm854_vm6, %v1021_v49  ;;  %6713 = vmatmul.msk.bf16.gmra.mxu0 %vm854_vm6, %v1021_v49 }
 0x250   :  { %v987_v33 = vadd.f32 %v986_v32, %v985_v30 }
 0x252   :  { %v989_v37 = vadd.f32 %v988_v36, %v987_v33 }
 0x254   :  { %v991_v39 = vadd.f32 %v990_v38, %v989_v37 }
 0x256   :  { %v993_v41 = vadd.f32 %v992_v40, %v991_v39 }
 0x258   :  { %v994_v42 = vrot.slane %v993_v41, 4 }
 0x25a   :  { %v995_v53 = vadd.f32 %v994_v42, %v993_v41 }
 0x25c   :  { %v996_v54 = vrot.slane %v995_v53, 2 }
 0x25e   :  { %v997_v57 = vadd.f32 %v996_v54, %v995_v53  ;;  %6690 = vmatmul.msk.bf16.gmra.mxu1 %vm854_vm6, %v1022_v55  ;;  %6698 = vmatmul.msk.bf16.gmra.mxu2 %vm854_vm6, %v1022_v55 }
 0x25f   :  { %6706 = vmatmul.msk.bf16.gmra.mxu3 %vm854_vm6, %v1022_v55  ;;  %6714 = vmatmul.msk.bf16.gmra.mxu0 %vm854_vm6, %v1022_v55 }
 0x260   :  { %v998_v52 = vrot.slane %v997_v57, 1 }
 0x262   :  { %v999_v58 = vadd.f32 %v998_v52, %v997_v57 }
 0x264   :  { %v1000_v59 = vmul.f32 %v999_v58, %v10399_v43 }
 0x266   :  { %v1001_v56 = vadd.f32 1e-05, %v1000_v59 }
 0x268   :  { %9330 = vrsqrt.f32 %v1001_v56  ;;  %vm1008_vm10 = vweird.f32 %v1001_v56 }
 0x26e   :  { %v9331_v50 = vpop.eup %9330  ;;  %6691 = vmatmul.msk.bf16.gmra.mxu1 %vm854_vm6, %v1023_v34  ;;  %6699 = vmatmul.msk.bf16.gmra.mxu2 %vm854_vm6, %v1023_v34 }
 0x26f   :  { %v1003_v63 = vmul.f32 %v9331_v50, %v1001_v56  ;;  %6707 = vmatmul.msk.bf16.gmra.mxu3 %vm854_vm6, %v1023_v34  ;;  %6715 = vmatmul.msk.bf16.gmra.mxu0 %vm854_vm6, %v1023_v34  ;;  %vm1009_vm9 = vweird.f32 %v9331_v50 }
 0x270   :  { %vm1010_vm11 = vmor %vm1008_vm10, %vm1009_vm9 }
 0x271   :  { %v1004_v1 = vmul.f32 %v9331_v50, %v1003_v63 }
 0x273   :  { %v1005_v0 = vmul.f32 0.5, %v1004_v1 }
 0x275   :  { %v1006_v51 = vsub.f32 1.5, %v1005_v0 }
 0x277   :  { %v1007_v6 = vmul.f32 %v9331_v50, %v1006_v51 }
 0x279   :  { %v1011_v61 = vsel %vm1010_vm11, %v9331_v50, %v1007_v6  ;;  %vm2679_vm11 = vcmask 254976  }
 0x27a   :  { %v10640_v2 = vmul.f32 %v1011_v61, %v10555_v10  ;;  %v10643_v7 = vmul.f32 %v1011_v61, %v10558_v47  ;;  %v10652_v8 = vmul.f32 %v1011_v61, %v10560_v11  ;;  %v10655_v46 = vmul.f32 %v1011_v61, %v10562_v12 }
 0x27b   :  { %v10664_v10 = vmul.f32 %v1011_v61, %v10564_v13  ;;  %v10667_v47 = vmul.f32 %v1011_v61, %v10580_v20  ;;  %v10676_v12 = vmul.f32 %v1011_v61, %v10593_v27  ;;  %v10679_v13 = vmul.f32 %v1011_v61, %v10586_v24 }
 0x27c   :  { %12507 = vst [vmem:[#allocation13_spill] sm:$0xff] %v10640_v2  ;;  %v1024_v5 = vpack.c.bf16 %v10643_v7, %v10640_v2  ;;  %v1025_v9 = vpack.c.bf16 %v10655_v46, %v10652_v8 }
 0x27d   :  { %12508 = vst [vmem:[#allocation14_spill] sm:$0xff] %v10643_v7  ;;  %v1026_v11 = vpack.c.bf16 %v10667_v47, %v10664_v10  ;;  %v1027_v15 = vpack.c.bf16 %v10676_v12, %v10679_v13 }
 0x27e   :  { %6692 = vmatmul.msk.bf16.gmra.mxu1 %vm854_vm6, %v1024_v5  ;;  %6700 = vmatmul.msk.bf16.gmra.mxu2 %vm854_vm6, %v1024_v5  ;;  %12509 = vst [vmem:[#allocation15_spill] sm:$0xff] %v10652_v8 }
 0x27f   :  { %6708 = vmatmul.msk.bf16.gmra.mxu3 %vm854_vm6, %v1024_v5  ;;  %6716 = vmatmul.msk.bf16.gmra.mxu0 %vm854_vm6, %v1024_v5  ;;  %12510 = vst [vmem:[#allocation16_spill] sm:$0xff] %v10655_v46 }
 0x280   :  { %12511 = vst [vmem:[#allocation17_spill] sm:$0xff] %v10664_v10 }
 0x281   :  { %12512 = vst [vmem:[#allocation18_spill] sm:$0xff] %v10667_v47 }
 0x282   :  { %12513 = vst [vmem:[#allocation19_spill] sm:$0xff] %v10676_v12 }
 0x283   :  { %12514 = vst [vmem:[#allocation20_spill] sm:$0xff] %v10679_v13 }
 0x28e   :  { %6693 = vmatmul.msk.bf16.gmra.mxu1 %vm854_vm6, %v1025_v9  ;;  %6701 = vmatmul.msk.bf16.gmra.mxu2 %vm854_vm6, %v1025_v9 }
 0x28f   :  { %6709 = vmatmul.msk.bf16.gmra.mxu3 %vm854_vm6, %v1025_v9  ;;  %6717 = vmatmul.msk.bf16.gmra.mxu0 %vm854_vm6, %v1025_v9 }
 0x29e   :  { %6694 = vmatmul.msk.bf16.gmra.mxu1 %vm854_vm6, %v1026_v11  ;;  %6702 = vmatmul.msk.bf16.gmra.mxu2 %vm854_vm6, %v1026_v11 }
 0x29f   :  { %6710 = vmatmul.msk.bf16.gmra.mxu3 %vm854_vm6, %v1026_v11  ;;  %6718 = vmatmul.msk.bf16.gmra.mxu0 %vm854_vm6, %v1026_v11 }
 0x2ae   :  { %6695 = vmatmul.msk.bf16.gmra.mxu1 %vm854_vm6, %v1027_v15  ;;  %6703 = vmatmul.msk.bf16.gmra.mxu2 %vm854_vm6, %v1027_v15 }
 0x2af   :  { %6711 = vmatmul.msk.bf16.gmra.mxu3 %vm854_vm6, %v1027_v15  ;;  %6719 = vmatmul.msk.bf16.gmra.mxu0 %vm854_vm6, %v1027_v15 }
 0x2bb   :  { %v10687_v17 = vpop.f32.mrf.mxu1 }
 0x2c1   :  { %v10689_v18 = vpop.f32.mrf.mxu2 }
 0x2c2   :  { %v10691_v20 = vpop.f32.mrf.mxu3  ;;  %v8860_v21 = vpack.i.bf16 %v10689_v18, %v10687_v17 }
 0x2c3   :  { %v10697_v22 = vpop.f32.mrf.mxu1 }
 0x2c4   :  { %8861 = vrot.lane.b32.xlu1 %v8860_v21, %s9370_s4  ;;  %v8865_v23 = vpack.i.bf16 %v10697_v22, %v10687_v17 }
 0x2c6   :  { %8866 = vrot.lane.b32.xlu0 %v8865_v23, %s9371_s26 }
 0x2c9   :  { %v10703_v24 = vpop.f32.mrf.mxu2 }
 0x2ca   :  { %v10705_v48 = vpop.f32.mrf.mxu3  ;;  %v8870_v25 = vpack.i.bf16 %v10703_v24, %v10697_v22 }
 0x2cb   :  { %v10709_v26 = vpop.f32.mrf.mxu1 }
 0x2cc   :  { %8871 = vrot.lane.b32.xlu2 %v8870_v25, %s9370_s4 }
 0x2d1   :  { %v10712_v49 = vpop.f32.mrf.mxu2 }
 0x2d2   :  { %v10714_v27 = vpop.f32.mrf.mxu3  ;;  %v8875_v28 = vpack.i.bf16 %v10712_v49, %v10709_v26 }
 0x2d3   :  { %v10720_v30 = vpop.f32.mrf.mxu1 }
 0x2d4   :  { %8876 = vrot.lane.b32.xlu1 %v8875_v28, %s9370_s4  ;;  %v8880_v31 = vpack.i.bf16 %v10720_v30, %v10709_v26 }
 0x2d6   :  { %8881 = vrot.lane.b32.xlu0 %v8880_v31, %s9371_s26 }
 0x2d9   :  { %v10726_v32 = vpop.f32.mrf.mxu2 }
 0x2da   :  { %v10728_v33 = vpop.f32.mrf.mxu3  ;;  %v8885_v35 = vpack.i.bf16 %v10726_v32, %v10720_v30 }
 0x2db   :  { %v10732_v36 = vpop.f32.mrf.mxu1 }
 0x2dc   :  { %8886 = vrot.lane.b32.xlu2 %v8885_v35, %s9370_s4 }
 0x2e1   :  { %v10735_v37 = vpop.f32.mrf.mxu2 }
 0x2e2   :  { %v10737_v38 = vpop.f32.mrf.mxu3  ;;  %v8890_v39 = vpack.i.bf16 %v10735_v37, %v10732_v36 }
 0x2e3   :  { %v10743_v41 = vpop.f32.mrf.mxu1 }
 0x2e4   :  { %8891 = vrot.lane.b32.xlu1 %v8890_v39, %s9370_s4  ;;  %v8895_v42 = vpack.i.bf16 %v10743_v41, %v10732_v36 }
 0x2e6   :  { %8896 = vrot.lane.b32.xlu0 %v8895_v42, %s9371_s26 }
 0x2e9   :  { %v10749_v53 = vpop.f32.mrf.mxu2 }
 0x2ea   :  { %v10751_v54 = vpop.f32.mrf.mxu3  ;;  %v8900_v55 = vpack.i.bf16 %v10749_v53, %v10743_v41 }
 0x2eb   :  { %v10755_v57 = vpop.f32.mrf.mxu1 }
 0x2ec   :  { %8901 = vrot.lane.b32.xlu2 %v8900_v55, %s9370_s4 }
 0x2f1   :  { %v10758_v52 = vpop.f32.mrf.mxu2 }
 0x2f2   :  { %v10760_v58 = vpop.f32.mrf.mxu3  ;;  %v8905_v59 = vpack.i.bf16 %v10758_v52, %v10755_v57 }
 0x2f3   :  { %v10766_v34 = vpop.f32.mrf.mxu1 }
 0x2f4   :  { %8906 = vrot.lane.b32.xlu1 %v8905_v59, %s9370_s4  ;;  %v8910_v50 = vpack.i.bf16 %v10766_v34, %v10755_v57 }
 0x2f6   :  { %8911 = vrot.lane.b32.xlu0 %v8910_v50, %s9371_s26 }
 0x2f9   :  { %v10772_v63 = vpop.f32.mrf.mxu2 }
 0x2fa   :  { %v10774_v1 = vpop.f32.mrf.mxu3  ;;  %v8915_v0 = vpack.i.bf16 %v10772_v63, %v10766_v34 }
 0x2fb   :  { %v10778_v51 = vpop.f32.mrf.mxu1 }
 0x2fc   :  { %8916 = vrot.lane.b32.xlu2 %v8915_v0, %s9370_s4 }
 0x301   :  { %v10781_v6 = vpop.f32.mrf.mxu2 }
 0x302   :  { %v10783_v61 = vpop.f32.mrf.mxu3  ;;  %v8920_v5 = vpack.i.bf16 %v10781_v6, %v10778_v51 }
 0x303   :  { %v10789_v11 = vpop.f32.mrf.mxu1 }
 0x304   :  { %8921 = vrot.lane.b32.xlu1 %v8920_v5, %s9370_s4  ;;  %v8925_v15 = vpack.i.bf16 %v10789_v11, %v10778_v51 }
 0x306   :  { %8926 = vrot.lane.b32.xlu0 %v8925_v15, %s9371_s26 }
 0x309   :  { %v10795_v21 = vpop.f32.mrf.mxu2 }
 0x30a   :  { %v10797_v23 = vpop.f32.mrf.mxu3  ;;  %v8930_v25 = vpack.i.bf16 %v10795_v21, %v10789_v11  ;;  %v10806_v31 = vpack.i.bf16 %v10795_v21, %v10781_v6 }
 0x30b   :  { %v10801_v28 = vpop.f32.mrf.mxu1 }
 0x30c   :  { %8931 = vrot.lane.b32.xlu2 %v8930_v25, %s9370_s4 }
 0x30e   :  { %8936 = vrot.lane.b32.xlu0 %v10806_v31, %s9372_s28 }
 0x311   :  { %v1207_v35 = vpop.f32.mrf.mxu2 }
 0x312   :  { %v10810_v39 = vpop.f32.mrf.mxu3  ;;  %v8940_v42 = vpack.i.bf16 %v1207_v35, %v10801_v28 }
 0x313   :  { %v1160_v55 = vpop.f32.mrf.mxu1  ;;  %v8945_v59 = vpack.i.bf16 %v10810_v39, %v1207_v35 }
 0x314   :  { %8941 = vrot.lane.b32.xlu1 %v8940_v42, %s9370_s4  ;;  %v8950_v16 = vpack.i.bf16 %v1160_v55, %v10801_v28 }
 0x316   :  { %8946 = vrot.lane.b32.xlu0 %v8945_v59, %s9373_s29 }
 0x319   :  { %v1209_v50 = vpop.f32.mrf.mxu2 }
 0x31a   :  { %v10816_v0 = vpop.f32.mrf.mxu3  ;;  %v8955_v5 = vpack.i.bf16 %v1209_v50, %v1160_v55  ;;  %v8960_v40 = vpack.i.bf16 %v1209_v50, %v1207_v35 }
 0x31b   :  { %v1163_v15 = vpop.f32.mrf.mxu1  ;;  %v8965_v25 = vpack.i.bf16 %v10816_v0, %v1209_v50 }
 0x31c   :  { %8956 = vrot.lane.b32.xlu2 %v8955_v5, %s9370_s4 }
 0x31d   :  { %8966 = vrot.lane.b32.xlu1 %v8965_v25, %s9373_s29 }
 0x31e   :  { %8951 = vrot.lane.b32.xlu0 %v8950_v16, %s9371_s26 }
 0x321   :  { %v1212_v29 = vpop.f32.mrf.mxu2 }
 0x322   :  { %v10823_v42 = vpop.f32.mrf.mxu3  ;;  %v8975_v25 = vpack.i.bf16 %v1212_v29, %v1163_v15 }
 0x323   :  { %v1165_v59 = vpop.f32.mrf.mxu1 }
 0x324   :  { %8961 = vrot.lane.b32.xlu2 %v8960_v40, %s9372_s28  ;;  %v8985_v56 = vpack.i.bf16 %v1165_v59, %v1163_v15  ;;  %v1828_v7 = vpack.c.bf16 %v1165_v59, %v1163_v15  ;;  %v1827_v15 = vpack.c.bf16 %v1160_v55, %v10801_v28  ;;  %v1825_v28 = vpack.c.bf16 %v10766_v34, %v10755_v57 }
 0x325   :  { %v9035_v57 = vpack.i.bf16 %v10797_v23, %v10795_v21  ;;  %v1822_v21 = vpack.c.bf16 %v10697_v22, %v10687_v17 }
 0x326   :  { %8986 = vrot.lane.b32.xlu1 %v8985_v56, %s9371_s26  ;;  %v8872_v50 = vpop.permute.xlu2 %8871 }
 0x327   :  { %v8874_v10 = vunpack.i.h.bf16 %v8872_v50  ;;  %v8873_v46 = vunpack.i.l.bf16 %v8872_v50  ;;  %v8980_v50 = vpack.i.bf16 %v10823_v42, %v1212_v29 }
 0x329   :  { %v1214_v9 = vpop.f32.mrf.mxu2 }
 0x32a   :  { %v10827_v43 = vpop.f32.mrf.mxu3  ;;  %v8995_v16 = vpack.i.bf16 %v1214_v9, %v1212_v29 }
 0x32b   :  { %v1168_v5 = vpop.f32.mrf.mxu1  ;;  %v9000_v12 = vpack.i.bf16 %v10827_v43, %v1214_v9 }
 0x32c   :  { %8971 = vrot.lane.b32.xlu2 %v8960_v40, %s9374_s30 }
 0x32d   :  { %9001 = vrot.lane.b32.xlu0 %v9000_v12, %s9373_s29 }
 0x32e   :  { %8996 = vrot.lane.b32.xlu1 %v8995_v16, %s9372_s28 }
 0x331   :  { %v10833_v35 = vpop.f32.mrf.mxu2 }
 0x332   :  { %v9010_v56 = vpack.i.bf16 %v10833_v35, %v1168_v5  ;;  %v10839_v2 = vpop.f32.mrf.mxu3 }
 0x333   :  { %v1170_v13 = vpop.f32.mrf.mxu1 }
 0x334   :  { %8976 = vrot.lane.b32.xlu2 %v8975_v25, %s9370_s4  ;;  %v1829_v47 = vpack.c.bf16 %v1170_v13, %v1168_v5  ;;  %v10845_v25 = vsel %vm1484_vm12, %v8873_v46, %v8874_v10  ;;  %v8990_v10 = vpack.i.bf16 %v1214_v9, %v1165_v59  ;;  %v1824_v9 = vpack.c.bf16 %v10743_v41, %v10732_v36 }
 0x335   :  { %9011 = vrot.lane.b32.xlu0 %v9010_v56, %s9370_s4  ;;  %v1823_v36 = vpack.c.bf16 %v10720_v30, %v10709_v26  ;;  %v12515_v41 = vpack.i.bf16 %v10783_v61, %v10781_v6  ;;  %v9045_v26 = vpack.i.bf16 %v10772_v63, %v10758_v52  ;;  %v12517_v6 = vpack.i.bf16 %v10737_v38, %v10735_v37 }
 0x336   :  { %v8862_v40 = vpop.permute.xlu1 %8861  ;;  %9006 = vrot.lane.b32.xlu1 %v8995_v16, %s9374_s30  ;;  %1988 = vmatpush.bf16.msrb.mxu1 %v1829_v47  ;;  %v9020_v16 = vpack.i.bf16 %v1170_v13, %v1168_v5  ;;  %v9015_v47 = vpack.i.bf16 %v10839_v2, %v10833_v35  ;;  %v8887_v46 = vpop.permute.xlu2 %8886 }
 0x337   :  { %v8864_v12 = vunpack.i.h.bf16 %v8862_v40  ;;  %v8863_v8 = vunpack.i.l.bf16 %v8862_v40  ;;  %v8889_v55 = vunpack.i.h.bf16 %v8887_v46  ;;  %v8888_v5 = vunpack.i.l.bf16 %v8887_v46 }
 0x339   :  { %v10842_v60 = vsel %vm1484_vm12, %v8863_v8, %v8864_v12  ;;  %v1826_v8 = vpack.c.bf16 %v10789_v11, %v10778_v51 }
 0x33a   :  { %1989 = vmatpush.bf16.msrb.mxu1 %v1828_v7  ;;  %v10858_v7 = vpop.f32.mrf.mxu2 }
 0x33b   :  { %v9025_v29 = vpack.i.bf16 %v10858_v7, %v1170_v13  ;;  %v10873_v13 = vsel %vm1484_vm12, %v8888_v5, %v8889_v55  ;;  %v9075_v5 = vpack.i.bf16 %v10751_v54, %v10749_v53 }
 0x33c   :  { %8981 = vrot.lane.b32.xlu2 %v8980_v50, %s9373_s29  ;;  %v12516_v50 = vpack.i.bf16 %v10760_v58, %v10758_v52  ;;  %v9065_v52 = vpack.i.bf16 %v10749_v53, %v10735_v37  ;;  %v9095_v37 = vpack.i.bf16 %v10858_v7, %v10833_v35 }
 0x33d   :  { %9021 = vrot.lane.b32.xlu0 %v9020_v16, %s9371_s26 }
 0x33e   :  { %9016 = vrot.lane.b32.xlu1 %v9015_v47, %s9373_s29  ;;  %1990 = vmatpush.bf16.msrb.mxu1 %v1827_v15  ;;  %v10902_v15 = vpop.permute.xlu0 %8866 }
 0x342   :  { %1991 = vmatpush.bf16.msrb.mxu1 %v1826_v8 }
 0x344   :  { %8991 = vrot.lane.b32.xlu2 %v8990_v10, %s9370_s4  ;;  %v9085_v10 = vpack.i.bf16 %v10726_v32, %v10712_v49 }
 0x345   :  { %9041 = vrot.lane.b32.xlu0 %v10806_v31, %s9374_s30  ;;  %v9055_v31 = vpack.i.bf16 %v10774_v1, %v10772_v63 }
 0x346   :  { %v8877_v40 = vpop.permute.xlu1 %8876  ;;  %9026 = vrot.lane.b32.xlu1 %v9025_v29, %s9370_s4  ;;  %1992 = vmatpush.bf16.msrb.mxu1 %v1825_v28  ;;  %v8902_v12 = vpop.permute.xlu2 %8901 }
 0x347   :  { %v8879_v51 = vunpack.i.h.bf16 %v8877_v40  ;;  %v8878_v11 = vunpack.i.l.bf16 %v8877_v40  ;;  %v8904_v30 = vunpack.i.h.bf16 %v8902_v12  ;;  %v8903_v16 = vunpack.i.l.bf16 %v8902_v12  ;;  %v10917_v29 = vpop.f32.mrf.mxu0 }
 0x348   :  { %v10921_v28 = vpop.permute.xlu0 %8881 }
 0x349   :  { %v10870_v59 = vsel %vm1484_vm12, %v8878_v11, %v8879_v51  ;;  %v10908_v46 = vsel %vm1484_vm12, %v8903_v16, %v8904_v30 }
 0x34a   :  { %1993 = vmatpush.bf16.msrb.mxu1 %v1824_v9 }
 0x34c   :  { %9036 = vrot.lane.b32.xlu2 %v9035_v57, %s9373_s29  ;;  %v1268_v57 = vpop.f32.mrf.mxu3 }
 0x34d   :  { %9056 = vrot.lane.b32.xlu0 %v9055_v31, %s9373_s29  ;;  %v9100_v53 = vpack.i.bf16 %v1268_v57, %v10858_v7  ;;  %v9105_v7 = vpack.i.bf16 %v10728_v33, %v10726_v32 }
 0x34e   :  { %9031 = vrot.lane.b32.xlu1 %v12515_v41, %s9373_s29  ;;  %1994 = vmatpush.bf16.msrb.mxu1 %v1823_v36 }
 0x34f   :  { %v10930_v9 = vpop.f32.mrf.mxu0 }
 0x352   :  { %1995 = vmatpush.bf16.msrb.mxu1 %v1822_v21 }
 0x354   :  { %9051 = vrot.lane.b32.xlu2 %v12516_v50, %s9373_s29 }
 0x355   :  { %9071 = vrot.lane.b32.xlu0 %v12517_v6, %s9373_s29  ;;  %v9120_v6 = vpack.i.bf16 %v10703_v24, %v10689_v18 }
 0x356   :  { %v8892_v47 = vpop.permute.xlu1 %8891  ;;  %9046 = vrot.lane.b32.xlu1 %v9045_v26, %s9372_s28  ;;  %v8917_v55 = vpop.permute.xlu2 %8916 }
 0x357   :  { %v8894_v17 = vunpack.i.h.bf16 %v8892_v47  ;;  %v8893_v22 = vunpack.i.l.bf16 %v8892_v47  ;;  %v8919_v40 = vunpack.i.h.bf16 %v8917_v55  ;;  %v8918_v51 = vunpack.i.l.bf16 %v8917_v55  ;;  %v10951_v16 = vpop.f32.mrf.mxu0 }
 0x358   :  { %v10932_v41 = vpop.permute.xlu0 %8896 }
 0x359   :  { %v10905_v8 = vsel %vm1484_vm12, %v8893_v22, %v8894_v17  ;;  %v10938_v21 = vsel %vm1484_vm12, %v8918_v51, %v8919_v40 }
 0x35c   :  { %9066 = vrot.lane.b32.xlu2 %v9065_v52, %s9372_s28 }
 0x35d   :  { %9086 = vrot.lane.b32.xlu0 %v9085_v10, %s9372_s28 }
 0x35e   :  { %9061 = vrot.lane.b32.xlu1 %v9045_v26, %s9374_s30  ;;  %v12518_v26 = vpack.i.bf16 %v10714_v27, %v10712_v49 }
 0x35f   :  { %v10972_v51 = vpop.f32.mrf.mxu0 }
 0x364   :  { %9081 = vrot.lane.b32.xlu2 %v9065_v52, %s9374_s30 }
 0x365   :  { %9096 = vrot.lane.b32.xlu0 %v9095_v37, %s9372_s28 }
 0x366   :  { %v8907_v11 = vpop.permute.xlu1 %8906  ;;  %9076 = vrot.lane.b32.xlu1 %v9075_v5, %s9373_s29  ;;  %v8932_v50 = vpop.permute.xlu2 %8931 }
 0x367   :  { %v8909_v31 = vunpack.i.h.bf16 %v8907_v11  ;;  %v8908_v36 = vunpack.i.l.bf16 %v8907_v11  ;;  %v8934_v47 = vunpack.i.h.bf16 %v8932_v50  ;;  %v8933_v17 = vunpack.i.l.bf16 %v8932_v50 }
 0x368   :  { %v10949_v30 = vpop.permute.xlu0 %8911  ;;  %v12519_v11 = vpack.i.bf16 %v10691_v20, %v10689_v18  ;;  %v9150_v50 = vpack.i.bf16 %v10816_v0, %v10810_v39 }
 0x369   :  { %v10935_v35 = vsel %vm1484_vm12, %v8908_v36, %v8909_v31  ;;  %v10968_v5 = vsel %vm1484_vm12, %v8933_v17, %v8934_v47  ;;  %v8914_v19 = vunpack.i.h.bf16 %v10949_v30 }
 0x36c   :  { %9101 = vrot.lane.b32.xlu2 %v9100_v53, %s9373_s29  ;;  %v9145_v53 = vpack.i.bf16 %v10827_v43, %v10823_v42 }
 0x36d   :  { %9111 = vrot.lane.b32.xlu0 %v9095_v37, %s9374_s30 }
 0x36e   :  { %9091 = vrot.lane.b32.xlu1 %v12518_v26, %s9373_s29 }
 0x374   :  { %9106 = vrot.lane.b32.xlu2 %v9105_v7, %s9373_s29  ;;  %v9160_v7 = vpack.i.bf16 %v1268_v57, %v10839_v2  ;;  %v9165_v2 = vpack.i.bf16 %v10797_v23, %v10783_v61 }
 0x375   :  { %9116 = vrot.lane.b32.xlu0 %v9085_v10, %s9374_s30  ;;  %v9130_v10 = vpack.i.bf16 %v10705_v48, %v10703_v24  ;;  %v10991_v24 = vpop.f32.mrf.mxu0 }
 0x376   :  { %v8922_v22 = vpop.permute.xlu1 %8921  ;;  %v10959_v52 = vpop.permute.xlu2 %8956  ;;  %9121 = vrot.lane.b32.xlu1 %v9120_v6, %s9372_s28 }
 0x377   :  { %v8924_v49 = vunpack.i.h.bf16 %v8922_v22  ;;  %v8923_v55 = vunpack.i.l.bf16 %v8922_v22 }
 0x378   :  { %v10962_v37 = vpop.permute.xlu0 %8926 }
 0x379   :  { %v10965_v32 = vsel %vm1484_vm12, %v8923_v55, %v8924_v49 }
 0x37c   :  { %9126 = vrot.lane.b32.xlu2 %v12519_v11, %s9373_s29 }
 0x37d   :  { %9131 = vrot.lane.b32.xlu0 %v9130_v10, %s9373_s29  ;;  %v11005_v47 = vpop.f32.mrf.mxu0  ;;  %v9180_v10 = vpack.i.bf16 %v10774_v1, %v10760_v58 }
 0x37e   :  { %v10981_v31 = vpop.permute.xlu2 %8961  ;;  %9136 = vrot.lane.b32.xlu1 %v9120_v6, %s9374_s30 }
 0x380   :  { %v10984_v36 = vpop.permute.xlu0 %8936 }
 0x384   :  { %9146 = vrot.lane.b32.xlu2 %v9145_v53, %s9375_s0 }
 0x385   :  { %9151 = vrot.lane.b32.xlu0 %v9150_v50, %s9376_s19 }
 0x386   :  { %v10994_v18 = vpop.permute.xlu1 %8941  ;;  %v10996_v26 = vpop.permute.xlu2 %8971  ;;  %9141 = vrot.lane.b32.xlu1 %v9145_v53, %s9376_s19 }
 0x387   :  { %v11024_v53 = vpop.f32.mrf.mxu0 }
 0x388   :  { %v8947_v43 = vpop.permute.xlu0 %8946 }
 0x389   :  { %v8949_v39 = vunpack.i.h.bf16 %v8947_v43  ;;  %v8948_v0 = vunpack.i.l.bf16 %v8947_v43  ;;  %v9200_v43 = vpack.i.bf16 %v10728_v33, %v10714_v27 }
 0x38b   :  { %v11010_v57 = vsel %vm1693_vm13, %v8948_v0, %v8949_v39 }
 0x38c   :  { %9161 = vrot.lane.b32.xlu2 %v9160_v7, %s9376_s19 }
 0x38d   :  { %9171 = vrot.lane.b32.xlu0 %v9160_v7, %s9375_s0 }
 0x38e   :  { %v11002_v42 = vpop.permute.xlu2 %8976  ;;  %9156 = vrot.lane.b32.xlu1 %v9150_v50, %s9375_s0  ;;  %v9190_v50 = vpack.i.bf16 %v10751_v54, %v10737_v38  ;;  %v9210_v38 = vpack.i.bf16 %v10705_v48, %v10691_v20 }
 0x38f   :  { %v8967_v6 = vpop.permute.xlu1 %8966  ;;  %v11037_v39 = vpop.f32.mrf.mxu0 }
 0x390   :  { %v8969_v17 = vunpack.i.h.bf16 %v8967_v6  ;;  %v8968_v22 = vunpack.i.l.bf16 %v8967_v6  ;;  %v8952_v61 = vpop.permute.xlu0 %8951 }
 0x391   :  { %v8953_v55 = vunpack.i.l.bf16 %v8952_v61 }
 0x392   :  { %v11013_v49 = vsel %vm1693_vm13, %v8968_v22, %v8969_v17 }
 0x394   :  { %9166 = vrot.lane.b32.xlu2 %v9165_v2, %s9376_s19 }
 0x395   :  { %9176 = vrot.lane.b32.xlu0 %v9165_v2, %s9375_s0 }
 0x396   :  { %v11021_v11 = vpop.permute.xlu2 %8981  ;;  %9181 = vrot.lane.b32.xlu1 %v9180_v10, %s9376_s19 }
 0x397   :  { %v11049_v17 = vpop.f32.mrf.mxu0 }
 0x398   :  { %v8987_v23 = vpop.permute.xlu1 %8986 }
 0x399   :  { %v8989_v20 = vunpack.i.h.bf16 %v8987_v23  ;;  %v8988_v48 = vunpack.i.l.bf16 %v8987_v23  ;;  %v8929_v23 = vunpack.i.h.bf16 %v10962_v37 }
 0x39b   :  { %v1836_v34 = vpack.c.bf16 %v8989_v20, %v8988_v48  ;;  %v8978_v20 = vunpack.i.l.bf16 %v11002_v42 }
 0x39c   :  { %9186 = vrot.lane.b32.xlu2 %v9180_v10, %s9375_s0 }
 0x39d   :  { %9191 = vrot.lane.b32.xlu0 %v9190_v50, %s9376_s19 }
 0x39e   :  { %v8992_v7 = vpop.permute.xlu2 %8991  ;;  %9196 = vrot.lane.b32.xlu1 %v9190_v50, %s9375_s0 }
 0x39f   :  { %v11031_v58 = vpop.permute.xlu0 %9001  ;;  %v11059_v40 = vpop.f32.mrf.mxu0  ;;  %v8993_v45 = vunpack.i.l.bf16 %v8992_v7 }
 0x3a0   :  { %v11033_v1 = vpop.permute.xlu1 %8996 }
 0x3a4   :  { %9201 = vrot.lane.b32.xlu2 %v9200_v43, %s9376_s19 }
 0x3a5   :  { %9206 = vrot.lane.b32.xlu0 %v9200_v43, %s9375_s0  ;;  %v8954_v43 = vunpack.i.h.bf16 %v8952_v61 }
 0x3a6   :  { %v11043_v54 = vpop.permute.xlu2 %9036  ;;  %9211 = vrot.lane.b32.xlu1 %v9210_v38, %s9376_s19 }
 0x3a7   :  { %v9012_v0 = vpop.permute.xlu0 %9011  ;;  %v1835_v61 = vpack.c.bf16 %v8954_v43, %v8953_v55 }
 0x3a8   :  { %v11046_v6 = vpop.permute.xlu1 %9006  ;;  %v9014_v63 = vunpack.i.h.bf16 %v9012_v0 }
 0x3ac   :  { %9216 = vrot.lane.b32.xlu2 %v9210_v38, %s9375_s0  ;;  %v9013_v38 = vunpack.i.l.bf16 %v9012_v0 }
 0x3ae   :  { %v11051_v27 = vpop.permute.xlu2 %9051  ;;  %v1499_v0 = vsel %vm1484_vm12, %v9013_v38, %v9014_v63  ;;  %v8959_v63 = vunpack.i.h.bf16 %v10959_v52 }
 0x3af   :  { %v9022_v33 = vpop.permute.xlu0 %9021 }
 0x3b0   :  { %v9024_v22 = vunpack.i.h.bf16 %v9022_v33  ;;  %v9023_v2 = vunpack.i.l.bf16 %v9022_v33  ;;  %v11053_v10 = vpop.permute.xlu1 %9016  ;;  %v8994_v33 = vunpack.i.h.bf16 %v8992_v7  ;;  %v8943_v7 = vunpack.i.l.bf16 %v10994_v18 }
 0x3b2   :  { %v1837_v50 = vpack.c.bf16 %v9024_v22, %v9023_v2  ;;  %v8928_v22 = vunpack.i.l.bf16 %v10962_v37  ;;  %v8979_v2 = vunpack.i.h.bf16 %v11002_v42  ;;  %v8913_v37 = vunpack.i.l.bf16 %v10949_v30  ;;  %v8439_v30 = vld [vmem:[%s12461_s3 + $0x20] sm:$0xf0] }
 0x3b4   :  { %2007 = vmatpush.bf16.msrb.mxu2 %v1837_v50  ;;  %v8944_v50 = vunpack.i.h.bf16 %v10994_v18  ;;  %v1834_v42 = vpack.c.bf16 %v8929_v23, %v8928_v22  ;;  %v1497_v43 = vsel %vm1484_vm12, %v8978_v20, %v8979_v2  ;;  %v8899_v22 = vunpack.i.h.bf16 %v10932_v41 }
 0x3b5   :  { %v1833_v2 = vpack.c.bf16 %v8914_v19, %v8913_v37  ;;  %v8868_v19 = vunpack.i.l.bf16 %v10902_v15  ;;  %v12520_v37 = vpack.c.bf16 %v10968_v5, %v10965_v32  ;;  %v6758_v5 = vld [vmem:[%s12461_s3 + $0x48] sm:$0xf] }
 0x3b6   :  { %v11055_v56 = vpop.permute.xlu2 %9066  ;;  %v1495_v23 = vsel %vm1484_vm12, %v8943_v7, %v8944_v50 }
 0x3b7   :  { %v11057_v12 = vpop.permute.xlu0 %9041 }
 0x3b8   :  { %2008 = vmatpush.bf16.msrb.mxu2 %v1836_v34  ;;  %v9027_v62 = vpop.permute.xlu1 %9026 }
 0x3b9   :  { %v9029_v44 = vunpack.i.h.bf16 %v9027_v62  ;;  %v9028_v14 = vunpack.i.l.bf16 %v9027_v62  ;;  %v1498_v62 = vsel %vm1484_vm12, %v8993_v45, %v8994_v33  ;;  %v6722_v45 = vld [vmem:[%s12461_s3] sm:$0xf] }
 0x3ba   :  { %v1844_v38 = vpack.c.bf16 %v1498_v62, %v1497_v43  ;;  %v6723_v33 = vor.u32 %v8439_v30, %v6722_v45  ;;  %v6724_v43 = vld [vmem:[%s12461_s3 + $0x24] sm:$0xf0]  ;;  %v12521_v45 = vpack.c.bf16 %v10938_v21, %v10935_v35 }
 0x3bb   :  { %v1500_v48 = vsel %vm1484_vm12, %v9028_v14, %v9029_v44  ;;  %v8958_v14 = vunpack.i.l.bf16 %v10959_v52  ;;  %v11088_v52 = vpop.f32.mrf.mxu0 }
 0x3bc   :  { %2009 = vmatpush.bf16.msrb.mxu2 %v1835_v61  ;;  %v1845_v34 = vpack.c.bf16 %v1500_v48, %v1499_v0  ;;  %v8898_v61 = vunpack.i.l.bf16 %v10932_v41  ;;  %1996 = vmatmul.bf16.vlgmr.msrb.gmra.mxu1 %v6723_v33  ;;  %v8884_v48 = vunpack.i.h.bf16 %v10921_v28  ;;  %v8869_v41 = vunpack.i.h.bf16 %v10902_v15 }
 0x3bd   :  { %v1496_v20 = vsel %vm1484_vm12, %v8958_v14, %v8959_v63 }
 0x3be   :  { %v11072_v55 = vpop.permute.xlu2 %9081  ;;  %2026 = vmatpush.bf16.msrb.mxu3 %v1845_v34  ;;  %v1843_v0 = vpack.c.bf16 %v1496_v20, %v1495_v23  ;;  %v8883_v34 = vunpack.i.l.bf16 %v10921_v28  ;;  %v1832_v62 = vpack.c.bf16 %v8899_v22, %v8898_v61  ;;  %v8435_v28 = vld [vmem:[%s12461_s3 + $0x4] sm:$0xf]  ;;  %v1830_v15 = vpack.c.bf16 %v8869_v41, %v8868_v19 }
 0x3bf   :  { %v11076_v44 = vpop.permute.xlu0 %9056  ;;  %v6727_v32 = vor.u32 %v8435_v28, %v6724_v43  ;;  %v12522_v61 = vpack.c.bf16 %v10908_v46, %v10905_v8  ;;  %v9018_v20 = vunpack.i.l.bf16 %v11053_v10  ;;  %v6730_v8 = vld [vmem:[%s12461_s3 + $0x8] sm:$0xf]  ;;  %v8440_v46 = vld [vmem:[%s12461_s3 + $0x28] sm:$0xf0]  ;;  %v8983_v19 = vunpack.i.l.bf16 %v11021_v11 }
 0x3c0   :  { %2010 = vmatpush.bf16.msrb.mxu2 %v1834_v42  ;;  %v11085_v18 = vpop.permute.xlu1 %9031  ;;  %v1831_v63 = vpack.c.bf16 %v8884_v48, %v8883_v34  ;;  %v9004_v48 = vunpack.i.h.bf16 %v11031_v58  ;;  %v9003_v34 = vunpack.i.l.bf16 %v11031_v58  ;;  %v8999_v43 = vunpack.i.h.bf16 %v11033_v1 }
 0x3c2   :  { %2027 = vmatpush.bf16.msrb.mxu3 %v1844_v38  ;;  %v8448_v38 = vld [vmem:[%s12461_s3 + $0x68] sm:$0xf0] }
 0x3c3   :  { %v11104_v14 = vpop.f32.mrf.mxu0  ;;  %v6759_v23 = vor.u32 %v8448_v38, %v6758_v5  ;;  %v1707_v5 = vsel %vm1693_vm13, %v9003_v34, %v9004_v48  ;;  %v8938_v48 = vunpack.i.l.bf16 %v10984_v36 }
 0x3c4   :  { %2011 = vmatpush.bf16.msrb.mxu2 %v1833_v2  ;;  %v9019_v2 = vunpack.i.h.bf16 %v11053_v10  ;;  %v8984_v10 = vunpack.i.h.bf16 %v11021_v11 }
 0x3c6   :  { %2028 = vmatpush.bf16.msrb.mxu3 %v1843_v0  ;;  %v9102_v50 = vpop.permute.xlu2 %9101  ;;  %v1708_v58 = vsel %vm1693_vm13, %v9018_v20, %v9019_v2  ;;  %v1706_v38 = vsel %vm1693_vm13, %v8983_v19, %v8984_v10  ;;  %v9033_v2 = vunpack.i.l.bf16 %v11085_v18  ;;  %v8939_v20 = vunpack.i.h.bf16 %v10984_v36 }
 0x3c7   :  { %v11095_v7 = vpop.permute.xlu0 %9071  ;;  %v9104_v35 = vunpack.i.h.bf16 %v9102_v50  ;;  %v9103_v21 = vunpack.i.l.bf16 %v9102_v50  ;;  %v12523_v50 = vpack.c.bf16 %v10873_v13, %v10870_v59  ;;  %v6731_v13 = vor.u32 %v8440_v46, %v6730_v8 }
 0x3c8   :  { %2012 = vmatpush.bf16.msrb.mxu2 %v1832_v62  ;;  %v11097_v42 = vpop.permute.xlu1 %9046  ;;  %v9039_v8 = vunpack.i.h.bf16 %v11043_v54  ;;  %v9038_v46 = vunpack.i.l.bf16 %v11043_v54  ;;  %v9008_v19 = vunpack.i.l.bf16 %v11046_v6  ;;  %v9059_v36 = vunpack.i.h.bf16 %v11076_v44 }
 0x3c9   :  { %v1709_v62 = vsel %vm1693_vm13, %v9103_v21, %v9104_v35  ;;  %v8964_v35 = vunpack.i.h.bf16 %v10981_v31  ;;  %v8973_v54 = vunpack.i.l.bf16 %v10996_v26 }
 0x3ca   :  { %2029 = vmatpush.bf16.msrb.mxu3 %v12520_v37  ;;  %v1869_v59 = vpack.c.bf16 %v1709_v62, %v1708_v58  ;;  %v9058_v58 = vunpack.i.l.bf16 %v11076_v44  ;;  %v1858_v44 = vpack.c.bf16 %v8939_v20, %v8938_v48  ;;  %v9044_v48 = vunpack.i.h.bf16 %v11057_v12 }
 0x3cb   :  { %v11132_v0 = vpop.f32.mrf.mxu0 }
 0x3cc   :  { %2013 = vmatpush.bf16.msrb.mxu2 %v1831_v63  ;;  %2001 = vmatmul.bf16.gmra.mxu1 %v6759_v23  ;;  %v8444_v23 = vld [vmem:[%s12461_s3 + $0x4c] sm:$0xf] }
 0x3ce   :  { %2030 = vmatpush.bf16.msrb.mxu3 %v12521_v45  ;;  %v11125_v22 = vpop.permute.xlu2 %9106  ;;  %v8998_v45 = vunpack.i.l.bf16 %v11033_v1  ;;  %v6760_v1 = vld [vmem:[%s12461_s3 + $0x6c] sm:$0xf0] }
 0x3cf   :  { %v11115_v30 = vpop.permute.xlu0 %9086  ;;  %v6763_v62 = vor.u32 %v8444_v23, %v6760_v1  ;;  %v9049_v23 = vunpack.i.h.bf16 %v11097_v42 }
 0x3d0   :  { %2014 = vmatpush.bf16.msrb.mxu2 %v1830_v15  ;;  %v11123_v33 = vpop.permute.xlu1 %9061  ;;  %v1860_v21 = vpack.c.bf16 %v8999_v43, %v8998_v45  ;;  %v9054_v43 = vunpack.i.h.bf16 %v11051_v27  ;;  %v9053_v45 = vunpack.i.l.bf16 %v11051_v27  ;;  %v9048_v27 = vunpack.i.l.bf16 %v11097_v42 }
 0x3d1   :  { %v9069_v42 = vunpack.i.h.bf16 %v11055_v56 }
 0x3d2   :  { %2031 = vmatpush.bf16.msrb.mxu3 %v12522_v61  ;;  %v9034_v61 = vunpack.i.h.bf16 %v11085_v18  ;;  %v9009_v18 = vunpack.i.h.bf16 %v11046_v6  ;;  %v1703_v6 = vsel %vm1693_vm13, %v9038_v46, %v9039_v8 }
 0x3d3   :  { %2015 = vmatmul.bf16.vlgmr.msrb.gmra.mxu2 %v6727_v32  ;;  %v12524_v32 = vpack.c.bf16 %v10845_v25, %v10842_v60  ;;  %v1868_v60 = vpack.c.bf16 %v1707_v5, %v1706_v38  ;;  %v8963_v25 = vunpack.i.l.bf16 %v10981_v31 }
 0x3d6   :  { %2032 = vmatpush.bf16.msrb.mxu3 %v12523_v50  ;;  %v11157_v11 = vpop.permute.xlu2 %9126  ;;  %v11172_v50 = vpop.f32.mrf.mxu0 }
 0x3d7   :  { %v9097_v41 = vpop.permute.xlu0 %9096 }
 0x3d8   :  { %v9099_v37 = vunpack.i.h.bf16 %v9097_v41  ;;  %v9098_v63 = vunpack.i.l.bf16 %v9097_v41  ;;  %v11149_v28 = vpop.permute.xlu1 %9076 }
 0x3d9   :  { %v9079_v1 = vunpack.i.h.bf16 %v11149_v28 }
 0x3da   :  { %v1861_v15 = vpack.c.bf16 %v9099_v37, %v9098_v63  ;;  %2033 = vmatpush.bf16.msrb.mxu3 %v12524_v32  ;;  %v1859_v37 = vpack.c.bf16 %v8964_v35, %v8963_v25  ;;  %v1852_v32 = vpack.c.bf16 %v9009_v18, %v9008_v19  ;;  %v8449_v35 = vld [vmem:[%s12461_s3 + $0x70] sm:$0xf0]  ;;  %v9108_v19 = vunpack.i.l.bf16 %v11125_v22 }
 0x3dc   :  { %2064 = vmatpush.bf16.msra.mxu2 %v1861_v15  ;;  %v12525_v15 = vpack.c.bf16 %v11013_v49, %v11010_v57  ;;  %v9078_v57 = vunpack.i.l.bf16 %v11149_v28  ;;  %v6766_v49 = vld [vmem:[%s12461_s3 + $0x50] sm:$0xf]  ;;  %v9074_v28 = vunpack.i.h.bf16 %v11095_v7 }
 0x3dd   :  { %2034 = vmatmul.bf16.vlgmr.msrb.gmra.mxu3 %v6731_v13  ;;  %v8974_v13 = vunpack.i.h.bf16 %v10996_v26  ;;  %v1701_v26 = vsel %vm1693_vm13, %v9058_v58, %v9059_v36  ;;  %v6767_v8 = vor.u32 %v8449_v35, %v6766_v49  ;;  %v9089_v58 = vunpack.i.h.bf16 %v11115_v30 }
 0x3de   :  { %2083 = vmatpush.bf16.msra.mxu3 %v1869_v59  ;;  %v1702_v59 = vsel %vm1693_vm13, %v9033_v2, %v9034_v61  ;;  %v11191_v5 = vpop.permute.xlu2 %9146  ;;  %v9068_v61 = vunpack.i.l.bf16 %v11055_v56  ;;  %v9073_v2 = vunpack.i.l.bf16 %v11095_v7  ;;  %v11213_v46 = vpop.f32.mrf.mxu0  ;;  %v1699_v18 = vsel %vm1693_vm13, %v9078_v57, %v9079_v1 }
 0x3df   :  { %v9112_v34 = vpop.permute.xlu0 %9111  ;;  %v1866_v38 = vpack.c.bf16 %v1703_v6, %v1702_v59  ;;  %v9109_v7 = vunpack.i.h.bf16 %v11125_v22  ;;  %v9128_v6 = vunpack.i.l.bf16 %v11157_v11 }
 0x3e0   :  { %v9114_v10 = vunpack.i.h.bf16 %v9112_v34  ;;  %v9113_v31 = vunpack.i.l.bf16 %v9112_v34  ;;  %2065 = vmatpush.bf16.msra.mxu2 %v1860_v21  ;;  %v11176_v41 = vpop.permute.xlu1 %9091  ;;  %v1700_v21 = vsel %vm1693_vm13, %v9053_v45, %v9054_v43  ;;  %v9043_v34 = vunpack.i.l.bf16 %v11057_v12 }
 0x3e1   :  { %v9093_v56 = vunpack.i.l.bf16 %v11176_v41  ;;  %v1698_v12 = vsel %vm1693_vm13, %v9073_v2, %v9074_v28  ;;  %v1856_v36 = vpack.c.bf16 %v9069_v42, %v9068_v61  ;;  %v1697_v45 = vsel %vm1693_vm13, %v9108_v19, %v9109_v7  ;;  %v6738_v42 = vld [vmem:[%s12461_s3 + $0x10] sm:$0xf] }
 0x3e2   :  { %2084 = vmatpush.bf16.msra.mxu3 %v1868_v60  ;;  %v1853_v63 = vpack.c.bf16 %v9114_v10, %v9113_v31  ;;  %v1851_v60 = vpack.c.bf16 %v8974_v13, %v8973_v54  ;;  %v1857_v10 = vpack.c.bf16 %v9049_v23, %v9048_v27  ;;  %v9094_v31 = vunpack.i.h.bf16 %v11176_v41 }
 0x3e3   :  { %2020 = vmatmul.bf16.gmra.mxu2 %v6763_v62  ;;  %v1865_v62 = vpack.c.bf16 %v1701_v26, %v1700_v21  ;;  %v1850_v59 = vpack.c.bf16 %v9044_v48, %v9043_v34  ;;  %v9064_v41 = vunpack.i.h.bf16 %v11123_v33  ;;  %v9063_v13 = vunpack.i.l.bf16 %v11123_v33 }
 0x3e4   :  { %2045 = vmatpush.bf16.msra.mxu1 %v1853_v63  ;;  %2066 = vmatpush.bf16.msra.mxu2 %v1859_v37  ;;  %v9088_v37 = vunpack.i.l.bf16 %v11115_v30  ;;  %v1864_v63 = vpack.c.bf16 %v1699_v18, %v1698_v12  ;;  %v1696_v54 = vsel %vm1693_vm13, %v9093_v56, %v9094_v31  ;;  %v9083_v33 = vunpack.i.l.bf16 %v11072_v55  ;;  %v8437_v31 = vld [vmem:[%s12461_s3 + $0x14] sm:$0xf]  ;;  %v6740_v56 = vld [vmem:[%s12461_s3 + $0x34] sm:$0xf0] }
 0x3e5   :  { %v1863_v23 = vpack.c.bf16 %v1697_v45, %v1696_v54  ;;  %v1849_v27 = vpack.c.bf16 %v9064_v41, %v9063_v13  ;;  %v8436_v13 = vld [vmem:[%s12461_s3 + $0xc] sm:$0xf]  ;;  %v6732_v54 = vld [vmem:[%s12461_s3 + $0x2c] sm:$0xf0] }
 0x3e6   :  { %2085 = vmatpush.bf16.msra.mxu3 %v12525_v15  ;;  %v9162_v22 = vpop.permute.xlu2 %9161  ;;  %v9129_v15 = vunpack.i.h.bf16 %v11157_v11  ;;  %v1855_v26 = vpack.c.bf16 %v9089_v58, %v9088_v37  ;;  %v1317_v11 = vpop.f32.mrf.mxu0  ;;  %v6743_v58 = vor.u32 %v8437_v31, %v6740_v56  ;;  %v1892_v37 = vpack.c.bf16 %v11172_v50, %v11132_v0 }
 0x3e7   :  { %v11204_v25 = vpop.permute.xlu0 %9116  ;;  %v9164_v35 = vunpack.i.h.bf16 %v9162_v22  ;;  %v1893_v34 = vpack.c.bf16 %v1317_v11, %v11213_v46  ;;  %v6776_v11 = vld [vmem:[%s12461_s3 + $0x7c] sm:$0xf0] }
 0x3e8   :  { %2046 = vmatpush.bf16.msra.mxu1 %v1852_v32  ;;  %2067 = vmatpush.bf16.msra.mxu2 %v1858_v44  ;;  %v9122_v20 = vpop.permute.xlu1 %9121  ;;  %v1694_v21 = vsel %vm1693_vm13, %v9128_v6, %v9129_v15  ;;  %v9119_v2 = vunpack.i.h.bf16 %v11204_v25  ;;  %v6735_v6 = vor.u32 %v8436_v13, %v6732_v54  ;;  %v6754_v13 = vld [vmem:[%s12461_s3 + $0x20] sm:$0xf]  ;;  %v8443_v54 = vld [vmem:[%s12461_s3 + $0x40] sm:$0xf0] }
 0x3e9   :  { %v9124_v1 = vunpack.i.h.bf16 %v9122_v20  ;;  %v9123_v57 = vunpack.i.l.bf16 %v9122_v20  ;;  %v9118_v20 = vunpack.i.l.bf16 %v11204_v25 }
 0x3ea   :  { %2086 = vmatpush.bf16.msra.mxu3 %v1866_v38  ;;  %v9084_v38 = vunpack.i.h.bf16 %v11072_v55  ;;  %v8441_v55 = vld [vmem:[%s12461_s3 + $0x30] sm:$0xf0] }
 0x3eb   :  { %v1854_v48 = vpack.c.bf16 %v9124_v1, %v9123_v57  ;;  %v1847_v46 = vpack.c.bf16 %v9119_v2, %v9118_v20  ;;  %v8450_v1 = vld [vmem:[%s12461_s3 + $0x78] sm:$0xf0] }
 0x3ec   :  { %2047 = vmatpush.bf16.msra.mxu1 %v1851_v60  ;;  %2068 = vmatpush.bf16.msra.mxu2 %v1857_v10  ;;  %v9163_v60 = vunpack.i.l.bf16 %v9162_v22  ;;  %v1848_v28 = vpack.c.bf16 %v9084_v38, %v9083_v33  ;;  %v6739_v10 = vor.u32 %v8441_v55, %v6738_v42  ;;  %v1891_v22 = vpack.c.bf16 %v11104_v14, %v11088_v52 }
 0x3ed   :  { %2039 = vmatmul.bf16.gmra.mxu3 %v6767_v8  ;;  %v9149_v38 = vunpack.i.h.bf16 %v11191_v5  ;;  %v9148_v33 = vunpack.i.l.bf16 %v11191_v5  ;;  %v1890_v52 = vpack.c.bf16 %v11059_v40, %v11049_v17  ;;  %v1889_v40 = vpack.c.bf16 %v11037_v39, %v11024_v53 }
 0x3ee   :  { %2087 = vmatpush.bf16.msra.mxu3 %v1865_v62  ;;  %v1885_v62 = vpack.c.bf16 %v9164_v35, %v9163_v60  ;;  %v9167_v7 = vpop.permute.xlu2 %9166  ;;  %v8446_v60 = vld [vmem:[%s12461_s3 + $0x5c] sm:$0xf]  ;;  %v1888_v53 = vpack.c.bf16 %v11005_v47, %v10991_v24  ;;  %v1887_v24 = vpack.c.bf16 %v10972_v51, %v10951_v16 }
 0x3ef   :  { %v9132_v43 = vpop.permute.xlu0 %9131  ;;  %v9169_v0 = vunpack.i.h.bf16 %v9167_v7  ;;  %v9168_v50 = vunpack.i.l.bf16 %v9167_v7  ;;  %v1876_v57 = vpack.c.bf16 %v9149_v38, %v9148_v33  ;;  %v6779_v20 = vor.u32 %v8446_v60, %v6776_v11  ;;  %v6746_v33 = vld [vmem:[%s12461_s3 + $0x18] sm:$0xf] }
 0x3f0   :  { %v9134_v44 = vunpack.i.h.bf16 %v9132_v43  ;;  %v9133_v30 = vunpack.i.l.bf16 %v9132_v43  ;;  %2048 = vmatpush.bf16.msra.mxu1 %v1850_v59  ;;  %2069 = vmatpush.bf16.msra.mxu2 %v1856_v36  ;;  %v9137_v32 = vpop.permute.xlu1 %9136 }
 0x3f1   :  { %v9139_v12 = vunpack.i.h.bf16 %v9137_v32  ;;  %v9138_v36 = vunpack.i.l.bf16 %v9137_v32  ;;  %v1882_v14 = vpack.c.bf16 %v9169_v0, %v9168_v50  ;;  %v8438_v50 = vld [vmem:[%s12461_s3 + $0x1c] sm:$0xf] }
 0x3f2   :  { %2088 = vmatpush.bf16.msra.mxu3 %v1864_v63  ;;  %v1695_v49 = vsel %vm1693_vm13, %v9133_v30, %v9134_v44 }
 0x3f3   :  { %v1862_v61 = vpack.c.bf16 %v1695_v49, %v1694_v21  ;;  %v1846_v43 = vpack.c.bf16 %v9139_v12, %v9138_v36 }
 0x3f4   :  { %2049 = vmatpush.bf16.msra.mxu1 %v1849_v27  ;;  %2070 = vmatpush.bf16.msra.mxu2 %v1855_v26  ;;  %v6774_v27 = vld [vmem:[%s12461_s3 + $0x58] sm:$0xf] }
 0x3f5   :  { %v6775_v35 = vor.u32 %v8450_v1, %v6774_v27  ;;  %v8452_v27 = vld [vmem:[%s12461_s3 + $0x88] sm:$0xf0]  ;;  %v8447_v1 = vld [vmem:[%s12461_s3 + $0x64] sm:$0xf] }
 0x3f6   :  { %2089 = vmatpush.bf16.msra.mxu3 %v1863_v23  ;;  %v9187_v23 = vpop.permute.xlu2 %9186 }
 0x3f7   :  { %v9152_v8 = vpop.permute.xlu0 %9151 }
 0x3f8   :  { %2050 = vmatpush.bf16.msra.mxu1 %v1848_v28  ;;  %2071 = vmatpush.bf16.msra.mxu2 %v1854_v48  ;;  %v9142_v18 = vpop.permute.xlu1 %9141  ;;  %v9154_v63 = vunpack.i.h.bf16 %v9152_v8  ;;  %v9153_v59 = vunpack.i.l.bf16 %v9152_v8  ;;  %v8445_v48 = vld [vmem:[%s12461_s3 + $0x54] sm:$0xf]  ;;  %v9188_v8 = vunpack.i.l.bf16 %v9187_v23 }
 0x3f9   :  { %v9144_v25 = vunpack.i.h.bf16 %v9142_v18  ;;  %v9143_v19 = vunpack.i.l.bf16 %v9142_v18 }
 0x3fa   :  { %2090 = vmatpush.bf16.msra.mxu3 %v1862_v61  ;;  %v1883_v45 = vpack.c.bf16 %v9154_v63, %v9153_v59  ;;  %v1886_v63 = vpack.c.bf16 %v10930_v9, %v10917_v29 }
 0x3fb   :  { %v1884_v41 = vpack.c.bf16 %v9144_v25, %v9143_v19  ;;  %2072 = vmatmul.bf16.vlgmr.msra.gmra.mxu2 %v6739_v10 }
 0x3fc   :  { %2121 = vmatpush.bf16.msrb.mxu2 %v1885_v62  ;;  %2051 = vmatpush.bf16.msra.mxu1 %v1847_v46  ;;  %v9189_v62 = vunpack.i.h.bf16 %v9187_v23  ;;  %v6790_v23 = vld [vmem:[%s12461_s3 + $0x68] sm:$0xf] }
 0x3fd   :  { %2091 = vmatmul.bf16.vlgmr.msra.gmra.mxu3 %v6743_v58 }
 0x3fe   :  { %2140 = vmatpush.bf16.msrb.mxu3 %v1893_v34  ;;  %v6768_v34 = vld [vmem:[%s12461_s3 + $0x74] sm:$0xf0]  ;;  %v9202_v10 = vpop.permute.xlu2 %9201  ;;  %v1873_v19 = vpack.c.bf16 %v9189_v62, %v9188_v8 }
 0x3ff   :  { %v9172_v15 = vpop.permute.xlu0 %9171  ;;  %v6771_v56 = vor.u32 %v8445_v48, %v6768_v34  ;;  %v9204_v46 = vunpack.i.h.bf16 %v9202_v10  ;;  %v9203_v12 = vunpack.i.l.bf16 %v9202_v10 }
 0x400   :  { %2122 = vmatpush.bf16.msrb.mxu2 %v1884_v41  ;;  %v9174_v44 = vunpack.i.h.bf16 %v9172_v15  ;;  %v9173_v30 = vunpack.i.l.bf16 %v9172_v15  ;;  %2052 = vmatpush.bf16.msra.mxu1 %v1846_v43  ;;  %v9157_v32 = vpop.permute.xlu1 %9156 }
 0x401   :  { %v9159_v5 = vunpack.i.h.bf16 %v9157_v32  ;;  %v9158_v49 = vunpack.i.l.bf16 %v9157_v32  ;;  %v1879_v16 = vpack.c.bf16 %v9204_v46, %v9203_v12 }
 0x402   :  { %2141 = vmatpush.bf16.msrb.mxu3 %v1892_v37  ;;  %v1877_v26 = vpack.c.bf16 %v9174_v44, %v9173_v30  ;;  %v6755_v30 = vor.u32 %v8443_v54, %v6754_v13 }
 0x403   :  { %2053 = vmatmul.bf16.vlgmr.msra.gmra.mxu1 %v6735_v6  ;;  %v1875_v61 = vpack.c.bf16 %v9159_v5, %v9158_v49  ;;  %v6791_v5 = vor.u32 %v8452_v27, %v6790_v23 }
 0x404   :  { %2123 = vmatpush.bf16.msrb.mxu2 %v1883_v45  ;;  %2102 = vmatpush.bf16.msrb.mxu1 %v1877_v26  ;;  %v6748_v45 = vld [vmem:[%s12461_s3 + $0x3c] sm:$0xf0]  ;;  %v8442_v26 = vld [vmem:[%s12461_s3 + $0x38] sm:$0xf0] }
 0x405   :  { %v6751_v38 = vor.u32 %v8438_v50, %v6748_v45 }
 0x406   :  { %2142 = vmatpush.bf16.msrb.mxu3 %v1891_v22  ;;  %v9217_v59 = vpop.permute.xlu2 %9216 }
 0x407   :  { %v9177_v17 = vpop.permute.xlu0 %9176  ;;  %v9219_v15 = vunpack.i.h.bf16 %v9217_v59  ;;  %v9218_v6 = vunpack.i.l.bf16 %v9217_v59 }
 0x408   :  { %2124 = vmatpush.bf16.msrb.mxu2 %v1882_v14  ;;  %2103 = vmatpush.bf16.msrb.mxu1 %v1876_v57  ;;  %v9182_v21 = vpop.permute.xlu1 %9181  ;;  %v9179_v28 = vunpack.i.h.bf16 %v9177_v17  ;;  %v9178_v2 = vunpack.i.l.bf16 %v9177_v17  ;;  %v6747_v14 = vor.u32 %v8442_v26, %v6746_v33  ;;  %v6784_v57 = vld [vmem:[%s12461_s3 + $0x84] sm:$0xf0]  ;;  %v8451_v17 = vld [vmem:[%s12461_s3 + $0x80] sm:$0xf0] }
 0x409   :  { %v9184_v42 = vunpack.i.h.bf16 %v9182_v21  ;;  %v9183_v55 = vunpack.i.l.bf16 %v9182_v21  ;;  %v6787_v49 = vor.u32 %v8447_v1, %v6784_v57 }
 0x40a   :  { %2143 = vmatpush.bf16.msrb.mxu3 %v1890_v52  ;;  %v1874_v31 = vpack.c.bf16 %v9179_v28, %v9178_v2  ;;  %v1870_v52 = vpack.c.bf16 %v9219_v15, %v9218_v6  ;;  %v9377_v6 = vmov 16.0  }
 0x40b   :  { %v1881_v39 = vpack.c.bf16 %v9184_v42, %v9183_v55  ;;  %2077 = vmatmul.bf16.gmra.mxu2 %v6775_v35  ;;  %9332 = vrcp.f32 %v9377_v6 }
 0x40c   :  { %2104 = vmatpush.bf16.msrb.mxu1 %v1875_v61 }
 0x40d   :  { %2125 = vmatpush.bf16.msrb.mxu2 %v1881_v39  ;;  %2096 = vmatmul.bf16.gmra.mxu3 %v6779_v20 }
 0x40e   :  { %2144 = vmatpush.bf16.msrb.mxu3 %v1889_v40  ;;  %v6782_v40 = vld [vmem:[%s12461_s3 + $0x60] sm:$0xf] }
 0x40f   :  { %v9192_v47 = vpop.permute.xlu0 %9191  ;;  %v6783_v35 = vor.u32 %v8451_v17, %v6782_v40 }
 0x410   :  { %v9194_v18 = vunpack.i.h.bf16 %v9192_v47  ;;  %v9193_v7 = vunpack.i.l.bf16 %v9192_v47  ;;  %2105 = vmatpush.bf16.msrb.mxu1 %v1874_v31  ;;  %v9197_v25 = vpop.permute.xlu1 %9196  ;;  %v9321_v47 = vld [vmem:[%s12474_s16 + $0x1] ss:$0 sm:$0xff] }
 0x411   :  { %v9199_v58 = vunpack.i.h.bf16 %v9197_v25  ;;  %v9198_v37 = vunpack.i.l.bf16 %v9197_v25  ;;  %v9333_v27 = vpop.eup %9332 }
 0x412   :  { %2145 = vmatpush.bf16.msrb.mxu3 %v1888_v53  ;;  %v1880_v36 = vpack.c.bf16 %v9194_v18, %v9193_v7  ;;  %vm2185_vm1 = vweird.f32 %v9333_v27 }
 0x413   :  { %2058 = vmatmul.bf16.gmra.mxu1 %v6771_v56  ;;  %v1872_v51 = vpack.c.bf16 %v9199_v58, %v9198_v37 }
 0x414   :  { %2106 = vmatpush.bf16.msrb.mxu1 %v1873_v19  ;;  %2126 = vmatpush.bf16.msrb.mxu2 %v1880_v36 }
 0x416   :  { %2146 = vmatpush.bf16.msrb.mxu3 %v1887_v24 }
 0x417   :  { %v9207_v41 = vpop.permute.xlu0 %9206 }
 0x418   :  { %v9209_v22 = vunpack.i.h.bf16 %v9207_v41  ;;  %v9208_v43 = vunpack.i.l.bf16 %v9207_v41  ;;  %2107 = vmatpush.bf16.msrb.mxu1 %v1872_v51  ;;  %2127 = vmatpush.bf16.msrb.mxu2 %v1879_v16  ;;  %v9212_v29 = vpop.permute.xlu1 %9211 }
 0x419   :  { %v9214_v9 = vunpack.i.h.bf16 %v9212_v29  ;;  %v9213_v0 = vunpack.i.l.bf16 %v9212_v29 }
 0x41a   :  { %2147 = vmatpush.bf16.msrb.mxu3 %v1886_v63  ;;  %v1871_v44 = vpack.c.bf16 %v9209_v22, %v9208_v43 }
 0x41b   :  { %v1878_v32 = vpack.c.bf16 %v9214_v9, %v9213_v0 }
 0x41c   :  { %2108 = vmatpush.bf16.msrb.mxu1 %v1871_v44 }
 0x41d   :  { %2128 = vmatpush.bf16.msrb.mxu2 %v1878_v32  ;;  %2148 = vmatmul.bf16.vlgmr.msrb.gmra.mxu3 %v6755_v30 }
 0x420   :  { %2109 = vmatpush.bf16.msrb.mxu1 %v1870_v52  ;;  %2129 = vmatmul.bf16.vlgmr.msrb.gmra.mxu2 %v6751_v38 }
 0x423   :  { %2110 = vmatmul.bf16.vlgmr.msrb.gmra.mxu1 %v6747_v14 }
 0x42d   :  { %2153 = vmatmul.bf16.gmra.mxu3 %v6791_v5 }
 0x430   :  { %2134 = vmatmul.bf16.gmra.mxu2 %v6787_v49 }
 0x433   :  { %2115 = vmatmul.bf16.gmra.mxu1 %v6783_v35  ;;  %v2181_v35 = vmul.f32 16.0, %v9333_v27 }
 0x439   :  { %v1997_v11 = vpop.f32.mrf.mxu1 }
 0x43a   :  { %v1998_v56 = vadd.f32 %v9321_v47, %v1997_v11 }
 0x441   :  { %v1999_v55 = vpop.f32.mrf.mxu1 }
 0x442   :  { %v2000_v12 = vadd.f32 %v9321_v47, %v1999_v55 }
 0x449   :  { %v2002_v2 = vpop.f32.mrf.mxu1 }
 0x44a   :  { %v2003_v59 = vadd.f32 %v9321_v47, %v2002_v2 }
 0x451   :  { %v2004_v39 = vpop.f32.mrf.mxu1 }
 0x452   :  { %v2005_v30 = vadd.f32 %v9321_v47, %v2004_v39 }
 0x456   :  { %v2016_v60 = vpop.f32.mrf.mxu2 }
 0x457   :  { %v2017_v19 = vadd.f32 %v2016_v60, %v1998_v56 }
 0x45e   :  { %v2018_v42 = vpop.f32.mrf.mxu2 }
 0x45f   :  { %v2019_v16 = vadd.f32 %v2018_v42, %v2000_v12 }
 0x460   :  { %v2035_v21 = vpop.f32.mrf.mxu3 }
 0x461   :  { %v2036_v46 = vadd.f32 %v2035_v21, %v2017_v19 }
 0x466   :  { %v2021_v28 = vpop.f32.mrf.mxu2 }
 0x467   :  { %v2022_v43 = vadd.f32 %v2021_v28, %v2003_v59 }
 0x468   :  { %v2037_v61 = vpop.f32.mrf.mxu3 }
 0x469   :  { %v2038_v41 = vadd.f32 %v2037_v61, %v2019_v16 }
 0x46e   :  { %v2023_v53 = vpop.f32.mrf.mxu2 }
 0x46f   :  { %v2024_v1 = vadd.f32 %v2023_v53, %v2005_v30 }
 0x470   :  { %v2040_v20 = vpop.f32.mrf.mxu3 }
 0x471   :  { %v2041_v15 = vadd.f32 %v2040_v20, %v2022_v43  ;;  %v2182_v20 = vsub.f32 1.0, %v2181_v35  ;;  %v8476_v35 = vld [vmem:[%s12464_s6 + $0xb8] sm:$0xf0] }
 0x478   :  { %v2042_v48 = vpop.f32.mrf.mxu3 }
 0x479   :  { %v2043_v49 = vadd.f32 %v2042_v48, %v2024_v1 }
 0x47e   :  { %v2073_v34 = vpop.f32.mrf.mxu2 }
 0x480   :  { %v2054_v62 = vpop.f32.mrf.mxu1  ;;  %v2092_v8 = vpop.f32.mrf.mxu3 }
 0x481   :  { %v2055_v36 = vadd.f32 %v2054_v62, %v2036_v46 }
 0x483   :  { %v2074_v51 = vadd.f32 %v2073_v34, %v2055_v36 }
 0x485   :  { %v2093_v13 = vadd.f32 %v2092_v8, %v2074_v51 }
 0x486   :  { %v2075_v10 = vpop.f32.mrf.mxu2 }
 0x488   :  { %v2056_v31 = vpop.f32.mrf.mxu1  ;;  %v2094_v24 = vpop.f32.mrf.mxu3 }
 0x489   :  { %v2057_v54 = vadd.f32 %v2056_v31, %v2038_v41 }
 0x48b   :  { %v2076_v50 = vadd.f32 %v2075_v10, %v2057_v54  ;;  %v2183_v10 = vmul.f32 %v9333_v27, %v2182_v20  ;;  %v6838_v20 = vld [vmem:[%s12464_s6 + $0x50] sm:$0xf] }
 0x48d   :  { %v2095_v32 = vadd.f32 %v2094_v24, %v2076_v50 }
 0x48e   :  { %v2078_v7 = vpop.f32.mrf.mxu2 }
 0x490   :  { %v2059_v18 = vpop.f32.mrf.mxu1  ;;  %v2097_v25 = vpop.f32.mrf.mxu3 }
 0x491   :  { %v2060_v44 = vadd.f32 %v2059_v18, %v2041_v15 }
 0x493   :  { %v2079_v14 = vadd.f32 %v2078_v7, %v2060_v44 }
 0x495   :  { %v2098_v17 = vadd.f32 %v2097_v25, %v2079_v14  ;;  %v2184_v25 = vadd.f32 %v9333_v27, %v2183_v10  ;;  %v6840_v10 = vld [vmem:[%s12464_s6 + $0x74] sm:$0xf0] }
 0x496   :  { %v2080_v63 = vpop.f32.mrf.mxu2 }
 0x497   :  { %v11329_v51 = vsel %vm2185_vm1, %v9333_v27, %v2184_v25  ;;  %v8471_v27 = vld [vmem:[%s12464_s6 + $0x94] sm:$0xf] }
 0x498   :  { %v2061_v58 = vpop.f32.mrf.mxu1  ;;  %v2099_v37 = vpop.f32.mrf.mxu3 }
 0x499   :  { %v2062_v60 = vadd.f32 %v2061_v58, %v2043_v49  ;;  %v6874_v49 = vld [vmem:[%s12464_s6 + $0x98] sm:$0xf] }
 0x49b   :  { %v2081_v34 = vadd.f32 %v2080_v63, %v2062_v60 }
 0x49d   :  { %v2100_v31 = vadd.f32 %v2099_v37, %v2081_v34  ;;  %v8467_v34 = vld [vmem:[%s12464_s6 + $0x70] sm:$0xf0] }
 0x4a0   :  { %v2111_v22 = vpop.f32.mrf.mxu1  ;;  %v2149_v29 = vpop.f32.mrf.mxu3 }
 0x4a1   :  { %v2112_v9 = vadd.f32 %v2111_v22, %v2093_v13 }
 0x4a3   :  { %v2130_v0 = vpop.f32.mrf.mxu2 }
 0x4a4   :  { %v2131_v45 = vadd.f32 %v2130_v0, %v2112_v9 }
 0x4a6   :  { %v2150_v38 = vadd.f32 %v2149_v29, %v2131_v45 }
 0x4a8   :  { %v2113_v33 = vpop.f32.mrf.mxu1  ;;  %v2151_v26 = vpop.f32.mrf.mxu3  ;;  %v2163_v57 = vmul.f32 0.01, %v2150_v38  ;;  %vm2159_vm14 = vcmp.ge.f32.partialorder %v2150_v38, 0.0 }
 0x4a9   :  { %v2114_v52 = vadd.f32 %v2113_v33, %v2095_v32  ;;  %v6876_v33 = vld [vmem:[%s12464_s6 + $0xbc] sm:$0xf0] }
 0x4aa   :  { %v2167_v11 = vsel %vm2159_vm14, %v2150_v38, %v2163_v57  ;;  %v8472_v38 = vld [vmem:[%s12464_s6 + $0x9c] sm:$0xf] }
 0x4ab   :  { %v2132_v23 = vpop.f32.mrf.mxu2  ;;  %v2171_v28 = vsel %vm854_vm6, %v2167_v11, 0.0  ;;  %v6879_v14 = vor.u32 %v8472_v38, %v6876_v33 }
 0x4ac   :  { %v2133_v5 = vadd.f32 %v2132_v23, %v2114_v52  ;;  %v8475_v23 = vld [vmem:[%s12464_s6 + $0xb0] sm:$0xf0] }
 0x4ad   :  { %2490 = vmatpush.bf16.msra.mxu0 %v6879_v14  ;;  %v8477_v14 = vld [vmem:[%s12464_s6 + $0xc0] sm:$0xf0] }
 0x4ae   :  { %v2152_v40 = vadd.f32 %v2151_v26, %v2133_v5  ;;  %v6866_v26 = vld [vmem:[%s12464_s6 + $0x90] sm:$0xf]  ;;  %v6868_v5 = vld [vmem:[%s12464_s6 + $0xb4] sm:$0xf0] }
 0x4af   :  { %v6867_v57 = vor.u32 %v8475_v23, %v6866_v26  ;;  %v8473_v23 = vld [vmem:[%s12464_s6 + $0xa4] sm:$0xf] }
 0x4b0   :  { %vm2160_vm15 = vcmp.ge.f32.partialorder %v2152_v40, 0.0  ;;  %v2164_v21 = vmul.f32 0.01, %v2152_v40  ;;  %v2116_v42 = vpop.f32.mrf.mxu1  ;;  %v2154_v39 = vpop.f32.mrf.mxu3 }
 0x4b1   :  { %v2117_v61 = vadd.f32 %v2116_v42, %v2098_v17  ;;  %v6871_v17 = vor.u32 %v8471_v27, %v6868_v5  ;;  %2433 = vmatpush.bf16.msra.mxu1 %v6867_v57  ;;  %v8466_v42 = vld [vmem:[%s12464_s6 + $0x68] sm:$0xf0]  ;;  %v6884_v57 = vld [vmem:[%s12464_s6 + $0xc4] sm:$0xf0] }
 0x4b2   :  { %v2168_v55 = vsel %vm2160_vm15, %v2152_v40, %v2164_v21  ;;  %v6830_v21 = vld [vmem:[%s12464_s6 + $0x48] sm:$0xf] }
 0x4b3   :  { %v2172_v2 = vsel %vm854_vm6, %v2168_v55, 0.0  ;;  %v2135_v53 = vpop.f32.mrf.mxu2  ;;  %2452 = vmatpush.bf16.msra.mxu2 %v6871_v17  ;;  %v6890_v5 = vld [vmem:[%s12464_s6 + $0xa8] sm:$0xf]  ;;  %v8478_v17 = vld [vmem:[%s12464_s6 + $0xc8] sm:$0xf0] }
 0x4b4   :  { %v2173_v62 = vadd.f32 %v2172_v2, %v2171_v28  ;;  %v2136_v48 = vadd.f32 %v2135_v53, %v2117_v61  ;;  %v6831_v28 = vor.u32 %v8466_v42, %v6830_v21  ;;  %v6832_v2 = vld [vmem:[%s12464_s6 + $0x6c] sm:$0xf0]  ;;  %v6891_v21 = vor.u32 %v8478_v17, %v6890_v5  ;;  %v6826_v5 = vld [vmem:[%s12464_s6 + $0x20] sm:$0xf] }
 0x4b6   :  { %v2174_v8 = vrot.slane %v2173_v62, 4  ;;  %v2155_v47 = vadd.f32 %v2154_v39, %v2136_v48  ;;  %2434 = vmatpush.bf16.msra.mxu1 %v6831_v28  ;;  %v8464_v28 = vld [vmem:[%s12464_s6 + $0x5c] sm:$0xf] }
 0x4b8   :  { %v2175_v24 = vadd.f32 %v2174_v8, %v2173_v62  ;;  %v2118_v56 = vpop.f32.mrf.mxu1  ;;  %v2165_v12 = vmul.f32 0.01, %v2155_v47  ;;  %vm2161_vm2 = vcmp.ge.f32.partialorder %v2155_v47, 0.0  ;;  %v2156_v58 = vpop.f32.mrf.mxu3  ;;  %v8463_v62 = vld [vmem:[%s12464_s6 + $0x54] sm:$0xf]  ;;  %v6839_v8 = vor.u32 %v8467_v34, %v6838_v20 }
 0x4b9   :  { %v2119_v7 = vadd.f32 %v2118_v56, %v2100_v31  ;;  %v8457_v56 = vld [vmem:[%s12464_s6 + $0x20] sm:$0xf0] }
 0x4ba   :  { %v2176_v18 = vrot.slane %v2175_v24, 2  ;;  %v11331_v41 = vsel %vm2161_vm2, %v2155_v47, %v2165_v12  ;;  %v6794_v47 = vld [vmem:[%s12464_s6] sm:$0xf]  ;;  %v8458_v12 = vld [vmem:[%s12464_s6 + $0x28] sm:$0xf0] }
 0x4bb   :  { %v2137_v19 = vpop.f32.mrf.mxu2  ;;  %v2215_v22 = vsel %vm854_vm6, %v11331_v41, 0.0  ;;  %v6795_v25 = vor.u32 %v8457_v56, %v6794_v47  ;;  %v6810_v56 = vld [vmem:[%s12464_s6 + $0x10] sm:$0xf] }
 0x4bc   :  { %v2177_v46 = vadd.f32 %v2176_v18, %v2175_v24  ;;  %v2138_v36 = vadd.f32 %v2137_v19, %v2119_v7  ;;  %v6843_v24 = vor.u32 %v8463_v62, %v6840_v10  ;;  %v8453_v18 = vld [vmem:[%s12464_s6 + $0x4] sm:$0xf]  ;;  %v6796_v19 = vld [vmem:[%s12464_s6 + $0x24] sm:$0xf0] }
 0x4bd   :  { %2435 = vmatpush.bf16.msra.mxu1 %v6795_v25  ;;  %v6856_v10 = vld [vmem:[%s12464_s6 + $0x84] sm:$0xf0] }
 0x4be   :  { %v2178_v16 = vrot.slane %v2177_v46, 1  ;;  %v2157_v63 = vadd.f32 %v2156_v58, %v2138_v36  ;;  %2491 = vmatpush.bf16.msra.mxu0 %v6843_v24  ;;  %v6799_v58 = vor.u32 %v8453_v18, %v6796_v19  ;;  %v8459_v18 = vld [vmem:[%s12464_s6 + $0x30] sm:$0xf0] }
 0x4bf   :  { %v6811_v25 = vor.u32 %v8459_v18, %v6810_v56  ;;  %v8455_v19 = vld [vmem:[%s12464_s6 + $0x14] sm:$0xf] }
 0x4c0   :  { %v2179_v59 = vadd.f32 %v2178_v16, %v2177_v46  ;;  %vm2162_vm3 = vcmp.ge.f32.partialorder %v2157_v63, 0.0  ;;  %v2166_v37 = vmul.f32 0.01, %v2157_v63  ;;  %v6802_v46 = vld [vmem:[%s12464_s6 + $0x8] sm:$0xf] }
 0x4c1   :  { %v6803_v16 = vor.u32 %v8458_v12, %v6802_v46  ;;  %v6812_v46 = vld [vmem:[%s12464_s6 + $0x34] sm:$0xf0] }
 0x4c2   :  { %v2187_v13 = vmul.f32 %v11329_v51, %v2179_v59  ;;  %v11334_v54 = vsel %vm2162_vm3, %v2157_v63, %v2166_v37  ;;  %v8454_v63 = vld [vmem:[%s12464_s6 + $0xc] sm:$0xf]  ;;  %v6804_v59 = vld [vmem:[%s12464_s6 + $0x2c] sm:$0xf0] }
 0x4c3   :  { %v2216_v43 = vsel %vm854_vm6, %v11334_v54, 0.0 }
 0x4c4   :  { %v11340_v29 = vsub.f32 %v2167_v11, %v2187_v13  ;;  %v11342_v9 = vsub.f32 %v2168_v55, %v2187_v13  ;;  %v2217_v0 = vadd.f32 %v2216_v43, %v2215_v22  ;;  %v6875_v11 = vor.u32 %v8476_v35, %v6874_v49  ;;  %v8462_v55 = vld [vmem:[%s12464_s6 + $0x4c] sm:$0xf] }
 0x4c5   :  { %v6835_v39 = vor.u32 %v8462_v55, %v6832_v2  ;;  %v6807_v22 = vor.u32 %v8454_v63, %v6804_v59  ;;  %v8474_v35 = vld [vmem:[%s12464_s6 + $0xac] sm:$0xf]  ;;  %v6846_v55 = vld [vmem:[%s12464_s6 + $0x58] sm:$0xf]  ;;  %v8456_v63 = vld [vmem:[%s12464_s6 + $0x1c] sm:$0xf] }
 0x4c6   :  { %v2190_v50 = vmul.f32 %v11340_v29, %v11340_v29  ;;  %v2191_v45 = vmul.f32 %v11342_v9, %v11342_v9  ;;  %v2218_v15 = vrot.slane %v2217_v0, 4  ;;  %2471 = vmatpush.bf16.msra.mxu3 %v6875_v11 }
 0x4c7   :  { %2453 = vmatpush.bf16.msra.mxu2 %v6835_v39  ;;  %2492 = vmatpush.bf16.msra.mxu0 %v6807_v22  ;;  %v6854_v39 = vld [vmem:[%s12464_s6 + $0x60] sm:$0xf] }
 0x4c8   :  { %v2192_v6 = vsel %vm854_vm6, %v2190_v50, 0.0  ;;  %v2193_v44 = vsel %vm854_vm6, %v2191_v45, 0.0  ;;  %v2219_v30 = vadd.f32 %v2218_v15, %v2217_v0  ;;  %v6820_v22 = vld [vmem:[%s12464_s6 + $0x3c] sm:$0xf0] }
 0x4c9   :  { %v2194_v32 = vadd.f32 %v2193_v44, %v2192_v6 }
 0x4ca   :  { %v2220_v52 = vrot.slane %v2219_v30, 2  ;;  %2472 = vmatpush.bf16.msra.mxu3 %v6839_v8  ;;  %v8465_v8 = vld [vmem:[%s12464_s6 + $0x64] sm:$0xf] }
 0x4cb   :  { %v2195_v1 = vrot.slane %v2194_v32, 4  ;;  %2454 = vmatpush.bf16.msra.mxu2 %v6799_v58  ;;  %v6859_v47 = vor.u32 %v8465_v8, %v6856_v10  ;;  %v6818_v58 = vld [vmem:[%s12464_s6 + $0x18] sm:$0xf] }
 0x4cc   :  { %v2221_v40 = vadd.f32 %v2220_v52, %v2219_v30  ;;  %v6882_v52 = vld [vmem:[%s12464_s6 + $0xa0] sm:$0xf] }
 0x4cd   :  { %v2196_v60 = vadd.f32 %v2195_v1, %v2194_v32  ;;  %v6883_v1 = vor.u32 %v8477_v14, %v6882_v52 }
 0x4ce   :  { %v2222_v61 = vrot.slane %v2221_v40, 1  ;;  %2473 = vmatpush.bf16.msra.mxu3 %v6803_v16  ;;  %v8460_v16 = vld [vmem:[%s12464_s6 + $0x38] sm:$0xf0] }
 0x4cf   :  { %v2197_v53 = vrot.slane %v2196_v60, 2  ;;  %2509 = vmatpush.bf16.msrb.mxu1 %v6883_v1  ;;  %v6819_v59 = vor.u32 %v8460_v16, %v6818_v58  ;;  %v8470_v1 = vld [vmem:[%s12464_s6 + $0x88] sm:$0xf0] }
 0x4d0   :  { %v2223_v48 = vadd.f32 %v2222_v61, %v2221_v40  ;;  %v6887_v40 = vor.u32 %v8473_v23, %v6884_v57  ;;  %v8468_v61 = vld [vmem:[%s12464_s6 + $0x78] sm:$0xf0]  ;;  %v6862_v23 = vld [vmem:[%s12464_s6 + $0x68] sm:$0xf] }
 0x4d1   :  { %v2198_v31 = vadd.f32 %v2197_v53, %v2196_v60  ;;  %v6892_v60 = vld [vmem:[%s12464_s6 + $0xcc] sm:$0xf0]  ;;  %v6847_v20 = vor.u32 %v8468_v61, %v6846_v55  ;;  %v6848_v53 = vld [vmem:[%s12464_s6 + $0x7c] sm:$0xf0]  ;;  %v6863_v57 = vor.u32 %v8470_v1, %v6862_v23 }
 0x4d2   :  { %v2224_v7 = vmul.f32 %v2223_v48, %v11329_v51  ;;  %v6895_v42 = vor.u32 %v8474_v35, %v6892_v60  ;;  %2528 = vmatpush.bf16.msrb.mxu2 %v6887_v40  ;;  %2547 = vmatpush.bf16.msrb.mxu3 %v6891_v21  ;;  %v6851_v62 = vor.u32 %v8464_v28, %v6848_v53  ;;  %v8469_v48 = vld [vmem:[%s12464_s6 + $0x80] sm:$0xf0] }
 0x4d3   :  { %v2199_v36 = vrot.slane %v2198_v31, 1  ;;  %v6855_v24 = vor.u32 %v8469_v48, %v6854_v39  ;;  %2510 = vmatpush.bf16.msrb.mxu1 %v6847_v20 }
 0x4d4   :  { %v11424_v37 = vsub.f32 %v11331_v41, %v2224_v7  ;;  %v11427_v13 = vsub.f32 %v11334_v54, %v2224_v7  ;;  %2566 = vmatpush.bf16.msrb.mxu0 %v6895_v42 }
 0x4d5   :  { %v2200_v43 = vadd.f32 %v2199_v36, %v2198_v31  ;;  %v6815_v36 = vor.u32 %v8455_v19, %v6812_v46 }
 0x4d6   :  { %v2227_v0 = vmul.f32 %v11424_v37, %v11424_v37  ;;  %v2228_v50 = vmul.f32 %v11427_v13, %v11427_v13  ;;  %2529 = vmatpush.bf16.msrb.mxu2 %v6851_v62  ;;  %2548 = vmatpush.bf16.msrb.mxu3 %v6855_v24 }
 0x4d7   :  { %v2201_v45 = vmul.f32 %v2200_v43, %v11329_v51  ;;  %2511 = vmatpush.bf16.msrb.mxu1 %v6811_v25 }
 0x4d8   :  { %v2229_v41 = vsel %vm854_vm6, %v2227_v0, 0.0  ;;  %v2230_v15 = vsel %vm854_vm6, %v2228_v50, 0.0  ;;  %2567 = vmatpush.bf16.msrb.mxu0 %v6859_v47  ;;  %v6823_v0 = vor.u32 %v8456_v63, %v6820_v22 }
 0x4d9   :  { %v2202_v54 = vadd.f32 1e-05, %v2201_v45  ;;  %v2231_v6 = vadd.f32 %v2230_v15, %v2229_v41 }
 0x4da   :  { %2530 = vmatpush.bf16.msrb.mxu2 %v6815_v36  ;;  %2549 = vmatpush.bf16.msrb.mxu3 %v6819_v59 }
 0x4db   :  { %9334 = vrsqrt.f32 %v2202_v54  ;;  %v2232_v44 = vrot.slane %v2231_v6, 4  ;;  %vm2209_vm5 = vweird.f32 %v2202_v54 }
 0x4dc   :  { %2568 = vmatpush.bf16.msrb.mxu0 %v6823_v0 }
 0x4dd   :  { %v2233_v30 = vadd.f32 %v2232_v44, %v2231_v6 }
 0x4df   :  { %v2234_v32 = vrot.slane %v2233_v30, 2 }
 0x4e1   :  { %v9335_v38 = vpop.eup %9334  ;;  %v2235_v33 = vadd.f32 %v2234_v32, %v2233_v30  ;;  %v11525_v32 = vld [vmem:[%s12526_s21] sm:$0x3] }
 0x4e2   :  { %v2204_v26 = vmul.f32 %v9335_v38, %v2202_v54  ;;  %vm2210_vm4 = vweird.f32 %v9335_v38 }
 0x4e3   :  { %v2236_v27 = vrot.slane %v2235_v33, 1  ;;  %vm2211_vm7 = vmor %vm2209_vm5, %vm2210_vm4  ;;  %vm2758_vm5 = vcmask 1043456  }
 0x4e4   :  { %v2205_v49 = vmul.f32 %v9335_v38, %v2204_v26  ;;  %v2678_v26 = vmul.f32 %v11525_v32, %v11525_v32 }
 0x4e5   :  { %v2237_v11 = vadd.f32 %v2236_v27, %v2235_v33 }
 0x4e6   :  { %v2206_v2 = vmul.f32 0.5, %v2205_v49  ;;  %v2680_v14 = vsel %vm2679_vm11, %v2678_v26, 0.0  ;;  %v8461_v49 = vld [vmem:[%s12464_s6 + $0x40] sm:$0xf0]  ;;  %vm2764_vm11 = vcmask 1046528  }
 0x4e7   :  { %v2238_v34 = vmul.f32 %v2237_v11, %v11329_v51  ;;  %2681 = vadd.xlane.f32.xlu0 %v2680_v14  ;;  %v6827_v40 = vor.u32 %v8461_v49, %v6826_v5 }
 0x4e8   :  { %v2207_v31 = vsub.f32 1.5, %v2206_v2 }
 0x4e9   :  { %v2239_v7 = vadd.f32 1e-05, %v2238_v34 }
 0x4ea   :  { %v2208_v12 = vmul.f32 %v9335_v38, %v2207_v31 }
 0x4eb   :  { %9336 = vrsqrt.f32 %v2239_v7  ;;  %vm2246_vm9 = vweird.f32 %v2239_v7 }
 0x4ec   :  { %v2212_v43 = vsel %vm2211_vm7, %v9335_v38, %v2208_v12  ;;  %vm2753_vm7 = vcmask 1040384  }
 0x4ed   :  { %v2213_v50 = vmul.f32 %v2212_v43, %v11340_v29  ;;  %v2214_v45 = vmul.f32 %v2212_v43, %v11342_v9 }
 0x4ef   :  { %v11512_v41 = vpack.c.bf16 %v2214_v45, %v2213_v50 }
 0x4f1   :  { %v9337_v15 = vpop.eup %9336  ;;  %6900 = vmatmul.msk.bf16.vlgmr.msra.gmra.mxu1 %vm854_vm6, %v11512_v41  ;;  %6902 = vmatmul.msk.bf16.vlgmr.msra.gmra.mxu2 %vm854_vm6, %v11512_v41 }
 0x4f2   :  { %v2241_v54 = vmul.f32 %v9337_v15, %v2239_v7  ;;  %6904 = vmatmul.msk.bf16.vlgmr.msra.gmra.mxu3 %vm854_vm6, %v11512_v41  ;;  %6906 = vmatmul.msk.bf16.vlgmr.msra.gmra.mxu0 %vm854_vm6, %v11512_v41  ;;  %vm2247_vm8 = vweird.f32 %v9337_v15 }
 0x4f3   :  { %vm2248_vm10 = vmor %vm2246_vm9, %vm2247_vm8  ;;  %vm2756_vm8 = vcmask 1042432   ;;  %vm2760_vm9 = vcmask 1044480  }
 0x4f4   :  { %v2242_v29 = vmul.f32 %v9337_v15, %v2241_v54 }
 0x4f6   :  { %v2243_v9 = vmul.f32 0.5, %v2242_v29 }
 0x4f8   :  { %v2244_v6 = vsub.f32 1.5, %v2243_v9 }
 0x4fa   :  { %v2245_v44 = vmul.f32 %v9337_v15, %v2244_v6 }
 0x4fc   :  { %v2249_v30 = vsel %vm2248_vm10, %v9337_v15, %v2245_v44  ;;  %v2599_v15 = vld [vmem:[%s12463_s5] sm:$0xff]  ;;  %vm2762_vm10 = vcmask 1045504  }
 0x4fd   :  { %v2250_v38 = vmul.f32 %v2249_v30, %v11424_v37  ;;  %v2251_v33 = vmul.f32 %v2249_v30, %v11427_v13  ;;  %v6898_v37 = vld [vmem:[%s12464_s6 + $0xb0] sm:$0xf]  ;;  %v8479_v13 = vld [vmem:[%s12464_s6 + $0xd0] sm:$0xf0]  ;;  %v2623_v29 = vunpack.c.l.b16 %v2599_v15 }
 0x4fe   :  { %v6899_v27 = vor.u32 %v8479_v13, %v6898_v37 }
 0x4ff   :  { %v11531_v52 = vpack.c.bf16 %v2251_v33, %v2250_v38  ;;  %v2626_v44 = vpack.c.b16 %v2623_v29, %v2623_v29  ;;  %v6932_v29 = vld [vmem:[%s12468_s10 + $0x18] sm:$0xf0] }
 0x500   :  { %2585 = vmatpush.bf16.msra.mxu1 %v6899_v27 }
 0x501   :  { %6901 = vmatmul.msk.bf16.gmra.mxu1 %vm854_vm6, %v11531_v52  ;;  %6903 = vmatmul.msk.bf16.gmra.mxu2 %vm854_vm6, %v11531_v52 }
 0x502   :  { %6905 = vmatmul.msk.bf16.gmra.mxu3 %vm854_vm6, %v11531_v52  ;;  %6907 = vmatmul.msk.bf16.gmra.mxu0 %vm854_vm6, %v11531_v52 }
 0x504   :  { %2586 = vmatpush.bf16.msra.mxu1 %v6863_v57 }
 0x508   :  { %2587 = vmatpush.bf16.msra.mxu1 %v6827_v40 }
 0x511   :  { %6908 = vmatmul.msk.bf16.vlgmr.msrb.gmra.mxu1 %vm854_vm6, %v11512_v41  ;;  %6910 = vmatmul.msk.bf16.vlgmr.msrb.gmra.mxu2 %vm854_vm6, %v11512_v41 }
 0x512   :  { %6912 = vmatmul.msk.bf16.vlgmr.msrb.gmra.mxu3 %vm854_vm6, %v11512_v41  ;;  %6914 = vmatmul.msk.bf16.vlgmr.msrb.gmra.mxu0 %vm854_vm6, %v11512_v41 }
 0x521   :  { %6909 = vmatmul.msk.bf16.gmra.mxu1 %vm854_vm6, %v11531_v52  ;;  %6911 = vmatmul.msk.bf16.gmra.mxu2 %vm854_vm6, %v11531_v52 }
 0x522   :  { %6913 = vmatmul.msk.bf16.gmra.mxu3 %vm854_vm6, %v11531_v52  ;;  %6915 = vmatmul.msk.bf16.gmra.mxu0 %vm854_vm6, %v11531_v52 }
 0x531   :  { %6916 = vmatmul.msk.bf16.vlgmr.msra.gmra.mxu1 %vm854_vm6, %v11512_v41 }
 0x541   :  { %6917 = vmatmul.msk.bf16.gmra.mxu1 %vm854_vm6, %v11531_v52 }
 0x55a   :  { %v2682_v48 = vpop.xlane.xlu0 %2681 }
 0x55b   :  { %9338 = vrsqrt.f32 %v2682_v48  ;;  %vm2690_vm14 = vcmp.eq.f32.partialorder %v2682_v48, inf  ;;  %v2693_v27 = vand.u32 2147483648, %v2682_v48  ;;  %vm2692_vm15 = vcmp.eq.f32.partialorder %v2682_v48, 0.0 }
 0x561   :  { %v9339_v18 = vpop.eup %9338 }
 0x562   :  { %v2684_v46 = vmul.f32 %v9339_v18, %v2682_v48 }
 0x564   :  { %v2685_v16 = vmul.f32 %v9339_v18, %v2684_v46 }
 0x566   :  { %v2686_v43 = vmul.f32 0.5, %v2685_v16 }
 0x568   :  { %v2687_v54 = vsub.f32 1.5, %v2686_v43 }
 0x56a   :  { %v2688_v38 = vmul.f32 %v9339_v18, %v2687_v54  ;;  %v2711_v18 = vld [vmem:[%s12465_s7] sm:$0xff] }
 0x56c   :  { %v2689_v14 = vmul.f32 %v2688_v38, %v2682_v48  ;;  %v7064_v38 = vld [vmem:[%s12467_s9 + $0xf8] sm:$0xf0] }
 0x56e   :  { %v2437_v17 = vpop.f32.mrf.mxu1  ;;  %v2691_v1 = vsel %vm2690_vm14, %v2682_v48, %v2689_v14 }
 0x56f   :  { %v2494_v35 = vpop.f32.mrf.mxu0  ;;  %v2694_v49 = vsel %vm2692_vm15, %v2693_v27, %v2691_v1 }
 0x574   :  { %v2456_v60 = vpop.f32.mrf.mxu2 }
 0x575   :  { %v2475_v11 = vpop.f32.mrf.mxu3 }
 0x576   :  { %v2439_v21 = vpop.f32.mrf.mxu1 }
 0x577   :  { %v2496_v42 = vpop.f32.mrf.mxu0  ;;  %v2601_v9 = vpack.c.bf16 %v2439_v21, %v2437_v17  ;;  %v2695_v17 = vmax.f32 %v2694_v49, 1e-12 }
 0x578   :  { %v2607_v8 = vpack.c.bf16 %v2496_v42, %v2494_v35 }
 0x579   :  { %9340 = vrcp.f32 %v2695_v17  ;;  %vm2701_vm1 = vweird.f32 %v2695_v17  ;;  %v2705_v46 = vand.u32 2147483647, %v2695_v17 }
 0x57b   :  { %vm2706_vm4 = vcmp.eq.f32.partialorder %v2705_v46, 8.507059e+37  ;;  %v8506_v46 = vld [vmem:[%s12467_s9 + $0xcc] sm:$0xf0] }
 0x57c   :  { %v2458_v55 = vpop.f32.mrf.mxu2 }
 0x57d   :  { %v2477_v61 = vpop.f32.mrf.mxu3  ;;  %v2603_v63 = vpack.c.bf16 %v2458_v55, %v2456_v60 }
 0x57e   :  { %v2442_v28 = vpop.f32.mrf.mxu1  ;;  %v2605_v7 = vpack.c.bf16 %v2477_v61, %v2475_v11 }
 0x57f   :  { %v2499_v2 = vpop.f32.mrf.mxu0  ;;  %v9341_v42 = vpop.eup %9340 }
 0x580   :  { %vm2702_vm2 = vweird.f32 %v9341_v42 }
 0x581   :  { %vm2703_vm3 = vmor %vm2701_vm1, %vm2702_vm2 }
 0x584   :  { %v2461_v20 = vpop.f32.mrf.mxu2 }
 0x585   :  { %v2480_v53 = vpop.f32.mrf.mxu3 }
 0x586   :  { %v2444_v39 = vpop.f32.mrf.mxu1 }
 0x587   :  { %v2501_v34 = vpop.f32.mrf.mxu0  ;;  %v2602_v50 = vpack.c.bf16 %v2444_v39, %v2442_v28  ;;  %v2624_v28 = vunpack.c.h.b16 %v2599_v15 }
 0x588   :  { %v2608_v62 = vpack.c.bf16 %v2501_v34, %v2499_v2  ;;  %v2697_v2 = vmul.f32 %v9341_v42, %v2695_v17 }
 0x589   :  { %v2627_v39 = vpack.c.b16 %v2624_v28, %v2624_v28  ;;  %v7054_v28 = vld [vmem:[%s12467_s9 + $0xe0] sm:$0xf] }
 0x58a   :  { %2634 = vmatpush.bf16.msra.mxu2 %v2608_v62  ;;  %v2698_v34 = vsub.f32 1.0, %v2697_v2  ;;  %v2600_v62 = vld [vmem:[%s12463_s5 + $0x8] sm:$0xf]  ;;  %v8510_v2 = vld [vmem:[%s12467_s9 + $0xec] sm:$0xf0] }
 0x58c   :  { %v2463_v10 = vpop.f32.mrf.mxu2 }
 0x58d   :  { %v2482_v31 = vpop.f32.mrf.mxu3  ;;  %v2604_v58 = vpack.c.bf16 %v2463_v10, %v2461_v20  ;;  %v2713_v10 = vld [vmem:[%s12465_s7 + $0x10] sm:$0xff] }
 0x58e   :  { %2635 = vmatpush.bf16.msra.mxu2 %v2607_v8  ;;  %v11579_v24 = vpop.f32.mrf.mxu1  ;;  %v2606_v56 = vpack.c.bf16 %v2482_v31, %v2480_v53  ;;  %v2714_v53 = vld [vmem:[%s12465_s7 + $0x18] sm:$0xff]  ;;  %v2625_v31 = vunpack.c.l.b16 %v2600_v62  ;;  %v8505_v62 = vld [vmem:[%s12467_s9 + $0xcc] sm:$0xf] }
 0x58f   :  { %v2570_v47 = vpop.f32.mrf.mxu0 }
 0x592   :  { %2636 = vmatpush.bf16.msra.mxu2 %v2606_v56 }
 0x594   :  { %v2532_v12 = vpop.f32.mrf.mxu2 }
 0x595   :  { %v2551_v25 = vpop.f32.mrf.mxu3 }
 0x596   :  { %2637 = vmatpush.bf16.msra.mxu2 %v2605_v7  ;;  %v11581_v19 = vpop.f32.mrf.mxu1  ;;  %v2707_v7 = vand.u32 2147483648, %v2695_v17  ;;  %v8512_v17 = vld [vmem:[%s12468_s10 + $0x4] sm:$0xf] }
 0x597   :  { %v2572_v36 = vpop.f32.mrf.mxu0  ;;  %v2609_v20 = vpack.c.bf16 %v11581_v19, %v11579_v24  ;;  %v2712_v24 = vld [vmem:[%s12465_s7 + $0x8] sm:$0xff] }
 0x598   :  { %v2615_v13 = vpack.c.bf16 %v2572_v36, %v2570_v47  ;;  %v2699_v47 = vmul.f32 %v9341_v42, %v2698_v34  ;;  %v8507_v34 = vld [vmem:[%s12467_s9 + $0xd4] sm:$0xf0] }
 0x59a   :  { %2638 = vmatpush.bf16.msra.mxu2 %v2604_v58  ;;  %v2700_v19 = vadd.f32 %v9341_v42, %v2699_v47  ;;  %v8501_v47 = vld [vmem:[%s12467_s9 + $0xac] sm:$0xf] }
 0x59c   :  { %v2534_v45 = vpop.f32.mrf.mxu2  ;;  %v2704_v36 = vsel %vm2703_vm3, %v9341_v42, %v2700_v19  ;;  %v8508_v42 = vld [vmem:[%s12467_s9 + $0xe4] sm:$0xf]  ;;  %v7038_v19 = vld [vmem:[%s12467_s9 + $0xc0] sm:$0xf] }
 0x59d   :  { %v2553_v59 = vpop.f32.mrf.mxu3  ;;  %v2611_v21 = vpack.c.bf16 %v2534_v45, %v2532_v12  ;;  %v2708_v12 = vor.u32 1.1754944e-38, %v2707_v7  ;;  %v8513_v45 = vld [vmem:[%s12468_s10 + $0xc] sm:$0xf] }
 0x59e   :  { %2639 = vmatpush.bf16.msra.mxu2 %v2603_v63  ;;  %v2518_v22 = vpop.f32.mrf.mxu1  ;;  %v2613_v40 = vpack.c.bf16 %v2553_v59, %v2551_v25  ;;  %v2628_v25 = vpack.c.b16 %v2625_v31, %v2625_v31  ;;  %v2804_v59 = vld [vmem:[%s12468_s10 + $0x28] sm:$0xff]  ;;  %v8503_v31 = vld [vmem:[%s12467_s9 + $0xb4] sm:$0xf0] }
 0x59f   :  { %v2575_v0 = vpop.f32.mrf.mxu0  ;;  %v2709_v58 = vsel %vm2706_vm4, %v2708_v12, %v2704_v36  ;;  %v2821_v43 = vunpack.c.l.b16 %v2804_v59 }
 0x5a0   :  { %v2710_v16 = vmul.f32 %v2709_v58, %v11525_v32  ;;  %v8515_v32 = vld [vmem:[%s12468_s10 + $0x14] sm:$0xf0]  ;;  %v7039_v58 = vor.u32 %v8506_v46, %v7038_v19  ;;  %v8486_v19 = vld [vmem:[%s12467_s9 + $0x2c] sm:$0xf0] }
 0x5a1   :  { %v2829_v15 = vpack.c.b16 %v2821_v43, %v2821_v43  ;;  %v7016_v43 = vld [vmem:[%s12467_s9 + $0x98] sm:$0xf0] }
 0x5a2   :  { %2640 = vmatpush.bf16.msra.mxu2 %v2602_v50  ;;  %v6930_v50 = vld [vmem:[%s12468_s10 + $0x8] sm:$0xf] }
 0x5a3   :  { %v2846_v14 = vsel %vm2758_vm5, %v2829_v15, 0  ;;  %v8502_v15 = vld [vmem:[%s12467_s9 + $0xac] sm:$0xf0] }
 0x5a4   :  { %v2537_v37 = vpop.f32.mrf.mxu2  ;;  %2883 = vmatpush.bf16.msrb.mxu1 %v2846_v14  ;;  %v7000_v14 = vld [vmem:[%s12467_s9 + $0x78] sm:$0xf0] }
 0x5a5   :  { %v2556_v6 = vpop.f32.mrf.mxu3 }
 0x5a6   :  { %2641 = vmatpush.bf16.msra.mxu2 %v2601_v9  ;;  %v2520_v30 = vpop.f32.mrf.mxu1  ;;  %v7062_v9 = vld [vmem:[%s12467_s9 + $0xe8] sm:$0xf] }
 0x5a7   :  { %v2577_v33 = vpop.f32.mrf.mxu0  ;;  %v2610_v61 = vpack.c.bf16 %v2520_v30, %v2518_v22  ;;  %v8509_v30 = vld [vmem:[%s12467_s9 + $0xec] sm:$0xf] }
 0x5a8   :  { %v2616_v26 = vpack.c.bf16 %v2577_v33, %v2575_v0  ;;  %v2822_v0 = vunpack.c.h.b16 %v2804_v59  ;;  %v8499_v59 = vld [vmem:[%s12467_s9 + $0x94] sm:$0xf0] }
 0x5a9   :  { %2642 = vmatmul.bf16.vlgmr.msra.gmra.mxu2 %v2626_v44  ;;  %v8511_v44 = vld [vmem:[%s12467_s9 + $0xf4] sm:$0xf0] }
 0x5aa   :  { %2647 = vmatpush.bf16.msra.mxu3 %v2616_v26  ;;  %v2830_v54 = vpack.c.b16 %v2822_v0, %v2822_v0  ;;  %v8500_v0 = vld [vmem:[%s12467_s9 + $0xa4] sm:$0xf] }
 0x5ac   :  { %v2539_v35 = vpop.f32.mrf.mxu2 }
 0x5ad   :  { %v2558_v23 = vpop.f32.mrf.mxu3  ;;  %v2612_v11 = vpack.c.bf16 %v2539_v35, %v2537_v37  ;;  %v2849_v37 = vsel %vm2758_vm5, %v2830_v54, 0  ;;  %v6924_v35 = vld [vmem:[%s12468_s10 + $0x10] sm:$0xf0] }
 0x5ae   :  { %2648 = vmatpush.bf16.msra.mxu3 %v2615_v13  ;;  %v2589_v57 = vpop.f32.mrf.mxu1  ;;  %v2614_v5 = vpack.c.bf16 %v2558_v23, %v2556_v6  ;;  %v2803_v6 = vld [vmem:[%s12468_s10 + $0x20] sm:$0xff]  ;;  %v6931_v13 = vor.u32 %v8515_v32, %v6930_v50  ;;  %v6935_v23 = vor.u32 %v8513_v45, %v6932_v29  ;;  %v7024_v50 = vld [vmem:[%s12467_s9 + $0xb0] sm:$0xf0] }
 0x5af   :  { %v2820_v33 = vunpack.c.h.b16 %v2803_v6  ;;  %v2819_v26 = vunpack.c.l.b16 %v2803_v6  ;;  %v7027_v32 = vor.u32 %v8500_v0, %v7024_v50  ;;  %v7022_v45 = vld [vmem:[%s12467_s9 + $0xa0] sm:$0xf]  ;;  %v8496_v6 = vld [vmem:[%s12467_s9 + $0x84] sm:$0xf] }
 0x5b0   :  { %2884 = vmatpush.bf16.msrb.mxu1 %v6931_v13  ;;  %v7023_v29 = vor.u32 %v8502_v15, %v7022_v45  ;;  %v8498_v13 = vld [vmem:[%s12467_s9 + $0x8c] sm:$0xf0]  ;;  %v6944_v45 = vld [vmem:[%s12467_s9 + $0x10] sm:$0xf0]  ;;  %v6942_v15 = vld [vmem:[%s12467_s9] sm:$0xf] }
 0x5b1   :  { %v2828_v27 = vpack.c.b16 %v2820_v33, %v2820_v33  ;;  %v2827_v1 = vpack.c.b16 %v2819_v26, %v2819_v26  ;;  %v8495_v33 = vld [vmem:[%s12467_s9 + $0x74] sm:$0xf0]  ;;  %v8493_v26 = vld [vmem:[%s12467_s9 + $0x6c] sm:$0xf] }
 0x5b2   :  { %2649 = vmatpush.bf16.msra.mxu3 %v2614_v5  ;;  %v7067_v5 = vor.u32 %v8509_v30, %v7064_v38  ;;  %v7006_v30 = vld [vmem:[%s12467_s9 + $0x80] sm:$0xf]  ;;  %v6998_v38 = vld [vmem:[%s12467_s9 + $0x68] sm:$0xf] }
 0x5b3   :  { %v2843_v49 = vsel %vm2758_vm5, %v2828_v27, 0  ;;  %v6999_v27 = vor.u32 %v8495_v33, %v6998_v38 }
 0x5b4   :  { %2870 = vmatpush.bf16.msra.mxu0 %v2843_v49  ;;  %v7003_v49 = vor.u32 %v8493_v26, %v7000_v14 }
 0x5b6   :  { %2650 = vmatpush.bf16.msra.mxu3 %v2613_v40  ;;  %v2591_v60 = vpop.f32.mrf.mxu1  ;;  %v2840_v40 = vsel %vm2758_vm5, %v2827_v1, 0  ;;  %v7007_v1 = vor.u32 %v8498_v13, %v7006_v30 }
 0x5b7   :  { %v2617_v56 = vpack.c.bf16 %v2591_v60, %v2589_v57  ;;  %v7063_v57 = vor.u32 %v8511_v44, %v7062_v9  ;;  %v6927_v60 = vor.u32 %v8512_v17, %v6924_v35  ;;  %v7008_v44 = vld [vmem:[%s12467_s9 + $0x90] sm:$0xf0]  ;;  %v6990_v35 = vld [vmem:[%s12467_s9 + $0x60] sm:$0xf] }
 0x5b8   :  { %v6992_v17 = vld [vmem:[%s12467_s9 + $0x70] sm:$0xf0] }
 0x5b9   :  { %3089 = vmatpush.bf16.msra.mxu1 %v7063_v57  ;;  %2871 = vmatpush.bf16.msra.mxu0 %v6927_v60  ;;  %v6982_v57 = vld [vmem:[%s12467_s9 + $0x48] sm:$0xf]  ;;  %v8489_v60 = vld [vmem:[%s12467_s9 + $0x4c] sm:$0xf] }
 0x5ba   :  { %2651 = vmatpush.bf16.msra.mxu3 %v2612_v11  ;;  %v6922_v11 = vld [vmem:[%s12468_s10] sm:$0xf] }
 0x5be   :  { %2652 = vmatpush.bf16.msra.mxu3 %v2611_v21  ;;  %v2594_v55 = vpop.f32.mrf.mxu1  ;;  %v8514_v21 = vld [vmem:[%s12468_s10 + $0xc] sm:$0xf0] }
 0x5c2   :  { %2653 = vmatpush.bf16.msra.mxu3 %v2610_v61  ;;  %v7056_v61 = vld [vmem:[%s12467_s9 + $0xf0] sm:$0xf0] }
 0x5c6   :  { %2654 = vmatpush.bf16.msra.mxu3 %v2609_v20  ;;  %v2596_v48 = vpop.f32.mrf.mxu1  ;;  %v7059_v20 = vor.u32 %v8508_v42, %v7056_v61  ;;  %v8488_v61 = vld [vmem:[%s12467_s9 + $0x44] sm:$0xf] }
 0x5c7   :  { %v2618_v8 = vpack.c.bf16 %v2596_v48, %v2594_v55  ;;  %v6923_v55 = vor.u32 %v8514_v21, %v6922_v11  ;;  %v6984_v11 = vld [vmem:[%s12467_s9 + $0x58] sm:$0xf0]  ;;  %v8494_v21 = vld [vmem:[%s12467_s9 + $0x6c] sm:$0xf0] }
 0x5c8   :  { %3076 = vmatpush.bf16.msrb.mxu0 %v7059_v20  ;;  %v6974_v20 = vld [vmem:[%s12467_s9 + $0x40] sm:$0xf] }
 0x5c9   :  { %2655 = vmatmul.bf16.vlgmr.msra.gmra.mxu3 %v2627_v39  ;;  %2666 = vmatpush.bf16.msrb.mxu2 %v2618_v8  ;;  %v7046_v39 = vld [vmem:[%s12467_s9 + $0xc8] sm:$0xf]  ;;  %v7048_v8 = vld [vmem:[%s12467_s9 + $0xd8] sm:$0xf0] }
 0x5ca   :  { %2732 = vmatpush.msrb.mxu3 %v2714_v53  ;;  %v7055_v53 = vor.u32 %v8510_v2, %v7054_v28  ;;  %v7047_v48 = vor.u32 %v8507_v34, %v7046_v39  ;;  %v6976_v2 = vld [vmem:[%s12467_s9 + $0x50] sm:$0xf0]  ;;  %v6987_v39 = vor.u32 %v8489_v60, %v6984_v11  ;;  %v6966_v34 = vld [vmem:[%s12467_s9 + $0x28] sm:$0xf] }
 0x5cc   :  { %2733 = vmatpush.msrb.mxu3 %v2713_v10  ;;  %v7030_v10 = vld [vmem:[%s12467_s9 + $0xa8] sm:$0xf]  ;;  %3090 = vmatpush.bf16.msra.mxu1 %v7047_v48  ;;  %v8485_v48 = vld [vmem:[%s12467_s9 + $0x2c] sm:$0xf] }
 0x5cd   :  { %2667 = vmatpush.bf16.msrb.mxu2 %v2617_v56  ;;  %v7032_v56 = vld [vmem:[%s12467_s9 + $0xb8] sm:$0xf0]  ;;  %v7031_v7 = vor.u32 %v8503_v31, %v7030_v10  ;;  %v6979_v31 = vor.u32 %v8488_v61, %v6976_v2  ;;  %v7116_v61 = vld [vmem:[%s12470_s12 + $0x10] sm:$0xf] }
 0x5ce   :  { %2734 = vmatpush.msrb.mxu3 %v2712_v24  ;;  %v7051_v24 = vor.u32 %v8505_v62, %v7048_v8  ;;  %v7035_v12 = vor.u32 %v8501_v47, %v7032_v56  ;;  %v8487_v62 = vld [vmem:[%s12467_s9 + $0x34] sm:$0xf0]  ;;  %v6968_v8 = vld [vmem:[%s12467_s9 + $0x38] sm:$0xf0]  ;;  %v8484_v47 = vld [vmem:[%s12467_s9 + $0x24] sm:$0xf] }
 0x5cf   :  { %v6971_v46 = vor.u32 %v8485_v48, %v6968_v8 }
 0x5d0   :  { %2735 = vmatpush.msrb.mxu3 %v2711_v18  ;;  %6918 = vmatmul.msk.bf16.vlgmr.msrb.gmra.mxu2 %vm1484_vm12, %v2628_v25  ;;  %v8504_v18 = vld [vmem:[%s12467_s9 + $0xc4] sm:$0xf]  ;;  %v7040_v25 = vld [vmem:[%s12467_s9 + $0xd0] sm:$0xf0] }
 0x5d1   :  { %2896 = vmatpush.bf16.msra.mxu2 %v2849_v37  ;;  %v7043_v36 = vor.u32 %v8504_v18, %v7040_v25  ;;  %3091 = vmatpush.bf16.msra.mxu1 %v7031_v7  ;;  %v7011_v37 = vor.u32 %v8496_v6, %v7008_v44  ;;  %v6967_v18 = vor.u32 %v8487_v62, %v6966_v34  ;;  %v6960_v7 = vld [vmem:[%s12467_s9 + $0x30] sm:$0xf0]  ;;  %v6958_v25 = vld [vmem:[%s12467_s9 + $0x20] sm:$0xf] }
 0x5d2   :  { %2857 = vmatpush.bf16.msra.mxu3 %v2840_v40  ;;  %v8492_v40 = vld [vmem:[%s12467_s9 + $0x64] sm:$0xf] }
 0x5d3   :  { %3077 = vmatpush.bf16.msrb.mxu0 %v7043_v36  ;;  %v6995_v42 = vor.u32 %v8492_v40, %v6992_v17  ;;  %v8483_v36 = vld [vmem:[%s12467_s9 + $0x14] sm:$0xf0]  ;;  %v7124_v17 = vld [vmem:[%s12470_s12 + $0x20] sm:$0xf] }
 0x5d5   :  { %2897 = vmatpush.bf16.msra.mxu2 %v6935_v23 }
 0x5d6   :  { %2858 = vmatpush.bf16.msra.mxu3 %v6923_v55  ;;  %v6991_v55 = vor.u32 %v8494_v21, %v6990_v35  ;;  %v8523_v35 = vld [vmem:[%s12470_s12 + $0x24] sm:$0xf0] }
 0x5d7   :  { %3078 = vmatpush.bf16.msrb.mxu0 %v7027_v32  ;;  %v8480_v32 = vld [vmem:[%s12467_s9 + $0x4] sm:$0xf] }
 0x5d9   :  { %6919 = vmatmul.msk.f32.vlgmr.msrb.gmra.mxu3 %vm1484_vm12, %v2710_v16  ;;  %3102 = vmatpush.bf16.msrb.mxu2 %v7067_v5  ;;  %v7014_v16 = vld [vmem:[%s12467_s9 + $0x88] sm:$0xf]  ;;  %v8491_v5 = vld [vmem:[%s12467_s9 + $0x54] sm:$0xf0] }
 0x5da   :  { %3063 = vmatpush.bf16.msrb.mxu3 %v7055_v53  ;;  %v7015_v54 = vor.u32 %v8499_v59, %v7014_v16  ;;  %v6983_v28 = vor.u32 %v8491_v5, %v6982_v57  ;;  %v8490_v53 = vld [vmem:[%s12467_s9 + $0x4c] sm:$0xf0]  ;;  %v6952_v16 = vld [vmem:[%s12467_s9 + $0x18] sm:$0xf0]  ;;  %v6963_v59 = vor.u32 %v8484_v47, %v6960_v7 }
 0x5db   :  { %3079 = vmatpush.bf16.msrb.mxu0 %v7011_v37 }
 0x5dc   :  { %3092 = vmatpush.bf16.msra.mxu1 %v7015_v54  ;;  %v8482_v54 = vld [vmem:[%s12467_s9 + $0xc] sm:$0xf0] }
 0x5dd   :  { %3103 = vmatpush.bf16.msrb.mxu2 %v7051_v24  ;;  %v6975_v24 = vor.u32 %v8490_v53, %v6974_v20  ;;  %v7108_v53 = vld [vmem:[%s12470_s12] sm:$0xf] }
 0x5de   :  { %3064 = vmatpush.bf16.msrb.mxu3 %v7039_v58  ;;  %v8481_v58 = vld [vmem:[%s12467_s9 + $0xc] sm:$0xf] }
 0x5df   :  { %3080 = vmatpush.bf16.msrb.mxu0 %v6995_v42  ;;  %v6955_v50 = vor.u32 %v8481_v58, %v6952_v16 }
 0x5e0   :  { %3093 = vmatpush.bf16.msra.mxu1 %v6999_v27  ;;  %v9323_v27 = vld [vmem:[%s12474_s16 + $0x2] ss:$0 sm:$0xff] }
 0x5e1   :  { %3104 = vmatpush.bf16.msrb.mxu2 %v7035_v12  ;;  %v6950_v12 = vld [vmem:[%s12467_s9 + $0x8] sm:$0xf] }
 0x5e2   :  { %3065 = vmatpush.bf16.msrb.mxu3 %v7023_v29  ;;  %v6951_v0 = vor.u32 %v8483_v36, %v6950_v12  ;;  %v6947_v29 = vor.u32 %v8480_v32, %v6944_v45 }
 0x5e3   :  { %3081 = vmatpush.bf16.msrb.mxu0 %v6979_v31 }
 0x5e4   :  { %3094 = vmatpush.bf16.msra.mxu1 %v6983_v28  ;;  %v8521_v28 = vld [vmem:[%s12470_s12 + $0x14] sm:$0xf0] }
 0x5e5   :  { %v7117_v2 = vor.u32 %v8521_v28, %v7116_v61  ;;  %v8518_v61 = vld [vmem:[%s12470_s12 + $0x4] sm:$0xf]  ;;  %v7110_v28 = vld [vmem:[%s12470_s12 + $0x8] sm:$0xf0] }
 0x5e6   :  { %3066 = vmatpush.bf16.msrb.mxu3 %v7007_v1 }
 0x5e7   :  { %3082 = vmatpush.bf16.msrb.mxu0 %v6963_v59 }
 0x5e8   :  { %3095 = vmatpush.bf16.msra.mxu1 %v6967_v18 }
 0x5ea   :  { %3067 = vmatpush.bf16.msrb.mxu3 %v6991_v55  ;;  %v7125_v55 = vor.u32 %v8523_v35, %v7124_v17 }
 0x5eb   :  { %3083 = vmatpush.bf16.msrb.mxu0 %v6947_v29 }
 0x5ec   :  { %3096 = vmatpush.bf16.msra.mxu1 %v6951_v0 }
 0x5ee   :  { %3068 = vmatpush.bf16.msrb.mxu3 %v6975_v24 }
 0x62c   :  { %v11606_v63 = vpop.f32.mrf.mxu2 }
 0x62d   :  { %v2644_v11 = vadd.f32 %v9323_v27, %v11606_v63 }
 0x634   :  { %v2645_v22 = vpop.f32.mrf.mxu2 }
 0x635   :  { %v8497_v22 = vld [vmem:[%s12467_s9 + $0x8c] sm:$0xf] }
 0x636   :  { %v7019_v9 = vor.u32 %v8497_v22, %v7016_v43  ;;  %v6959_v22 = vor.u32 %v8486_v19, %v6958_v25  ;;  %v9322_v43 = vld [vmem:[%s12474_s16 + $0x3] ss:$0 sm:$0xff] }
 0x638   :  { %3105 = vmatpush.bf16.msrb.mxu2 %v7019_v9  ;;  %3069 = vmatpush.bf16.msrb.mxu3 %v6959_v22  ;;  %v6943_v9 = vor.u32 %v8482_v54, %v6942_v15 }
 0x63c   :  { %3106 = vmatpush.bf16.msrb.mxu2 %v7003_v49  ;;  %3070 = vmatpush.bf16.msrb.mxu3 %v6943_v9 }
 0x640   :  { %3107 = vmatpush.bf16.msrb.mxu2 %v6987_v39  ;;  %v8519_v39 = vld [vmem:[%s12470_s12 + $0x4] sm:$0xf0] }
 0x641   :  { %v7109_v34 = vor.u32 %v8519_v39, %v7108_v53 }
 0x644   :  { %3108 = vmatpush.bf16.msrb.mxu2 %v6971_v46 }
 0x648   :  { %3109 = vmatpush.bf16.msrb.mxu2 %v6955_v50 }
 0x64c   :  { %v11750_v23 = vpop.f32.mrf.mxu3 }
 0x64d   :  { %v2657_v63 = vadd.f32 %v11750_v23, %v2644_v11  ;;  %v8520_v11 = vld [vmem:[%s12470_s12 + $0x14] sm:$0xf] }
 0x653   :  { %v11800_v10 = vpop.f32.mrf.mxu2 }
 0x654   :  { %v2658_v56 = vpop.f32.mrf.mxu3  ;;  %v2670_v20 = vadd.f32 %v11800_v10, %v2657_v63  ;;  %v7113_v63 = vor.u32 %v8518_v61, %v7110_v28  ;;  %v7080_v28 = vld [vmem:[%s12471_s13] sm:$0xf] }
 0x656   :  { %v2674_v62 = vmul.f32 0.01, %v2670_v20  ;;  %vm2673_vm14 = vcmp.ge.f32.partialorder %v2670_v20, 0.0 }
 0x658   :  { %v2675_v48 = vsel %vm2673_vm14, %v2670_v20, %v2674_v62  ;;  %v9324_v20 = vld [vmem:[%s12474_s16 + $0x4] ss:$0 sm:$0xff]  ;;  %vm3541_vm14 = vcmask 64512  }
 0x659   :  { %v2676_v8 = vpack.c.bf16 %v2675_v48, %v2675_v48 }
 0x65b   :  { %v2671_v6 = vpop.f32.mrf.mxu2 }
 0x65c   :  { %v2737_v44 = vpop.f32.mrf.mxu3 }
 0x65d   :  { %v2738_v30 = vadd.f32 %v9322_v43, %v2737_v44 }
 0x65f   :  { %v2741_v38 = vrot.slane %v2738_v30, 7  ;;  %v2743_v33 = vrot.slane %v2738_v30, 6  ;;  %v2745_v26 = vrot.slane %v2738_v30, 5  ;;  %v2747_v13 = vrot.slane %v2738_v30, 4 }
 0x660   :  { %v2749_v57 = vrot.slane %v2738_v30, 3  ;;  %v2751_v49 = vrot.slane %v2738_v30, 2 }
 0x661   :  { %v2754_v14 = vsel %vm2753_vm7, %v2738_v30, %v2741_v38 }
 0x662   :  { %v2755_v37 = vsel %vm753_vm0, %v2754_v14, %v2743_v33  ;;  %vm2835_vm0 = vcmask 195584  }
 0x663   :  { %v2757_v1 = vsel %vm2756_vm8, %v2755_v37, %v2745_v26 }
 0x664   :  { %v2759_v5 = vsel %vm2758_vm5, %v2757_v1, %v2745_v26 }
 0x665   :  { %v2761_v40 = vsel %vm2760_vm9, %v2759_v5, %v2747_v13 }
 0x666   :  { %v2763_v60 = vsel %vm2762_vm10, %v2761_v40, %v2749_v57  ;;  %v7126_v40 = vld [vmem:[%s12470_s12 + $0x28] sm:$0xf0] }
 0x667   :  { %v2765_v21 = vsel %vm2764_vm11, %v2763_v60, %v2751_v49  ;;  %v8522_v49 = vld [vmem:[%s12470_s12 + $0x24] sm:$0xf] }
 0x668   :  { %v2766_v42 = vpack.c.bf16 %v2765_v21, %v2765_v21  ;;  %v7129_v35 = vor.u32 %v8522_v49, %v7126_v40  ;;  %v7118_v21 = vld [vmem:[%s12470_s12 + $0x18] sm:$0xf0]  ;;  %v7088_v49 = vld [vmem:[%s12471_s13 + $0x10] sm:$0xf]  ;;  %v8527_v40 = vld [vmem:[%s12471_s13 + $0x14] sm:$0xf0] }
 0x66a   :  { %6938 = vmatmul.msk.bf16.vlgmr.msrb.gmra.mxu1 %vm2835_vm0, %v2766_v42  ;;  %6939 = vmatmul.msk.bf16.vlgmr.msra.gmra.mxu2 %vm2835_vm0, %v2766_v42 }
 0x66b   :  { %6937 = vmatmul.msk.bf16.vlgmr.msra.gmra.mxu0 %vm2835_vm0, %v2766_v42  ;;  %6936 = vmatmul.msk.bf16.vlgmr.msra.gmra.mxu3 %vm2835_vm0, %v2766_v42  ;;  %v8516_v42 = vld [vmem:[%s12466_s8] sm:$0xff] }
 0x66c   :  { %3404 = vmatpush.bf16.msra.mxu2 %v7125_v55  ;;  %v7121_v55 = vor.u32 %v8520_v11, %v7118_v21  ;;  %v7090_v11 = vld [vmem:[%s12471_s13 + $0x18] sm:$0xf0] }
 0x670   :  { %3405 = vmatpush.bf16.msra.mxu2 %v7117_v2  ;;  %v8517_v2 = vld [vmem:[%s12466_s8 + $0x8] sm:$0xff] }
 0x674   :  { %3406 = vmatpush.bf16.msra.mxu2 %v7109_v34 }
 0x67a   :  { %3097 = vmatmul.bf16.vlgmr.msra.gmra.mxu1 %v2676_v8  ;;  %3110 = vmatmul.bf16.vlgmr.msrb.gmra.mxu2 %v2676_v8 }
 0x67b   :  { %3084 = vmatmul.bf16.vlgmr.msrb.gmra.mxu0 %v2676_v8  ;;  %3071 = vmatmul.bf16.vlgmr.msrb.gmra.mxu3 %v2676_v8 }
 0x68a   :  { %7130 = vmatmul.msk.bf16.vlgmr.msra.gmra.mxu2 %vm854_vm6, %v11512_v41 }
 0x69a   :  { %7131 = vmatmul.msk.bf16.gmra.mxu2 %vm854_vm6, %v11531_v52 }
 0x6e7   :  { %v2886_v23 = vpop.f32.mrf.mxu1 }
 0x6e8   :  { %v2873_v10 = vpop.f32.mrf.mxu0 }
 0x6ed   :  { %v2899_v31 = vpop.f32.mrf.mxu2 }
 0x6ee   :  { %v2860_v24 = vpop.f32.mrf.mxu3 }
 0x6ef   :  { %v2888_v47 = vpop.f32.mrf.mxu1 }
 0x6f0   :  { %v2875_v56 = vpop.f32.mrf.mxu0 }
 0x6f5   :  { %v2901_v18 = vpop.f32.mrf.mxu2 }
 0x6f6   :  { %v2862_v7 = vpop.f32.mrf.mxu3 }
 0x6f7   :  { %v3098_v25 = vpop.f32.mrf.mxu1 }
 0x6f8   :  { %v3099_v19 = vadd.f32 %v3098_v25, %v2886_v23  ;;  %v3085_v46 = vpop.f32.mrf.mxu0 }
 0x6f9   :  { %v3086_v12 = vadd.f32 %v3085_v46, %v2873_v10 }
 0x6fa   :  { %3146 = vrot.lane.b32.xlu2 %v3099_v19, %s9376_s19  ;;  %3143 = vrot.lane.b32.xlu1 %v3099_v19, %s9375_s0  ;;  %s9380_s0 = smov 104   ;;  %s9381_s19 = smov 8  }
 0x6fb   :  { %v9220_v43 = vpack.i.bf16 %v3099_v19, %v3086_v12 }
 0x6fd   :  { %v3111_v36 = vpop.f32.mrf.mxu2 }
 0x6fe   :  { %v3112_v58 = vadd.f32 %v3111_v36, %v2899_v31  ;;  %v3072_v16 = vpop.f32.mrf.mxu3 }
 0x6ff   :  { %v3100_v59 = vpop.f32.mrf.mxu1  ;;  %v3073_v32 = vadd.f32 %v3072_v16, %v2860_v24 }
 0x700   :  { %v3153_v22 = vpack.c.bf16 %v3112_v58, %v3112_v58  ;;  %v3087_v0 = vpop.f32.mrf.mxu0 }
 0x701   :  { %v9225_v54 = vpack.i.bf16 %v3086_v12, %v3073_v32 }
 0x702   :  { %v3174_v50 = vsel %vm2758_vm5, %v3153_v22, 0  ;;  %3133 = vrot.lane.b32.xlu2 %v3086_v12, %s9372_s28  ;;  %9221 = vrot.lane.b32.xlu1 %v9220_v43, %s9373_s29  ;;  %s9379_s29 = smov 56  }
 0x703   :  { %3179 = vmatpush.bf16.msra.mxu3 %v3174_v50 }
 0x705   :  { %v3113_v45 = vpop.f32.mrf.mxu2 }
 0x706   :  { %v3074_v15 = vpop.f32.mrf.mxu3 }
 0x70a   :  { %3130 = vrot.lane.b32.xlu2 %v3086_v12, %s9374_s30  ;;  %9226 = vrot.lane.b32.xlu1 %v9225_v54, %s9370_s4 }
 0x712   :  { %3120 = vrot.lane.b32.xlu1 %v3073_v32, %s9371_s26 }
 0x754   :  { %v3147_v29 = vpop.permute.xlu2 %3146 }
 0x75c   :  { %v3134_v30 = vpop.permute.xlu2 %3133 }
 0x764   :  { %v3131_v1 = vpop.permute.xlu2 %3130 }
 0x76c   :  { %v3144_v9 = vpop.permute.xlu1 %3143 }
 0x76d   :  { %v3152_v6 = vpack.c.bf16 %v3147_v29, %v3144_v9 }
 0x76f   :  { %3180 = vmatpush.bf16.msra.mxu3 %v3152_v6 }
 0x774   :  { %v9222_v44 = vpop.permute.xlu1 %9221 }
 0x775   :  { %v9224_v38 = vunpack.i.h.bf16 %v9222_v44  ;;  %v9223_v33 = vunpack.i.l.bf16 %v9222_v44 }
 0x777   :  { %v3141_v26 = vsel %vm1693_vm13, %v9223_v33, %v9224_v38  ;;  %vm3166_vm13 = vcmask 588800   ;;  %v7096_v38 = vld [vmem:[%s12471_s13 + $0x20] sm:$0xf]  ;;  %v8529_v33 = vld [vmem:[%s12471_s13 + $0x24] sm:$0xf0] }
 0x778   :  { %v3151_v14 = vpack.c.bf16 %v3141_v26, %v3134_v30 }
 0x77a   :  { %3181 = vmatpush.bf16.msra.mxu3 %v3151_v14  ;;  %v7097_v14 = vor.u32 %v8529_v33, %v7096_v38 }
 0x77c   :  { %v9227_v37 = vpop.permute.xlu1 %9226  ;;  %3336 = vmatpush.bf16.msra.mxu0 %v7097_v14 }
 0x77d   :  { %v9229_v13 = vunpack.i.h.bf16 %v9227_v37  ;;  %v9228_v27 = vunpack.i.l.bf16 %v9227_v37  ;;  %v8528_v37 = vld [vmem:[%s12471_s13 + $0x24] sm:$0xf] }
 0x77f   :  { %v3128_v57 = vsel %vm1484_vm12, %v9228_v27, %v9229_v13  ;;  %v7098_v13 = vld [vmem:[%s12471_s13 + $0x28] sm:$0xf0] }
 0x780   :  { %v3150_v5 = vpack.c.bf16 %v3131_v1, %v3128_v57  ;;  %v7101_v1 = vor.u32 %v8528_v37, %v7098_v13 }
 0x782   :  { %3182 = vmatpush.bf16.msra.mxu3 %v3150_v5  ;;  %3355 = vmatpush.bf16.msrb.mxu1 %v7101_v1 }
 0x784   :  { %v3121_v17 = vpop.permute.xlu1 %3120 }
 0x785   :  { %v3149_v60 = vpack.c.bf16 %v3121_v17, %v3073_v32  ;;  %v8526_v17 = vld [vmem:[%s12471_s13 + $0x14] sm:$0xf] }
 0x787   :  { %3183 = vmatpush.bf16.msra.mxu3 %v3149_v60  ;;  %v7089_v60 = vor.u32 %v8527_v40, %v7088_v49 }
 0x789   :  { %3337 = vmatpush.bf16.msra.mxu0 %v7089_v60 }
 0x78a   :  { %7076 = vmatmul.msk.bf16.vlgmr.msra.gmra.mxu3 %vm3166_vm13, %v8516_v42  ;;  %v7093_v42 = vor.u32 %v8526_v17, %v7090_v11 }
 0x78b   :  { %3423 = vmatpush.bf16.msrb.mxu3 %v7129_v35 }
 0x78c   :  { %3356 = vmatpush.bf16.msrb.mxu1 %v7093_v42 }
 0x78f   :  { %3424 = vmatpush.bf16.msrb.mxu3 %v7121_v55 }
 0x793   :  { %3425 = vmatpush.bf16.msrb.mxu3 %v7113_v63  ;;  %v8525_v63 = vld [vmem:[%s12471_s13 + $0x4] sm:$0xf0] }
 0x79a   :  { %7077 = vmatmul.msk.bf16.gmra.mxu3 %vm3166_vm13, %v8517_v2  ;;  %v8524_v2 = vld [vmem:[%s12471_s13 + $0x4] sm:$0xf] }
 0x7aa   :  { %7132 = vmatmul.msk.bf16.vlgmr.msrb.gmra.mxu3 %vm854_vm6, %v11512_v41 }
 0x7ba   :  { %7133 = vmatmul.msk.bf16.gmra.mxu3 %vm854_vm6, %v11531_v52 }
 0x80d   :  { %v3185_v53 = vpop.f32.mrf.mxu3 }
 0x80e   :  { %v3186_v39 = vadd.f32 %v9324_v20, %v3185_v53  ;;  %v7081_v53 = vor.u32 %v8525_v63, %v7080_v28 }
 0x810   :  { %v3199_v34 = vmul.f32 0.01, %v3186_v39  ;;  %vm3195_vm15 = vcmp.ge.f32.partialorder %v3186_v39, 0.0  ;;  %3338 = vmatpush.bf16.msra.mxu0 %v7081_v53 }
 0x812   :  { %v3203_v8 = vsel %vm3195_vm15, %v3186_v39, %v3199_v34  ;;  %v7082_v39 = vld [vmem:[%s12471_s13 + $0x8] sm:$0xf0]  ;;  %s9378_s13 = smov 88  }
 0x813   :  { %v3207_v31 = vsel %vm854_vm6, %v3203_v8, 0.0 }
 0x815   :  { %v3187_v62 = vpop.f32.mrf.mxu3 }
 0x816   :  { %v3188_v48 = vadd.f32 %v9324_v20, %v3187_v62  ;;  %v7085_v62 = vor.u32 %v8524_v2, %v7082_v39 }
 0x818   :  { %vm3196_vm1 = vcmp.ge.f32.partialorder %v3188_v48, 0.0  ;;  %v3200_v23 = vmul.f32 0.01, %v3188_v48  ;;  %3357 = vmatpush.bf16.msrb.mxu1 %v7085_v62 }
 0x81a   :  { %v3204_v10 = vsel %vm3196_vm1, %v3188_v48, %v3200_v23 }
 0x81b   :  { %v3208_v41 = vsel %vm854_vm6, %v3204_v10, 0.0 }
 0x81c   :  { %v3209_v24 = vadd.f32 %v3208_v41, %v3207_v31 }
 0x81d   :  { %v3190_v52 = vpop.f32.mrf.mxu3 }
 0x81e   :  { %v3210_v47 = vrot.slane %v3209_v24, 4  ;;  %v3191_v18 = vadd.f32 %v9324_v20, %v3190_v52 }
 0x820   :  { %v3211_v56 = vadd.f32 %v3210_v47, %v3209_v24  ;;  %v3201_v19 = vmul.f32 0.01, %v3191_v18  ;;  %vm3197_vm2 = vcmp.ge.f32.partialorder %v3191_v18, 0.0 }
 0x822   :  { %v3212_v7 = vrot.slane %v3211_v56, 2  ;;  %v3205_v16 = vsel %vm3197_vm2, %v3191_v18, %v3201_v19 }
 0x823   :  { %v3244_v0 = vsel %vm854_vm6, %v3205_v16, 0.0 }
 0x824   :  { %v3213_v25 = vadd.f32 %v3212_v7, %v3211_v56 }
 0x825   :  { %v3192_v46 = vpop.f32.mrf.mxu3 }
 0x826   :  { %v3214_v12 = vrot.slane %v3213_v25, 1  ;;  %v3193_v36 = vadd.f32 %v9324_v20, %v3192_v46 }
 0x828   :  { %v3215_v58 = vadd.f32 %v3214_v12, %v3213_v25  ;;  %vm3198_vm3 = vcmp.ge.f32.partialorder %v3193_v36, 0.0  ;;  %v3202_v59 = vmul.f32 0.01, %v3193_v36 }
 0x82a   :  { %v3216_v22 = vmul.f32 %v3215_v58, %v11329_v51  ;;  %v3206_v43 = vsel %vm3198_vm3, %v3193_v36, %v3202_v59 }
 0x82b   :  { %v3245_v50 = vsel %vm854_vm6, %v3206_v43, 0.0 }
 0x82c   :  { %v11921_v32 = vsub.f32 %v3203_v8, %v3216_v22  ;;  %v11923_v45 = vsub.f32 %v3204_v10, %v3216_v22  ;;  %v3246_v15 = vadd.f32 %v3245_v50, %v3244_v0 }
 0x82e   :  { %v3219_v54 = vmul.f32 %v11921_v32, %v11921_v32  ;;  %v3220_v29 = vmul.f32 %v11923_v45, %v11923_v45  ;;  %v3247_v9 = vrot.slane %v3246_v15, 4 }
 0x830   :  { %v3221_v6 = vsel %vm854_vm6, %v3219_v54, 0.0  ;;  %v3222_v44 = vsel %vm854_vm6, %v3220_v29, 0.0  ;;  %v3248_v30 = vadd.f32 %v3247_v9, %v3246_v15 }
 0x831   :  { %v3223_v26 = vadd.f32 %v3222_v44, %v3221_v6 }
 0x832   :  { %v3249_v27 = vrot.slane %v3248_v30, 2 }
 0x833   :  { %v3224_v57 = vrot.slane %v3223_v26, 4 }
 0x834   :  { %v3250_v5 = vadd.f32 %v3249_v27, %v3248_v30  ;;  %v3427_v27 = vpop.f32.mrf.mxu3 }
 0x835   :  { %v3225_v35 = vadd.f32 %v3224_v57, %v3223_v26 }
 0x836   :  { %v3251_v21 = vrot.slane %v3250_v5, 1 }
 0x837   :  { %v3226_v55 = vrot.slane %v3225_v35, 2 }
 0x838   :  { %v3252_v61 = vadd.f32 %v3251_v21, %v3250_v5 }
 0x839   :  { %v3227_v20 = vadd.f32 %v3226_v55, %v3225_v35 }
 0x83a   :  { %v3253_v34 = vmul.f32 %v3252_v61, %v11329_v51 }
 0x83b   :  { %v3228_v48 = vrot.slane %v3227_v20, 1 }
 0x83c   :  { %v3254_v8 = vsub.f32 %v3205_v16, %v3253_v34  ;;  %v3255_v23 = vsub.f32 %v3206_v43, %v3253_v34  ;;  %v3429_v49 = vpop.f32.mrf.mxu3 }
 0x83d   :  { %v3229_v10 = vadd.f32 %v3228_v48, %v3227_v20 }
 0x83e   :  { %v3256_v31 = vmul.f32 %v3254_v8, %v3254_v8  ;;  %v3257_v41 = vmul.f32 %v3255_v23, %v3255_v23 }
 0x83f   :  { %v3230_v24 = vmul.f32 %v3229_v10, %v11329_v51 }
 0x840   :  { %v3258_v52 = vsel %vm854_vm6, %v3256_v31, 0.0  ;;  %v3259_v47 = vsel %vm854_vm6, %v3257_v41, 0.0 }
 0x841   :  { %v3231_v56 = vadd.f32 1e-05, %v3230_v24  ;;  %v3260_v18 = vadd.f32 %v3259_v47, %v3258_v52 }
 0x843   :  { %9342 = vrsqrt.f32 %v3231_v56  ;;  %v3261_v7 = vrot.slane %v3260_v18, 4  ;;  %vm3238_vm7 = vweird.f32 %v3231_v56 }
 0x844   :  { %v3432_v28 = vpop.f32.mrf.mxu3 }
 0x845   :  { %v3262_v25 = vadd.f32 %v3261_v7, %v3260_v18 }
 0x847   :  { %v3263_v19 = vrot.slane %v3262_v25, 2 }
 0x849   :  { %v9343_v46 = vpop.eup %9342  ;;  %v3264_v12 = vadd.f32 %v3263_v19, %v3262_v25  ;;  %v12527_v25 = vld [vmem:[#allocation7_spill] sm:$0xff] }
 0x84a   :  { %v3233_v36 = vmul.f32 %v9343_v46, %v3231_v56  ;;  %vm3239_vm4 = vweird.f32 %v9343_v46 }
 0x84b   :  { %v3265_v58 = vrot.slane %v3264_v12, 1  ;;  %vm3240_vm8 = vmor %vm3238_vm7, %vm3239_vm4 }
 0x84c   :  { %v3234_v16 = vmul.f32 %v9343_v46, %v3233_v36  ;;  %v3434_v39 = vpop.f32.mrf.mxu3 }
 0x84d   :  { %v3266_v59 = vadd.f32 %v3265_v58, %v3264_v12  ;;  %v12529_v12 = vld [vmem:[#allocation9_spill] sm:$0xff] }
 0x84e   :  { %v3235_v22 = vmul.f32 0.5, %v3234_v16 }
 0x84f   :  { %v3267_v43 = vmul.f32 %v3266_v59, %v11329_v51 }
 0x850   :  { %v3236_v0 = vsub.f32 1.5, %v3235_v22 }
 0x851   :  { %v3268_v50 = vadd.f32 1e-05, %v3267_v43 }
 0x852   :  { %v3237_v15 = vmul.f32 %v9343_v46, %v3236_v0 }
 0x853   :  { %9344 = vrsqrt.f32 %v3268_v50  ;;  %vm3275_vm10 = vweird.f32 %v3268_v50 }
 0x854   :  { %v3241_v54 = vsel %vm3240_vm8, %v9343_v46, %v3237_v15  ;;  %v12528_v46 = vld [vmem:[#allocation8_spill] sm:$0xff] }
 0x855   :  { %v3242_v29 = vmul.f32 %v3241_v54, %v11921_v32  ;;  %v3243_v9 = vmul.f32 %v3241_v54, %v11923_v45  ;;  %v3408_v45 = vpop.f32.mrf.mxu2 }
 0x857   :  { %v3281_v6 = vpack.c.bf16 %v3243_v9, %v3242_v29 }
 0x859   :  { %v9345_v44 = vpop.eup %9344  ;;  %7102 = vmatmul.msk.bf16.vlgmr.msra.gmra.mxu0 %vm854_vm6, %v3281_v6  ;;  %7104 = vmatmul.msk.bf16.vlgmr.msrb.gmra.mxu1 %vm854_vm6, %v3281_v6  ;;  %v12531_v6 = vld [vmem:[#allocation12_spill] sm:$0xff] }
 0x85a   :  { %v3270_v30 = vmul.f32 %v9345_v44, %v3268_v50  ;;  %vm3276_vm9 = vweird.f32 %v9345_v44 }
 0x85b   :  { %vm3277_vm11 = vmor %vm3275_vm10, %vm3276_vm9 }
 0x85c   :  { %v3271_v51 = vmul.f32 %v9345_v44, %v3270_v30 }
 0x85d   :  { %v3410_v5 = vpop.f32.mrf.mxu2 }
 0x85e   :  { %v3272_v38 = vmul.f32 0.5, %v3271_v51 }
 0x860   :  { %v3273_v33 = vsub.f32 1.5, %v3272_v38 }
 0x862   :  { %v3274_v26 = vmul.f32 %v9345_v44, %v3273_v33 }
 0x864   :  { %v3278_v14 = vsel %vm3277_vm11, %v9345_v44, %v3274_v26 }
 0x865   :  { %v3280_v37 = vmul.f32 %v3278_v14, %v3255_v23  ;;  %v3279_v13 = vmul.f32 %v3278_v14, %v3254_v8  ;;  %v3413_v61 = vpop.f32.mrf.mxu2  ;;  %v12532_v14 = vld [vmem:[#allocation11_spill] sm:$0xff] }
 0x867   :  { %v3282_v32 = vpack.c.bf16 %v3280_v37, %v3279_v13 }
 0x869   :  { %7103 = vmatmul.msk.bf16.gmra.mxu0 %vm854_vm6, %v3282_v32  ;;  %7105 = vmatmul.msk.bf16.gmra.mxu1 %vm854_vm6, %v3282_v32 }
 0x86d   :  { %v3415_v53 = vpop.f32.mrf.mxu2 }
 0x8d6   :  { %v3340_v1 = vpop.f32.mrf.mxu0  ;;  %v3359_v57 = vpop.f32.mrf.mxu1 }
 0x8d7   :  { %v11978_v35 = vadd.f32 %v3408_v45, %v3340_v1  ;;  %v3428_v60 = vadd.f32 %v3427_v27, %v3359_v57 }
 0x8d9   :  { %v9275_v18 = vpack.i.bf16 %v3428_v60, %v11978_v35 }
 0x8de   :  { %v3342_v40 = vpop.f32.mrf.mxu0  ;;  %v3361_v17 = vpop.f32.mrf.mxu1 }
 0x8df   :  { %v11980_v11 = vadd.f32 %v3410_v5, %v3342_v40  ;;  %v3430_v21 = vadd.f32 %v3429_v49, %v3361_v17  ;;  %v12533_v40 = vld [vmem:[#allocation13_spill] sm:$0xff] }
 0x8e1   :  { %v9235_v42 = vpack.i.bf16 %v3430_v21, %v3428_v60  ;;  %v9230_v55 = vpack.i.bf16 %v11980_v11, %v11978_v35  ;;  %v3586_v63 = vpack.c.bf16 %v11980_v11, %v11978_v35  ;;  %v9295_v47 = vpack.i.bf16 %v3430_v21, %v11980_v11  ;;  %v7148_v35 = vld [vmem:[%s12469_s11 + $0x18] sm:$0xf]  ;;  %v8534_v11 = vld [vmem:[%s12469_s11 + $0x20] sm:$0xf0] }
 0x8e3   :  { %9236 = vrot.lane.b32.xlu1 %v9235_v42, %s9378_s13  ;;  %9231 = vrot.lane.b32.xlu2 %v9230_v55, %s9379_s29 }
 0x8e6   :  { %v3345_v2 = vpop.f32.mrf.mxu0  ;;  %v3364_v20 = vpop.f32.mrf.mxu1 }
 0x8e7   :  { %v11988_v48 = vadd.f32 %v3413_v61, %v3345_v2  ;;  %v3433_v8 = vadd.f32 %v3432_v28, %v3364_v20 }
 0x8e9   :  { %v9265_v56 = vpack.i.bf16 %v3433_v8, %v11988_v48 }
 0x8eb   :  { %9241 = vrot.lane.b32.xlu1 %v9230_v55, %s9371_s26  ;;  %9246 = vrot.lane.b32.xlu2 %v9235_v42, %s9374_s30 }
 0x8ee   :  { %v3347_v34 = vpop.f32.mrf.mxu0  ;;  %v3366_v62 = vpop.f32.mrf.mxu1 }
 0x8ef   :  { %v11990_v23 = vadd.f32 %v3415_v53, %v3347_v34  ;;  %v3435_v10 = vadd.f32 %v3434_v39, %v3366_v62  ;;  %v12534_v39 = vld [vmem:[#allocation14_spill] sm:$0xff] }
 0x8f1   :  { %v9280_v31 = vpack.i.bf16 %v3435_v10, %v3433_v8  ;;  %v9250_v41 = vpack.i.bf16 %v11990_v23, %v11988_v48  ;;  %v3587_v24 = vpack.c.bf16 %v11990_v23, %v11988_v48  ;;  %v9290_v52 = vpack.i.bf16 %v3435_v10, %v11990_v23  ;;  %v12536_v23 = vld [vmem:[#allocation16_spill] sm:$0xff] }
 0x8f3   :  { %9281 = vrot.lane.b32.xlu0 %v9280_v31, %s9374_s30  ;;  %9256 = vrot.lane.b32.xlu1 %v9280_v31, %s9378_s13 }
 0x8f4   :  { %9251 = vrot.lane.b32.xlu2 %v9250_v41, %s9379_s29 }
 0x8fb   :  { %9271 = vrot.lane.b32.xlu1 %v9230_v55, %s9380_s0  ;;  %9291 = vrot.lane.b32.xlu0 %v9290_v52, %s9381_s19 }
 0x8fc   :  { %9261 = vrot.lane.b32.xlu2 %v9250_v41, %s9371_s26 }
 0x903   :  { %9296 = vrot.lane.b32.xlu0 %v9295_v47, %s9381_s19  ;;  %9286 = vrot.lane.b32.xlu1 %v9250_v41, %s9380_s0 }
 0x904   :  { %9266 = vrot.lane.b32.xlu2 %v9265_v56, %s9381_s19 }
 0x90b   :  { %9311 = vrot.lane.b32.xlu0 %v9235_v42, %s9372_s28  ;;  %9301 = vrot.lane.b32.xlu1 %v9280_v31, %s9372_s28 }
 0x90c   :  { %9276 = vrot.lane.b32.xlu2 %v9275_v18, %s9381_s19 }
 0x913   :  { %9316 = vrot.lane.b32.xlu1 %v9230_v55, %s9370_s4 }
 0x914   :  { %9306 = vrot.lane.b32.xlu2 %v9250_v41, %s9370_s4 }
 0x92d   :  { %4103 = vxpose.xlu0.b32.start [1/16] (narrow) %v10542_v3, 48  ;;  %v12530_v3 = vld [vmem:[#allocation10_spill] sm:$0xff] }
 0x935   :  { %4104 = vxpose.xlu0.b32.cont [2/16] (narrow) %v10546_v4, 48 }
 0x93d   :  { %v9232_v7 = vpop.permute.xlu2 %9231  ;;  %4105 = vxpose.xlu0.b32.cont [3/16] (narrow) %v12527_v25, 48 }
 0x93e   :  { %v9234_v59 = vunpack.i.h.bf16 %v9232_v7  ;;  %v9233_v22 = vunpack.i.l.bf16 %v9232_v7 }
 0x940   :  { %v3592_v0 = vpack.c.bf16 %v9234_v59, %v9233_v22 }
 0x945   :  { %v9247_v19 = vpop.permute.xlu2 %9246  ;;  %4106 = vxpose.xlu0.b32.cont [4/16] (narrow) %v12528_v46, 48 }
 0x946   :  { %v9249_v21 = vunpack.i.h.bf16 %v9247_v19  ;;  %v9248_v42 = vunpack.i.l.bf16 %v9247_v19 }
 0x948   :  { %v3598_v53 = vpack.c.bf16 %v9249_v21, %v9248_v42  ;;  %v12539_v42 = vld [vmem:[#allocation20_spill] sm:$0xff] }
 0x94d   :  { %4107 = vxpose.xlu0.b32.cont [5/16] (narrow) %v12529_v12, 48 }
 0x94e   :  { %v9252_v36 = vpop.permute.xlu2 %9251 }
 0x94f   :  { %v9254_v58 = vunpack.i.h.bf16 %v9252_v36  ;;  %v9253_v16 = vunpack.i.l.bf16 %v9252_v36 }
 0x951   :  { %v3593_v43 = vpack.c.bf16 %v9254_v58, %v9253_v16 }
 0x953   :  { %3750 = vmatpush.bf16.msrb.mxu0 %v3593_v43 }
 0x955   :  { %v9237_v50 = vpop.permute.xlu1 %9236  ;;  %4108 = vxpose.xlu0.b32.cont [6/16] (narrow) %v12530_v3, 48 }
 0x956   :  { %v9262_v4 = vpop.permute.xlu2 %9261  ;;  %v9239_v32 = vunpack.i.h.bf16 %v9237_v50  ;;  %v9238_v45 = vunpack.i.l.bf16 %v9237_v50 }
 0x957   :  { %v9264_v15 = vunpack.i.h.bf16 %v9262_v4  ;;  %v9263_v54 = vunpack.i.l.bf16 %v9262_v4  ;;  %3751 = vmatpush.bf16.msrb.mxu0 %v3592_v0  ;;  %v12535_v0 = vld [vmem:[#allocation15_spill] sm:$0xff] }
 0x958   :  { %v3600_v1 = vpack.c.bf16 %v9239_v32, %v9238_v45  ;;  %v7138_v32 = vld [vmem:[%s12469_s11 + $0xc] sm:$0xf0] }
 0x959   :  { %v3591_v29 = vpack.c.bf16 %v9264_v15, %v9263_v54 }
 0x95b   :  { %3752 = vmatpush.bf16.msrb.mxu0 %v3591_v29 }
 0x95d   :  { %v9242_v9 = vpop.permute.xlu1 %9241  ;;  %4109 = vxpose.xlu0.b32.cont [7/16] (narrow) %v12531_v6, 48 }
 0x95e   :  { %v9244_v44 = vunpack.i.h.bf16 %v9242_v9  ;;  %v9243_v30 = vunpack.i.l.bf16 %v9242_v9  ;;  %v9267_v38 = vpop.permute.xlu2 %9266 }
 0x95f   :  { %v9269_v2 = vunpack.i.h.bf16 %v9267_v38  ;;  %v9268_v20 = vunpack.i.l.bf16 %v9267_v38  ;;  %v8532_v38 = vld [vmem:[%s12469_s11 + $0x10] sm:$0xf0] }
 0x960   :  { %v3590_v51 = vpack.c.bf16 %v9244_v44, %v9243_v30  ;;  %v7136_v44 = vld [vmem:[%s12469_s11] sm:$0xf]  ;;  %v8531_v30 = vld [vmem:[%s12469_s11 + $0x8] sm:$0xf0] }
 0x961   :  { %v3544_v18 = vsel %vm3541_vm14, %v9268_v20, %v9269_v2  ;;  %v8538_v2 = vld [vmem:[%s12469_s11 + $0x40] sm:$0xf0]  ;;  %v12540_v20 = vld [vmem:[#allocation19_spill] sm:$0xff] }
 0x962   :  { %3753 = vmatpush.bf16.msrb.mxu0 %v3590_v51  ;;  %v7144_v51 = vld [vmem:[%s12469_s11 + $0x8] sm:$0xf] }
 0x965   :  { %v9282_v33 = vpop.permute.xlu0 %9281  ;;  %v9257_v26 = vpop.permute.xlu1 %9256  ;;  %4110 = vxpose.xlu0.b32.cont [8/16] (narrow) %v12532_v14, 48 }
 0x966   :  { %v9259_v37 = vunpack.i.h.bf16 %v9257_v26  ;;  %v9258_v13 = vunpack.i.l.bf16 %v9257_v26  ;;  %v9284_v57 = vunpack.i.h.bf16 %v9282_v33  ;;  %v9283_v5 = vunpack.i.l.bf16 %v9282_v33  ;;  %v9277_v60 = vpop.permute.xlu2 %9276 }
 0x967   :  { %v9279_v47 = vunpack.i.h.bf16 %v9277_v60  ;;  %v9278_v56 = vunpack.i.l.bf16 %v9277_v60  ;;  %v7137_v33 = vor.u32 %v8531_v30, %v7136_v44  ;;  %v7150_v60 = vld [vmem:[%s12469_s11 + $0x24] sm:$0xf0]  ;;  %v7208_v44 = vld [vmem:[%s12469_s11 + $0x90] sm:$0xf]  ;;  %v8549_v30 = vld [vmem:[%s12469_s11 + $0x98] sm:$0xf0] }
 0x968   :  { %v3601_v27 = vpack.c.bf16 %v9259_v37, %v9258_v13  ;;  %v3599_v55 = vpack.c.bf16 %v9284_v57, %v9283_v5  ;;  %v7145_v37 = vor.u32 %v8532_v38, %v7144_v51  ;;  %v8530_v13 = vld [vmem:[%s12469_s11 + $0x4] sm:$0xf]  ;;  %v8535_v57 = vld [vmem:[%s12469_s11 + $0x28] sm:$0xf0]  ;;  %v7216_v51 = vld [vmem:[%s12469_s11 + $0x98] sm:$0xf] }
 0x969   :  { %v3542_v58 = vsel %vm3541_vm14, %v9278_v56, %v9279_v47  ;;  %v12538_v5 = vld [vmem:[#allocation18_spill] sm:$0xff] }
 0x96a   :  { %3799 = vmatpush.bf16.msra.mxu1 %v3601_v27  ;;  %v7141_v27 = vor.u32 %v8530_v13, %v7138_v32  ;;  %v8550_v38 = vld [vmem:[%s12469_s11 + $0xa0] sm:$0xf0]  ;;  %v7228_v13 = vld [vmem:[%s12469_s11 + $0xb0] sm:$0xf]  ;;  %v8553_v32 = vld [vmem:[%s12469_s11 + $0xb8] sm:$0xf0] }
 0x96d   :  { %v9272_v49 = vpop.permute.xlu1 %9271  ;;  %4111 = vxpose.xlu0.b32.cont [9/16] (narrow) %v12533_v40, 48  ;;  %v9292_v17 = vpop.permute.xlu0 %9291 }
 0x96e   :  { %3800 = vmatpush.bf16.msra.mxu1 %v3600_v1  ;;  %v9294_v61 = vunpack.i.h.bf16 %v9292_v17  ;;  %v9293_v28 = vunpack.i.l.bf16 %v9292_v17  ;;  %v9274_v7 = vunpack.i.h.bf16 %v9272_v49  ;;  %v9273_v25 = vunpack.i.l.bf16 %v9272_v49  ;;  %v9307_v12 = vpop.permute.xlu2 %9306  ;;  %v12537_v1 = vld [vmem:[#allocation17_spill] sm:$0xff] }
 0x96f   :  { %v9309_v59 = vunpack.i.h.bf16 %v9307_v12  ;;  %v9308_v22 = vunpack.i.l.bf16 %v9307_v12  ;;  %v7149_v49 = vor.u32 %v8534_v11, %v7148_v35  ;;  %v8533_v17 = vld [vmem:[%s12469_s11 + $0x1c] sm:$0xf]  ;;  %v7192_v12 = vld [vmem:[%s12469_s11 + $0x68] sm:$0xf]  ;;  %v7222_v35 = vld [vmem:[%s12469_s11 + $0xb4] sm:$0xf0] }
 0x970   :  { %v3545_v8 = vsel %vm3541_vm14, %v9293_v28, %v9294_v61  ;;  %v3588_v16 = vpack.c.bf16 %v9274_v7, %v9273_v25  ;;  %v7153_v21 = vor.u32 %v8533_v17, %v7150_v60  ;;  %v8537_v61 = vld [vmem:[%s12469_s11 + $0x38] sm:$0xf0]  ;;  %v7168_v28 = vld [vmem:[%s12469_s11 + $0x38] sm:$0xf] }
 0x971   :  { %v3597_v46 = vpack.c.bf16 %v3545_v8, %v3544_v18  ;;  %v3595_v54 = vpack.c.bf16 %v9309_v59, %v9308_v22  ;;  %v8539_v18 = vld [vmem:[%s12469_s11 + $0x4c] sm:$0xf]  ;;  %v7174_v7 = vld [vmem:[%s12469_s11 + $0x54] sm:$0xf0]  ;;  %v8542_v59 = vld [vmem:[%s12469_s11 + $0x64] sm:$0xf] }
 0x972   :  { %3801 = vmatpush.bf16.msra.mxu1 %v3599_v55  ;;  %v7160_v55 = vld [vmem:[%s12469_s11 + $0x30] sm:$0xf]  ;;  %v7177_v25 = vor.u32 %v8539_v18, %v7174_v7 }
 0x973   :  { %v7186_v22 = vld [vmem:[%s12469_s11 + $0x6c] sm:$0xf0] }
 0x975   :  { %4112 = vxpose.xlu0.b32.cont [10/16] (narrow) %v12534_v39, 48  ;;  %v9297_v34 = vpop.permute.xlu0 %9296  ;;  %v9287_v62 = vpop.permute.xlu1 %9286  ;;  %v7169_v39 = vor.u32 %v8538_v2, %v7168_v28 }
 0x976   :  { %v9299_v10 = vunpack.i.h.bf16 %v9297_v34  ;;  %v9298_v31 = vunpack.i.l.bf16 %v9297_v34  ;;  %v9289_v41 = vunpack.i.h.bf16 %v9287_v62  ;;  %v9288_v52 = vunpack.i.l.bf16 %v9287_v62  ;;  %3802 = vmatpush.bf16.msra.mxu1 %v3598_v53  ;;  %v8536_v34 = vld [vmem:[%s12469_s11 + $0x34] sm:$0xf]  ;;  %v7162_v62 = vld [vmem:[%s12469_s11 + $0x3c] sm:$0xf0] }
 0x977   :  { %v7161_v53 = vor.u32 %v8537_v61, %v7160_v55  ;;  %v7165_v8 = vor.u32 %v8536_v34, %v7162_v62 }
 0x978   :  { %v3589_v19 = vpack.c.bf16 %v9289_v41, %v9288_v52  ;;  %v3543_v36 = vsel %vm3541_vm14, %v9298_v31, %v9299_v10  ;;  %v7172_v10 = vld [vmem:[%s12469_s11 + $0x48] sm:$0xf]  ;;  %v8540_v31 = vld [vmem:[%s12469_s11 + $0x50] sm:$0xf0]  ;;  %v7180_v41 = vld [vmem:[%s12469_s11 + $0x50] sm:$0xf] }
 0x979   :  { %v3596_v43 = vpack.c.bf16 %v3543_v36, %v3542_v58  ;;  %v8541_v52 = vld [vmem:[%s12469_s11 + $0x58] sm:$0xf0]  ;;  %v7173_v47 = vor.u32 %v8540_v31, %v7172_v10  ;;  %v8544_v36 = vld [vmem:[%s12469_s11 + $0x70] sm:$0xf0] }
 0x97a   :  { %3754 = vmatpush.bf16.msrb.mxu0 %v3589_v19  ;;  %3803 = vmatpush.bf16.msra.mxu1 %v3597_v46  ;;  %v7181_v56 = vor.u32 %v8541_v52, %v7180_v41  ;;  %v7184_v19 = vld [vmem:[%s12469_s11 + $0x60] sm:$0xf]  ;;  %v8543_v46 = vld [vmem:[%s12469_s11 + $0x68] sm:$0xf0] }
 0x97b   :  { %v7185_v58 = vor.u32 %v8543_v46, %v7184_v19 }
 0x97d   :  { %4113 = vxpose.xlu0.b32.cont [11/16] (narrow) %v12535_v0, 48  ;;  %v9302_v50 = vpop.permute.xlu1 %9301  ;;  %v9312_v3 = vpop.permute.xlu0 %9311  ;;  %v7196_v0 = vld [vmem:[%s12469_s11 + $0x78] sm:$0xf] }
 0x97e   :  { %v9304_v4 = vunpack.i.h.bf16 %v9302_v50  ;;  %v9303_v15 = vunpack.i.l.bf16 %v9302_v50  ;;  %3755 = vmatpush.bf16.msrb.mxu0 %v3588_v16  ;;  %3804 = vmatpush.bf16.msra.mxu1 %v3596_v43  ;;  %v9314_v9 = vunpack.i.h.bf16 %v9312_v3  ;;  %v9313_v6 = vunpack.i.l.bf16 %v9312_v3  ;;  %v8546_v50 = vld [vmem:[%s12469_s11 + $0x80] sm:$0xf0]  ;;  %v7204_v3 = vld [vmem:[%s12469_s11 + $0x80] sm:$0xf] }
 0x97f   :  { %v7193_v16 = vor.u32 %v8544_v36, %v7192_v12  ;;  %v7189_v43 = vor.u32 %v8542_v59, %v7186_v22 }
 0x980   :  { %v3603_v29 = vpack.c.bf16 %v9304_v4, %v9303_v15  ;;  %v3602_v48 = vpack.c.bf16 %v9314_v9, %v9313_v6  ;;  %v8547_v4 = vld [vmem:[%s12469_s11 + $0x88] sm:$0xf0]  ;;  %v7197_v15 = vor.u32 %v8546_v50, %v7196_v0  ;;  %v7198_v9 = vld [vmem:[%s12469_s11 + $0x84] sm:$0xf0] }
 0x982   :  { %3756 = vmatpush.bf16.msrb.mxu0 %v3587_v24  ;;  %3805 = vmatpush.bf16.msra.mxu1 %v3595_v54  ;;  %v7205_v54 = vor.u32 %v8547_v4, %v7204_v3 }
 0x983   :  { %3854 = vmatpush.bf16.msrb.mxu2 %v3603_v29  ;;  %v8545_v29 = vld [vmem:[%s12469_s11 + $0x7c] sm:$0xf] }
 0x984   :  { %v7201_v6 = vor.u32 %v8545_v29, %v7198_v9 }
 0x985   :  { %4114 = vxpose.xlu0.b32.cont [12/16] (narrow) %v12536_v23, 48  ;;  %v9317_v24 = vpop.permute.xlu1 %9316  ;;  %v7217_v23 = vor.u32 %v8550_v38, %v7216_v51 }
 0x986   :  { %v9319_v26 = vunpack.i.h.bf16 %v9317_v24  ;;  %v9318_v14 = vunpack.i.l.bf16 %v9317_v24  ;;  %3757 = vmatpush.bf16.msrb.mxu0 %v3586_v63  ;;  %v7156_v63 = vld [vmem:[%s12469_s11 + $0x20] sm:$0xf]  ;;  %v8548_v24 = vld [vmem:[%s12469_s11 + $0x94] sm:$0xf] }
 0x987   :  { %3855 = vmatpush.bf16.msrb.mxu2 %v3602_v48  ;;  %v7157_v40 = vor.u32 %v8535_v57, %v7156_v63  ;;  %v7209_v48 = vor.u32 %v8549_v30, %v7208_v44 }
 0x988   :  { %v3594_v45 = vpack.c.bf16 %v9319_v26, %v9318_v14  ;;  %v7220_v14 = vld [vmem:[%s12469_s11 + $0xa8] sm:$0xf] }
 0x989   :  { %3758 = vmatmul.bf16.vlgmr.msrb.gmra.mxu0 %v7137_v33  ;;  %v7210_v33 = vld [vmem:[%s12469_s11 + $0x9c] sm:$0xf0] }
 0x98a   :  { %7230 = vmatmul.msk.bf16.vlgmr.msrb.gmra.mxu2 %vm1484_vm12, %v7145_v37  ;;  %3806 = vmatpush.bf16.msra.mxu1 %v3594_v45  ;;  %v7213_v26 = vor.u32 %v8548_v24, %v7210_v33  ;;  %v8552_v37 = vld [vmem:[%s12469_s11 + $0xb0] sm:$0xf0] }
 0x98b   :  { %v7221_v45 = vor.u32 %v8552_v37, %v7220_v14 }
 0x98d   :  { %4115 = vxpose.xlu0.b32.cont [13/16] (narrow) %v12537_v1, 48  ;;  %3807 = vmatmul.bf16.vlgmr.msra.gmra.mxu1 %v7141_v27  ;;  %v7229_v27 = vor.u32 %v8553_v32, %v7228_v13  ;;  %v8551_v1 = vld [vmem:[%s12469_s11 + $0xac] sm:$0xf] }
 0x98e   :  { %v7225_v11 = vor.u32 %v8551_v1, %v7222_v35 }
 0x995   :  { %4116 = vxpose.xlu0.b32.cont [14/16] (narrow) %v12538_v5, 48 }
 0x999   :  { %3763 = vmatmul.bf16.gmra.mxu0 %v7149_v49 }
 0x99a   :  { %7231 = vmatmul.msk.bf16.gmra.mxu2 %vm1484_vm12, %v7157_v40 }
 0x99d   :  { %4117 = vxpose.xlu0.b32.cont [15/16] (narrow) %v12539_v42, 48  ;;  %3812 = vmatmul.bf16.gmra.mxu1 %v7153_v21 }
 0x9a5   :  { %4118 = vxpose.xlu0.b32.end [16/16] (narrow) %v12540_v20, 48  ;;  %v12187_v20 = vld [vmem:[%s12474_s16 + $0x5] ss:$0 sm:$0xff] }
 0x9a9   :  { %3768 = vmatmul.bf16.gmra.mxu0 %v7161_v53 }
 0x9aa   :  { %7232 = vmatmul.msk.bf16.gmra.mxu2 %vm1484_vm12, %v7169_v39 }
 0x9ad   :  { %3817 = vmatmul.bf16.gmra.mxu1 %v7165_v8 }
 0x9b9   :  { %3773 = vmatmul.bf16.gmra.mxu0 %v7173_v47 }
 0x9ba   :  { %7233 = vmatmul.msk.bf16.gmra.mxu2 %vm1484_vm12, %v7181_v56 }
 0x9bd   :  { %3822 = vmatmul.bf16.gmra.mxu1 %v7177_v25 }
 0x9c9   :  { %3778 = vmatmul.bf16.gmra.mxu0 %v7185_v58 }
 0x9ca   :  { %7234 = vmatmul.msk.bf16.gmra.mxu2 %vm1484_vm12, %v7193_v16 }
 0x9cd   :  { %3827 = vmatmul.bf16.gmra.mxu1 %v7189_v43 }
 0x9d9   :  { %3783 = vmatmul.bf16.gmra.mxu0 %v7197_v15 }
 0x9da   :  { %7235 = vmatmul.msk.bf16.gmra.mxu2 %vm1484_vm12, %v7205_v54 }
 0x9dd   :  { %3832 = vmatmul.bf16.gmra.mxu1 %v7201_v6 }
 0x9e9   :  { %3788 = vmatmul.bf16.gmra.mxu0 %v7209_v48 }
 0x9ea   :  { %7236 = vmatmul.msk.bf16.gmra.mxu2 %vm1484_vm12, %v7217_v23 }
 0x9ed   :  { %3837 = vmatmul.bf16.gmra.mxu1 %v7213_v26 }
 0x9f9   :  { %3793 = vmatmul.bf16.gmra.mxu0 %v7221_v45 }
 0x9fa   :  { %7237 = vmatmul.msk.bf16.gmra.mxu2 %vm1484_vm12, %v7229_v27 }
 0x9fd   :  { %3842 = vmatmul.bf16.gmra.mxu1 %v7225_v11 }
 0xa06   :  { %v3759_v63 = vpop.f32.mrf.mxu0 }
 0xa07   :  { %v3760_v39 = vadd.f32 %v12187_v20, %v3759_v63 }
 0xa0a   :  { %v3808_v57 = vpop.f32.mrf.mxu1 }
 0xa0b   :  { %v3809_v41 = vadd.f32 %v3808_v57, %v3760_v39 }
 0xa0d   :  { %v3857_v5 = vpop.f32.mrf.mxu2 }
 0xa0e   :  { %v3761_v49 = vpop.f32.mrf.mxu0  ;;  %v3858_v19 = vadd.f32 %v3857_v5, %v3809_v41 }
 0xa0f   :  { %v3762_v34 = vadd.f32 %v12187_v20, %v3761_v49 }
 0xa10   :  { %v3913_v50 = vmul.f32 0.01, %v3858_v19  ;;  %vm3897_vm13 = vcmp.ge.f32.partialorder %v3858_v19, 0.0 }
 0xa12   :  { %v3810_v40 = vpop.f32.mrf.mxu1  ;;  %v3929_v51 = vsel %vm3897_vm13, %v3858_v19, %v3913_v50 }
 0xa13   :  { %v3811_v10 = vadd.f32 %v3810_v40, %v3762_v34  ;;  %v3945_v37 = vsel %vm2835_vm0, %v3929_v51, 0.0 }
 0xa15   :  { %v3859_v17 = vpop.f32.mrf.mxu2 }
 0xa16   :  { %v3764_v60 = vpop.f32.mrf.mxu0  ;;  %v3860_v18 = vadd.f32 %v3859_v17, %v3811_v10 }
 0xa17   :  { %v3765_v62 = vadd.f32 %v12187_v20, %v3764_v60 }
 0xa18   :  { %v3914_v16 = vmul.f32 0.01, %v3860_v18  ;;  %vm3898_vm12 = vcmp.ge.f32.partialorder %v3860_v18, 0.0 }
 0xa1a   :  { %v3813_v21 = vpop.f32.mrf.mxu1  ;;  %v3930_v15 = vsel %vm3898_vm12, %v3860_v18, %v3914_v16 }
 0xa1b   :  { %v3814_v52 = vadd.f32 %v3813_v21, %v3765_v62  ;;  %v3946_v38 = vsel %vm2835_vm0, %v3930_v15, 0.0 }
 0xa1c   :  { %v3947_v45 = vadd.f32 %v3946_v38, %v3945_v37 }
 0xa1d   :  { %v3862_v42 = vpop.f32.mrf.mxu2 }
 0xa1e   :  { %v3766_v55 = vpop.f32.mrf.mxu0  ;;  %v3863_v46 = vadd.f32 %v3862_v42, %v3814_v52 }
 0xa1f   :  { %v3767_v47 = vadd.f32 %v12187_v20, %v3766_v55 }
 0xa20   :  { %v3915_v3 = vmul.f32 0.01, %v3863_v46  ;;  %vm3899_vm15 = vcmp.ge.f32.partialorder %v3863_v46, 0.0 }
 0xa22   :  { %v3815_v61 = vpop.f32.mrf.mxu1  ;;  %v3931_v44 = vsel %vm3899_vm15, %v3863_v46, %v3915_v3 }
 0xa23   :  { %v3816_v7 = vadd.f32 %v3815_v61, %v3767_v47  ;;  %v3948_v14 = vsel %vm2835_vm0, %v3931_v44, 0.0 }
 0xa24   :  { %v3949_v63 = vadd.f32 %v3948_v14, %v3947_v45 }
 0xa25   :  { %v3864_v28 = vpop.f32.mrf.mxu2 }
 0xa26   :  { %v3769_v2 = vpop.f32.mrf.mxu0  ;;  %v3865_v59 = vadd.f32 %v3864_v28, %v3816_v7 }
 0xa27   :  { %v3770_v56 = vadd.f32 %v12187_v20, %v3769_v2 }
 0xa28   :  { %v3916_v54 = vmul.f32 0.01, %v3865_v59  ;;  %vm3900_vm1 = vcmp.ge.f32.partialorder %v3865_v59, 0.0 }
 0xa2a   :  { %v3818_v53 = vpop.f32.mrf.mxu1  ;;  %v3932_v23 = vsel %vm3900_vm1, %v3865_v59, %v3916_v54 }
 0xa2b   :  { %v3819_v12 = vadd.f32 %v3818_v53, %v3770_v56  ;;  %v3950_v27 = vsel %vm2835_vm0, %v3932_v23, 0.0 }
 0xa2c   :  { %v3951_v40 = vadd.f32 %v3950_v27, %v3949_v63 }
 0xa2d   :  { %v3867_v8 = vpop.f32.mrf.mxu2 }
 0xa2e   :  { %v3771_v31 = vpop.f32.mrf.mxu0  ;;  %v3868_v4 = vadd.f32 %v3867_v8, %v3819_v12 }
 0xa2f   :  { %v3772_v36 = vadd.f32 %v12187_v20, %v3771_v31 }
 0xa30   :  { %v3917_v30 = vmul.f32 0.01, %v3868_v4  ;;  %vm3901_vm2 = vcmp.ge.f32.partialorder %v3868_v4, 0.0 }
 0xa32   :  { %v3820_v25 = vpop.f32.mrf.mxu1  ;;  %v3933_v13 = vsel %vm3901_vm2, %v3868_v4, %v3917_v30 }
 0xa33   :  { %v3821_v22 = vadd.f32 %v3820_v25, %v3772_v36  ;;  %v3952_v57 = vsel %vm2835_vm0, %v3933_v13, 0.0  ;;  %v12541_v36 = vld [vmem:[#allocation6_spill] sm:$0xff] }
 0xa34   :  { %v3953_v55 = vadd.f32 %v3952_v57, %v3951_v40 }
 0xa35   :  { %v3869_v58 = vpop.f32.mrf.mxu2 }
 0xa36   :  { %v3774_v43 = vpop.f32.mrf.mxu0  ;;  %v3870_v29 = vadd.f32 %v3869_v58, %v3821_v22 }
 0xa37   :  { %v3775_v0 = vadd.f32 %v12187_v20, %v3774_v43 }
 0xa38   :  { %v3918_v24 = vmul.f32 0.01, %v3870_v29  ;;  %vm3902_vm3 = vcmp.ge.f32.partialorder %v3870_v29, 0.0 }
 0xa3a   :  { %v3823_v9 = vpop.f32.mrf.mxu1  ;;  %v3934_v35 = vsel %vm3902_vm3, %v3870_v29, %v3918_v24 }
 0xa3b   :  { %v3824_v6 = vadd.f32 %v3823_v9, %v3775_v0  ;;  %v3954_v17 = vsel %vm2835_vm0, %v3934_v35, 0.0 }
 0xa3c   :  { %v3955_v2 = vadd.f32 %v3954_v17, %v3953_v55 }
 0xa3d   :  { %v3872_v48 = vpop.f32.mrf.mxu2 }
 0xa3e   :  { %v3873_v33 = vadd.f32 %v3872_v48, %v3824_v6  ;;  %v3776_v26 = vpop.f32.mrf.mxu0 }
 0xa3f   :  { %v3777_v1 = vadd.f32 %v12187_v20, %v3776_v26 }
 0xa40   :  { %v3919_v32 = vmul.f32 0.01, %v3873_v33  ;;  %vm3903_vm4 = vcmp.ge.f32.partialorder %v3873_v33, 0.0 }
 0xa42   :  { %v3825_v11 = vpop.f32.mrf.mxu1  ;;  %v3935_v49 = vsel %vm3903_vm4, %v3873_v33, %v3919_v32 }
 0xa43   :  { %v3826_v5 = vadd.f32 %v3825_v11, %v3777_v1  ;;  %v3956_v61 = vsel %vm2835_vm0, %v3935_v49, 0.0 }
 0xa44   :  { %v3957_v34 = vadd.f32 %v3956_v61, %v3955_v2 }
 0xa45   :  { %v3874_v60 = vpop.f32.mrf.mxu2 }
 0xa46   :  { %v3875_v21 = vadd.f32 %v3874_v60, %v3826_v5  ;;  %v3779_v42 = vpop.f32.mrf.mxu0 }
 0xa47   :  { %v3780_v5 = vadd.f32 %v12187_v20, %v3779_v42 }
 0xa48   :  { %vm3904_vm7 = vcmp.ge.f32.partialorder %v3875_v21, 0.0  ;;  %v3920_v28 = vmul.f32 0.01, %v3875_v21 }
 0xa4a   :  { %v3936_v53 = vsel %vm3904_vm7, %v3875_v21, %v3920_v28  ;;  %v3828_v39 = vpop.f32.mrf.mxu1 }
 0xa4b   :  { %v3958_v62 = vsel %vm2835_vm0, %v3936_v53, 0.0 }
 0xa4c   :  { %v3959_v8 = vadd.f32 %v3958_v62, %v3957_v34 }
 0xa4d   :  { %v12205_v10 = vpop.f32.mrf.mxu2 }
 0xa4e   :  { %v3781_v31 = vpop.f32.mrf.mxu0  ;;  %v3960_v41 = vrot.slane %v3959_v8, 4 }
 0xa4f   :  { %v3782_v40 = vadd.f32 %v12187_v20, %v3781_v31 }
 0xa50   :  { %v3961_v52 = vadd.f32 %v3960_v41, %v3959_v8 }
 0xa52   :  { %v3830_v47 = vpop.f32.mrf.mxu1  ;;  %v3962_v56 = vrot.slane %v3961_v52, 2 }
 0xa53   :  { %v3831_v61 = vadd.f32 %v3830_v47, %v3782_v40 }
 0xa54   :  { %v3963_v18 = vadd.f32 %v3962_v56, %v3961_v52 }
 0xa55   :  { %v3879_v7 = vpop.f32.mrf.mxu2 }
 0xa56   :  { %v3784_v25 = vpop.f32.mrf.mxu0  ;;  %v3964_v19 = vrot.slane %v3963_v18, 1  ;;  %v3880_v41 = vadd.f32 %v3879_v7, %v3831_v61 }
 0xa57   :  { %v3785_v17 = vadd.f32 %v12187_v20, %v3784_v25 }
 0xa58   :  { %v3965_v46 = vadd.f32 %v3964_v19, %v3963_v18  ;;  %vm3906_vm8 = vcmp.ge.f32.partialorder %v3880_v41, 0.0 }
 0xa5a   :  { %v3833_v12 = vpop.f32.mrf.mxu1  ;;  %v3966_v58 = vmul.f32 %v3965_v46, %v12541_v36 }
 0xa5b   :  { %v3834_v34 = vadd.f32 %v3833_v12, %v3785_v17 }
 0xa5c   :  { %v12208_v16 = vsub.f32 %v3929_v51, %v3966_v58  ;;  %v12210_v59 = vsub.f32 %v3930_v15, %v3966_v58  ;;  %v12212_v22 = vsub.f32 %v3931_v44, %v3966_v58  ;;  %v12214_v0 = vsub.f32 %v3932_v23, %v3966_v58 }
 0xa5d   :  { %v3882_v43 = vpop.f32.mrf.mxu2  ;;  %v12220_v54 = vsub.f32 %v3933_v13, %v3966_v58  ;;  %v12224_v9 = vsub.f32 %v3934_v35, %v3966_v58  ;;  %v12230_v38 = vsub.f32 %v3935_v49, %v3966_v58  ;;  %v12235_v26 = vsub.f32 %v3936_v53, %v3966_v58 }
 0xa5e   :  { %v3786_v50 = vpop.f32.mrf.mxu0  ;;  %v3975_v3 = vmul.f32 %v12208_v16, %v12208_v16  ;;  %v3976_v4 = vmul.f32 %v12210_v59, %v12210_v59  ;;  %v3977_v29 = vmul.f32 %v12212_v22, %v12212_v22  ;;  %v3978_v15 = vmul.f32 %v12214_v0, %v12214_v0 }
 0xa5f   :  { %v3979_v48 = vmul.f32 %v12220_v54, %v12220_v54  ;;  %v3980_v14 = vmul.f32 %v12224_v9, %v12224_v9  ;;  %v3981_v45 = vmul.f32 %v12230_v38, %v12230_v38  ;;  %v3982_v35 = vmul.f32 %v12235_v26, %v12235_v26 }
 0xa60   :  { %v3983_v6 = vsel %vm2835_vm0, %v3975_v3, 0.0  ;;  %v3984_v44 = vsel %vm2835_vm0, %v3976_v4, 0.0  ;;  %v3986_v23 = vsel %vm2835_vm0, %v3977_v29, 0.0  ;;  %v3988_v37 = vsel %vm2835_vm0, %v3978_v15, 0.0 }
 0xa61   :  { %v3985_v51 = vadd.f32 %v3984_v44, %v3983_v6  ;;  %v3990_v27 = vsel %vm2835_vm0, %v3979_v48, 0.0  ;;  %v3992_v11 = vsel %vm2835_vm0, %v3980_v14, 0.0  ;;  %v3994_v49 = vsel %vm2835_vm0, %v3981_v45, 0.0 }
 0xa62   :  { %v3835_v30 = vpop.f32.mrf.mxu1  ;;  %v3996_v55 = vsel %vm2835_vm0, %v3982_v35, 0.0  ;;  %v3829_v53 = vadd.f32 %v3828_v39, %v3780_v5  ;;  %v3787_v62 = vadd.f32 %v12187_v20, %v3786_v50  ;;  %v3883_v25 = vadd.f32 %v3882_v43, %v3834_v34 }
 0xa63   :  { %v3987_v24 = vadd.f32 %v3986_v23, %v3985_v51  ;;  %v3922_v3 = vmul.f32 0.01, %v3880_v41 }
 0xa64   :  { %v3836_v52 = vadd.f32 %v3835_v30, %v3787_v62  ;;  %v3878_v18 = vadd.f32 %v12205_v10, %v3829_v53  ;;  %v3923_v15 = vmul.f32 0.01, %v3883_v25  ;;  %vm3907_vm10 = vcmp.ge.f32.partialorder %v3883_v25, 0.0 }
 0xa65   :  { %v3884_v33 = vpop.f32.mrf.mxu2  ;;  %v3989_v32 = vadd.f32 %v3988_v37, %v3987_v24  ;;  %v12256_v10 = vsel %vm3906_vm8, %v3880_v41, %v3922_v3 }
 0xa66   :  { %v3789_v13 = vpop.f32.mrf.mxu0  ;;  %v3885_v39 = vadd.f32 %v3884_v33, %v3836_v52  ;;  %v3921_v7 = vmul.f32 0.01, %v3878_v18  ;;  %vm3905_vm9 = vcmp.ge.f32.partialorder %v3878_v18, 0.0  ;;  %v12258_v33 = vsel %vm3907_vm10, %v3883_v25, %v3923_v15 }
 0xa67   :  { %v3991_v1 = vadd.f32 %v3990_v27, %v3989_v32  ;;  %v3790_v8 = vadd.f32 %v12187_v20, %v3789_v13  ;;  %v4025_v13 = vsel %vm2835_vm0, %v12256_v10, 0.0 }
 0xa68   :  { %v3924_v43 = vmul.f32 0.01, %v3885_v39  ;;  %vm3908_vm11 = vcmp.ge.f32.partialorder %v3885_v39, 0.0  ;;  %v3937_v24 = vsel %vm3905_vm9, %v3878_v18, %v3921_v7 }
 0xa69   :  { %v3993_v57 = vadd.f32 %v3992_v11, %v3991_v1 }
 0xa6a   :  { %v3838_v63 = vpop.f32.mrf.mxu1  ;;  %v3940_v45 = vsel %vm3908_vm11, %v3885_v39, %v3924_v43 }
 0xa6b   :  { %v3995_v60 = vadd.f32 %v3994_v49, %v3993_v57  ;;  %v3839_v19 = vadd.f32 %v3838_v63, %v3790_v8  ;;  %v4024_v63 = vsel %vm2835_vm0, %v3937_v24, 0.0  ;;  %v4027_v57 = vsel %vm2835_vm0, %v12258_v33, 0.0 }
 0xa6c   :  { %v4026_v5 = vadd.f32 %v4025_v13, %v4024_v63  ;;  %v4029_v17 = vsel %vm2835_vm0, %v3940_v45, 0.0 }
 0xa6d   :  { %v3887_v21 = vpop.f32.mrf.mxu2  ;;  %v3997_v2 = vadd.f32 %v3996_v55, %v3995_v60 }
 0xa6e   :  { %v3791_v28 = vpop.f32.mrf.mxu0  ;;  %v3888_v6 = vadd.f32 %v3887_v21, %v3839_v19  ;;  %v4028_v21 = vadd.f32 %v4027_v57, %v4026_v5 }
 0xa6f   :  { %v3998_v42 = vrot.slane %v3997_v2, 4  ;;  %v3792_v46 = vadd.f32 %v12187_v20, %v3791_v28 }
 0xa70   :  { %v3925_v14 = vmul.f32 0.01, %v3888_v6  ;;  %vm3909_vm14 = vcmp.ge.f32.partialorder %v3888_v6, 0.0  ;;  %v4030_v53 = vadd.f32 %v4029_v17, %v4028_v21 }
 0xa71   :  { %v3999_v31 = vadd.f32 %v3998_v42, %v3997_v2 }
 0xa72   :  { %v3840_v56 = vpop.f32.mrf.mxu1  ;;  %v3941_v49 = vsel %vm3909_vm14, %v3888_v6, %v3925_v14 }
 0xa73   :  { %v4000_v47 = vrot.slane %v3999_v31, 2  ;;  %v3841_v12 = vadd.f32 %v3840_v56, %v3792_v46  ;;  %v4031_v28 = vsel %vm2835_vm0, %v3941_v49, 0.0 }
 0xa74   :  { %v4032_v41 = vadd.f32 %v4031_v28, %v4030_v53 }
 0xa75   :  { %v3889_v58 = vpop.f32.mrf.mxu2  ;;  %v4001_v50 = vadd.f32 %v4000_v47, %v3999_v31 }
 0xa76   :  { %v3794_v4 = vpop.f32.mrf.mxu0  ;;  %v3890_v30 = vadd.f32 %v3889_v58, %v3841_v12 }
 0xa77   :  { %v3795_v29 = vadd.f32 %v12187_v20, %v3794_v4  ;;  %v4002_v44 = vrot.slane %v4001_v50, 1 }
 0xa78   :  { %v3926_v27 = vmul.f32 0.01, %v3890_v30  ;;  %vm3910_vm12 = vcmp.ge.f32.partialorder %v3890_v30, 0.0 }
 0xa79   :  { %v4003_v48 = vadd.f32 %v4002_v44, %v4001_v50 }
 0xa7a   :  { %v3843_v51 = vpop.f32.mrf.mxu1  ;;  %v3942_v55 = vsel %vm3910_vm12, %v3890_v30, %v3926_v27 }
 0xa7b   :  { %v3844_v23 = vadd.f32 %v3843_v51, %v3795_v29  ;;  %v4004_v37 = vmul.f32 %v4003_v48, %v12541_v36  ;;  %v4033_v62 = vsel %vm2835_vm0, %v3942_v55, 0.0 }
 0xa7c   :  { %v4034_v18 = vadd.f32 %v4033_v62, %v4032_v41 }
 0xa7d   :  { %v3892_v32 = vpop.f32.mrf.mxu2  ;;  %v4005_v11 = vadd.f32 1e-05, %v4004_v37 }
 0xa7e   :  { %v3893_v1 = vadd.f32 %v3892_v32, %v3844_v23  ;;  %v3796_v35 = vpop.f32.mrf.mxu0 }
 0xa7f   :  { %9346 = vrsqrt.f32 %v4005_v11  ;;  %v3797_v60 = vadd.f32 %v12187_v20, %v3796_v35  ;;  %vm4012_vm2 = vweird.f32 %v4005_v11 }
 0xa80   :  { %v3927_v40 = vmul.f32 0.01, %v3893_v1  ;;  %vm3911_vm13 = vcmp.ge.f32.partialorder %v3893_v1, 0.0 }
 0xa82   :  { %v3845_v61 = vpop.f32.mrf.mxu1  ;;  %v3943_v34 = vsel %vm3911_vm13, %v3893_v1, %v3927_v40 }
 0xa83   :  { %v3846_v2 = vadd.f32 %v3845_v61, %v3797_v60  ;;  %v4035_v56 = vsel %vm2835_vm0, %v3943_v34, 0.0 }
 0xa84   :  { %v4036_v19 = vadd.f32 %v4035_v56, %v4034_v18 }
 0xa85   :  { %v3894_v8 = vpop.f32.mrf.mxu2  ;;  %v9347_v42 = vpop.eup %9346 }
 0xa86   :  { %v3895_v52 = vadd.f32 %v3894_v8, %v3846_v2  ;;  %v4007_v31 = vmul.f32 %v9347_v42, %v4005_v11  ;;  %vm4013_vm1 = vweird.f32 %v9347_v42 }
 0xa87   :  { %vm4014_vm3 = vmor %vm4012_vm2, %vm4013_vm1 }
 0xa88   :  { %vm3912_vm15 = vcmp.ge.f32.partialorder %v3895_v52, 0.0  ;;  %v3928_v20 = vmul.f32 0.01, %v3895_v52  ;;  %v4008_v25 = vmul.f32 %v9347_v42, %v4007_v31 }
 0xa8a   :  { %v3944_v46 = vsel %vm3912_vm15, %v3895_v52, %v3928_v20  ;;  %v4009_v58 = vmul.f32 0.5, %v4008_v25 }
 0xa8b   :  { %v4037_v47 = vsel %vm2835_vm0, %v3944_v46, 0.0 }
 0xa8c   :  { %v4038_v3 = vadd.f32 %v4037_v47, %v4036_v19  ;;  %v4010_v39 = vsub.f32 1.5, %v4009_v58 }
 0xa8e   :  { %v4039_v12 = vrot.slane %v4038_v3, 4  ;;  %v4011_v4 = vmul.f32 %v9347_v42, %v4010_v39 }
 0xa90   :  { %v4040_v50 = vadd.f32 %v4039_v12, %v4038_v3  ;;  %v12272_v29 = vsel %vm4014_vm3, %v9347_v42, %v4011_v4 }
 0xa91   :  { %v4016_v15 = vmul.f32 %v12272_v29, %v12208_v16  ;;  %v4017_v51 = vmul.f32 %v12272_v29, %v12210_v59  ;;  %v4018_v1 = vmul.f32 %v12272_v29, %v12212_v22  ;;  %v4019_v2 = vmul.f32 %v12272_v29, %v12214_v0 }
 0xa92   :  { %v4041_v7 = vrot.slane %v4040_v50, 2  ;;  %v4020_v52 = vmul.f32 %v12272_v29, %v12220_v54  ;;  %v4021_v0 = vmul.f32 %v12272_v29, %v12224_v9  ;;  %v4023_v3 = vmul.f32 %v12272_v29, %v12235_v26 }
 0xa93   :  { %4138 = vxpose.xlu2.b32.start [1/16] (narrow) %v4016_v15, 24 }
 0xa94   :  { %v4042_v6 = vadd.f32 %v4041_v7, %v4040_v50 }
 0xa96   :  { %v4043_v44 = vrot.slane %v4042_v6, 1 }
 0xa98   :  { %v4044_v43 = vadd.f32 %v4043_v44, %v4042_v6  ;;  %v4119_v44 = vpop.trf.xlu0 }
 0xa9a   :  { %v4045_v30 = vmul.f32 %v4044_v43, %v12541_v36 }
 0xa9b   :  { %4139 = vxpose.xlu2.b32.cont [2/16] (narrow) %v4017_v51, 24 }
 0xa9c   :  { %v12279_v48 = vsub.f32 %v3937_v24, %v4045_v30  ;;  %v12282_v23 = vsub.f32 %v12256_v10, %v4045_v30  ;;  %v12285_v14 = vsub.f32 %v12258_v33, %v4045_v30  ;;  %v12287_v37 = vsub.f32 %v3940_v45, %v4045_v30 }
 0xa9d   :  { %v12289_v16 = vsub.f32 %v3941_v49, %v4045_v30  ;;  %v12297_v24 = vsub.f32 %v3942_v55, %v4045_v30  ;;  %v4052_v35 = vsub.f32 %v3943_v34, %v4045_v30  ;;  %v4053_v5 = vsub.f32 %v3944_v46, %v4045_v30 }
 0xa9e   :  { %v4054_v13 = vmul.f32 %v12279_v48, %v12279_v48  ;;  %v4055_v32 = vmul.f32 %v12282_v23, %v12282_v23  ;;  %v4056_v59 = vmul.f32 %v12285_v14, %v12285_v14  ;;  %v4057_v10 = vmul.f32 %v12287_v37, %v12287_v37 }
 0xa9f   :  { %v4058_v11 = vmul.f32 %v12289_v16, %v12289_v16  ;;  %v4059_v49 = vmul.f32 %v12297_v24, %v12297_v24  ;;  %v4060_v60 = vmul.f32 %v4052_v35, %v4052_v35  ;;  %v4061_v22 = vmul.f32 %v4053_v5, %v4053_v5 }
 0xaa0   :  { %v4062_v33 = vsel %vm2835_vm0, %v4054_v13, 0.0  ;;  %v4063_v45 = vsel %vm2835_vm0, %v4055_v32, 0.0  ;;  %v4065_v63 = vsel %vm2835_vm0, %v4056_v59, 0.0  ;;  %v4067_v40 = vsel %vm2835_vm0, %v4057_v10, 0.0  ;;  %v4120_v43 = vpop.trf.xlu0  ;;  %v8556_v10 = vld [vmem:[%s12473_s15] sm:$0xff] }
 0xaa1   :  { %v4064_v27 = vadd.f32 %v4063_v45, %v4062_v33  ;;  %v4069_v21 = vsel %vm2835_vm0, %v4058_v11, 0.0  ;;  %v4071_v61 = vsel %vm2835_vm0, %v4059_v49, 0.0  ;;  %v4073_v53 = vsel %vm2835_vm0, %v4060_v60, 0.0 }
 0xaa2   :  { %v4075_v62 = vsel %vm2835_vm0, %v4061_v22, 0.0  ;;  %v4022_v46 = vmul.f32 %v12272_v29, %v12230_v38  ;;  %v4135_v45 = vpack.c.bf16 %v4120_v43, %v4119_v44 }
 0xaa3   :  { %v4066_v57 = vadd.f32 %v4065_v63, %v4064_v27  ;;  %4140 = vxpose.xlu2.b32.cont [3/16] (narrow) %v4018_v1, 24  ;;  %v8557_v27 = vld [vmem:[%s12473_s15 + $0x8] sm:$0xff]  ;;  %v4181_v1 = vld [vmem:[%s12473_s15 + $0x10] sm:$0x3]  ;;  %v8554_v63 = vld [vmem:[%s12472_s14] sm:$0xff] }
 0xaa5   :  { %v4068_v17 = vadd.f32 %v4067_v40, %v4066_v57  ;;  %v8555_v57 = vld [vmem:[%s12472_s14 + $0x8] sm:$0xff] }
 0xaa7   :  { %v4070_v55 = vadd.f32 %v4069_v21, %v4068_v17 }
 0xaa8   :  { %v4121_v30 = vpop.trf.xlu0 }
 0xaa9   :  { %v4072_v28 = vadd.f32 %v4071_v61, %v4070_v55 }
 0xaab   :  { %v4074_v34 = vadd.f32 %v4073_v53, %v4072_v28  ;;  %4141 = vxpose.xlu2.b32.cont [4/16] (narrow) %v4019_v2, 24 }
 0xaad   :  { %v4076_v8 = vadd.f32 %v4075_v62, %v4074_v34 }
 0xaaf   :  { %v4077_v42 = vrot.slane %v4076_v8, 4 }
 0xab0   :  { %v4122_v51 = vpop.trf.xlu0 }
 0xab1   :  { %v4078_v41 = vadd.f32 %v4077_v42, %v4076_v8  ;;  %v4136_v33 = vpack.c.bf16 %v4122_v51, %v4121_v30 }
 0xab3   :  { %v4079_v56 = vrot.slane %v4078_v41, 2  ;;  %4142 = vxpose.xlu2.b32.cont [5/16] (narrow) %v4020_v52, 24 }
 0xab5   :  { %v4080_v31 = vadd.f32 %v4079_v56, %v4078_v41 }
 0xab7   :  { %v4081_v18 = vrot.slane %v4080_v31, 1 }
 0xab9   :  { %v4082_v20 = vadd.f32 %v4081_v18, %v4080_v31 }
 0xabb   :  { %v4083_v25 = vmul.f32 %v4082_v20, %v12541_v36  ;;  %4143 = vxpose.xlu2.b32.cont [6/16] (narrow) %v4021_v0, 24 }
 0xabd   :  { %v4084_v19 = vadd.f32 1e-05, %v4083_v25 }
 0xabf   :  { %9348 = vrsqrt.f32 %v4084_v19  ;;  %vm4091_vm7 = vweird.f32 %v4084_v19 }
 0xac3   :  { %4144 = vxpose.xlu2.b32.cont [7/16] (narrow) %v4022_v46, 24 }
 0xac5   :  { %v9349_v47 = vpop.eup %9348 }
 0xac6   :  { %v4086_v58 = vmul.f32 %v9349_v47, %v4084_v19  ;;  %vm4092_vm4 = vweird.f32 %v9349_v47 }
 0xac7   :  { %vm4093_vm8 = vmor %vm4091_vm7, %vm4092_vm4 }
 0xac8   :  { %v4087_v54 = vmul.f32 %v9349_v47, %v4086_v58 }
 0xaca   :  { %v4088_v39 = vmul.f32 0.5, %v4087_v54 }
 0xacb   :  { %4145 = vxpose.xlu2.b32.cont [8/16] (narrow) %v4023_v3, 24 }
 0xacc   :  { %v4089_v12 = vsub.f32 1.5, %v4088_v39 }
 0xace   :  { %v4090_v9 = vmul.f32 %v9349_v47, %v4089_v12 }
 0xad0   :  { %v4094_v36 = vsel %vm4093_vm8, %v9349_v47, %v4090_v9 }
 0xad1   :  { %v4095_v4 = vmul.f32 %v4094_v36, %v12279_v48  ;;  %v4096_v38 = vmul.f32 %v4094_v36, %v12282_v23  ;;  %v4097_v50 = vmul.f32 %v4094_v36, %v12285_v14  ;;  %v4098_v7 = vmul.f32 %v4094_v36, %v12287_v37  ;;  %v4123_v14 = vpop.trf.xlu0 }
 0xad2   :  { %v4099_v26 = vmul.f32 %v4094_v36, %v12289_v16  ;;  %v4100_v29 = vmul.f32 %v4094_v36, %v12297_v24  ;;  %v4101_v15 = vmul.f32 %v4094_v36, %v4052_v35  ;;  %v4102_v6 = vmul.f32 %v4094_v36, %v4053_v5  ;;  %v4176_v5 = vld [vmem:[%s12472_s14 + $0x10] sm:$0x3] }
 0xad3   :  { %4146 = vxpose.xlu2.b32.cont [9/16] (narrow) %v4095_v4, 24  ;;  %v4191_v35 = vunpack.c.l.b16 %v4181_v1  ;;  %v4239_v49 = vunpack.c.l.b16 %v4176_v5 }
 0xad5   :  { %v4194_v11 = vpack.c.b16 %v4191_v35, %v4191_v35  ;;  %v4242_v40 = vpack.c.b16 %v4239_v49, %v4239_v49 }
 0xad9   :  { %v4124_v32 = vpop.trf.xlu0 }
 0xada   :  { %v4137_v59 = vpack.c.bf16 %v4124_v32, %v4123_v14 }
 0xadb   :  { %4147 = vxpose.xlu2.b32.cont [10/16] (narrow) %v4096_v38, 24 }
 0xae3   :  { %4148 = vxpose.xlu2.b32.cont [11/16] (narrow) %v4097_v50, 24 }
 0xaeb   :  { %4149 = vxpose.xlu2.b32.cont [12/16] (narrow) %v4098_v7, 24 }
 0xaf3   :  { %4150 = vxpose.xlu2.b32.cont [13/16] (narrow) %v4099_v26, 24 }
 0xafb   :  { %4151 = vxpose.xlu2.b32.cont [14/16] (narrow) %v4100_v29, 24 }
 0xb03   :  { %4152 = vxpose.xlu2.b32.cont [15/16] (narrow) %v4101_v15, 24 }
 0xb0b   :  { %4153 = vxpose.xlu2.b32.end [16/16] (narrow) %v4102_v6, 24 }
 0xb2c   :  { %v4154_v48 = vpop.trf.xlu2 }
 0xb34   :  { %v4155_v23 = vpop.trf.xlu2 }
 0xb35   :  { %v4170_v24 = vpack.c.bf16 %v4155_v23, %v4154_v48 }
 0xb3c   :  { %v4156_v13 = vpop.trf.xlu2 }
 0xb3d   :  { %v4171_v37 = vpack.c.bf16 %v4156_v13, %v4156_v13 }
 0xb3f   :  { %v4205_v16 = vsel %vm2758_vm5, %v4171_v37, 0 }
 0xb40   :  { %4213 = vmatpush.bf16.msra.mxu3 %v4205_v16 }
 0xb44   :  { %4214 = vmatpush.bf16.msra.mxu3 %v4170_v24 }
 0xb47   :  { %7246 = vmatmul.msk.bf16.vlgmr.msra.gmra.mxu3 %vm2835_vm0, %v8556_v10 }
 0xb48   :  { %4257 = vmatpush.bf16.msrb.mxu3 %v4137_v59 }
 0xb4c   :  { %4258 = vmatpush.bf16.msrb.mxu3 %v4136_v33 }
 0xb50   :  { %4259 = vmatpush.bf16.msrb.mxu3 %v4135_v45 }
 0xb57   :  { %7247 = vmatmul.msk.bf16.gmra.mxu3 %vm2835_vm0, %v8557_v27 }
 0xb67   :  { %7248 = vmatmul.msk.bf16.gmra.mxu3 %vm2835_vm0, %v4194_v11 }
 0xb77   :  { %7257 = vmatmul.msk.bf16.vlgmr.msrb.gmra.mxu3 %vm854_vm6, %v8554_v63 }
 0xb87   :  { %7258 = vmatmul.msk.bf16.gmra.mxu3 %vm854_vm6, %v8555_v57 }
 0xb97   :  { %7259 = vmatmul.msk.bf16.gmra.mxu3 %vm854_vm6, %v4242_v40 }
 0xbca   :  { %v4216_v17 = vpop.f32.mrf.mxu3 }
 0xbd2   :  { %v4218_v60 = vpop.f32.mrf.mxu3 }
 0xbda   :  { %v4221_v21 = vpop.f32.mrf.mxu3 }
 0xbe2   :  { %v4223_v55 = vpop.f32.mrf.mxu3 }
 0xbea   :  { %v4226_v22 = vpop.f32.mrf.mxu3 }
 0xbf2   :  { %v4228_v61 = vpop.f32.mrf.mxu3 }
 0xbfa   :  { %v4261_v28 = vpop.f32.mrf.mxu3 }
 0xbfb   :  { %v4262_v2 = vadd.f32 %v4261_v28, %v4216_v17 }
 0xbfd   :  { %v4276_v53 = vrot.slane %v4262_v2, 4  ;;  %v12357_v34 = vpack.c.bf16 %v4262_v2, %v4262_v2 }
 0xbff   :  { %v12359_v62 = vpack.c.bf16 %v4276_v53, %v4276_v53 }
 0xc02   :  { %v4263_v8 = vpop.f32.mrf.mxu3 }
 0xc03   :  { %v4264_v42 = vadd.f32 %v4263_v8, %v4218_v60 }
 0xc05   :  { %v4279_v41 = vrot.slane %v4264_v42, 4  ;;  %v12361_v52 = vpack.c.bf16 %v4264_v42, %v4264_v42 }
 0xc07   :  { %v12363_v56 = vpack.c.bf16 %v4279_v41, %v4279_v41 }
 0xc0a   :  { %v4266_v31 = vpop.f32.mrf.mxu3 }
 0xc0b   :  { %v4267_v18 = vadd.f32 %v4266_v31, %v4221_v21 }
 0xc0d   :  { %v4282_v20 = vrot.slane %v4267_v18, 4  ;;  %v12365_v0 = vpack.c.bf16 %v4267_v18, %v4267_v18 }
 0xc0f   :  { %v12367_v25 = vpack.c.bf16 %v4282_v20, %v4282_v20 }
 0xc12   :  { %v4268_v19 = vpop.f32.mrf.mxu3 }
 0xc13   :  { %v4269_v46 = vadd.f32 %v4268_v19, %v4223_v55 }
 0xc15   :  { %v4285_v47 = vrot.slane %v4269_v46, 4  ;;  %v12369_v58 = vpack.c.bf16 %v4269_v46, %v4269_v46 }
 0xc17   :  { %v12371_v54 = vpack.c.bf16 %v4285_v47, %v4285_v47 }
 0xc1a   :  { %v4271_v3 = vpop.f32.mrf.mxu3 }
 0xc1b   :  { %v4272_v39 = vadd.f32 %v4271_v3, %v4226_v22 }
 0xc1d   :  { %v12373_v12 = vpack.c.bf16 %v4272_v39, %v4272_v39 }
 0xc22   :  { %v4273_v9 = vpop.f32.mrf.mxu3 }
 0xc23   :  { %9367 = dma.done.wait [#allocation3], 36864 }
 0xc24   :  { %9368 = vsyncadd [#allocation3], 4294930432  ;;  %v7374_v36 = vld [vmem:[#allocation2 + $0xe0] sm:$0xf]  ;;  %v8588_v4 = vld [vmem:[#allocation2 + $0xec] sm:$0xf0] }
 0xc25   :  { %v7502_v38 = vld [vmem:[#allocation2 + $0x1e0] sm:$0xf]  ;;  %v7375_v50 = vor.u32 %v8588_v4, %v7374_v36  ;;  %v8620_v7 = vld [vmem:[#allocation2 + $0x1ec] sm:$0xf0] }
 0xc26   :  { %v7758_v26 = vld [vmem:[#allocation2 + $0x3e0] sm:$0xf]  ;;  %v8684_v29 = vld [vmem:[#allocation2 + $0x3ec] sm:$0xf0]  ;;  %v7503_v15 = vor.u32 %v8620_v7, %v7502_v38 }
 0xc27   :  { %v7759_v6 = vor.u32 %v8684_v29, %v7758_v26  ;;  %v7630_v44 = vld [vmem:[#allocation2 + $0x2e0] sm:$0xf]  ;;  %v8652_v43 = vld [vmem:[#allocation2 + $0x2ec] sm:$0xf0]  ;;  %6034 = vmatpush.bf16.msra.mxu3 %v7375_v50 }
 0xc28   :  { %v7358_v30 = vld [vmem:[#allocation2 + $0xc0] sm:$0xf]  ;;  %v7631_v51 = vor.u32 %v8652_v43, %v7630_v44  ;;  %v8584_v48 = vld [vmem:[#allocation2 + $0xcc] sm:$0xf0]  ;;  %6047 = vmatpush.bf16.msra.mxu0 %v7503_v15 }
 0xc29   :  { %v7486_v23 = vld [vmem:[#allocation2 + $0x1c0] sm:$0xf]  ;;  %v8616_v14 = vld [vmem:[#allocation2 + $0x1cc] sm:$0xf0]  ;;  %6073 = vmatpush.bf16.msra.mxu2 %v7759_v6  ;;  %v7359_v13 = vor.u32 %v8584_v48, %v7358_v30 }
 0xc2a   :  { %v7487_v37 = vor.u32 %v8616_v14, %v7486_v23  ;;  %v7742_v32 = vld [vmem:[#allocation2 + $0x3c0] sm:$0xf]  ;;  %v8680_v16 = vld [vmem:[#allocation2 + $0x3cc] sm:$0xf0]  ;;  %6060 = vmatpush.bf16.msrb.mxu1 %v7631_v51 }
 0xc2b   :  { %v7614_v59 = vld [vmem:[#allocation2 + $0x2c0] sm:$0xf]  ;;  %v7743_v24 = vor.u32 %v8680_v16, %v7742_v32  ;;  %v8648_v10 = vld [vmem:[#allocation2 + $0x2cc] sm:$0xf0]  ;;  %6035 = vmatpush.bf16.msra.mxu3 %v7359_v13 }
 0xc2c   :  { %v7342_v33 = vld [vmem:[#allocation2 + $0xa0] sm:$0xf]  ;;  %v8580_v45 = vld [vmem:[#allocation2 + $0xac] sm:$0xf0]  ;;  %v7615_v27 = vor.u32 %v8648_v10, %v7614_v59  ;;  %6048 = vmatpush.bf16.msra.mxu0 %v7487_v37 }
 0xc2d   :  { %v7470_v1 = vld [vmem:[#allocation2 + $0x1a0] sm:$0xf]  ;;  %v8612_v35 = vld [vmem:[#allocation2 + $0x1ac] sm:$0xf0]  ;;  %v7343_v63 = vor.u32 %v8580_v45, %v7342_v33  ;;  %6074 = vmatpush.bf16.msra.mxu2 %v7743_v24 }
 0xc2e   :  { %v7726_v11 = vld [vmem:[#allocation2 + $0x3a0] sm:$0xf]  ;;  %v8676_v57 = vld [vmem:[#allocation2 + $0x3ac] sm:$0xf0]  ;;  %v7471_v40 = vor.u32 %v8612_v35, %v7470_v1  ;;  %6061 = vmatpush.bf16.msrb.mxu1 %v7615_v27 }
 0xc2f   :  { %v7598_v5 = vld [vmem:[#allocation2 + $0x2a0] sm:$0xf]  ;;  %v8644_v49 = vld [vmem:[#allocation2 + $0x2ac] sm:$0xf0]  ;;  %v7727_v17 = vor.u32 %v8676_v57, %v7726_v11  ;;  %6036 = vmatpush.bf16.msra.mxu3 %v7343_v63 }
 0xc30   :  { %v7326_v60 = vld [vmem:[#allocation2 + $0x80] sm:$0xf]  ;;  %v8576_v21 = vld [vmem:[#allocation2 + $0x8c] sm:$0xf0]  ;;  %v7599_v22 = vor.u32 %v8644_v49, %v7598_v5  ;;  %6049 = vmatpush.bf16.msra.mxu0 %v7471_v40 }
 0xc31   :  { %v7454_v55 = vld [vmem:[#allocation2 + $0x180] sm:$0xf]  ;;  %v8608_v61 = vld [vmem:[#allocation2 + $0x18c] sm:$0xf0]  ;;  %v7327_v42 = vor.u32 %v8576_v21, %v7326_v60  ;;  %6075 = vmatpush.bf16.msra.mxu2 %v7727_v17 }
 0xc32   :  { %v7710_v28 = vld [vmem:[#allocation2 + $0x380] sm:$0xf]  ;;  %v8672_v2 = vld [vmem:[#allocation2 + $0x38c] sm:$0xf0]  ;;  %v7455_v41 = vor.u32 %v8608_v61, %v7454_v55  ;;  %6062 = vmatpush.bf16.msrb.mxu1 %v7599_v22 }
 0xc33   :  { %v7582_v53 = vld [vmem:[#allocation2 + $0x280] sm:$0xf]  ;;  %v8640_v8 = vld [vmem:[#allocation2 + $0x28c] sm:$0xf0]  ;;  %v7711_v31 = vor.u32 %v8672_v2, %v7710_v28  ;;  %6037 = vmatpush.bf16.msra.mxu3 %v7327_v42 }
 0xc34   :  { %v7310_v18 = vld [vmem:[#allocation2 + $0x60] sm:$0xf]  ;;  %v8572_v20 = vld [vmem:[#allocation2 + $0x6c] sm:$0xf0]  ;;  %v7583_v46 = vor.u32 %v8640_v8, %v7582_v53  ;;  %6050 = vmatpush.bf16.msra.mxu0 %v7455_v41 }
 0xc35   :  { %v7438_v19 = vld [vmem:[#allocation2 + $0x160] sm:$0xf]  ;;  %v8604_v47 = vld [vmem:[#allocation2 + $0x16c] sm:$0xf0]  ;;  %v7311_v4 = vor.u32 %v8572_v20, %v7310_v18  ;;  %6076 = vmatpush.bf16.msra.mxu2 %v7711_v31 }
 0xc36   :  { %v7694_v3 = vld [vmem:[#allocation2 + $0x360] sm:$0xf]  ;;  %v8668_v39 = vld [vmem:[#allocation2 + $0x36c] sm:$0xf0]  ;;  %v7439_v38 = vor.u32 %v8604_v47, %v7438_v19  ;;  %6063 = vmatpush.bf16.msrb.mxu1 %v7583_v46 }
 0xc37   :  { %v7566_v9 = vld [vmem:[#allocation2 + $0x260] sm:$0xf]  ;;  %v8636_v36 = vld [vmem:[#allocation2 + $0x26c] sm:$0xf0]  ;;  %v7695_v50 = vor.u32 %v8668_v39, %v7694_v3  ;;  %6038 = vmatpush.bf16.msra.mxu3 %v7311_v4 }
 0xc38   :  { %v7294_v7 = vld [vmem:[#allocation2 + $0x40] sm:$0xf]  ;;  %v8568_v26 = vld [vmem:[#allocation2 + $0x4c] sm:$0xf0]  ;;  %v7567_v15 = vor.u32 %v8636_v36, %v7566_v9  ;;  %6051 = vmatpush.bf16.msra.mxu0 %v7439_v38 }
 0xc39   :  { %v7422_v29 = vld [vmem:[#allocation2 + $0x140] sm:$0xf]  ;;  %v8600_v6 = vld [vmem:[#allocation2 + $0x14c] sm:$0xf0]  ;;  %v7295_v48 = vor.u32 %v8568_v26, %v7294_v7  ;;  %6077 = vmatpush.bf16.msra.mxu2 %v7695_v50 }
 0xc3a   :  { %v7678_v44 = vld [vmem:[#allocation2 + $0x340] sm:$0xf]  ;;  %v8664_v43 = vld [vmem:[#allocation2 + $0x34c] sm:$0xf0]  ;;  %v7423_v23 = vor.u32 %v8600_v6, %v7422_v29  ;;  %6064 = vmatpush.bf16.msrb.mxu1 %v7567_v15 }
 0xc3b   :  { %v7550_v30 = vld [vmem:[#allocation2 + $0x240] sm:$0xf]  ;;  %v8632_v51 = vld [vmem:[#allocation2 + $0x24c] sm:$0xf0]  ;;  %v7679_v14 = vor.u32 %v8664_v43, %v7678_v44  ;;  %6039 = vmatpush.bf16.msra.mxu3 %v7295_v48 }
 0xc3c   :  { %v7278_v13 = vld [vmem:[#allocation2 + $0x20] sm:$0xf]  ;;  %v8564_v37 = vld [vmem:[#allocation2 + $0x2c] sm:$0xf0]  ;;  %v7551_v16 = vor.u32 %v8632_v51, %v7550_v30  ;;  %6052 = vmatpush.bf16.msra.mxu0 %v7423_v23 }
 0xc3d   :  { %v7406_v32 = vld [vmem:[#allocation2 + $0x120] sm:$0xf]  ;;  %v8596_v59 = vld [vmem:[#allocation2 + $0x12c] sm:$0xf0]  ;;  %v7279_v27 = vor.u32 %v8564_v37, %v7278_v13  ;;  %6078 = vmatpush.bf16.msra.mxu2 %v7679_v14 }
 0xc3e   :  { %v7662_v24 = vld [vmem:[#allocation2 + $0x320] sm:$0xf]  ;;  %v8660_v10 = vld [vmem:[#allocation2 + $0x32c] sm:$0xf0]  ;;  %v7407_v11 = vor.u32 %v8596_v59, %v7406_v32  ;;  %6065 = vmatpush.bf16.msrb.mxu1 %v7551_v16 }
 0xc3f   :  { %v7534_v33 = vld [vmem:[#allocation2 + $0x220] sm:$0xf]  ;;  %v8628_v45 = vld [vmem:[#allocation2 + $0x22c] sm:$0xf0]  ;;  %v7663_v63 = vor.u32 %v8660_v10, %v7662_v24  ;;  %6040 = vmatpush.bf16.msra.mxu3 %v7279_v27 }
 0xc40   :  { %v7262_v1 = vld [vmem:[#allocation2] sm:$0xf]  ;;  %v8560_v35 = vld [vmem:[#allocation2 + $0xc] sm:$0xf0]  ;;  %v7535_v40 = vor.u32 %v8628_v45, %v7534_v33  ;;  %6053 = vmatpush.bf16.msra.mxu0 %v7407_v11 }
 0xc41   :  { %v7390_v57 = vld [vmem:[#allocation2 + $0x100] sm:$0xf]  ;;  %v8592_v5 = vld [vmem:[#allocation2 + $0x10c] sm:$0xf0]  ;;  %v7263_v28 = vor.u32 %v8560_v35, %v7262_v1  ;;  %6079 = vmatpush.bf16.msra.mxu2 %v7663_v63 }
 0xc42   :  { %v7646_v49 = vld [vmem:[#allocation2 + $0x300] sm:$0xf]  ;;  %v8656_v17 = vld [vmem:[#allocation2 + $0x30c] sm:$0xf0]  ;;  %v7391_v42 = vor.u32 %v8592_v5, %v7390_v57  ;;  %6066 = vmatpush.bf16.msrb.mxu1 %v7535_v40 }
 0xc43   :  { %v7886_v60 = vld [vmem:[#allocation2 + $0x4e0] sm:$0xf]  ;;  %v8716_v21 = vld [vmem:[#allocation2 + $0x4ec] sm:$0xf0]  ;;  %v7647_v41 = vor.u32 %v8656_v17, %v7646_v49  ;;  %6041 = vmatpush.bf16.msra.mxu3 %v7263_v28 }
 0xc44   :  { %v8014_v55 = vld [vmem:[#allocation2 + $0x5e0] sm:$0xf]  ;;  %v8748_v22 = vld [vmem:[#allocation2 + $0x5ec] sm:$0xf0]  ;;  %v7887_v20 = vor.u32 %v8716_v21, %v7886_v60  ;;  %6054 = vmatpush.bf16.msra.mxu0 %v7391_v42 }
 0xc45   :  { %v8270_v61 = vld [vmem:[#allocation2 + $0x7e0] sm:$0xf]  ;;  %v8812_v2 = vld [vmem:[#allocation2 + $0x7ec] sm:$0xf0]  ;;  %v8015_v19 = vor.u32 %v8748_v22, %v8014_v55  ;;  %6080 = vmatpush.bf16.msra.mxu2 %v7647_v41 }
 0xc46   :  { %v7518_v53 = vld [vmem:[#allocation2 + $0x200] sm:$0xf]  ;;  %v8624_v8 = vld [vmem:[#allocation2 + $0x20c] sm:$0xf0]  ;;  %v8271_v47 = vor.u32 %v8812_v2, %v8270_v61  ;;  %6042 = vmatmul.bf16.vlgmr.msra.gmra.mxu3 %v12357_v34 }
 0xc47   :  { %v8142_v31 = vld [vmem:[#allocation2 + $0x6e0] sm:$0xf]  ;;  %v8780_v18 = vld [vmem:[#allocation2 + $0x6ec] sm:$0xf0]  ;;  %v7519_v3 = vor.u32 %v8624_v8, %v7518_v53  ;;  %6086 = vmatpush.bf16.msrb.mxu3 %v7887_v20  ;;  %6055 = vmatmul.bf16.vlgmr.msra.gmra.mxu0 %v12359_v62 }
 0xc48   :  { %v7870_v46 = vld [vmem:[#allocation2 + $0x4c0] sm:$0xf]  ;;  %v8712_v39 = vld [vmem:[#allocation2 + $0x4cc] sm:$0xf0]  ;;  %v8143_v4 = vor.u32 %v8780_v18, %v8142_v31  ;;  %6099 = vmatpush.bf16.msrb.mxu0 %v8015_v19  ;;  %6081 = vmatmul.bf16.vlgmr.msra.gmra.mxu2 %v12363_v56 }
 0xc49   :  { %v7998_v9 = vld [vmem:[#allocation2 + $0x5c0] sm:$0xf]  ;;  %v8744_v36 = vld [vmem:[#allocation2 + $0x5cc] sm:$0xf0]  ;;  %v7871_v29 = vor.u32 %v8712_v39, %v7870_v46  ;;  %6125 = vmatpush.bf16.msrb.mxu2 %v8271_v47  ;;  %6067 = vmatpush.bf16.msrb.mxu1 %v7519_v3 }
 0xc4a   :  { %v8254_v38 = vld [vmem:[#allocation2 + $0x7c0] sm:$0xf]  ;;  %v8808_v50 = vld [vmem:[#allocation2 + $0x7cc] sm:$0xf0]  ;;  %v7999_v15 = vor.u32 %v8744_v36, %v7998_v9 }
 0xc4b   :  { %v8126_v7 = vld [vmem:[#allocation2 + $0x6c0] sm:$0xf]  ;;  %v8776_v26 = vld [vmem:[#allocation2 + $0x6cc] sm:$0xf0]  ;;  %v8255_v44 = vor.u32 %v8808_v50, %v8254_v38  ;;  %6087 = vmatpush.bf16.msrb.mxu3 %v7871_v29 }
 0xc4c   :  { %v7854_v6 = vld [vmem:[#allocation2 + $0x4a0] sm:$0xf]  ;;  %v8708_v43 = vld [vmem:[#allocation2 + $0x4ac] sm:$0xf0]  ;;  %v8127_v48 = vor.u32 %v8776_v26, %v8126_v7  ;;  %6100 = vmatpush.bf16.msrb.mxu0 %v7999_v15  ;;  %6068 = vmatmul.bf16.vlgmr.msrb.gmra.mxu1 %v12361_v52 }
 0xc4d   :  { %v7982_v30 = vld [vmem:[#allocation2 + $0x5a0] sm:$0xf]  ;;  %v8740_v51 = vld [vmem:[#allocation2 + $0x5ac] sm:$0xf0]  ;;  %6112 = vmatpush.bf16.msra.mxu1 %v8143_v4  ;;  %v7855_v32 = vor.u32 %v8708_v43, %v7854_v6  ;;  %6126 = vmatpush.bf16.msrb.mxu2 %v8255_v44 }
 0xc4e   :  { %v8238_v23 = vld [vmem:[#allocation2 + $0x7a0] sm:$0xf]  ;;  %v8804_v14 = vld [vmem:[#allocation2 + $0x7ac] sm:$0xf0]  ;;  %v7983_v16 = vor.u32 %v8740_v51, %v7982_v30 }
 0xc4f   :  { %v8110_v13 = vld [vmem:[#allocation2 + $0x6a0] sm:$0xf]  ;;  %v8772_v37 = vld [vmem:[#allocation2 + $0x6ac] sm:$0xf0]  ;;  %v8239_v24 = vor.u32 %v8804_v14, %v8238_v23  ;;  %6088 = vmatpush.bf16.msrb.mxu3 %v7855_v32 }
 0xc50   :  { %v7838_v59 = vld [vmem:[#allocation2 + $0x480] sm:$0xf]  ;;  %v8704_v10 = vld [vmem:[#allocation2 + $0x48c] sm:$0xf0]  ;;  %v8111_v27 = vor.u32 %v8772_v37, %v8110_v13  ;;  %6101 = vmatpush.bf16.msrb.mxu0 %v7983_v16 }
 0xc51   :  { %v7966_v33 = vld [vmem:[#allocation2 + $0x580] sm:$0xf]  ;;  %v8736_v45 = vld [vmem:[#allocation2 + $0x58c] sm:$0xf0]  ;;  %6113 = vmatpush.bf16.msra.mxu1 %v8127_v48  ;;  %v7839_v57 = vor.u32 %v8704_v10, %v7838_v59  ;;  %6127 = vmatpush.bf16.msrb.mxu2 %v8239_v24  ;;  %v9382_v24 = vmov 127  }
 0xc52   :  { %v8222_v1 = vld [vmem:[#allocation2 + $0x780] sm:$0xf]  ;;  %v8800_v35 = vld [vmem:[#allocation2 + $0x78c] sm:$0xf0]  ;;  %v7967_v5 = vor.u32 %v8736_v45, %v7966_v33  ;;  %9350 = vset.pattern.permute.xlu0 %v9382_v24  ;;  %v8586_v45 = vld [vmem:[#allocation2 + $0xe4] sm:$0xf] }
 0xc53   :  { %v8094_v11 = vld [vmem:[#allocation2 + $0x680] sm:$0xf]  ;;  %v8768_v63 = vld [vmem:[#allocation2 + $0x68c] sm:$0xf0]  ;;  %v8223_v40 = vor.u32 %v8800_v35, %v8222_v1  ;;  %6089 = vmatpush.bf16.msrb.mxu3 %v7839_v57  ;;  %v7376_v1 = vld [vmem:[#allocation2 + $0xf0] sm:$0xf0] }
 0xc54   :  { %v7822_v49 = vld [vmem:[#allocation2 + $0x460] sm:$0xf]  ;;  %v8700_v17 = vld [vmem:[#allocation2 + $0x46c] sm:$0xf0]  ;;  %v8095_v55 = vor.u32 %v8768_v63, %v8094_v11  ;;  %6102 = vmatpush.bf16.msrb.mxu0 %v7967_v5  ;;  %v8650_v35 = vld [vmem:[#allocation2 + $0x2e4] sm:$0xf] }
 0xc55   :  { %v7950_v60 = vld [vmem:[#allocation2 + $0x560] sm:$0xf]  ;;  %v8732_v21 = vld [vmem:[#allocation2 + $0x56c] sm:$0xf0]  ;;  %6114 = vmatpush.bf16.msra.mxu1 %v8111_v27  ;;  %v7823_v53 = vor.u32 %v8700_v17, %v7822_v49  ;;  %6128 = vmatpush.bf16.msrb.mxu2 %v8223_v40  ;;  %v7632_v11 = vld [vmem:[#allocation2 + $0x2f0] sm:$0xf0] }
 0xc56   :  { %v8206_v22 = vld [vmem:[#allocation2 + $0x760] sm:$0xf]  ;;  %v8796_v61 = vld [vmem:[#allocation2 + $0x76c] sm:$0xf0]  ;;  %v7951_v8 = vor.u32 %v8732_v21, %v7950_v60  ;;  %v8618_v60 = vld [vmem:[#allocation2 + $0x1e4] sm:$0xf] }
 0xc57   :  { %v8078_v28 = vld [vmem:[#allocation2 + $0x660] sm:$0xf]  ;;  %v8764_v2 = vld [vmem:[#allocation2 + $0x66c] sm:$0xf0]  ;;  %v8207_v41 = vor.u32 %v8796_v61, %v8206_v22  ;;  %6090 = vmatpush.bf16.msrb.mxu3 %v7823_v53  ;;  %v7504_v21 = vld [vmem:[#allocation2 + $0x1f0] sm:$0xf0]  ;;  %v7635_v22 = vor.u32 %v8650_v35, %v7632_v11 }
 0xc58   :  { %v7806_v42 = vld [vmem:[#allocation2 + $0x440] sm:$0xf]  ;;  %v8696_v31 = vld [vmem:[#allocation2 + $0x44c] sm:$0xf0]  ;;  %v8079_v19 = vor.u32 %v8764_v2, %v8078_v28  ;;  %6103 = vmatpush.bf16.msrb.mxu0 %v7951_v8  ;;  %v8582_v2 = vld [vmem:[#allocation2 + $0xc4] sm:$0xf] }
 0xc59   :  { %v7934_v18 = vld [vmem:[#allocation2 + $0x540] sm:$0xf]  ;;  %v8728_v20 = vld [vmem:[#allocation2 + $0x54c] sm:$0xf0]  ;;  %6115 = vmatpush.bf16.msra.mxu1 %v8095_v55  ;;  %v7807_v9 = vor.u32 %v8696_v31, %v7806_v42  ;;  %6129 = vmatpush.bf16.msrb.mxu2 %v8207_v41  ;;  %v7379_v55 = vor.u32 %v8586_v45, %v7376_v1  ;;  %v7360_v8 = vld [vmem:[#allocation2 + $0xd0] sm:$0xf0]  ;;  %v7507_v31 = vor.u32 %v8618_v60, %v7504_v21 }
 0xc5a   :  { %v8190_v46 = vld [vmem:[#allocation2 + $0x740] sm:$0xf]  ;;  %v8792_v47 = vld [vmem:[#allocation2 + $0x74c] sm:$0xf0]  ;;  %v7935_v36 = vor.u32 %v8728_v20, %v7934_v18  ;;  %v8646_v42 = vld [vmem:[#allocation2 + $0x2c4] sm:$0xf] }
 0xc5b   :  { %v8062_v3 = vld [vmem:[#allocation2 + $0x640] sm:$0xf]  ;;  %v8760_v39 = vld [vmem:[#allocation2 + $0x64c] sm:$0xf0]  ;;  %v8191_v38 = vor.u32 %v8792_v47, %v8190_v46  ;;  %6091 = vmatpush.bf16.msrb.mxu3 %v7807_v9  ;;  %v7616_v41 = vld [vmem:[#allocation2 + $0x2d0] sm:$0xf0]  ;;  %v7363_v46 = vor.u32 %v8582_v2, %v7360_v8 }
 0xc5c   :  { %v7790_v4 = vld [vmem:[#allocation2 + $0x420] sm:$0xf]  ;;  %v8692_v50 = vld [vmem:[#allocation2 + $0x42c] sm:$0xf0]  ;;  %v8063_v29 = vor.u32 %v8760_v39, %v8062_v3  ;;  %6104 = vmatpush.bf16.msrb.mxu0 %v7935_v36  ;;  %v8614_v20 = vld [vmem:[#allocation2 + $0x1c4] sm:$0xf]  ;;  %v7619_v47 = vor.u32 %v8646_v42, %v7616_v41 }
 0xc5d   :  { %v7918_v7 = vld [vmem:[#allocation2 + $0x520] sm:$0xf]  ;;  %v8724_v26 = vld [vmem:[#allocation2 + $0x52c] sm:$0xf0]  ;;  %6116 = vmatpush.bf16.msra.mxu1 %v8079_v19  ;;  %v7791_v48 = vor.u32 %v8692_v50, %v7790_v4  ;;  %6130 = vmatpush.bf16.msrb.mxu2 %v8191_v38  ;;  %v7488_v19 = vld [vmem:[#allocation2 + $0x1d0] sm:$0xf0] }
 0xc5e   :  { %v8174_v15 = vld [vmem:[#allocation2 + $0x720] sm:$0xf]  ;;  %v8788_v6 = vld [vmem:[#allocation2 + $0x72c] sm:$0xf0]  ;;  %v7919_v23 = vor.u32 %v8724_v26, %v7918_v7  ;;  %v8578_v9 = vld [vmem:[#allocation2 + $0xa4] sm:$0xf]  ;;  %v7491_v50 = vor.u32 %v8614_v20, %v7488_v19 }
 0xc5f   :  { %v8046_v44 = vld [vmem:[#allocation2 + $0x620] sm:$0xf]  ;;  %v8756_v43 = vld [vmem:[#allocation2 + $0x62c] sm:$0xf0]  ;;  %v8175_v37 = vor.u32 %v8788_v6, %v8174_v15  ;;  %6092 = vmatpush.bf16.msrb.mxu3 %v7791_v48  ;;  %v7344_v36 = vld [vmem:[#allocation2 + $0xb0] sm:$0xf0] }
 0xc60   :  { %v7774_v30 = vld [vmem:[#allocation2 + $0x400] sm:$0xf]  ;;  %v8688_v51 = vld [vmem:[#allocation2 + $0x40c] sm:$0xf0]  ;;  %v8047_v10 = vor.u32 %v8756_v43, %v8046_v44  ;;  %6105 = vmatpush.bf16.msrb.mxu0 %v7919_v23  ;;  %v8642_v4 = vld [vmem:[#allocation2 + $0x2a4] sm:$0xf]  ;;  %v7347_v15 = vor.u32 %v8578_v9, %v7344_v36 }
 0xc61   :  { %v7902_v14 = vld [vmem:[#allocation2 + $0x500] sm:$0xf]  ;;  %v8720_v13 = vld [vmem:[#allocation2 + $0x50c] sm:$0xf0]  ;;  %6117 = vmatpush.bf16.msra.mxu1 %v8063_v29  ;;  %v7775_v63 = vor.u32 %v8688_v51, %v7774_v30  ;;  %6131 = vmatpush.bf16.msrb.mxu2 %v8175_v37  ;;  %v7600_v38 = vld [vmem:[#allocation2 + $0x2b0] sm:$0xf0] }
 0xc62   :  { %v8158_v32 = vld [vmem:[#allocation2 + $0x700] sm:$0xf]  ;;  %v8784_v16 = vld [vmem:[#allocation2 + $0x70c] sm:$0xf0]  ;;  %v7903_v57 = vor.u32 %v8720_v13, %v7902_v14  ;;  %v8610_v26 = vld [vmem:[#allocation2 + $0x1a4] sm:$0xf]  ;;  %v7603_v6 = vor.u32 %v8642_v4, %v7600_v38 }
 0xc63   :  { %v8398_v59 = vld [vmem:[#allocation2 + $0x8e0] sm:$0xf]  ;;  %v8844_v33 = vld [vmem:[#allocation2 + $0x8ec] sm:$0xf0]  ;;  %v8159_v40 = vor.u32 %v8784_v16, %v8158_v32  ;;  %6093 = vmatpush.bf16.msrb.mxu3 %v7775_v63  ;;  %v7472_v29 = vld [vmem:[#allocation2 + $0x1b0] sm:$0xf0] }
 0xc64   :  { %v4588_v27 = vld [vmem:[%s12474_s16 + $0x3] sm:$0xf]  ;;  %v8752_v49 = vld [vmem:[#allocation2 + $0x60c] sm:$0xf0]  ;;  %v8399_v17 = vor.u32 %v8844_v33, %v8398_v59  ;;  %6106 = vmatpush.bf16.msrb.mxu0 %v7903_v57  ;;  %v7328_v51 = vld [vmem:[#allocation2 + $0x90] sm:$0xf0]  ;;  %v7475_v14 = vor.u32 %v8610_v26, %v7472_v29 }
 0xc65   :  { %4591 = vperm.xlu0 %9350, %v4588_v27   ;;  %v8030_v5 = vld [vmem:[#allocation2 + $0x600] sm:$0xf]  ;;  %6118 = vmatpush.bf16.msra.mxu1 %v8047_v10  ;;  %v8840_v28 = vld [vmem:[#allocation2 + $0x8cc] sm:$0xf0]  ;;  %v8574_v30 = vld [vmem:[#allocation2 + $0x84] sm:$0xf] }
 0xc66   :  { %v8382_v61 = vld [vmem:[#allocation2 + $0x8c0] sm:$0xf]  ;;  %v8031_v53 = vor.u32 %v8752_v49, %v8030_v5  ;;  %6132 = vmatpush.bf16.msrb.mxu2 %v8159_v40  ;;  %v8836_v39 = vld [vmem:[#allocation2 + $0x8ac] sm:$0xf0]  ;;  %6094 = vmatmul.bf16.vlgmr.msrb.gmra.mxu3 %v12365_v0  ;;  %v8638_v48 = vld [vmem:[#allocation2 + $0x284] sm:$0xf]  ;;  %v7331_v16 = vor.u32 %v8574_v30, %v7328_v51 }
 0xc67   :  { %6138 = vmatpush.bf16.msra.mxu3 %v8399_v17  ;;  %v8383_v18 = vor.u32 %v8840_v28, %v8382_v61  ;;  %v8366_v3 = vld [vmem:[#allocation2 + $0x8a0] sm:$0xf]  ;;  %6107 = vmatmul.bf16.vlgmr.msrb.gmra.mxu0 %v12367_v25  ;;  %v8832_v43 = vld [vmem:[#allocation2 + $0x88c] sm:$0xf0]  ;;  %v7584_v23 = vld [vmem:[#allocation2 + $0x290] sm:$0xf0] }
 0xc68   :  { %6151 = vmatpush.bf16.msra.mxu0 %v7379_v55  ;;  %v8367_v7 = vor.u32 %v8836_v39, %v8366_v3  ;;  %v8350_v44 = vld [vmem:[#allocation2 + $0x880] sm:$0xf]  ;;  %v8606_v37 = vld [vmem:[#allocation2 + $0x184] sm:$0xf]  ;;  %v7456_v32 = vld [vmem:[#allocation2 + $0x190] sm:$0xf0]  ;;  %v7587_v59 = vor.u32 %v8638_v48, %v7584_v23 }
 0xc69   :  { %6119 = vmatpush.bf16.msra.mxu1 %v8031_v53  ;;  %6133 = vmatmul.bf16.vlgmr.msrb.gmra.mxu2 %v12371_v54  ;;  %v8351_v13 = vor.u32 %v8832_v43, %v8350_v44  ;;  %v8334_v24 = vld [vmem:[#allocation2 + $0x860] sm:$0xf]  ;;  %v8828_v10 = vld [vmem:[#allocation2 + $0x86c] sm:$0xf0]  ;;  %v8570_v33 = vld [vmem:[#allocation2 + $0x64] sm:$0xf]  ;;  %v7459_v35 = vor.u32 %v8606_v37, %v7456_v32 }
 0xc6a   :  { %6177 = vmatpush.bf16.msra.mxu2 %v7635_v22  ;;  %v7312_v45 = vld [vmem:[#allocation2 + $0x70] sm:$0xf0]  ;;  %v8634_v27 = vld [vmem:[#allocation2 + $0x264] sm:$0xf]  ;;  %v8335_v11 = vor.u32 %v8828_v10, %v8334_v24  ;;  %v8318_v40 = vld [vmem:[#allocation2 + $0x840] sm:$0xf] }
 0xc6b   :  { %6139 = vmatpush.bf16.msra.mxu3 %v8383_v18  ;;  %v7568_v1 = vld [vmem:[#allocation2 + $0x270] sm:$0xf0]  ;;  %v8602_v63 = vld [vmem:[#allocation2 + $0x164] sm:$0xf]  ;;  %v7315_v5 = vor.u32 %v8570_v33, %v7312_v45  ;;  %v8824_v17 = vld [vmem:[#allocation2 + $0x84c] sm:$0xf0] }
 0xc6c   :  { %6152 = vmatpush.bf16.msra.mxu0 %v7363_v46  ;;  %6120 = vmatmul.bf16.vlgmr.msra.gmra.mxu1 %v12369_v58  ;;  %v7440_v57 = vld [vmem:[#allocation2 + $0x170] sm:$0xf0]  ;;  %v7571_v49 = vor.u32 %v8634_v27, %v7568_v1  ;;  %v8566_v60 = vld [vmem:[#allocation2 + $0x44] sm:$0xf]  ;;  %v8319_v28 = vor.u32 %v8824_v17, %v8318_v40  ;;  %v8302_v41 = vld [vmem:[#allocation2 + $0x820] sm:$0xf] }
 0xc6d   :  { %6164 = vmatpush.bf16.msrb.mxu1 %v7507_v31  ;;  %v7296_v21 = vld [vmem:[#allocation2 + $0x50] sm:$0xf0]  ;;  %v8630_v55 = vld [vmem:[#allocation2 + $0x244] sm:$0xf]  ;;  %v7443_v61 = vor.u32 %v8602_v63, %v7440_v57  ;;  %v8820_v31 = vld [vmem:[#allocation2 + $0x82c] sm:$0xf0] }
 0xc6e   :  { %6178 = vmatpush.bf16.msra.mxu2 %v7619_v47  ;;  %v7552_v22 = vld [vmem:[#allocation2 + $0x250] sm:$0xf0]  ;;  %v8598_v2 = vld [vmem:[#allocation2 + $0x144] sm:$0xf]  ;;  %v7299_v8 = vor.u32 %v8566_v60, %v7296_v21  ;;  %v8303_v39 = vor.u32 %v8820_v31, %v8302_v41  ;;  %v8286_v36 = vld [vmem:[#allocation2 + $0x800] sm:$0xf] }
 0xc6f   :  { %6140 = vmatpush.bf16.msra.mxu3 %v8367_v7  ;;  %v7424_v53 = vld [vmem:[#allocation2 + $0x150] sm:$0xf0]  ;;  %v7555_v42 = vor.u32 %v8630_v55, %v7552_v22  ;;  %v8562_v18 = vld [vmem:[#allocation2 + $0x24] sm:$0xf]  ;;  %v8816_v4 = vld [vmem:[#allocation2 + $0x80c] sm:$0xf0] }
 0xc70   :  { %6153 = vmatpush.bf16.msra.mxu0 %v7347_v15  ;;  %v7280_v20 = vld [vmem:[#allocation2 + $0x30] sm:$0xf0]  ;;  %v8626_v19 = vld [vmem:[#allocation2 + $0x224] sm:$0xf]  ;;  %v7427_v47 = vor.u32 %v8598_v2, %v7424_v53  ;;  %v8287_v23 = vor.u32 %v8816_v4, %v8286_v36 }
 0xc71   :  { %6165 = vmatpush.bf16.msrb.mxu1 %v7491_v50  ;;  %v7536_v46 = vld [vmem:[#allocation2 + $0x230] sm:$0xf0]  ;;  %v8594_v3 = vld [vmem:[#allocation2 + $0x124] sm:$0xf]  ;;  %v7283_v38 = vor.u32 %v8562_v18, %v7280_v20 }
 0xc72   :  { %6179 = vmatpush.bf16.msra.mxu2 %v7603_v6  ;;  %v7408_v9 = vld [vmem:[#allocation2 + $0x130] sm:$0xf0]  ;;  %v7539_v50 = vor.u32 %v8626_v19, %v7536_v46  ;;  %v8558_v7 = vld [vmem:[#allocation2 + $0x4] sm:$0xf] }
 0xc73   :  { %6141 = vmatpush.bf16.msra.mxu3 %v8351_v13  ;;  %v7264_v26 = vld [vmem:[#allocation2 + $0x10] sm:$0xf0]  ;;  %v8622_v29 = vld [vmem:[#allocation2 + $0x204] sm:$0xf]  ;;  %v7411_v43 = vor.u32 %v8594_v3, %v7408_v9 }
 0xc74   :  { %6154 = vmatpush.bf16.msra.mxu0 %v7331_v16  ;;  %v7520_v15 = vld [vmem:[#allocation2 + $0x210] sm:$0xf0]  ;;  %v8682_v6 = vld [vmem:[#allocation2 + $0x3e4] sm:$0xf]  ;;  %v7267_v32 = vor.u32 %v8558_v7, %v7264_v26 }
 0xc75   :  { %6166 = vmatpush.bf16.msrb.mxu1 %v7475_v14  ;;  %v7760_v44 = vld [vmem:[#allocation2 + $0x3f0] sm:$0xf0]  ;;  %v8714_v30 = vld [vmem:[#allocation2 + $0x4e4] sm:$0xf]  ;;  %v7523_v16 = vor.u32 %v8622_v29, %v7520_v15 }
 0xc76   :  { %6180 = vmatpush.bf16.msra.mxu2 %v7587_v59  ;;  %v7888_v51 = vld [vmem:[#allocation2 + $0x4f0] sm:$0xf0]  ;;  %v8778_v48 = vld [vmem:[#allocation2 + $0x6e4] sm:$0xf]  ;;  %v7763_v10 = vor.u32 %v8682_v6, %v7760_v44 }
 0xc77   :  { %6142 = vmatpush.bf16.msra.mxu3 %v8335_v11  ;;  %v8144_v14 = vld [vmem:[#allocation2 + $0x6f0] sm:$0xf0]  ;;  %v8590_v13 = vld [vmem:[#allocation2 + $0x104] sm:$0xf]  ;;  %v7891_v33 = vor.u32 %v8714_v30, %v7888_v51 }
 0xc78   :  { %6155 = vmatpush.bf16.msra.mxu0 %v7315_v5  ;;  %v7392_v37 = vld [vmem:[#allocation2 + $0x110] sm:$0xf0]  ;;  %v8746_v59 = vld [vmem:[#allocation2 + $0x5e4] sm:$0xf]  ;;  %v8147_v27 = vor.u32 %v8778_v48, %v8144_v14 }
 0xc79   :  { %6167 = vmatpush.bf16.msrb.mxu1 %v7459_v35  ;;  %v8016_v24 = vld [vmem:[#allocation2 + $0x5f0] sm:$0xf0]  ;;  %v8678_v45 = vld [vmem:[#allocation2 + $0x3c4] sm:$0xf]  ;;  %v7395_v1 = vor.u32 %v8590_v13, %v7392_v37 }
 0xc7a   :  { %6181 = vmatpush.bf16.msra.mxu2 %v7571_v49  ;;  %v7744_v35 = vld [vmem:[#allocation2 + $0x3d0] sm:$0xf0]  ;;  %v8710_v11 = vld [vmem:[#allocation2 + $0x4c4] sm:$0xf]  ;;  %v8019_v57 = vor.u32 %v8746_v59, %v8016_v24 }
 0xc7b   :  { %6143 = vmatpush.bf16.msra.mxu3 %v8319_v28  ;;  %v7872_v63 = vld [vmem:[#allocation2 + $0x4d0] sm:$0xf0]  ;;  %v8774_v5 = vld [vmem:[#allocation2 + $0x6c4] sm:$0xf]  ;;  %v7747_v60 = vor.u32 %v8678_v45, %v7744_v35 }
 0xc7c   :  { %6156 = vmatpush.bf16.msra.mxu0 %v7299_v8  ;;  %v8128_v49 = vld [vmem:[#allocation2 + $0x6d0] sm:$0xf0]  ;;  %v8742_v40 = vld [vmem:[#allocation2 + $0x5c4] sm:$0xf]  ;;  %v7875_v21 = vor.u32 %v8710_v11, %v7872_v63 }
 0xc7d   :  { %6168 = vmatpush.bf16.msrb.mxu1 %v7443_v61  ;;  %v8000_v17 = vld [vmem:[#allocation2 + $0x5d0] sm:$0xf0]  ;;  %v8674_v55 = vld [vmem:[#allocation2 + $0x3a4] sm:$0xf]  ;;  %v8131_v22 = vor.u32 %v8774_v5, %v8128_v49 }
 0xc7e   :  { %6182 = vmatpush.bf16.msra.mxu2 %v7555_v42  ;;  %v7728_v61 = vld [vmem:[#allocation2 + $0x3b0] sm:$0xf0]  ;;  %v8706_v28 = vld [vmem:[#allocation2 + $0x4a4] sm:$0xf]  ;;  %v8003_v53 = vor.u32 %v8742_v40, %v8000_v17 }
 0xc7f   :  { %6144 = vmatpush.bf16.msra.mxu3 %v8303_v39  ;;  %v7856_v2 = vld [vmem:[#allocation2 + $0x4b0] sm:$0xf0]  ;;  %v8770_v8 = vld [vmem:[#allocation2 + $0x6a4] sm:$0xf]  ;;  %v7731_v18 = vor.u32 %v8674_v55, %v7728_v61 }
 0xc80   :  { %6157 = vmatpush.bf16.msra.mxu0 %v7283_v38  ;;  %v8112_v42 = vld [vmem:[#allocation2 + $0x6b0] sm:$0xf0]  ;;  %v8738_v41 = vld [vmem:[#allocation2 + $0x5a4] sm:$0xf]  ;;  %v7859_v20 = vor.u32 %v8706_v28, %v7856_v2 }
 0xc81   :  { %6169 = vmatpush.bf16.msrb.mxu1 %v7427_v47  ;;  %v7984_v31 = vld [vmem:[#allocation2 + $0x5b0] sm:$0xf0]  ;;  %v8670_v19 = vld [vmem:[#allocation2 + $0x384] sm:$0xf]  ;;  %v8115_v46 = vor.u32 %v8770_v8, %v8112_v42 }
 0xc82   :  { %6183 = vmatpush.bf16.msra.mxu2 %v7539_v50  ;;  %v7712_v47 = vld [vmem:[#allocation2 + $0x390] sm:$0xf0]  ;;  %v8702_v3 = vld [vmem:[#allocation2 + $0x484] sm:$0xf]  ;;  %v7987_v9 = vor.u32 %v8738_v41, %v7984_v31 }
 0xc83   :  { %6145 = vmatpush.bf16.msra.mxu3 %v8287_v23  ;;  %v7840_v39 = vld [vmem:[#allocation2 + $0x490] sm:$0xf0]  ;;  %v8766_v36 = vld [vmem:[#allocation2 + $0x684] sm:$0xf]  ;;  %v7715_v7 = vor.u32 %v8670_v19, %v7712_v47 }
 0xc84   :  { %6158 = vmatpush.bf16.msra.mxu0 %v7267_v32  ;;  %v8096_v4 = vld [vmem:[#allocation2 + $0x690] sm:$0xf0]  ;;  %v8734_v38 = vld [vmem:[#allocation2 + $0x584] sm:$0xf]  ;;  %v7843_v26 = vor.u32 %v8702_v3, %v7840_v39 }
 0xc85   :  { %6170 = vmatpush.bf16.msrb.mxu1 %v7411_v43  ;;  %v7968_v50 = vld [vmem:[#allocation2 + $0x590] sm:$0xf0]  ;;  %v8666_v29 = vld [vmem:[#allocation2 + $0x364] sm:$0xf]  ;;  %v8099_v15 = vor.u32 %v8766_v36, %v8096_v4  ;;  %v8621_v36 = vld [vmem:[#allocation2 + $0x1f4] sm:$0xf0] }
 0xc86   :  { %6184 = vmatpush.bf16.msra.mxu2 %v7523_v16  ;;  %6146 = vmatmul.bf16.vlgmr.msra.gmra.mxu3 %v12373_v12  ;;  %v7696_v6 = vld [vmem:[#allocation2 + $0x370] sm:$0xf0]  ;;  %v8698_v44 = vld [vmem:[#allocation2 + $0x464] sm:$0xf]  ;;  %v7971_v30 = vor.u32 %v8734_v38, %v7968_v50 }
 0xc87   :  { %6190 = vmatpush.bf16.msrb.mxu3 %v7763_v10  ;;  %6159 = vmatmul.bf16.vlgmr.msra.gmra.mxu0 %v12357_v34  ;;  %v7824_v43 = vld [vmem:[#allocation2 + $0x470] sm:$0xf0]  ;;  %v8762_v51 = vld [vmem:[#allocation2 + $0x664] sm:$0xf]  ;;  %v7699_v13 = vor.u32 %v8666_v29, %v7696_v6  ;;  %v8589_v6 = vld [vmem:[#allocation2 + $0xf4] sm:$0xf0] }
 0xc88   :  { %6203 = vmatpush.bf16.msrb.mxu0 %v7891_v33  ;;  %v8080_v48 = vld [vmem:[#allocation2 + $0x670] sm:$0xf0]  ;;  %v8730_v23 = vld [vmem:[#allocation2 + $0x564] sm:$0xf]  ;;  %v7827_v37 = vor.u32 %v8698_v44, %v7824_v43 }
 0xc89   :  { %6171 = vmatpush.bf16.msrb.mxu1 %v7395_v1  ;;  %6185 = vmatmul.bf16.vlgmr.msra.gmra.mxu2 %v12361_v52  ;;  %v7952_v14 = vld [vmem:[#allocation2 + $0x570] sm:$0xf0]  ;;  %v8662_v32 = vld [vmem:[#allocation2 + $0x344] sm:$0xf]  ;;  %v8083_v16 = vor.u32 %v8762_v51, %v8080_v48 }
 0xc8a   :  { %6229 = vmatpush.bf16.msrb.mxu2 %v8147_v27  ;;  %v7680_v59 = vld [vmem:[#allocation2 + $0x350] sm:$0xf0]  ;;  %v8694_v24 = vld [vmem:[#allocation2 + $0x444] sm:$0xf]  ;;  %v7955_v33 = vor.u32 %v8730_v23, %v7952_v14 }
 0xc8b   :  { %6191 = vmatpush.bf16.msrb.mxu3 %v7747_v60  ;;  %v7808_v10 = vld [vmem:[#allocation2 + $0x450] sm:$0xf0]  ;;  %v8758_v45 = vld [vmem:[#allocation2 + $0x644] sm:$0xf]  ;;  %v7683_v11 = vor.u32 %v8662_v32, %v7680_v59  ;;  %v7366_v59 = vld [vmem:[#allocation2 + $0xc8] sm:$0xf] }
 0xc8c   :  { %6204 = vmatpush.bf16.msrb.mxu0 %v7875_v21  ;;  %6172 = vmatmul.bf16.vlgmr.msrb.gmra.mxu1 %v12359_v62  ;;  %v8064_v27 = vld [vmem:[#allocation2 + $0x650] sm:$0xf0]  ;;  %v8726_v1 = vld [vmem:[#allocation2 + $0x544] sm:$0xf]  ;;  %v7811_v63 = vor.u32 %v8694_v24, %v7808_v10  ;;  %v8585_v24 = vld [vmem:[#allocation2 + $0xd4] sm:$0xf0] }
 0xc8d   :  { %6216 = vmatpush.bf16.msra.mxu1 %v8019_v57  ;;  %v7936_v35 = vld [vmem:[#allocation2 + $0x550] sm:$0xf0]  ;;  %v8658_v57 = vld [vmem:[#allocation2 + $0x324] sm:$0xf]  ;;  %v8067_v5 = vor.u32 %v8758_v45, %v8064_v27 }
 0xc8e   :  { %6230 = vmatpush.bf16.msrb.mxu2 %v8131_v22  ;;  %v7664_v49 = vld [vmem:[#allocation2 + $0x330] sm:$0xf0]  ;;  %v8690_v40 = vld [vmem:[#allocation2 + $0x424] sm:$0xf]  ;;  %v7939_v60 = vor.u32 %v8726_v1, %v7936_v35 }
 0xc8f   :  { %6192 = vmatpush.bf16.msrb.mxu3 %v7731_v18  ;;  %v7792_v17 = vld [vmem:[#allocation2 + $0x430] sm:$0xf0]  ;;  %v8754_v21 = vld [vmem:[#allocation2 + $0x624] sm:$0xf]  ;;  %v7667_v28 = vor.u32 %v8658_v57, %v7664_v49  ;;  %v7367_v57 = vor.u32 %v8585_v24, %v7366_v59  ;;  %v7350_v49 = vld [vmem:[#allocation2 + $0xa8] sm:$0xf] }
 0xc90   :  { %6205 = vmatpush.bf16.msrb.mxu0 %v7859_v20  ;;  %v8048_v55 = vld [vmem:[#allocation2 + $0x630] sm:$0xf0]  ;;  %v8722_v22 = vld [vmem:[#allocation2 + $0x524] sm:$0xf]  ;;  %v7795_v2 = vor.u32 %v8690_v40, %v7792_v17  ;;  %v8581_v40 = vld [vmem:[#allocation2 + $0xb4] sm:$0xf0] }
 0xc91   :  { %6217 = vmatpush.bf16.msra.mxu1 %v8003_v53  ;;  %v7920_v61 = vld [vmem:[#allocation2 + $0x530] sm:$0xf0]  ;;  %v8654_v53 = vld [vmem:[#allocation2 + $0x304] sm:$0xf]  ;;  %v8051_v41 = vor.u32 %v8754_v21, %v8048_v55  ;;  %v7414_v24 = vld [vmem:[#allocation2 + $0x128] sm:$0xf] }
 0xc92   :  { %6231 = vmatpush.bf16.msrb.mxu2 %v8115_v46  ;;  %v7648_v8 = vld [vmem:[#allocation2 + $0x310] sm:$0xf0]  ;;  %v8686_v42 = vld [vmem:[#allocation2 + $0x404] sm:$0xf]  ;;  %v7923_v19 = vor.u32 %v8722_v22, %v7920_v61 }
 0xc93   :  { %6193 = vmatpush.bf16.msrb.mxu3 %v7715_v7  ;;  %v7776_v31 = vld [vmem:[#allocation2 + $0x410] sm:$0xf0]  ;;  %v8750_v18 = vld [vmem:[#allocation2 + $0x604] sm:$0xf]  ;;  %v7651_v4 = vor.u32 %v8654_v53, %v7648_v8  ;;  %v7351_v53 = vor.u32 %v8581_v40, %v7350_v49  ;;  %v7398_v40 = vld [vmem:[#allocation2 + $0x108] sm:$0xf] }
 0xc94   :  { %6206 = vmatpush.bf16.msrb.mxu0 %v7843_v26  ;;  %v8032_v20 = vld [vmem:[#allocation2 + $0x610] sm:$0xf0]  ;;  %v8810_v46 = vld [vmem:[#allocation2 + $0x7e4] sm:$0xf]  ;;  %v7779_v38 = vor.u32 %v8686_v42, %v7776_v31  ;;  %v7334_v42 = vld [vmem:[#allocation2 + $0x88] sm:$0xf] }
 0xc95   :  { %6218 = vmatpush.bf16.msra.mxu1 %v7987_v9  ;;  %v8272_v47 = vld [vmem:[#allocation2 + $0x7f0] sm:$0xf0]  ;;  %v8842_v3 = vld [vmem:[#allocation2 + $0x8e4] sm:$0xf]  ;;  %v7510_v9 = vld [vmem:[#allocation2 + $0x1e8] sm:$0xf]  ;;  %v8035_v26 = vor.u32 %v8750_v18, %v8032_v20 }
 0xc96   :  { %6232 = vmatpush.bf16.msrb.mxu2 %v8099_v15  ;;  %v8400_v39 = vld [vmem:[#allocation2 + $0x8f0] sm:$0xf0]  ;;  %v8718_v50 = vld [vmem:[#allocation2 + $0x504] sm:$0xf]  ;;  %v8275_v29 = vor.u32 %v8810_v46, %v8272_v47  ;;  %v7382_v15 = vld [vmem:[#allocation2 + $0xe8] sm:$0xf]  ;;  %v7511_v43 = vor.u32 %v8621_v36, %v7510_v9 }
 0xc97   :  { %6194 = vmatpush.bf16.msrb.mxu3 %v7699_v13  ;;  %v7904_v7 = vld [vmem:[#allocation2 + $0x510] sm:$0xf0]  ;;  %v8403_v44 = vor.u32 %v8842_v3, %v8400_v39  ;;  %v8838_v48 = vld [vmem:[#allocation2 + $0x8c4] sm:$0xf]  ;;  %v7494_v13 = vld [vmem:[#allocation2 + $0x1c8] sm:$0xf]  ;;  %v7383_v32 = vor.u32 %v8589_v6, %v7382_v15 }
 0xc98   :  { %6207 = vmatpush.bf16.msrb.mxu0 %v7827_v37  ;;  %v8256_v51 = vld [vmem:[#allocation2 + $0x7d0] sm:$0xf0]  ;;  %v7907_v23 = vor.u32 %v8718_v50, %v7904_v7  ;;  %v8617_v37 = vld [vmem:[#allocation2 + $0x1d4] sm:$0xf0]  ;;  %v8802_v45 = vld [vmem:[#allocation2 + $0x7a4] sm:$0xf] }
 0xc99   :  { %6219 = vmatpush.bf16.msra.mxu1 %v7971_v30  ;;  %v8806_v30 = vld [vmem:[#allocation2 + $0x7c4] sm:$0xf]  ;;  %v8384_v14 = vld [vmem:[#allocation2 + $0x8d0] sm:$0xf0]  ;;  %v7446_v3 = vld [vmem:[#allocation2 + $0x168] sm:$0xf] }
 0xc9a   :  { %6233 = vmatpush.bf16.msrb.mxu2 %v8083_v16  ;;  %v8259_v16 = vor.u32 %v8806_v30, %v8256_v51  ;;  %v8387_v10 = vor.u32 %v8838_v48, %v8384_v14  ;;  %v8240_v27 = vld [vmem:[#allocation2 + $0x7b0] sm:$0xf0]  ;;  %v8834_v1 = vld [vmem:[#allocation2 + $0x8a4] sm:$0xf]  ;;  %v8605_v39 = vld [vmem:[#allocation2 + $0x174] sm:$0xf0] }
 0xc9b   :  { %6195 = vmatpush.bf16.msrb.mxu3 %v7683_v11  ;;  %v8368_v35 = vld [vmem:[#allocation2 + $0x8b0] sm:$0xf0]  ;;  %v7478_v11 = vld [vmem:[#allocation2 + $0x1a8] sm:$0xf]  ;;  %v8798_v21 = vld [vmem:[#allocation2 + $0x784] sm:$0xf]  ;;  %v7447_v7 = vor.u32 %v8605_v39, %v7446_v3 }
 0xc9c   :  { %6208 = vmatpush.bf16.msrb.mxu0 %v7811_v63  ;;  %v8613_v63 = vld [vmem:[#allocation2 + $0x1b4] sm:$0xf0]  ;;  %v8371_v17 = vor.u32 %v8834_v1, %v8368_v35  ;;  %v8224_v55 = vld [vmem:[#allocation2 + $0x790] sm:$0xf0]  ;;  %v8830_v22 = vld [vmem:[#allocation2 + $0x884] sm:$0xf] }
 0xc9d   :  { %6220 = vmatpush.bf16.msra.mxu1 %v7955_v33  ;;  %v7495_v33 = vor.u32 %v8617_v37, %v7494_v13  ;;  %v8352_v61 = vld [vmem:[#allocation2 + $0x890] sm:$0xf0]  ;;  %v8227_v8 = vor.u32 %v8798_v21, %v8224_v55  ;;  %v8794_v20 = vld [vmem:[#allocation2 + $0x764] sm:$0xf]  ;;  %v7302_v48 = vld [vmem:[#allocation2 + $0x48] sm:$0xf] }
 0xc9e   :  { %6234 = vmatpush.bf16.msrb.mxu2 %v8067_v5  ;;  %v8243_v5 = vor.u32 %v8802_v45, %v8240_v27  ;;  %v8355_v31 = vor.u32 %v8830_v22, %v8352_v61  ;;  %v8826_v46 = vld [vmem:[#allocation2 + $0x864] sm:$0xf]  ;;  %v8336_v47 = vld [vmem:[#allocation2 + $0x870] sm:$0xf0]  ;;  %v7286_v45 = vld [vmem:[#allocation2 + $0x28] sm:$0xf] }
 0xc9f   :  { %6196 = vmatpush.bf16.msrb.mxu3 %v7667_v28  ;;  %v7462_v28 = vld [vmem:[#allocation2 + $0x188] sm:$0xf]  ;;  %v8339_v50 = vor.u32 %v8826_v46, %v8336_v47  ;;  %v8822_v15 = vld [vmem:[#allocation2 + $0x844] sm:$0xf]  ;;  %v8320_v6 = vld [vmem:[#allocation2 + $0x850] sm:$0xf0] }
 0xca0   :  { %6209 = vmatpush.bf16.msrb.mxu0 %v7795_v2  ;;  %v8609_v2 = vld [vmem:[#allocation2 + $0x194] sm:$0xf0]  ;;  %v8323_v14 = vor.u32 %v8822_v15, %v8320_v6  ;;  %v8786_v37 = vld [vmem:[#allocation2 + $0x724] sm:$0xf]  ;;  %v8304_v59 = vld [vmem:[#allocation2 + $0x830] sm:$0xf0] }
 0xca1   :  { %6221 = vmatpush.bf16.msra.mxu1 %v7939_v60  ;;  %v7479_v60 = vor.u32 %v8613_v63, %v7478_v11  ;;  %v7463_v18 = vor.u32 %v8609_v2, %v7462_v28  ;;  %v8565_v1 = vld [vmem:[#allocation2 + $0x34] sm:$0xf0]  ;;  %v8782_v35 = vld [vmem:[#allocation2 + $0x704] sm:$0xf]  ;;  %v8160_v11 = vld [vmem:[#allocation2 + $0x710] sm:$0xf0] }
 0xca2   :  { %6235 = vmatpush.bf16.msrb.mxu2 %v8051_v41  ;;  %v8577_v41 = vld [vmem:[#allocation2 + $0x94] sm:$0xf0]  ;;  %v8288_v49 = vld [vmem:[#allocation2 + $0x810] sm:$0xf0]  ;;  %v7287_v55 = vor.u32 %v8565_v1, %v7286_v45  ;;  %v7766_v22 = vld [vmem:[#allocation2 + $0x3e8] sm:$0xf]  ;;  %v8163_v2 = vor.u32 %v8782_v35, %v8160_v11 }
 0xca3   :  { %6197 = vmatpush.bf16.msrb.mxu3 %v7651_v4  ;;  %v7335_v9 = vor.u32 %v8577_v41, %v7334_v42  ;;  %v7318_v4 = vld [vmem:[#allocation2 + $0x68] sm:$0xf]  ;;  %v8653_v21 = vld [vmem:[#allocation2 + $0x2f4] sm:$0xf0] }
 0xca4   :  { %6210 = vmatpush.bf16.msrb.mxu0 %v7779_v38  ;;  %v8573_v38 = vld [vmem:[#allocation2 + $0x74] sm:$0xf0]  ;;  %v8022_v28 = vld [vmem:[#allocation2 + $0x5e8] sm:$0xf] }
 0xca5   :  { %6222 = vmatpush.bf16.msra.mxu1 %v7923_v19  ;;  %v8208_v19 = vld [vmem:[#allocation2 + $0x770] sm:$0xf0]  ;;  %v7319_v30 = vor.u32 %v8573_v38, %v7318_v4  ;;  %v8685_v61 = vld [vmem:[#allocation2 + $0x3f4] sm:$0xf0]  ;;  %v7622_v47 = vld [vmem:[#allocation2 + $0x2c8] sm:$0xf] }
 0xca6   :  { %6236 = vmatpush.bf16.msrb.mxu2 %v8035_v26  ;;  %6198 = vmatmul.bf16.vlgmr.msrb.gmra.mxu3 %v12363_v56  ;;  %v8211_v36 = vor.u32 %v8794_v20, %v8208_v19  ;;  %v8790_v26 = vld [vmem:[#allocation2 + $0x744] sm:$0xf]  ;;  %v8561_v42 = vld [vmem:[#allocation2 + $0x14] sm:$0xf0]  ;;  %v7767_v46 = vor.u32 %v8685_v61, %v7766_v22  ;;  %v7718_v45 = vld [vmem:[#allocation2 + $0x388] sm:$0xf] }
 0xca7   :  { %6242 = vmatpush.bf16.msra.mxu3 %v8275_v29  ;;  %6211 = vmatmul.bf16.vlgmr.msrb.gmra.mxu0 %v12365_v0  ;;  %v8192_v29 = vld [vmem:[#allocation2 + $0x750] sm:$0xf0]  ;;  %v8717_v20 = vld [vmem:[#allocation2 + $0x4f4] sm:$0xf0]  ;;  %v7974_v35 = vld [vmem:[#allocation2 + $0x588] sm:$0xf] }
 0xca8   :  { %6255 = vmatpush.bf16.msra.mxu0 %v8403_v44  ;;  %v7430_v44 = vld [vmem:[#allocation2 + $0x148] sm:$0xf]  ;;  %v8195_v51 = vor.u32 %v8790_v26, %v8192_v29  ;;  %v8681_v4 = vld [vmem:[#allocation2 + $0x3d4] sm:$0xf0] }
 0xca9   :  { %6223 = vmatpush.bf16.msra.mxu1 %v7907_v23  ;;  %6237 = vmatmul.bf16.vlgmr.msrb.gmra.mxu2 %v12369_v58  ;;  %v8569_v23 = vld [vmem:[#allocation2 + $0x54] sm:$0xf0]  ;;  %v7878_v26 = vld [vmem:[#allocation2 + $0x4c8] sm:$0xf] }
 0xcaa   :  { %6281 = vmatpush.bf16.msra.mxu2 %v7511_v43  ;;  %v8601_v43 = vld [vmem:[#allocation2 + $0x154] sm:$0xf0]  ;;  %v7958_v61 = vld [vmem:[#allocation2 + $0x568] sm:$0xf] }
 0xcab   :  { %6243 = vmatpush.bf16.msra.mxu3 %v8259_v16  ;;  %v7431_v13 = vor.u32 %v8601_v43, %v7430_v44  ;;  %v8818_v16 = vld [vmem:[#allocation2 + $0x824] sm:$0xf]  ;;  %v8713_v29 = vld [vmem:[#allocation2 + $0x4d4] sm:$0xf0]  ;;  %v7606_v44 = vld [vmem:[#allocation2 + $0x2a8] sm:$0xf] }
 0xcac   :  { %6256 = vmatpush.bf16.msra.mxu0 %v8387_v10  ;;  %6224 = vmatmul.bf16.vlgmr.msra.gmra.mxu1 %v12367_v25  ;;  %v8597_v10 = vld [vmem:[#allocation2 + $0x134] sm:$0xf0]  ;;  %v8307_v63 = vor.u32 %v8818_v16, %v8304_v59 }
 0xcad   :  { %6268 = vmatpush.bf16.msrb.mxu1 %v7383_v32  ;;  %v8176_v32 = vld [vmem:[#allocation2 + $0x730] sm:$0xf0]  ;;  %v8737_v11 = vld [vmem:[#allocation2 + $0x594] sm:$0xf0] }
 0xcae   :  { %6282 = vmatpush.bf16.msra.mxu2 %v7495_v33  ;;  %v7303_v33 = vor.u32 %v8569_v23, %v7302_v48  ;;  %v8179_v27 = vor.u32 %v8786_v37, %v8176_v32  ;;  %v8677_v48 = vld [vmem:[#allocation2 + $0x3b4] sm:$0xf0]  ;;  %v7879_v23 = vor.u32 %v8713_v29, %v7878_v26  ;;  %v7862_v37 = vld [vmem:[#allocation2 + $0x4a8] sm:$0xf] }
 0xcaf   :  { %6244 = vmatpush.bf16.msra.mxu3 %v8243_v5  ;;  %v8814_v5 = vld [vmem:[#allocation2 + $0x804] sm:$0xf]  ;;  %v8709_v32 = vld [vmem:[#allocation2 + $0x4b4] sm:$0xf0]  ;;  %v7542_v26 = vld [vmem:[#allocation2 + $0x228] sm:$0xf] }
 0xcb0   :  { %6257 = vmatpush.bf16.msra.mxu0 %v8371_v17  ;;  %v8593_v17 = vld [vmem:[#allocation2 + $0x114] sm:$0xf0]  ;;  %v8291_v41 = vor.u32 %v8814_v5, %v8288_v49  ;;  %v7863_v1 = vor.u32 %v8709_v32, %v7862_v37 }
 0xcb1   :  { %6269 = vmatpush.bf16.msrb.mxu1 %v7367_v57  ;;  %v7415_v57 = vor.u32 %v8597_v10, %v7414_v24  ;;  %v7590_v24 = vld [vmem:[#allocation2 + $0x288] sm:$0xf] }
 0xcb2   :  { %6283 = vmatpush.bf16.msra.mxu2 %v7479_v60  ;;  %v7638_v60 = vld [vmem:[#allocation2 + $0x2e8] sm:$0xf] }
 0xcb3   :  { %6245 = vmatpush.bf16.msra.mxu3 %v8227_v8  ;;  %v7270_v8 = vld [vmem:[#allocation2 + $0x8] sm:$0xf]  ;;  %v7639_v19 = vor.u32 %v8653_v21, %v7638_v60  ;;  %v8637_v60 = vld [vmem:[#allocation2 + $0x274] sm:$0xf0] }
 0xcb4   :  { %6258 = vmatpush.bf16.msra.mxu0 %v8355_v31  ;;  %v7399_v31 = vor.u32 %v8593_v17, %v7398_v40  ;;  %v7271_v39 = vor.u32 %v8561_v42, %v7270_v8  ;;  %v7574_v40 = vld [vmem:[#allocation2 + $0x268] sm:$0xf]  ;;  %v7975_v17 = vor.u32 %v8737_v11, %v7974_v35  ;;  %v8701_v8 = vld [vmem:[#allocation2 + $0x474] sm:$0xf0] }
 0xcb5   :  { %6270 = vmatpush.bf16.msrb.mxu1 %v7351_v53  ;;  %v8749_v53 = vld [vmem:[#allocation2 + $0x5f4] sm:$0xf0]  ;;  %v7702_v21 = vld [vmem:[#allocation2 + $0x368] sm:$0xf]  ;;  %v7575_v42 = vor.u32 %v8637_v60, %v7574_v40  ;;  %v8587_v60 = vld [vmem:[#allocation2 + $0xec] sm:$0xf] }
 0xcb6   :  { %6284 = vmatpush.bf16.msra.mxu2 %v7463_v18  ;;  %v7894_v18 = vld [vmem:[#allocation2 + $0x4e8] sm:$0xf]  ;;  %v8023_v3 = vor.u32 %v8749_v53, %v8022_v28  ;;  %v8733_v28 = vld [vmem:[#allocation2 + $0x574] sm:$0xf0] }
 0xcb7   :  { %6246 = vmatpush.bf16.msra.mxu3 %v8211_v36  ;;  %v7750_v36 = vld [vmem:[#allocation2 + $0x3c8] sm:$0xf]  ;;  %v7895_v38 = vor.u32 %v8717_v20, %v7894_v18  ;;  %v7959_v20 = vor.u32 %v8733_v28, %v7958_v61  ;;  %v8721_v11 = vld [vmem:[#allocation2 + $0x514] sm:$0xf0] }
 0xcb8   :  { %6259 = vmatpush.bf16.msra.mxu0 %v8339_v50  ;;  %v8006_v50 = vld [vmem:[#allocation2 + $0x5c8] sm:$0xf]  ;;  %v7751_v6 = vor.u32 %v8681_v4, %v7750_v36  ;;  %v8697_v4 = vld [vmem:[#allocation2 + $0x454] sm:$0xf0] }
 0xcb9   :  { %6271 = vmatpush.bf16.msrb.mxu1 %v7335_v9  ;;  %v8649_v9 = vld [vmem:[#allocation2 + $0x2d4] sm:$0xf0]  ;;  %v7830_v53 = vld [vmem:[#allocation2 + $0x468] sm:$0xf] }
 0xcba   :  { %6285 = vmatpush.bf16.msra.mxu2 %v7447_v7  ;;  %v8745_v7 = vld [vmem:[#allocation2 + $0x5d4] sm:$0xf0]  ;;  %v7623_v15 = vor.u32 %v8649_v9, %v7622_v47  ;;  %v7814_v36 = vld [vmem:[#allocation2 + $0x448] sm:$0xf] }
 0xcbb   :  { %6247 = vmatpush.bf16.msra.mxu3 %v8195_v51  ;;  %v8007_v43 = vor.u32 %v8745_v7, %v8006_v50  ;;  %v7734_v51 = vld [vmem:[#allocation2 + $0x3a8] sm:$0xf]  ;;  %v8665_v47 = vld [vmem:[#allocation2 + $0x354] sm:$0xf0] }
 0xcbc   :  { %6260 = vmatpush.bf16.msra.mxu0 %v8323_v14  ;;  %v7990_v14 = vld [vmem:[#allocation2 + $0x5a8] sm:$0xf]  ;;  %v7735_v59 = vor.u32 %v8677_v48, %v7734_v51  ;;  %v8729_v9 = vld [vmem:[#allocation2 + $0x554] sm:$0xf0] }
 0xcbd   :  { %6272 = vmatpush.bf16.msrb.mxu1 %v7319_v30  ;;  %v8645_v30 = vld [vmem:[#allocation2 + $0x2b4] sm:$0xf0]  ;;  %v7926_v51 = vld [vmem:[#allocation2 + $0x528] sm:$0xf] }
 0xcbe   :  { %6286 = vmatpush.bf16.msra.mxu2 %v7431_v13  ;;  %v8741_v13 = vld [vmem:[#allocation2 + $0x5b4] sm:$0xf0]  ;;  %v7607_v16 = vor.u32 %v8645_v30, %v7606_v44  ;;  %v7670_v44 = vld [vmem:[#allocation2 + $0x328] sm:$0xf]  ;;  %v7815_v30 = vor.u32 %v8697_v4, %v7814_v36 }
 0xcbf   :  { %6248 = vmatpush.bf16.msra.mxu3 %v8179_v27  ;;  %v7991_v10 = vor.u32 %v8741_v13, %v7990_v14  ;;  %v8673_v27 = vld [vmem:[#allocation2 + $0x394] sm:$0xf0]  ;;  %v7798_v14 = vld [vmem:[#allocation2 + $0x428] sm:$0xf] }
 0xcc0   :  { %6261 = vmatpush.bf16.msra.mxu0 %v8307_v63  ;;  %v7846_v63 = vld [vmem:[#allocation2 + $0x488] sm:$0xf]  ;;  %v7719_v49 = vor.u32 %v8673_v27, %v7718_v45  ;;  %v8725_v48 = vld [vmem:[#allocation2 + $0x534] sm:$0xf0] }
 0xcc1   :  { %6273 = vmatpush.bf16.msrb.mxu1 %v7303_v33  ;;  %v8641_v33 = vld [vmem:[#allocation2 + $0x294] sm:$0xf0]  ;;  %v7927_v27 = vor.u32 %v8725_v48, %v7926_v51  ;;  %v7910_v35 = vld [vmem:[#allocation2 + $0x508] sm:$0xf]  ;;  %v8579_v48 = vld [vmem:[#allocation2 + $0xac] sm:$0xf] }
 0xcc2   :  { %6287 = vmatpush.bf16.msra.mxu2 %v7415_v57  ;;  %v8705_v57 = vld [vmem:[#allocation2 + $0x494] sm:$0xf0]  ;;  %v7591_v5 = vor.u32 %v8641_v33, %v7590_v24  ;;  %v7782_v28 = vld [vmem:[#allocation2 + $0x408] sm:$0xf] }
 0xcc3   :  { %6249 = vmatpush.bf16.msra.mxu3 %v8163_v2  ;;  %v7847_v22 = vor.u32 %v8705_v57, %v7846_v63  ;;  %v8693_v13 = vld [vmem:[#allocation2 + $0x434] sm:$0xf0]  ;;  %v8150_v57 = vld [vmem:[#allocation2 + $0x6e8] sm:$0xf] }
 0xcc4   :  { %6262 = vmatpush.bf16.msra.mxu0 %v8291_v41  ;;  %v6056_v2 = vpop.f32.mrf.mxu0  ;;  %v8625_v24 = vld [vmem:[#allocation2 + $0x214] sm:$0xf0]  ;;  %v7799_v63 = vor.u32 %v8693_v13, %v7798_v14 }
 0xcc5   :  { %6274 = vmatpush.bf16.msrb.mxu1 %v7287_v55  ;;  %v8669_v55 = vld [vmem:[#allocation2 + $0x374] sm:$0xf0] }
 0xcc6   :  { %6288 = vmatpush.bf16.msra.mxu2 %v7399_v31  ;;  %6250 = vmatmul.bf16.vlgmr.msra.gmra.mxu3 %v12371_v54  ;;  %v7703_v41 = vor.u32 %v8669_v55, %v7702_v21  ;;  %v7558_v31 = vld [vmem:[#allocation2 + $0x248] sm:$0xf]  ;;  %v7384_v21 = vld [vmem:[#allocation2 + $0xf8] sm:$0xf0]  ;;  %v8809_v4 = vld [vmem:[#allocation2 + $0x7d4] sm:$0xf0] }
 0xcc7   :  { %6294 = vmatpush.bf16.msrb.mxu3 %v7639_v19  ;;  %6263 = vmatmul.bf16.vlgmr.msra.gmra.mxu0 %v12373_v12  ;;  %v8633_v19 = vld [vmem:[#allocation2 + $0x254] sm:$0xf0] }
 0xcc8   :  { %6307 = vmatpush.bf16.msrb.mxu0 %v7767_v46  ;;  %v7686_v46 = vld [vmem:[#allocation2 + $0x348] sm:$0xf]  ;;  %v7559_v50 = vor.u32 %v8633_v19, %v7558_v31  ;;  %v8845_v19 = vld [vmem:[#allocation2 + $0x8f4] sm:$0xf0] }
 0xcc9   :  { %6275 = vmatpush.bf16.msrb.mxu1 %v7271_v39  ;;  %6289 = vmatmul.bf16.vlgmr.msra.gmra.mxu2 %v12359_v62  ;;  %v12398_v18 = vpop.f32.mrf.mxu1  ;;  %v7942_v39 = vld [vmem:[#allocation2 + $0x548] sm:$0xf]  ;;  %v7687_v7 = vor.u32 %v8665_v47, %v7686_v46  ;;  %v7387_v46 = vor.u32 %v8587_v60, %v7384_v21  ;;  %v8805_v51 = vld [vmem:[#allocation2 + $0x7b4] sm:$0xf0] }
 0xcca   :  { %6333 = vmatpush.bf16.msrb.mxu2 %v8023_v3  ;;  %v7831_v3 = vor.u32 %v8701_v8, %v7830_v53  ;;  %v8689_v53 = vld [vmem:[#allocation2 + $0x414] sm:$0xf0]  ;;  %v8134_v47 = vld [vmem:[#allocation2 + $0x6c8] sm:$0xf] }
 0xccb   :  { %6295 = vmatpush.bf16.msrb.mxu3 %v7623_v15  ;;  %v6082_v29 = vpop.f32.mrf.mxu2  ;;  %v7943_v15 = vor.u32 %v8729_v9, %v7942_v39  ;;  %v8262_v39 = vld [vmem:[#allocation2 + $0x7c8] sm:$0xf]  ;;  %v7783_v36 = vor.u32 %v8689_v53, %v7782_v28  ;;  %v8765_v60 = vld [vmem:[#allocation2 + $0x674] sm:$0xf0] }
 0xccc   :  { %6308 = vmatpush.bf16.msrb.mxu0 %v7751_v6  ;;  %6276 = vmatmul.bf16.vlgmr.msrb.gmra.mxu1 %v12357_v34  ;;  %v8629_v6 = vld [vmem:[#allocation2 + $0x234] sm:$0xf0]  ;;  %v8214_v21 = vld [vmem:[#allocation2 + $0x768] sm:$0xf] }
 0xccd   :  { %6320 = vmatpush.bf16.msra.mxu1 %v7895_v38  ;;  %v6043_v38 = vpop.f32.mrf.mxu3  ;;  %v7543_v32 = vor.u32 %v8629_v6, %v7542_v26  ;;  %v8390_v26 = vld [vmem:[#allocation2 + $0x8c8] sm:$0xf]  ;;  %v8263_v6 = vor.u32 %v8809_v4, %v8262_v39  ;;  %v8567_v39 = vld [vmem:[#allocation2 + $0x4c] sm:$0xf] }
 0xcce   :  { %6334 = vmatpush.bf16.msrb.mxu2 %v8007_v43  ;;  %v8661_v43 = vld [vmem:[#allocation2 + $0x334] sm:$0xf0] }
 0xccf   :  { %6296 = vmatpush.bf16.msrb.mxu3 %v7607_v16  ;;  %v7671_v16 = vor.u32 %v8661_v43, %v7670_v44  ;;  %v8118_v43 = vld [vmem:[#allocation2 + $0x6a8] sm:$0xf] }
 0xcd0   :  { %6309 = vmatpush.bf16.msrb.mxu0 %v7735_v59  ;;  %v7526_v59 = vld [vmem:[#allocation2 + $0x208] sm:$0xf] }
 0xcd1   :  { %6321 = vmatpush.bf16.msra.mxu1 %v7879_v23  ;;  %v6058_v23 = vpop.f32.mrf.mxu0  ;;  %v6071_v45 = vpop.f32.mrf.mxu1 }
 0xcd2   :  { %6335 = vmatpush.bf16.msrb.mxu2 %v7991_v10  ;;  %v7654_v10 = vld [vmem:[#allocation2 + $0x308] sm:$0xf]  ;;  %v7352_v23 = vld [vmem:[#allocation2 + $0xb8] sm:$0xf0] }
 0xcd3   :  { %6297 = vmatpush.bf16.msrb.mxu3 %v7591_v5  ;;  %v8781_v5 = vld [vmem:[#allocation2 + $0x6f4] sm:$0xf0]  ;;  %v6084_v8 = vpop.f32.mrf.mxu2  ;;  %v8230_v45 = vld [vmem:[#allocation2 + $0x788] sm:$0xf] }
 0xcd4   :  { %6310 = vmatpush.bf16.msrb.mxu0 %v7719_v49  ;;  %v8278_v49 = vld [vmem:[#allocation2 + $0x7e8] sm:$0xf]  ;;  %v8151_v31 = vor.u32 %v8781_v5, %v8150_v57  ;;  %v8833_v5 = vld [vmem:[#allocation2 + $0x894] sm:$0xf0] }
 0xcd5   :  { %6322 = vmatpush.bf16.msra.mxu1 %v7863_v1  ;;  %v8657_v1 = vld [vmem:[#allocation2 + $0x314] sm:$0xf0]  ;;  %v6045_v55 = vpop.f32.mrf.mxu3  ;;  %v8358_v57 = vld [vmem:[#allocation2 + $0x888] sm:$0xf] }
 0xcd6   :  { %6336 = vmatpush.bf16.msrb.mxu2 %v7975_v17  ;;  %v8813_v17 = vld [vmem:[#allocation2 + $0x7f4] sm:$0xf0]  ;;  %v7655_v61 = vor.u32 %v8657_v1, %v7654_v10  ;;  %v8102_v10 = vld [vmem:[#allocation2 + $0x688] sm:$0xf]  ;;  %v8575_v1 = vld [vmem:[#allocation2 + $0x8c] sm:$0xf]  ;;  %v8359_v28 = vor.u32 %v8833_v5, %v8358_v57 }
 0xcd7   :  { %6298 = vmatpush.bf16.msrb.mxu3 %v7575_v42  ;;  %v12400_v37 = vpop.permute.xlu0 %4591  ;;  %v8797_v55 = vld [vmem:[#allocation2 + $0x774] sm:$0xf0]  ;;  %v7272_v57 = vld [vmem:[#allocation2 + $0x18] sm:$0xf0] }
 0xcd8   :  { %6311 = vmatpush.bf16.msrb.mxu0 %v7703_v41  ;;  %v6044_v33 = vadd.f32 %v6043_v38, %v12400_v37  ;;  %v7911_v41 = vor.u32 %v8721_v11, %v7910_v35  ;;  %v8583_v38 = vld [vmem:[#allocation2 + $0xcc] sm:$0xf]  ;;  %v7336_v35 = vld [vmem:[#allocation2 + $0x98] sm:$0xf0] }
 0xcd9   :  { %6323 = vmatpush.bf16.msra.mxu1 %v7847_v22  ;;  %v7527_v22 = vor.u32 %v8625_v24, %v7526_v59  ;;  %v7355_v24 = vor.u32 %v8579_v48, %v7352_v23  ;;  %v8563_v48 = vld [vmem:[#allocation2 + $0x2c] sm:$0xf]  ;;  %v7288_v23 = vld [vmem:[#allocation2 + $0x38] sm:$0xf0] }
 0xcda   :  { %6337 = vmatpush.bf16.msrb.mxu2 %v7959_v20  ;;  %v6057_v40 = vadd.f32 %v6056_v2, %v6044_v33  ;;  %v8406_v20 = vld [vmem:[#allocation2 + $0x8e8] sm:$0xf]  ;;  %v8279_v2 = vor.u32 %v8813_v17, %v8278_v49  ;;  %v8769_v33 = vld [vmem:[#allocation2 + $0x694] sm:$0xf0] }
 0xcdb   :  { %6299 = vmatpush.bf16.msrb.mxu3 %v7559_v50  ;;  %v7368_v50 = vld [vmem:[#allocation2 + $0xd8] sm:$0xf0]  ;;  %v8086_v17 = vld [vmem:[#allocation2 + $0x668] sm:$0xf] }
 0xcdc   :  { %6312 = vmatpush.bf16.msrb.mxu0 %v7687_v7  ;;  %v6070_v42 = vadd.f32 %v12398_v18, %v6057_v40  ;;  %v8407_v18 = vor.u32 %v8845_v19, %v8406_v20  ;;  %v7371_v44 = vor.u32 %v8583_v38, %v7368_v50  ;;  %v7339_v40 = vor.u32 %v8575_v1, %v7336_v35  ;;  %v8070_v19 = vld [vmem:[#allocation2 + $0x648] sm:$0xf]  ;;  %v8785_v35 = vld [vmem:[#allocation2 + $0x714] sm:$0xf0] }
 0xcdd   :  { %6324 = vmatpush.bf16.msra.mxu1 %v7831_v3  ;;  %v8777_v3 = vld [vmem:[#allocation2 + $0x6d4] sm:$0xf0]  ;;  %v8087_v8 = vor.u32 %v8765_v60, %v8086_v17  ;;  %v8166_v1 = vld [vmem:[#allocation2 + $0x708] sm:$0xf]  ;;  %v8651_v60 = vld [vmem:[#allocation2 + $0x2ec] sm:$0xf] }
 0xcde   :  { %6338 = vmatpush.bf16.msrb.mxu2 %v7943_v15  ;;  %v12404_v9 = vadd.f32 %v6082_v29, %v6070_v42  ;;  %v8135_v7 = vor.u32 %v8777_v3, %v8134_v47  ;;  %v8841_v15 = vld [vmem:[#allocation2 + $0x8d4] sm:$0xf0]  ;;  %v8246_v29 = vld [vmem:[#allocation2 + $0x7a8] sm:$0xf] }
 0xcdf   :  { %6300 = vmatpush.bf16.msrb.mxu3 %v7543_v32  ;;  %v8391_v14 = vor.u32 %v8841_v15, %v8390_v26  ;;  %v8374_v32 = vld [vmem:[#allocation2 + $0x8a8] sm:$0xf]  ;;  %v8247_v59 = vor.u32 %v8805_v51, %v8246_v29  ;;  %v8793_v3 = vld [vmem:[#allocation2 + $0x754] sm:$0xf0] }
 0xce0   :  { %6313 = vmatpush.bf16.msrb.mxu0 %v7671_v16  ;;  %v8837_v16 = vld [vmem:[#allocation2 + $0x8b4] sm:$0xf0]  ;;  %v8342_v42 = vld [vmem:[#allocation2 + $0x868] sm:$0xf] }
 0xce1   :  { %6325 = vmatpush.bf16.msra.mxu1 %v7815_v30  ;;  %v8773_v30 = vld [vmem:[#allocation2 + $0x6b4] sm:$0xf0]  ;;  %v8375_v11 = vor.u32 %v8837_v16, %v8374_v32  ;;  %v8182_v29 = vld [vmem:[#allocation2 + $0x728] sm:$0xf] }
 0xce2   :  { %6339 = vmatpush.bf16.msrb.mxu2 %v7927_v27  ;;  %v8119_v13 = vor.u32 %v8773_v30, %v8118_v43  ;;  %v8801_v27 = vld [vmem:[#allocation2 + $0x794] sm:$0xf0]  ;;  %v8054_v43 = vld [vmem:[#allocation2 + $0x628] sm:$0xf] }
 0xce3   :  { %6301 = vmatpush.bf16.msrb.mxu3 %v7527_v22  ;;  %v8231_v49 = vor.u32 %v8801_v27, %v8230_v45  ;;  %v8571_v22 = vld [vmem:[#allocation2 + $0x6c] sm:$0xf]  ;;  %v8757_v30 = vld [vmem:[#allocation2 + $0x634] sm:$0xf0]  ;;  %v8310_v32 = vld [vmem:[#allocation2 + $0x828] sm:$0xf]  ;;  %v7291_v27 = vor.u32 %v8563_v48, %v7288_v23 }
 0xce4   :  { %6314 = vmatpush.bf16.msrb.mxu0 %v7655_v61  ;;  %v7320_v61 = vld [vmem:[#allocation2 + $0x78] sm:$0xf0]  ;;  %v6108_v53 = vpop.f32.mrf.mxu0  ;;  %v8789_v51 = vld [vmem:[#allocation2 + $0x734] sm:$0xf0] }
 0xce5   :  { %6326 = vmatpush.bf16.msra.mxu1 %v7799_v63  ;;  %v8103_v63 = vor.u32 %v8769_v33, %v8102_v10  ;;  %v7323_v20 = vor.u32 %v8571_v22, %v7320_v61  ;;  %v8038_v10 = vld [vmem:[#allocation2 + $0x608] sm:$0xf]  ;;  %v8753_v33 = vld [vmem:[#allocation2 + $0x614] sm:$0xf0]  ;;  %v8183_v45 = vor.u32 %v8789_v51, %v8182_v29  ;;  %v7480_v29 = vld [vmem:[#allocation2 + $0x1b8] sm:$0xf0] }
 0xce6   :  { %6340 = vmatpush.bf16.msrb.mxu2 %v7911_v41  ;;  %6302 = vmatmul.bf16.vlgmr.msrb.gmra.mxu3 %v12361_v52  ;;  %v8829_v41 = vld [vmem:[#allocation2 + $0x874] sm:$0xf0]  ;;  %v8039_v61 = vor.u32 %v8753_v33, %v8038_v10  ;;  %v8643_v51 = vld [vmem:[#allocation2 + $0x2ac] sm:$0xf]  ;;  %v7608_v48 = vld [vmem:[#allocation2 + $0x2b8] sm:$0xf0] }
 0xce7   :  { %6346 = vmatpush.bf16.msra.mxu3 %v8151_v31  ;;  %6315 = vmatmul.bf16.vlgmr.msrb.gmra.mxu0 %v12363_v56  ;;  %v8215_v31 = vor.u32 %v8797_v55, %v8214_v21  ;;  %v8343_v4 = vor.u32 %v8829_v41, %v8342_v42  ;;  %v7640_v21 = vld [vmem:[#allocation2 + $0x2f8] sm:$0xf0]  ;;  %v8715_v55 = vld [vmem:[#allocation2 + $0x4ec] sm:$0xf]  ;;  %v8167_v41 = vor.u32 %v8785_v35, %v8166_v1 }
 0xce8   :  { %6359 = vmatpush.bf16.msra.mxu0 %v8279_v2  ;;  %v8761_v2 = vld [vmem:[#allocation2 + $0x654] sm:$0xf0]  ;;  %v7464_v33 = vld [vmem:[#allocation2 + $0x198] sm:$0xf0]  ;;  %v8703_v35 = vld [vmem:[#allocation2 + $0x48c] sm:$0xf] }
 0xce9   :  { %6327 = vmatpush.bf16.msra.mxu1 %v7783_v36  ;;  %6341 = vmatmul.bf16.vlgmr.msrb.gmra.mxu2 %v12367_v25  ;;  %v6121_v47 = vpop.f32.mrf.mxu1  ;;  %v7304_v36 = vld [vmem:[#allocation2 + $0x58] sm:$0xf0]  ;;  %v6095_v38 = vpop.f32.mrf.mxu3  ;;  %v8071_v50 = vor.u32 %v8761_v2, %v8070_v19 }
 0xcea   :  { %6385 = vmatpush.bf16.msra.mxu2 %v7387_v46  ;;  %v8198_v46 = vld [vmem:[#allocation2 + $0x748] sm:$0xf]  ;;  %v6096_v26 = vadd.f32 %v6095_v38, %v12404_v9  ;;  %v7768_v19 = vld [vmem:[#allocation2 + $0x3f8] sm:$0xf0] }
 0xceb   :  { %6347 = vmatpush.bf16.msra.mxu3 %v8135_v7  ;;  %v8825_v7 = vld [vmem:[#allocation2 + $0x854] sm:$0xf0]  ;;  %v7624_v38 = vld [vmem:[#allocation2 + $0x2d8] sm:$0xf0] }
 0xcec   :  { %6360 = vmatpush.bf16.msra.mxu0 %v8263_v6  ;;  %6328 = vmatmul.bf16.vlgmr.msra.gmra.mxu1 %v12365_v0  ;;  %v6134_v15 = vpop.f32.mrf.mxu2  ;;  %v8199_v6 = vor.u32 %v8793_v3, %v8198_v46  ;;  %v6110_v16 = vpop.f32.mrf.mxu0  ;;  %v7643_v46 = vor.u32 %v8651_v60, %v7640_v21  ;;  %v7448_v60 = vld [vmem:[#allocation2 + $0x178] sm:$0xf0]  ;;  %v8635_v21 = vld [vmem:[#allocation2 + $0x26c] sm:$0xf] }
 0xced   :  { %6372 = vmatpush.bf16.msrb.mxu1 %v8407_v18  ;;  %v8326_v18 = vld [vmem:[#allocation2 + $0x848] sm:$0xf]  ;;  %v7736_v16 = vld [vmem:[#allocation2 + $0x3b8] sm:$0xf0] }
 0xcee   :  { %6386 = vmatpush.bf16.msra.mxu2 %v7371_v44  ;;  %v7307_v44 = vor.u32 %v8567_v39, %v7304_v36  ;;  %v7496_v36 = vld [vmem:[#allocation2 + $0x1d8] sm:$0xf0] }
 0xcef   :  { %6348 = vmatpush.bf16.msra.mxu3 %v8119_v13  ;;  %v8327_v13 = vor.u32 %v8825_v7, %v8326_v18  ;;  %v8711_v18 = vld [vmem:[#allocation2 + $0x4cc] sm:$0xf]  ;;  %v7880_v7 = vld [vmem:[#allocation2 + $0x4d8] sm:$0xf0] }
 0xcf0   :  { %6361 = vmatpush.bf16.msra.mxu0 %v8247_v59  ;;  %v8055_v59 = vor.u32 %v8757_v30, %v8054_v43  ;;  %v8611_v43 = vld [vmem:[#allocation2 + $0x1ac] sm:$0xf]  ;;  %v7883_v30 = vor.u32 %v8711_v18, %v7880_v7  ;;  %v7688_v18 = vld [vmem:[#allocation2 + $0x358] sm:$0xf0] }
 0xcf1   :  { %6373 = vmatpush.bf16.msrb.mxu1 %v8391_v14  ;;  %v6109_v14 = vadd.f32 %v6108_v53, %v6096_v26  ;;  %v6097_v22 = vpop.f32.mrf.mxu3  ;;  %v8294_v53 = vld [vmem:[#allocation2 + $0x808] sm:$0xf]  ;;  %v8679_v26 = vld [vmem:[#allocation2 + $0x3cc] sm:$0xf] }
 0xcf2   :  { %6387 = vmatpush.bf16.msra.mxu2 %v7355_v24  ;;  %v8821_v24 = vld [vmem:[#allocation2 + $0x834] sm:$0xf0] }
 0xcf3   :  { %6349 = vmatpush.bf16.msra.mxu3 %v8103_v63  ;;  %v6122_v9 = vadd.f32 %v6121_v47, %v6109_v14  ;;  %v6123_v63 = vpop.f32.mrf.mxu1  ;;  %v8311_v17 = vor.u32 %v8821_v24, %v8310_v32  ;;  %v8615_v47 = vld [vmem:[#allocation2 + $0x1cc] sm:$0xf]  ;;  %v7611_v24 = vor.u32 %v8643_v51, %v7608_v48 }
 0xcf4   :  { %6362 = vmatpush.bf16.msra.mxu0 %v8231_v49  ;;  %v8619_v49 = vld [vmem:[#allocation2 + $0x1ec] sm:$0xf]  ;;  %v6136_v42 = vpop.f32.mrf.mxu2 }
 0xcf5   :  { %6374 = vmatpush.bf16.msrb.mxu1 %v8375_v11  ;;  %v8559_v11 = vld [vmem:[#allocation2 + $0xc] sm:$0xf]  ;;  %v12411_v5 = vadd.f32 %v6134_v15, %v6122_v9  ;;  %v7752_v15 = vld [vmem:[#allocation2 + $0x3d8] sm:$0xf0] }
 0xcf6   :  { %6388 = vmatpush.bf16.msra.mxu2 %v7339_v40  ;;  %v7512_v40 = vld [vmem:[#allocation2 + $0x1f8] sm:$0xf0]  ;;  %v7755_v23 = vor.u32 %v8679_v26, %v7752_v15  ;;  %v8707_v14 = vld [vmem:[#allocation2 + $0x4ac] sm:$0xf] }
 0xcf7   :  { %6350 = vmatpush.bf16.msra.mxu3 %v8087_v8  ;;  %v8817_v8 = vld [vmem:[#allocation2 + $0x814] sm:$0xf0]  ;;  %v7515_v2 = vor.u32 %v8619_v49, %v7512_v40  ;;  %v8675_v32 = vld [vmem:[#allocation2 + $0x3ac] sm:$0xf]  ;;  %v7704_v42 = vld [vmem:[#allocation2 + $0x378] sm:$0xf0] }
 0xcf8   :  { %6363 = vmatpush.bf16.msra.mxu0 %v8215_v31  ;;  %v7275_v31 = vor.u32 %v8559_v11, %v7272_v57  ;;  %v8295_v39 = vor.u32 %v8817_v8, %v8294_v53  ;;  %v8607_v9 = vld [vmem:[#allocation2 + $0x18c] sm:$0xf]  ;;  %v7739_v1 = vor.u32 %v8675_v32, %v7736_v16  ;;  %v7848_v11 = vld [vmem:[#allocation2 + $0x498] sm:$0xf0] }
 0xcf9   :  { %6375 = vmatpush.bf16.msrb.mxu1 %v8359_v28  ;;  %v7896_v28 = vld [vmem:[#allocation2 + $0x4f8] sm:$0xf0]  ;;  %v8671_v63 = vld [vmem:[#allocation2 + $0x38c] sm:$0xf] }
 0xcfa   :  { %6389 = vmatpush.bf16.msra.mxu2 %v7323_v20  ;;  %v8683_v20 = vld [vmem:[#allocation2 + $0x3ec] sm:$0xf]  ;;  %v7899_v3 = vor.u32 %v8715_v55, %v7896_v28  ;;  %v7720_v57 = vld [vmem:[#allocation2 + $0x398] sm:$0xf0] }
 0xcfb   :  { %6351 = vmatpush.bf16.msra.mxu3 %v8071_v50  ;;  %v7771_v50 = vor.u32 %v8683_v20, %v7768_v19  ;;  %v8603_v40 = vld [vmem:[#allocation2 + $0x16c] sm:$0xf]  ;;  %v7576_v55 = vld [vmem:[#allocation2 + $0x278] sm:$0xf0]  ;;  %v7723_v22 = vor.u32 %v8671_v63, %v7720_v57 }
 0xcfc   :  { %6364 = vmatpush.bf16.msra.mxu0 %v8199_v6  ;;  %v7499_v6 = vor.u32 %v8615_v47, %v7496_v36  ;;  %v7832_v28 = vld [vmem:[#allocation2 + $0x478] sm:$0xf0]  ;;  %v8667_v8 = vld [vmem:[#allocation2 + $0x36c] sm:$0xf] }
 0xcfd   :  { %6376 = vmatpush.bf16.msrb.mxu1 %v8343_v4  ;;  %v8647_v4 = vld [vmem:[#allocation2 + $0x2cc] sm:$0xf]  ;;  %v7672_v32 = vld [vmem:[#allocation2 + $0x338] sm:$0xf0] }
 0xcfe   :  { %6390 = vmatpush.bf16.msra.mxu2 %v7307_v44  ;;  %v7627_v44 = vor.u32 %v8647_v4, %v7624_v38  ;;  %v8599_v20 = vld [vmem:[#allocation2 + $0x14c] sm:$0xf]  ;;  %v7816_v4 = vld [vmem:[#allocation2 + $0x458] sm:$0xf0] }
 0xcff   :  { %6352 = vmatpush.bf16.msra.mxu3 %v8055_v59  ;;  %v7483_v59 = vor.u32 %v8611_v43, %v7480_v29  ;;  %v8631_v47 = vld [vmem:[#allocation2 + $0x24c] sm:$0xf]  ;;  %v7416_v43 = vld [vmem:[#allocation2 + $0x138] sm:$0xf0] }
 0xd00   :  { %6365 = vmatpush.bf16.msra.mxu0 %v8183_v45  ;;  %v8639_v45 = vld [vmem:[#allocation2 + $0x28c] sm:$0xf]  ;;  %v7544_v29 = vld [vmem:[#allocation2 + $0x238] sm:$0xf0] }
 0xd01   :  { %6377 = vmatpush.bf16.msrb.mxu1 %v8327_v13  ;;  %v7864_v13 = vld [vmem:[#allocation2 + $0x4b8] sm:$0xf0]  ;;  %v8695_v36 = vld [vmem:[#allocation2 + $0x44c] sm:$0xf] }
 0xd02   :  { %6391 = vmatpush.bf16.msra.mxu2 %v7291_v27  ;;  %v7867_v10 = vor.u32 %v8707_v14, %v7864_v13  ;;  %v7592_v27 = vld [vmem:[#allocation2 + $0x298] sm:$0xf0]  ;;  %v8595_v15 = vld [vmem:[#allocation2 + $0x12c] sm:$0xf] }
 0xd03   :  { %6353 = vmatpush.bf16.msra.mxu3 %v8039_v61  ;;  %v7595_v49 = vor.u32 %v8639_v45, %v7592_v27  ;;  %v8699_v61 = vld [vmem:[#allocation2 + $0x46c] sm:$0xf]  ;;  %v7419_v16 = vor.u32 %v8595_v15, %v7416_v43  ;;  %v7528_v27 = vld [vmem:[#allocation2 + $0x218] sm:$0xf0] }
 0xd04   :  { %6366 = vmatpush.bf16.msra.mxu0 %v8167_v41  ;;  %v12417_v53 = vpop.f32.mrf.mxu0  ;;  %v7451_v41 = vor.u32 %v8603_v40, %v7448_v60  ;;  %v8691_v48 = vld [vmem:[#allocation2 + $0x42c] sm:$0xf]  ;;  %v8024_v57 = vld [vmem:[#allocation2 + $0x5f8] sm:$0xf0] }
 0xd05   :  { %6378 = vmatpush.bf16.msrb.mxu1 %v8311_v17  ;;  %v7851_v17 = vor.u32 %v8703_v35, %v7848_v11  ;;  %v8659_v13 = vld [vmem:[#allocation2 + $0x32c] sm:$0xf]  ;;  %v7784_v35 = vld [vmem:[#allocation2 + $0x418] sm:$0xf0] }
 0xd06   :  { %6392 = vmatpush.bf16.msra.mxu2 %v7275_v31  ;;  %6354 = vmatmul.bf16.vlgmr.msra.gmra.mxu3 %v12369_v58  ;;  %v7579_v31 = vor.u32 %v8635_v21, %v7576_v55  ;;  %v7675_v11 = vor.u32 %v8659_v13, %v7672_v32  ;;  %v8747_v63 = vld [vmem:[#allocation2 + $0x5ec] sm:$0xf]  ;;  %v8264_v15 = vld [vmem:[#allocation2 + $0x7d8] sm:$0xf0] }
 0xd07   :  { %6398 = vmatpush.bf16.msrb.mxu3 %v7515_v2  ;;  %6367 = vmatmul.bf16.vlgmr.msra.gmra.mxu0 %v12371_v54  ;;  %v7835_v2 = vor.u32 %v8699_v61, %v7832_v28  ;;  %v8843_v40 = vld [vmem:[#allocation2 + $0x8ec] sm:$0xf]  ;;  %v7656_v61 = vld [vmem:[#allocation2 + $0x318] sm:$0xf0] }
 0xd08   :  { %6411 = vmatpush.bf16.msrb.mxu0 %v7643_v46  ;;  %v7432_v46 = vld [vmem:[#allocation2 + $0x158] sm:$0xf0] }
 0xd09   :  { %6379 = vmatpush.bf16.msrb.mxu1 %v8295_v39  ;;  %6393 = vmatmul.bf16.vlgmr.msra.gmra.mxu2 %v12357_v34  ;;  %v7467_v34 = vor.u32 %v8607_v9, %v7464_v33  ;;  %v12419_v19 = vpop.f32.mrf.mxu1  ;;  %v7707_v39 = vor.u32 %v8667_v8, %v7704_v42  ;;  %v12421_v38 = vpop.f32.mrf.mxu3  ;;  %v7435_v7 = vor.u32 %v8599_v20, %v7432_v46  ;;  %v7400_v9 = vld [vmem:[#allocation2 + $0x118] sm:$0xf0]  ;;  %v8743_v46 = vld [vmem:[#allocation2 + $0x5cc] sm:$0xf] }
 0xd0a   :  { %6437 = vmatpush.bf16.msrb.mxu2 %v7899_v3  ;;  %v7560_v3 = vld [vmem:[#allocation2 + $0x258] sm:$0xf0]  ;;  %v8027_v42 = vor.u32 %v8747_v63, %v8024_v57 }
 0xd0b   :  { %6399 = vmatpush.bf16.msrb.mxu3 %v7499_v6  ;;  %v7563_v26 = vor.u32 %v8631_v47, %v7560_v3  ;;  %v8008_v47 = vld [vmem:[#allocation2 + $0x5d8] sm:$0xf0]  ;;  %v8775_v3 = vld [vmem:[#allocation2 + $0x6cc] sm:$0xf] }
 0xd0c   :  { %6412 = vmatpush.bf16.msrb.mxu0 %v7627_v44  ;;  %6380 = vmatmul.bf16.vlgmr.msrb.gmra.mxu1 %v12373_v12  ;;  %v12423_v6 = vpop.f32.mrf.mxu2  ;;  %v7819_v44 = vor.u32 %v8695_v36, %v7816_v4  ;;  %v6162_v14 = vpop.f32.mrf.mxu0  ;;  %v8136_v36 = vld [vmem:[#allocation2 + $0x6d8] sm:$0xf0]  ;;  %v8839_v4 = vld [vmem:[#allocation2 + $0x8cc] sm:$0xf] }
 0xd0d   :  { %6424 = vmatpush.bf16.msra.mxu1 %v7771_v50  ;;  %v8663_v50 = vld [vmem:[#allocation2 + $0x34c] sm:$0xf]  ;;  %v8376_v14 = vld [vmem:[#allocation2 + $0x8b8] sm:$0xf0] }
 0xd0e   :  { %6438 = vmatpush.bf16.msrb.mxu2 %v7883_v30  ;;  %v8627_v30 = vld [vmem:[#allocation2 + $0x22c] sm:$0xf]  ;;  %v7691_v51 = vor.u32 %v8663_v50, %v7688_v18  ;;  %v8392_v50 = vld [vmem:[#allocation2 + $0x8d8] sm:$0xf0] }
 0xd0f   :  { %6400 = vmatpush.bf16.msrb.mxu3 %v7483_v59  ;;  %v7547_v59 = vor.u32 %v8627_v30, %v7544_v29  ;;  %v8395_v43 = vor.u32 %v8839_v4, %v8392_v50  ;;  %v8739_v30 = vld [vmem:[#allocation2 + $0x5ac] sm:$0xf]  ;;  %v7992_v29 = vld [vmem:[#allocation2 + $0x5b8] sm:$0xf0] }
 0xd10   :  { %6413 = vmatpush.bf16.msrb.mxu0 %v7611_v24  ;;  %v8591_v24 = vld [vmem:[#allocation2 + $0x10c] sm:$0xf]  ;;  %v7995_v32 = vor.u32 %v8739_v30, %v7992_v29  ;;  %v8232_v63 = vld [vmem:[#allocation2 + $0x798] sm:$0xf0] }
 0xd11   :  { %6425 = vmatpush.bf16.msra.mxu1 %v7755_v23  ;;  %v7800_v23 = vld [vmem:[#allocation2 + $0x438] sm:$0xf0]  ;;  %v6175_v33 = vpop.f32.mrf.mxu1  ;;  %v6149_v60 = vpop.f32.mrf.mxu3  ;;  %v7403_v21 = vor.u32 %v8591_v24, %v7400_v9  ;;  %v8791_v50 = vld [vmem:[#allocation2 + $0x74c] sm:$0xf] }
 0xd12   :  { %6439 = vmatpush.bf16.msrb.mxu2 %v7867_v10  ;;  %v8623_v10 = vld [vmem:[#allocation2 + $0x20c] sm:$0xf]  ;;  %v7803_v45 = vor.u32 %v8691_v48, %v7800_v23  ;;  %v8120_v48 = vld [vmem:[#allocation2 + $0x6b8] sm:$0xf0] }
 0xd13   :  { %6401 = vmatpush.bf16.msrb.mxu3 %v7467_v34  ;;  %v8779_v34 = vld [vmem:[#allocation2 + $0x6ec] sm:$0xf]  ;;  %v7531_v55 = vor.u32 %v8623_v10, %v7528_v27  ;;  %v7976_v33 = vld [vmem:[#allocation2 + $0x598] sm:$0xf0] }
 0xd14   :  { %6414 = vmatpush.bf16.msrb.mxu0 %v7595_v49  ;;  %v8152_v49 = vld [vmem:[#allocation2 + $0x6f8] sm:$0xf0]  ;;  %v6188_v28 = vpop.f32.mrf.mxu2  ;;  %v8835_v23 = vld [vmem:[#allocation2 + $0x8ac] sm:$0xf] }
 0xd15   :  { %6426 = vmatpush.bf16.msra.mxu1 %v7739_v1  ;;  %v8687_v1 = vld [vmem:[#allocation2 + $0x40c] sm:$0xf]  ;;  %v8155_v20 = vor.u32 %v8779_v34, %v8152_v49  ;;  %v8379_v9 = vor.u32 %v8835_v23, %v8376_v14  ;;  %v7960_v49 = vld [vmem:[#allocation2 + $0x578] sm:$0xf0] }
 0xd16   :  { %6440 = vmatpush.bf16.msrb.mxu2 %v7851_v17  ;;  %v8408_v17 = vld [vmem:[#allocation2 + $0x8f8] sm:$0xf0]  ;;  %v7787_v8 = vor.u32 %v8687_v1, %v7784_v35  ;;  %v8735_v10 = vld [vmem:[#allocation2 + $0x58c] sm:$0xf] }
 0xd17   :  { %6402 = vmatpush.bf16.msrb.mxu3 %v7451_v41  ;;  %v8811_v41 = vld [vmem:[#allocation2 + $0x7ec] sm:$0xf]  ;;  %v8360_v1 = vld [vmem:[#allocation2 + $0x898] sm:$0xf0]  ;;  %v7979_v35 = vor.u32 %v8735_v10, %v7976_v33 }
 0xd18   :  { %6415 = vmatpush.bf16.msrb.mxu0 %v7579_v31  ;;  %v8280_v31 = vld [vmem:[#allocation2 + $0x7f8] sm:$0xf0]  ;;  %v8831_v27 = vld [vmem:[#allocation2 + $0x88c] sm:$0xf] }
 0xd19   :  { %6427 = vmatpush.bf16.msra.mxu1 %v7723_v22  ;;  %v8655_v22 = vld [vmem:[#allocation2 + $0x30c] sm:$0xf]  ;;  %v8283_v18 = vor.u32 %v8811_v41, %v8280_v31  ;;  %v8363_v57 = vor.u32 %v8831_v27, %v8360_v1  ;;  %v8216_v28 = vld [vmem:[#allocation2 + $0x778] sm:$0xf0] }
 0xd1a   :  { %6441 = vmatpush.bf16.msrb.mxu2 %v7835_v2  ;;  %v8411_v2 = vor.u32 %v8843_v40, %v8408_v17  ;;  %v8731_v34 = vld [vmem:[#allocation2 + $0x56c] sm:$0xf]  ;;  %v8088_v17 = vld [vmem:[#allocation2 + $0x678] sm:$0xf0] }
 0xd1b   :  { %6403 = vmatpush.bf16.msrb.mxu3 %v7435_v7  ;;  %v8011_v7 = vor.u32 %v8743_v46, %v8008_v47  ;;  %v8763_v40 = vld [vmem:[#allocation2 + $0x66c] sm:$0xf]  ;;  %v7944_v31 = vld [vmem:[#allocation2 + $0x558] sm:$0xf0] }
 0xd1c   :  { %6416 = vmatpush.bf16.msrb.mxu0 %v7563_v26  ;;  %v8807_v26 = vld [vmem:[#allocation2 + $0x7cc] sm:$0xf]  ;;  %v8072_v46 = vld [vmem:[#allocation2 + $0x658] sm:$0xf0] }
 0xd1d   :  { %6428 = vmatpush.bf16.msra.mxu1 %v7707_v39  ;;  %v7659_v39 = vor.u32 %v8655_v22, %v7656_v61  ;;  %v8267_v13 = vor.u32 %v8807_v26, %v8264_v15  ;;  %v8827_v60 = vld [vmem:[#allocation2 + $0x86c] sm:$0xf]  ;;  %v8056_v29 = vld [vmem:[#allocation2 + $0x638] sm:$0xf0] }
 0xd1e   :  { %6442 = vmatpush.bf16.msrb.mxu2 %v7819_v44  ;;  %v8139_v44 = vor.u32 %v8775_v3, %v8136_v36  ;;  %v8795_v61 = vld [vmem:[#allocation2 + $0x76c] sm:$0xf]  ;;  %v8328_v3 = vld [vmem:[#allocation2 + $0x858] sm:$0xf0] }
 0xd1f   :  { %6404 = vmatpush.bf16.msrb.mxu3 %v7419_v16  ;;  %v8803_v16 = vld [vmem:[#allocation2 + $0x7ac] sm:$0xf]  ;;  %v7912_v33 = vld [vmem:[#allocation2 + $0x518] sm:$0xf0] }
 0xd20   :  { %6417 = vmatpush.bf16.msrb.mxu0 %v7547_v59  ;;  %v8248_v59 = vld [vmem:[#allocation2 + $0x7b8] sm:$0xf0]  ;;  %v8727_v41 = vld [vmem:[#allocation2 + $0x54c] sm:$0xf] }
 0xd21   :  { %6429 = vmatpush.bf16.msra.mxu1 %v7691_v51  ;;  %v8771_v51 = vld [vmem:[#allocation2 + $0x6ac] sm:$0xf]  ;;  %v7947_v4 = vor.u32 %v8727_v41, %v7944_v31  ;;  %v8040_v27 = vld [vmem:[#allocation2 + $0x618] sm:$0xf0] }
 0xd22   :  { %6443 = vmatpush.bf16.msrb.mxu2 %v7803_v45  ;;  %v8123_v24 = vor.u32 %v8771_v51, %v8120_v48  ;;  %v8104_v45 = vld [vmem:[#allocation2 + $0x698] sm:$0xf0]  ;;  %v8823_v47 = vld [vmem:[#allocation2 + $0x84c] sm:$0xf] }
 0xd23   :  { %6405 = vmatpush.bf16.msrb.mxu3 %v7403_v21  ;;  %v8344_v21 = vld [vmem:[#allocation2 + $0x878] sm:$0xf0]  ;;  %v8331_v15 = vor.u32 %v8823_v47, %v8328_v3  ;;  %v8755_v30 = vld [vmem:[#allocation2 + $0x62c] sm:$0xf] }
 0xd24   :  { %6418 = vmatpush.bf16.msrb.mxu0 %v7531_v55  ;;  %v12429_v22 = vpop.f32.mrf.mxu0  ;;  %v8819_v51 = vld [vmem:[#allocation2 + $0x82c] sm:$0xf]  ;;  %v8312_v48 = vld [vmem:[#allocation2 + $0x838] sm:$0xf0] }
 0xd25   :  { %6430 = vmatpush.bf16.msra.mxu1 %v7675_v11  ;;  %v8799_v11 = vld [vmem:[#allocation2 + $0x78c] sm:$0xf] }
 0xd26   :  { %6444 = vmatpush.bf16.msrb.mxu2 %v7787_v8  ;;  %6406 = vmatmul.bf16.vlgmr.msrb.gmra.mxu3 %v12359_v62  ;;  %v8767_v62 = vld [vmem:[#allocation2 + $0x68c] sm:$0xf]  ;;  %v8235_v55 = vor.u32 %v8799_v11, %v8232_v63  ;;  %v8091_v8 = vor.u32 %v8763_v40, %v8088_v17 }
 0xd27   :  { %6450 = vmatpush.bf16.msra.mxu3 %v8027_v42  ;;  %6419 = vmatmul.bf16.vlgmr.msrb.gmra.mxu0 %v12361_v52  ;;  %v8107_v52 = vor.u32 %v8767_v62, %v8104_v45  ;;  %v8347_v42 = vor.u32 %v8827_v60, %v8344_v21  ;;  %v8719_v10 = vld [vmem:[#allocation2 + $0x50c] sm:$0xf]  ;;  %v6148_v21 = vadd.f32 %v12421_v38, %v12411_v5 }
 0xd28   :  { %6463 = vmatpush.bf16.msra.mxu0 %v8155_v20  ;;  %v8759_v20 = vld [vmem:[#allocation2 + $0x64c] sm:$0xf]  ;;  %v7915_v63 = vor.u32 %v8719_v10, %v7912_v33 }
 0xd29   :  { %6431 = vmatpush.bf16.msra.mxu1 %v7659_v39  ;;  %6445 = vmatmul.bf16.vlgmr.msrb.gmra.mxu2 %v12365_v0  ;;  %v8251_v0 = vor.u32 %v8803_v16, %v8248_v59  ;;  %v8219_v39 = vor.u32 %v8795_v61, %v8216_v28  ;;  %v6199_v36 = vpop.f32.mrf.mxu3  ;;  %v8075_v26 = vor.u32 %v8759_v20, %v8072_v46  ;;  %v8787_v16 = vld [vmem:[#allocation2 + $0x72c] sm:$0xf]  ;;  %v8184_v59 = vld [vmem:[#allocation2 + $0x738] sm:$0xf0] }
 0xd2a   :  { %6489 = vmatpush.bf16.msra.mxu2 %v8411_v2  ;;  %v12431_v2 = vpop.f32.mrf.mxu1  ;;  %v8751_v62 = vld [vmem:[#allocation2 + $0x60c] sm:$0xf] }
 0xd2b   :  { %6451 = vmatpush.bf16.msra.mxu3 %v8011_v7  ;;  %v8815_v1 = vld [vmem:[#allocation2 + $0x80c] sm:$0xf] }
 0xd2c   :  { %6464 = vmatpush.bf16.msra.mxu0 %v8139_v44  ;;  %6432 = vmatmul.bf16.vlgmr.msra.gmra.mxu1 %v12363_v56  ;;  %v7963_v56 = vor.u32 %v8731_v34, %v7960_v49  ;;  %v12433_v7 = vpop.f32.mrf.mxu2  ;;  %v8723_v44 = vld [vmem:[#allocation2 + $0x52c] sm:$0xf]  ;;  %v6214_v14 = vpop.f32.mrf.mxu0  ;;  %v8043_v49 = vor.u32 %v8751_v62, %v8040_v27 }
 0xd2d   :  { %6476 = vmatpush.bf16.msrb.mxu1 %v8283_v18  ;;  %v8200_v18 = vld [vmem:[#allocation2 + $0x758] sm:$0xf0] }
 0xd2e   :  { %6490 = vmatpush.bf16.msra.mxu2 %v8395_v43  ;;  %v7928_v43 = vld [vmem:[#allocation2 + $0x538] sm:$0xf0]  ;;  %v8203_v23 = vor.u32 %v8791_v50, %v8200_v18 }
 0xd2f   :  { %6452 = vmatpush.bf16.msra.mxu3 %v7995_v32  ;;  %v7931_v32 = vor.u32 %v8723_v44, %v7928_v43 }
 0xd30   :  { %6465 = vmatpush.bf16.msra.mxu0 %v8123_v24  ;;  %v8059_v24 = vor.u32 %v8755_v30, %v8056_v29 }
 0xd31   :  { %6477 = vmatpush.bf16.msrb.mxu1 %v8267_v13  ;;  %v6161_v13 = vadd.f32 %v12417_v53, %v12400_v37  ;;  %v6201_v11 = vpop.f32.mrf.mxu3 }
 0xd32   :  { %6491 = vmatpush.bf16.msra.mxu2 %v8379_v9  ;;  %v8315_v9 = vor.u32 %v8819_v51, %v8312_v48  ;;  %v6227_v45 = vpop.f32.mrf.mxu1 }
 0xd33   :  { %6453 = vmatpush.bf16.msra.mxu3 %v7979_v35  ;;  %v8187_v35 = vor.u32 %v8787_v16, %v8184_v59  ;;  %v6174_v53 = vadd.f32 %v12419_v19, %v6161_v13  ;;  %v6502_v59 = vmin.f32 %v6148_v21, 0.0 }
 0xd34   :  { %6466 = vmatpush.bf16.msra.mxu0 %v8107_v52  ;;  %v8783_v52 = vld [vmem:[#allocation2 + $0x70c] sm:$0xf]  ;;  %v6240_v34 = vpop.f32.mrf.mxu2 }
 0xd35   :  { %6478 = vmatpush.bf16.msrb.mxu1 %v8251_v0  ;;  %v8296_v0 = vld [vmem:[#allocation2 + $0x818] sm:$0xf0]  ;;  %v6187_v60 = vadd.f32 %v12423_v6, %v6174_v53 }
 0xd36   :  { %6492 = vmatpush.bf16.msra.mxu2 %v8363_v57  ;;  %v8168_v57 = vld [vmem:[#allocation2 + $0x718] sm:$0xf0]  ;;  %v8299_v40 = vor.u32 %v8815_v1, %v8296_v0 }
 0xd37   :  { %6454 = vmatpush.bf16.msra.mxu3 %v7963_v56  ;;  %v8171_v17 = vor.u32 %v8783_v52, %v8168_v57  ;;  %v6200_v19 = vadd.f32 %v6199_v36, %v6187_v60 }
 0xd38   :  { %6467 = vmatpush.bf16.msra.mxu0 %v8091_v8 }
 0xd39   :  { %6479 = vmatpush.bf16.msrb.mxu1 %v8235_v55  ;;  %v6506_v55 = vand.u32 2147483647, %v6148_v21  ;;  %v6213_v56 = vadd.f32 %v12429_v22, %v6200_v19 }
 0xd3a   :  { %6493 = vmatpush.bf16.msra.mxu2 %v8347_v42 }
 0xd3b   :  { %6455 = vmatpush.bf16.msra.mxu3 %v7947_v4  ;;  %v6510_v6 = vsub.f32 0.0, %v6506_v55  ;;  %v6226_v61 = vadd.f32 %v12431_v2, %v6213_v56 }
 0xd3c   :  { %6468 = vmatpush.bf16.msra.mxu0 %v8075_v26 }
 0xd3d   :  { %6480 = vmatpush.bf16.msrb.mxu1 %v8219_v39  ;;  %v6514_v8 = vmul.f32 1.442695, %v6510_v6  ;;  %v6239_v5 = vadd.f32 %v12433_v7, %v6226_v61 }
 0xd3e   :  { %6494 = vmatpush.bf16.msra.mxu2 %v8331_v15 }
 0xd3f   :  { %6456 = vmatpush.bf16.msra.mxu3 %v7931_v32  ;;  %9351 = vpow2.f32 %v6514_v8 }
 0xd40   :  { %6469 = vmatpush.bf16.msra.mxu0 %v8059_v24 }
 0xd41   :  { %6481 = vmatpush.bf16.msrb.mxu1 %v8203_v23 }
 0xd42   :  { %6495 = vmatpush.bf16.msra.mxu2 %v8315_v9 }
 0xd43   :  { %6457 = vmatpush.bf16.msra.mxu3 %v7915_v63 }
 0xd44   :  { %6470 = vmatpush.bf16.msra.mxu0 %v8043_v49  ;;  %v6264_v28 = vpop.f32.mrf.mxu0 }
 0xd45   :  { %6482 = vmatpush.bf16.msrb.mxu1 %v8187_v35  ;;  %v9352_v22 = vpop.eup %9351 }
 0xd46   :  { %6496 = vmatpush.bf16.msra.mxu2 %v8299_v40  ;;  %6458 = vmatmul.bf16.vlgmr.msra.gmra.mxu3 %v12367_v25  ;;  %v6522_v36 = vadd.f32 1.0, %v9352_v22  ;;  %v6525_v50 = vmul.f32 -0.5, %v9352_v22  ;;  %v6528_v44 = vand.u32 2147483647, %v9352_v22 }
 0xd47   :  { %6471 = vmatmul.bf16.vlgmr.msra.gmra.mxu0 %v12369_v58 }
 0xd48   :  { %v6526_v15 = vadd.f32 1.0, %v6525_v50  ;;  %vm6529_vm6 = vcmp.lt.f32.partialorder %v6528_v44, 0.0004427343 }
 0xd49   :  { %6483 = vmatpush.bf16.msrb.mxu1 %v8171_v17  ;;  %6497 = vmatmul.bf16.vlgmr.msra.gmra.mxu2 %v12373_v12  ;;  %v6277_v42 = vpop.f32.mrf.mxu1  ;;  %v6251_v38 = vpop.f32.mrf.mxu3 }
 0xd4a   :  { %v6252_v25 = vadd.f32 %v6251_v38, %v6239_v5  ;;  %v6278_v58 = vadd.f32 %v6277_v42, %v12400_v37  ;;  %v6527_v51 = vmul.f32 %v9352_v22, %v6526_v15 }
 0xd4c   :  { %6484 = vmatmul.bf16.vlgmr.msrb.gmra.mxu1 %v12371_v54  ;;  %v6290_v41 = vpop.f32.mrf.mxu2  ;;  %v6265_v12 = vadd.f32 %v6264_v28, %v6252_v25  ;;  %v6266_v31 = vpop.f32.mrf.mxu0 }
 0xd4d   :  { %v6291_v20 = vadd.f32 %v6290_v41, %v6278_v58 }
 0xd4e   :  { %v6507_v54 = vand.u32 2147483647, %v6265_v12  ;;  %v6503_v24 = vmin.f32 %v6265_v12, 0.0 }
 0xd50   :  { %v6511_v47 = vsub.f32 0.0, %v6507_v54 }
 0xd51   :  { %v6279_v46 = vpop.f32.mrf.mxu1  ;;  %v6253_v3 = vpop.f32.mrf.mxu3 }
 0xd52   :  { %v6516_v2 = vmul.f32 1.442695, %v6511_v47 }
 0xd54   :  { %v6292_v39 = vpop.f32.mrf.mxu2  ;;  %9353 = vpow2.f32 %v6516_v2 }
 0xd55   :  { %9355 = vlog2.f32 %v6522_v36 }
 0xd5a   :  { %v9354_v4 = vpop.eup %9353 }
 0xd5b   :  { %v6531_v18 = vadd.f32 1.0, %v9354_v4  ;;  %v6534_v7 = vmul.f32 -0.5, %v9354_v4  ;;  %v9356_v26 = vpop.eup %9355  ;;  %v6537_v29 = vand.u32 2147483647, %v9354_v4 }
 0xd5c   :  { %v6524_v43 = vmul.f32 0.6931472, %v9356_v26 }
 0xd5d   :  { %9357 = vlog2.f32 %v6531_v18  ;;  %v6535_v30 = vadd.f32 1.0, %v6534_v7  ;;  %vm6538_vm0 = vcmp.lt.f32.partialorder %v6537_v29, 0.0004427343 }
 0xd5e   :  { %v6530_v14 = vsel %vm6529_vm6, %v6527_v51, %v6524_v43 }
 0xd5f   :  { %v6536_v32 = vmul.f32 %v9354_v4, %v6535_v30  ;;  %v6558_v33 = vsub.f32 %v6502_v59, %v6530_v14 }
 0xd61   :  { %v6562_v11 = vmax.f32 %v6558_v33, -5.2983174 }
 0xd63   :  { %v9358_v23 = vpop.eup %9357 }
 0xd64   :  { %v6316_v48 = vpop.f32.mrf.mxu0  ;;  %v6533_v13 = vmul.f32 0.6931472, %v9358_v23 }
 0xd66   :  { %v6539_v9 = vsel %vm6538_vm0, %v6536_v32, %v6533_v13 }
 0xd67   :  { %v6559_v62 = vsub.f32 %v6503_v24, %v6539_v9 }
 0xd69   :  { %v6329_v16 = vpop.f32.mrf.mxu1  ;;  %v6303_v10 = vpop.f32.mrf.mxu3  ;;  %v6563_v1 = vmax.f32 %v6559_v62, -5.2983174 }
 0xd6a   :  { %v6304_v45 = vadd.f32 %v6303_v10, %v6291_v20 }
 0xd6b   :  { %v6570_v53 = vrot.slane %v6563_v1, 4 }
 0xd6c   :  { %v6342_v27 = vpop.f32.mrf.mxu2  ;;  %v6317_v0 = vadd.f32 %v6316_v48, %v6304_v45  ;;  %v6318_v35 = vpop.f32.mrf.mxu0 }
 0xd6d   :  { %v6572_v57 = vsel %vm2758_vm5, %v6562_v11, %v6570_v53 }
 0xd6e   :  { %v6330_v63 = vadd.f32 %v6329_v16, %v6317_v0  ;;  %6576 = vst [vmem:[%s12476_s18] sm:$0xff] %v6572_v57 }
 0xd70   :  { %v6343_v34 = vadd.f32 %v6342_v27, %v6330_v63 }
 0xd71   :  { %v6331_v52 = vpop.f32.mrf.mxu1  ;;  %v6305_v49 = vpop.f32.mrf.mxu3 }
 0xd74   :  { %v6344_v40 = vpop.f32.mrf.mxu2 }
 0xd84   :  { %v6368_v17 = vpop.f32.mrf.mxu0 }
 0xd89   :  { %v6381_v60 = vpop.f32.mrf.mxu1  ;;  %v6355_v21 = vpop.f32.mrf.mxu3 }
 0xd8a   :  { %v6356_v19 = vadd.f32 %v6355_v21, %v6343_v34 }
 0xd8c   :  { %v6394_v55 = vpop.f32.mrf.mxu2  ;;  %v6369_v56 = vadd.f32 %v6368_v17, %v6356_v19  ;;  %v6370_v6 = vpop.f32.mrf.mxu0 }
 0xd8d   :  { %v6395_v54 = vadd.f32 %v6394_v55, %v12400_v37 }
 0xd8e   :  { %v6382_v61 = vadd.f32 %v6381_v60, %v6369_v56 }
 0xd90   :  { %v6508_v47 = vand.u32 2147483647, %v6382_v61  ;;  %v6504_v52 = vmin.f32 %v6382_v61, 0.0 }
 0xd91   :  { %v6383_v28 = vpop.f32.mrf.mxu1  ;;  %v6357_v8 = vpop.f32.mrf.mxu3 }
 0xd92   :  { %v6512_v39 = vsub.f32 0.0, %v6508_v47 }
 0xd94   :  { %v6396_v42 = vpop.f32.mrf.mxu2  ;;  %v6518_v18 = vmul.f32 1.442695, %v6512_v39 }
 0xd96   :  { %9359 = vpow2.f32 %v6518_v18 }
 0xd9c   :  { %v9360_v23 = vpop.eup %9359 }
 0xd9d   :  { %v6540_v32 = vadd.f32 1.0, %v9360_v23  ;;  %v6543_v59 = vmul.f32 -0.5, %v9360_v23  ;;  %v6546_v62 = vand.u32 2147483647, %v9360_v23 }
 0xd9f   :  { %v6544_v33 = vadd.f32 1.0, %v6543_v59  ;;  %vm6547_vm9 = vcmp.lt.f32.partialorder %v6546_v62, 0.0004427343 }
 0xda1   :  { %v6545_v0 = vmul.f32 %v9360_v23, %v6544_v33 }
 0xda4   :  { %v6420_v5 = vpop.f32.mrf.mxu0 }
 0xda9   :  { %v6433_v38 = vpop.f32.mrf.mxu1  ;;  %v6407_v25 = vpop.f32.mrf.mxu3 }
 0xdaa   :  { %v6408_v46 = vadd.f32 %v6407_v25, %v6395_v54 }
 0xdac   :  { %v6446_v41 = vpop.f32.mrf.mxu2  ;;  %v6422_v58 = vpop.f32.mrf.mxu0  ;;  %v6421_v22 = vadd.f32 %v6420_v5, %v6408_v46 }
 0xdae   :  { %v6434_v3 = vadd.f32 %v6433_v38, %v6421_v22 }
 0xdb0   :  { %v6447_v4 = vadd.f32 %v6446_v41, %v6434_v3 }
 0xdb1   :  { %v6435_v12 = vpop.f32.mrf.mxu1  ;;  %v6409_v31 = vpop.f32.mrf.mxu3 }
 0xdb4   :  { %v6448_v20 = vpop.f32.mrf.mxu2 }
 0xdc4   :  { %v6472_v2 = vpop.f32.mrf.mxu0 }
 0xdc9   :  { %v6485_v36 = vpop.f32.mrf.mxu1  ;;  %v6459_v50 = vpop.f32.mrf.mxu3 }
 0xdca   :  { %v6460_v7 = vadd.f32 %v6459_v50, %v6447_v4 }
 0xdcc   :  { %v6498_v26 = vpop.f32.mrf.mxu2  ;;  %v6473_v15 = vadd.f32 %v6472_v2, %v6460_v7  ;;  %v6474_v44 = vpop.f32.mrf.mxu0 }
 0xdce   :  { %v6486_v43 = vadd.f32 %v6485_v36, %v6473_v15 }
 0xdd0   :  { %v6499_v29 = vadd.f32 %v6498_v26, %v6486_v43 }
 0xdd1   :  { %v6487_v30 = vpop.f32.mrf.mxu1  ;;  %v6461_v51 = vpop.f32.mrf.mxu3 }
 0xdd2   :  { %v6509_v37 = vand.u32 2147483647, %v6499_v29  ;;  %v6505_v57 = vmin.f32 %v6499_v29, 0.0 }
 0xdd4   :  { %v6500_v48 = vpop.f32.mrf.mxu2  ;;  %v6513_v14 = vsub.f32 0.0, %v6509_v37 }
 0xdd6   :  { %v6520_v13 = vmul.f32 1.442695, %v6513_v14 }
 0xdd8   :  { %9361 = vpow2.f32 %v6520_v13 }
 0xdd9   :  { %9363 = vlog2.f32 %v6540_v32 }
 0xdde   :  { %v9362_v16 = vpop.eup %9361 }
 0xddf   :  { %v6549_v24 = vadd.f32 1.0, %v9362_v16  ;;  %v6552_v9 = vmul.f32 -0.5, %v9362_v16  ;;  %v9364_v10 = vpop.eup %9363  ;;  %v6555_v1 = vand.u32 2147483647, %v9362_v16 }
 0xde0   :  { %v6542_v45 = vmul.f32 0.6931472, %v9364_v10 }
 0xde1   :  { %9365 = vlog2.f32 %v6549_v24  ;;  %v6553_v27 = vadd.f32 1.0, %v6552_v9  ;;  %vm6556_vm10 = vcmp.lt.f32.partialorder %v6555_v1, 0.0004427343 }
 0xde2   :  { %v6548_v11 = vsel %vm6547_vm9, %v6545_v0, %v6542_v45 }
 0xde3   :  { %v6554_v63 = vmul.f32 %v9362_v16, %v6553_v27  ;;  %v6560_v49 = vsub.f32 %v6504_v52, %v6548_v11 }
 0xde5   :  { %v6564_v60 = vmax.f32 %v6560_v49, -5.2983174 }
 0xde7   :  { %v9366_v35 = vpop.eup %9365 }
 0xde8   :  { %v6551_v53 = vmul.f32 0.6931472, %v9366_v35 }
 0xdea   :  { %v6557_v34 = vsel %vm6556_vm10, %v6554_v63, %v6551_v53 }
 0xdeb   :  { %v6561_v40 = vsub.f32 %v6505_v57, %v6557_v34 }
 0xded   :  { %v6565_v17 = vmax.f32 %v6561_v40, -5.2983174 }
 0xdef   :  { %v6571_v21 = vrot.slane %v6565_v17, 4 }
 0xdf1   :  { %v6573_v19 = vsel %vm2758_vm5, %v6564_v60, %v6571_v21 }
 0xdf2   :  { %6577 = vst [vmem:[%s12476_s18 + $0x8] sm:$0xff] %v6573_v19 }
 0xdf3   :  { %6582 = vsyncmov [#allocation3] }
 0xdf6   :  { %s6583_s2 = vpop.sfrf %6582 }
 0xdf7   :  { %p8412_p0 = scmp.ne.s32.totalorder %s6583_s2, 0 }
 0xdf9   :  { %6587 = shalt.err (%p8412_p0)  }

</bundles_post_ra>
